<compile_context>
chip_gen: v5e
topology: v5e:2x2
jax: 0.10.0
libtpu: 0.0.40
codegen_flags: <defaults>
</compile_context>

<pallas_src>
import functools
import math

import jax
import jax.numpy as jnp
import numpy as np
from jax.experimental import pallas as pl
from jax.experimental.pallas import tpu as pltpu


# ==========================================================================
# Pallas kernels
# ==========================================================================
def _conv_lrelu_pool_kernel(*refs, stride, ksize, pool_k, pool_s,
                            Hout, Wout, Hp, Hbuild, cin_p, slope):
    """Fused Conv2d(k=ksize) + bias + LeakyReLU + AvgPool2d for ONE image.

    Refs (all VMEM):
      phase refs : `stride` refs of shape (Hpad, cin_p, Wq), bf16.  Phase p
                   holds the padded columns w with w % stride == p.
      w_ref      : (ksize, Cout, ksize*cin_p) bf16   (per-ki, kj-folded taps)
      b_ref      : (Cout, 1) f32
      pw_ref     : (Wout, Wp) bf16, 0/1 W-direction pooling matrix
      o_ref      : (Hp, Cout, Wp) bf16               (pooled output)
      colbuf_ref : scratch (Hbuild, ksize*cin_p, Wout) bf16 (kj-stacked rows)
      wp_ref     : scratch (Hout, Cout, Wp) f32      (W-pooled conv rows)
    """
    nphase = stride
    phase_refs = refs[:nphase]
    w_ref, b_ref, pw_ref, o_ref, colbuf_ref, wp_ref = refs[nphase:]

    cout = w_ref.shape[1]
    inv_pool = float(1.0 / (pool_k * pool_k))
    bias = jnp.broadcast_to(b_ref[...], (cout, Wout))     # hoisted broadcast

    # ---- Pass 1: build the kj-stacked column buffer, one padded row / iter.
    #      colbuf[h, kj*cin_p + c, w] = x_pad[h, c, stride*w + kj]
    def build_row(h, carry):
        rows = [phase_refs[p][h] for p in range(nphase)]          # (cin_p, Wq)
        for kj in range(ksize):                                   # static
            c0 = kj // stride
            src = rows[kj % stride][:, c0:c0 + Wout]
            colbuf_ref[h, kj * cin_p:(kj + 1) * cin_p, :] = src
        return carry

    jax.lax.fori_loop(0, Hbuild, build_row, 0)

    # ---- Pass 2: conv + bias + LeakyReLU + W-pool, one output row / iter.
    def conv_row(ho, carry):
        base = stride * ho
        acc = jnp.zeros((cout, Wout), jnp.float32)
        for ki in range(ksize):                                   # static
            acc = acc + jnp.dot(w_ref[ki], colbuf_ref[base + ki],
                                preferred_element_type=jnp.float32)
        acc = acc + bias
        acc = jnp.maximum(acc, slope * acc)                       # LeakyReLU
        # W-direction average-pool partial sums: (Cout,Wout)@(Wout,Wp) matmul.
        wp_ref[ho] = jnp.dot(acc.astype(pw_ref.dtype), pw_ref[...],
                             preferred_element_type=jnp.float32)
        return carry

    jax.lax.fori_loop(0, Hout, conv_row, 0)

    # ---- Pass 3: H-direction pooling: sum pool_k consecutive W-pooled rows.
    def pool_row(hp, carry):
        s = wp_ref[pool_s * hp]
        for i in range(1, pool_k):                                # static
            s = s + wp_ref[pool_s * hp + i]
        o_ref[hp] = (s * inv_pool).astype(o_ref.dtype)
        return carry

    jax.lax.fori_loop(0, Hp, pool_row, 0)


def _fc_head_kernel(x_ref, w1_ref, b1_ref, w2_ref, b2_ref, o_ref, acc_ref, *,
                    slope):
    """Fused Linear(3072->1024) + LeakyReLU + Linear(1024->1) + Sigmoid.

    Grid tiles the fc1 output columns; fc2 partial sums accumulate in a VMEM
    scratch so the 1024-wide hidden activation never leaves VMEM.
    """
    j = pl.program_id(0)

    @pl.when(j == 0)
    def _():
        acc_ref[...] = jnp.zeros_like(acc_ref)

    h = jnp.dot(x_ref[...], w1_ref[...], preferred_element_type=jnp.float32)
    h = h + b1_ref[...]                                  # (M, TN) f32
    h = jnp.maximum(h, slope * h)                        # LeakyReLU(0.2)
    # fc2 partial: elementwise by this tile's slice of the (1, N1) fc2 weight
    # row, reduced over lanes -> (M, 1).
    acc_ref[...] += jnp.sum(h * w2_ref[...], axis=-1, keepdims=True)

    @pl.when(j == pl.num_programs(0) - 1)
    def _():
        z = acc_ref[...] + b2_ref[...]
        o_ref[...] = (1.0 / (1.0 + jnp.exp(-z))).astype(o_ref.dtype)


# ==========================================================================
# Wrappers
# ==========================================================================
def conv_lrelu_pool(x_nhcw, w_taps, bias, *, ksize, pad, stride,
                    pool_k, pool_s):
    """x_nhcw: (N, H, Cin, W) bf16 -> (N, Hp, Cout, Wp) bf16."""
    N, H, c, W = x_nhcw.shape
    kh, cout, kwc = w_taps.shape
    assert kh == ksize
    cin_p = kwc // ksize                              # tile-aligned channel count
    assert cin_p >= c

    Hout = (H + 2 * pad - ksize) // stride + 1
    Wout = (W + 2 * pad - ksize) // stride + 1
    Hp = (Hout - pool_k) // pool_s + 1
    Wp = (Wout - pool_k) // pool_s + 1
    Hbuild = stride * (Hout - 1) + ksize

    # Zero-pad channels to the aligned count baked into the weights, then H/W;
    # split W into `stride` column phases so the kernel only ever takes
    # contiguous lane slices.  (Cheap: activations are a few MB.)
    wextra = (-(W + 2 * pad)) % stride
    xp = jnp.pad(x_nhcw,
                 ((0, 0), (pad, pad), (0, cin_p - c), (pad, pad + wextra)))
    phases = [xp[..., p::stride] for p in range(stride)]

    # Constant 0/1 W-pooling matrix (exact in bf16; 1/(k*k) applied in f32).
    pwm = np.zeros((Wout, Wp), np.float32)
    for w_i in range(Wp):
        pwm[pool_s * w_i: pool_s * w_i + pool_k, w_i] = 1.0
    pwm = jnp.asarray(pwm, jnp.bfloat16)

    kernel = functools.partial(
        _conv_lrelu_pool_kernel, stride=stride, ksize=ksize,
        pool_k=pool_k, pool_s=pool_s, Hout=Hout, Wout=Wout, Hp=Hp,
        Hbuild=Hbuild, cin_p=cin_p, slope=0.2)

    in_specs = [pl.BlockSpec((None,) + ph.shape[1:],
                             lambda n: (n, 0, 0, 0)) for ph in phases]
    in_specs += [
        pl.BlockSpec(w_taps.shape, lambda n: (0, 0, 0)),
        pl.BlockSpec(bias.shape, lambda n: (0, 0)),
        pl.BlockSpec(pwm.shape, lambda n: (0, 0)),
    ]

    return pl.pallas_call(
        kernel,
        out_shape=jax.ShapeDtypeStruct((N, Hp, cout, Wp), jnp.bfloat16),
        grid=(N,),
        in_specs=in_specs,
        out_specs=pl.BlockSpec((None, Hp, cout, Wp), lambda n: (n, 0, 0, 0)),
        scratch_shapes=[
            pltpu.VMEM((Hbuild, ksize * cin_p, Wout), jnp.bfloat16),
            pltpu.VMEM((Hout, cout, Wp), jnp.float32),
        ],
        compiler_params=pltpu.CompilerParams(
            dimension_semantics=("parallel",),
            vmem_limit_bytes=32 * 1024 * 1024,
        ),
    )(*phases, w_taps, bias, pwm)


def fc_head(feat, w1, b1, w2, b2, *, n_col_tiles=4):
    """feat (N,K) bf16, w1 (K,N1) bf16, b1 (1,N1) f32, w2 (1,N1) bf16,
    b2 (1,1) f32 -> (N,1) f32 sigmoid output."""
    N, K = feat.shape
    N1 = w1.shape[1]
    assert N1 % n_col_tiles == 0
    TN = N1 // n_col_tiles

    return pl.pallas_call(
        functools.partial(_fc_head_kernel, slope=0.2),
        out_shape=jax.ShapeDtypeStruct((N, 1), jnp.float32),
        grid=(n_col_tiles,),
        in_specs=[
            pl.BlockSpec((N, K), lambda j: (0, 0)),
            pl.BlockSpec((K, TN), lambda j: (0, j)),
            pl.BlockSpec((1, TN), lambda j: (0, j)),
            pl.BlockSpec((1, TN), lambda j: (0, j)),
            pl.BlockSpec((1, 1), lambda j: (0, 0)),
        ],
        out_specs=pl.BlockSpec((N, 1), lambda j: (0, 0)),
        scratch_shapes=[pltpu.VMEM((N, 1), jnp.float32)],
        compiler_params=pltpu.CompilerParams(
            dimension_semantics=("arbitrary",),
            vmem_limit_bytes=32 * 1024 * 1024,
        ),
    )(feat, w1, b1, w2, b2)


# ==========================================================================
# Model: parameters + forward
# ==========================================================================
def init_params(key):
    def conv_init(k, cout, cin, kh, kw):
        fan_in = cin * kh * kw
        bound = 1.0 / math.sqrt(fan_in)
        k1, k2 = jax.random.split(k)
        w = jax.random.uniform(k1, (cout, cin, kh, kw), jnp.float32, -bound, bound)
        b = jax.random.uniform(k2, (cout,), jnp.float32, -bound, bound)
        return w, b

    def linear_init(k, cout, cin):
        bound = 1.0 / math.sqrt(cin)
        k1, k2 = jax.random.split(k)
        w = jax.random.uniform(k1, (cout, cin), jnp.float32, -bound, bound)
        b = jax.random.uniform(k2, (cout,), jnp.float32, -bound, bound)
        return w, b

    ks = jax.random.split(key, 5)
    p = {}
    p["conv1_w"], p["conv1_b"] = conv_init(ks[0], 32, 3, 5, 5)
    p["conv2_w"], p["conv2_b"] = conv_init(ks[1], 32, 32, 5, 5)
    p["conv3_w"], p["conv3_b"] = conv_init(ks[2], 64, 32, 5, 5)
    p["fc1_w"], p["fc1_b"] = linear_init(ks[3], 1024, 64 * 8 * 6)
    p["fc2_w"], p["fc2_b"] = linear_init(ks[4], 1, 1024)
    return p


def prepare_params(params):
    """One-time conversion to kernel-friendly layouts / bf16 weights.

    Conv weights become (kh, Cout, kw*cin_p) with column index kj*cin_p + cin,
    matching the kj-stacked column buffer built inside the kernel; input
    channels are zero-padded up to a bf16 sublane tile (16).
    """
    prep = {}
    for name in ("conv1", "conv2", "conv3"):
        w = params[name + "_w"]                              # (Cout, Cin, kh, kw)
        cout, cin, kh, kw = w.shape
        cin_p = ((cin + 15) // 16) * 16                      # 3 -> 16, 32 -> 32
        if cin_p != cin:
            w = jnp.pad(w, ((0, 0), (0, cin_p - cin), (0, 0), (0, 0)))
        taps = jnp.transpose(w, (2, 0, 3, 1)).reshape(kh, cout, kw * cin_p)
        prep[name + "_w"] = taps.astype(jnp.bfloat16)
        prep[name + "_b"] = params[name + "_b"].reshape(cout, 1).astype(jnp.float32)
    prep["fc1_w"] = params["fc1_w"].T.astype(jnp.bfloat16)   # (3072, 1024)
    prep["fc1_b"] = params["fc1_b"].reshape(1, -1).astype(jnp.float32)
    prep["fc2_w"] = params["fc2_w"].astype(jnp.bfloat16)     # (1, 1024)
    prep["fc2_b"] = params["fc2_b"].reshape(1, 1).astype(jnp.float32)
    return prep


_CONV_CFGS = (
    dict(name="conv1", ksize=5, pad=2, stride=1, pool_k=2, pool_s=2),
    dict(name="conv2", ksize=5, pad=2, stride=1, pool_k=2, pool_s=2),
    dict(name="conv3", ksize=5, pad=2, stride=2, pool_k=5, pool_s=3),
)


def base_discriminator_forward(prep, x_nchw):
    # NCHW -> NHCW (C on sublanes, W on lanes), bf16 activations.
    x = jnp.transpose(x_nchw, (0, 2, 1, 3)).astype(jnp.bfloat16)

    for cfg in _CONV_CFGS:
        name = cfg["name"]
        x = conv_lrelu_pool(
            x, prep[name + "_w"], prep[name + "_b"],
            ksize=cfg["ksize"], pad=cfg["pad"], stride=cfg["stride"],
            pool_k=cfg["pool_k"], pool_s=cfg["pool_s"])

    # Flatten in PyTorch's (C, H, W) order: NHCW -> NCHW -> (N, C*H*W).
    n = x.shape[0]
    feat = jnp.transpose(x, (0, 2, 1, 3)).reshape(n, -1)     # (N, 3072) bf16
    assert feat.shape[1] == prep["fc1_w"].shape[0]

    out = fc_head(feat, prep["fc1_w"], prep["fc1_b"],
                  prep["fc2_w"], prep["fc2_b"])
    return jnp.squeeze(out, axis=-1)                         # (N,)


# ==========================================================================
# Pure-JAX reference (same bf16 rounding points) for a self-check
# ==========================================================================
def reference_forward(params, x_nchw):
    def lrelu(v):
        return jnp.where(v >= 0, v, 0.2 * v)

    cfgs = (("conv1", 1, 2, 2, 2), ("conv2", 1, 2, 2, 2), ("conv3", 2, 2, 5, 3))
    x = x_nchw.astype(jnp.bfloat16)
    for name, stride, pad, pk, ps in cfgs:
        w = params[name + "_w"].astype(jnp.bfloat16)
        b = params[name + "_b"].astype(jnp.float32)
        y = jax.lax.conv_general_dilated(
            x, w, window_strides=(stride, stride),
            padding=((pad, pad), (pad, pad)),
            dimension_numbers=("NCHW", "OIHW", "NCHW"),
            preferred_element_type=jnp.float32)
        y = lrelu(y + b.reshape(1, -1, 1, 1))
        y = y.astype(jnp.bfloat16).astype(jnp.float32)
        y = jax.lax.reduce_window(y, 0.0, jax.lax.add,
                                  (1, 1, pk, pk), (1, 1, ps, ps), "VALID")
        x = (y / (pk * pk)).astype(jnp.bfloat16)

    feat = x.reshape(x.shape[0], -1)
    h = jnp.dot(feat, params["fc1_w"].T.astype(jnp.bfloat16),
                preferred_element_type=jnp.float32)
    h = lrelu(h + params["fc1_b"].astype(jnp.float32))
    z = jnp.sum(h * params["fc2_w"].astype(jnp.bfloat16), axis=-1)
    z = z + params["fc2_b"].astype(jnp.float32)
    return jax.nn.sigmoid(z)


if __name__ == "__main__":
    key = jax.random.PRNGKey(0)
    kp, kx = jax.random.split(key)
    params = init_params(kp)
    prep = prepare_params(params)

    # The fc layer hard-codes 64*8*6 features, which implies a 218x178 input
    # (CelebA-sized); batch kept small.
    x = jax.random.normal(kx, (2, 3, 218, 178), dtype=jnp.float32)

    fwd = jax.jit(base_discriminator_forward)
    y = jax.block_until_ready(fwd(prep, x))

    assert y.shape == (2,), y.shape
    assert bool(jnp.all(jnp.isfinite(y)))
    assert bool(jnp.all((y >= 0.0) & (y <= 1.0)))

    # Cross-check against an XLA reference with identical bf16 rounding
    # points (only accumulation order differs -> loose tolerance).
    y_ref = jax.block_until_ready(jax.jit(reference_forward)(params, x))
    assert float(jnp.max(jnp.abs(y - y_ref))) < 5e-2, (y, y_ref)

    print("KERNEL_OK")
</pallas_src>

<mosaic_0001>
module attributes {stable_mosaic.version = 11 : i64} {
  func.func @_conv_lrelu_pool_kernel(%arg0: i32, %arg1: memref<1x222x16x182xbf16, #tpu.memory_space<vmem>>, %arg2: memref<5x32x80xbf16, #tpu.memory_space<vmem>>, %arg3: memref<32x1xf32, #tpu.memory_space<vmem>>, %arg4: memref<178x89xbf16, #tpu.memory_space<vmem>>, %arg5: memref<1x109x32x89xbf16, #tpu.memory_space<vmem>>, %arg6: memref<222x80x178xbf16, #tpu.memory_space<vmem>>, %arg7: memref<218x32x89xf32, #tpu.memory_space<vmem>>) attributes {dimension_semantics = [#tpu.dimension_semantics<parallel>], iteration_bounds = array<i64: 2>, scalar_prefetch = 0 : i64, scratch_operands = 2 : i64, tpu.core_type = #tpu.core_type<tc>, window_params = [{transform_indices = @transform_0, window_bounds = array<i64: 1, 222, 16, 182>}, {pipeline_mode = #tpu.pipeline_mode<synchronous>, transform_indices = @transform_1, window_bounds = array<i64: 5, 32, 80>}, {pipeline_mode = #tpu.pipeline_mode<synchronous>, transform_indices = @transform_2, window_bounds = array<i64: 32, 1>}, {pipeline_mode = #tpu.pipeline_mode<synchronous>, transform_indices = @transform_3, window_bounds = array<i64: 178, 89>}, {transform_indices = @transform_4, window_bounds = array<i64: 1, 109, 32, 89>}]} {
    %c0 = arith.constant 0 : index
    %c0_0 = arith.constant 0 : index
    %0 = vector.load %arg3[%c0, %c0_0] : memref<32x1xf32, #tpu.memory_space<vmem>>, vector<32x1xf32>
    %1 = vector.shape_cast %0 : vector<32x1xf32> to vector<32x1xf32>
    %2 = vector.broadcast %1 : vector<32x1xf32> to vector<32x178xf32>
    %c0_i32 = arith.constant 0 : i32
    %c222_i32 = arith.constant 222 : i32
    %3 = arith.addi %c0_i32, %c222_i32 : i32
    %c1_i32 = arith.constant 1 : i32
    scf.for %arg8 = %c0_i32 to %3 step %c1_i32  : i32 {
      %c0_8 = arith.constant 0 : index
      %6 = arith.index_cast %arg8 : i32 to index
      %c0_9 = arith.constant 0 : index
      %c0_10 = arith.constant 0 : index
      %7 = vector.load %arg1[%c0_8, %6, %c0_9, %c0_10] : memref<1x222x16x182xbf16, #tpu.memory_space<vmem>>, vector<1x1x16x182xbf16>
      %8 = vector.shape_cast %7 : vector<1x1x16x182xbf16> to vector<16x182xbf16>
      %9 = vector.extract_strided_slice %8 {offsets = [0, 0], sizes = [16, 178], strides = [1, 1]} : vector<16x182xbf16> to vector<16x178xbf16>
      %10 = arith.index_cast %arg8 : i32 to index
      %c0_11 = arith.constant 0 : index
      %c0_12 = arith.constant 0 : index
      %11 = vector.load %arg6[%10, %c0_11, %c0_12] : memref<222x80x178xbf16, #tpu.memory_space<vmem>>, vector<1x16x178xbf16>
      %12 = vector.shape_cast %11 : vector<1x16x178xbf16> to vector<16x178xbf16>
      %13 = vector.shape_cast %9 : vector<16x178xbf16> to vector<1x16x178xbf16>
      tpu.vector_store %arg6[%10, %c0_11, %c0_12], %13 {strides = array<i32>} : memref<222x80x178xbf16, #tpu.memory_space<vmem>>, vector<1x16x178xbf16>,
      %14 = vector.extract_strided_slice %8 {offsets = [0, 1], sizes = [16, 178], strides = [1, 1]} : vector<16x182xbf16> to vector<16x178xbf16>
      %15 = arith.index_cast %arg8 : i32 to index
      %c16 = arith.constant 16 : index
      %c0_13 = arith.constant 0 : index
      %16 = vector.load %arg6[%15, %c16, %c0_13] : memref<222x80x178xbf16, #tpu.memory_space<vmem>>, vector<1x16x178xbf16>
      %17 = vector.shape_cast %16 : vector<1x16x178xbf16> to vector<16x178xbf16>
      %18 = vector.shape_cast %14 : vector<16x178xbf16> to vector<1x16x178xbf16>
      tpu.vector_store %arg6[%15, %c16, %c0_13], %18 {strides = array<i32>} : memref<222x80x178xbf16, #tpu.memory_space<vmem>>, vector<1x16x178xbf16>,
      %19 = vector.extract_strided_slice %8 {offsets = [0, 2], sizes = [16, 178], strides = [1, 1]} : vector<16x182xbf16> to vector<16x178xbf16>
      %20 = arith.index_cast %arg8 : i32 to index
      %c32 = arith.constant 32 : index
      %c0_14 = arith.constant 0 : index
      %21 = vector.load %arg6[%20, %c32, %c0_14] : memref<222x80x178xbf16, #tpu.memory_space<vmem>>, vector<1x16x178xbf16>
      %22 = vector.shape_cast %21 : vector<1x16x178xbf16> to vector<16x178xbf16>
      %23 = vector.shape_cast %19 : vector<16x178xbf16> to vector<1x16x178xbf16>
      tpu.vector_store %arg6[%20, %c32, %c0_14], %23 {strides = array<i32>} : memref<222x80x178xbf16, #tpu.memory_space<vmem>>, vector<1x16x178xbf16>,
      %24 = vector.extract_strided_slice %8 {offsets = [0, 3], sizes = [16, 178], strides = [1, 1]} : vector<16x182xbf16> to vector<16x178xbf16>
      %25 = arith.index_cast %arg8 : i32 to index
      %c48 = arith.constant 48 : index
      %c0_15 = arith.constant 0 : index
      %26 = vector.load %arg6[%25, %c48, %c0_15] : memref<222x80x178xbf16, #tpu.memory_space<vmem>>, vector<1x16x178xbf16>
      %27 = vector.shape_cast %26 : vector<1x16x178xbf16> to vector<16x178xbf16>
      %28 = vector.shape_cast %24 : vector<16x178xbf16> to vector<1x16x178xbf16>
      tpu.vector_store %arg6[%25, %c48, %c0_15], %28 {strides = array<i32>} : memref<222x80x178xbf16, #tpu.memory_space<vmem>>, vector<1x16x178xbf16>,
      %29 = vector.extract_strided_slice %8 {offsets = [0, 4], sizes = [16, 178], strides = [1, 1]} : vector<16x182xbf16> to vector<16x178xbf16>
      %30 = arith.index_cast %arg8 : i32 to index
      %c64 = arith.constant 64 : index
      %c0_16 = arith.constant 0 : index
      %31 = vector.load %arg6[%30, %c64, %c0_16] : memref<222x80x178xbf16, #tpu.memory_space<vmem>>, vector<1x16x178xbf16>
      %32 = vector.shape_cast %31 : vector<1x16x178xbf16> to vector<16x178xbf16>
      %33 = vector.shape_cast %29 : vector<16x178xbf16> to vector<1x16x178xbf16>
      tpu.vector_store %arg6[%30, %c64, %c0_16], %33 {strides = array<i32>} : memref<222x80x178xbf16, #tpu.memory_space<vmem>>, vector<1x16x178xbf16>,
    }
    %c222_i32_1 = arith.constant 222 : i32
    %c0_i32_2 = arith.constant 0 : i32
    %c218_i32 = arith.constant 218 : i32
    %4 = arith.addi %c0_i32_2, %c218_i32 : i32
    %c1_i32_3 = arith.constant 1 : i32
    scf.for %arg8 = %c0_i32_2 to %4 step %c1_i32_3  : i32 {
      %c1_i32_8 = arith.constant 1 : i32
      %6 = arith.muli %c1_i32_8, %arg8 : i32
      %cst = arith.constant 0.000000e+00 : f32
      %7 = vector.broadcast %cst : f32 to vector<32x178xf32>
      %c0_9 = arith.constant 0 : index
      %c0_10 = arith.constant 0 : index
      %c0_11 = arith.constant 0 : index
      %8 = vector.load %arg2[%c0_9, %c0_10, %c0_11] : memref<5x32x80xbf16, #tpu.memory_space<vmem>>, vector<1x32x80xbf16>
      %9 = vector.shape_cast %8 : vector<1x32x80xbf16> to vector<32x80xbf16>
      %c0_i32_12 = arith.constant 0 : i32
      %10 = arith.addi %6, %c0_i32_12 : i32
      %11 = arith.index_cast %10 : i32 to index
      %c0_13 = arith.constant 0 : index
      %c0_14 = arith.constant 0 : index
      %12 = vector.load %arg6[%11, %c0_13, %c0_14] : memref<222x80x178xbf16, #tpu.memory_space<vmem>>, vector<1x80x178xbf16>
      %13 = vector.shape_cast %12 : vector<1x80x178xbf16> to vector<80x178xbf16>
      %cst_15 = arith.constant dense<0.000000e+00> : vector<32x178xf32>
      %14 = tpu.matmul %9, %13, %cst_15 {dimension_numbers = #tpu.dot_dimension_numbers<[1], [0], [0], [1], [0, 0, 1, 1], [], []>} : vector<32x80xbf16>, vector<80x178xbf16>, vector<32x178xf32> -> vector<32x178xf32>
      %15 = arith.addf %7, %14 : vector<32x178xf32>
      %c1 = arith.constant 1 : index
      %c0_16 = arith.constant 0 : index
      %c0_17 = arith.constant 0 : index
      %16 = vector.load %arg2[%c1, %c0_16, %c0_17] : memref<5x32x80xbf16, #tpu.memory_space<vmem>>, vector<1x32x80xbf16>
      %17 = vector.shape_cast %16 : vector<1x32x80xbf16> to vector<32x80xbf16>
      %c1_i32_18 = arith.constant 1 : i32
      %18 = arith.addi %6, %c1_i32_18 : i32
      %19 = arith.index_cast %18 : i32 to index
      %c0_19 = arith.constant 0 : index
      %c0_20 = arith.constant 0 : index
      %20 = vector.load %arg6[%19, %c0_19, %c0_20] : memref<222x80x178xbf16, #tpu.memory_space<vmem>>, vector<1x80x178xbf16>
      %21 = vector.shape_cast %20 : vector<1x80x178xbf16> to vector<80x178xbf16>
      %cst_21 = arith.constant dense<0.000000e+00> : vector<32x178xf32>
      %22 = tpu.matmul %17, %21, %cst_21 {dimension_numbers = #tpu.dot_dimension_numbers<[1], [0], [0], [1], [0, 0, 1, 1], [], []>} : vector<32x80xbf16>, vector<80x178xbf16>, vector<32x178xf32> -> vector<32x178xf32>
      %23 = arith.addf %15, %22 : vector<32x178xf32>
      %c2 = arith.constant 2 : index
      %c0_22 = arith.constant 0 : index
      %c0_23 = arith.constant 0 : index
      %24 = vector.load %arg2[%c2, %c0_22, %c0_23] : memref<5x32x80xbf16, #tpu.memory_space<vmem>>, vector<1x32x80xbf16>
      %25 = vector.shape_cast %24 : vector<1x32x80xbf16> to vector<32x80xbf16>
      %c2_i32 = arith.constant 2 : i32
      %26 = arith.addi %6, %c2_i32 : i32
      %27 = arith.index_cast %26 : i32 to index
      %c0_24 = arith.constant 0 : index
      %c0_25 = arith.constant 0 : index
      %28 = vector.load %arg6[%27, %c0_24, %c0_25] : memref<222x80x178xbf16, #tpu.memory_space<vmem>>, vector<1x80x178xbf16>
      %29 = vector.shape_cast %28 : vector<1x80x178xbf16> to vector<80x178xbf16>
      %cst_26 = arith.constant dense<0.000000e+00> : vector<32x178xf32>
      %30 = tpu.matmul %25, %29, %cst_26 {dimension_numbers = #tpu.dot_dimension_numbers<[1], [0], [0], [1], [0, 0, 1, 1], [], []>} : vector<32x80xbf16>, vector<80x178xbf16>, vector<32x178xf32> -> vector<32x178xf32>
      %31 = arith.addf %23, %30 : vector<32x178xf32>
      %c3 = arith.constant 3 : index
      %c0_27 = arith.constant 0 : index
      %c0_28 = arith.constant 0 : index
      %32 = vector.load %arg2[%c3, %c0_27, %c0_28] : memref<5x32x80xbf16, #tpu.memory_space<vmem>>, vector<1x32x80xbf16>
      %33 = vector.shape_cast %32 : vector<1x32x80xbf16> to vector<32x80xbf16>
      %c3_i32 = arith.constant 3 : i32
      %34 = arith.addi %6, %c3_i32 : i32
      %35 = arith.index_cast %34 : i32 to index
      %c0_29 = arith.constant 0 : index
      %c0_30 = arith.constant 0 : index
      %36 = vector.load %arg6[%35, %c0_29, %c0_30] : memref<222x80x178xbf16, #tpu.memory_space<vmem>>, vector<1x80x178xbf16>
      %37 = vector.shape_cast %36 : vector<1x80x178xbf16> to vector<80x178xbf16>
      %cst_31 = arith.constant dense<0.000000e+00> : vector<32x178xf32>
      %38 = tpu.matmul %33, %37, %cst_31 {dimension_numbers = #tpu.dot_dimension_numbers<[1], [0], [0], [1], [0, 0, 1, 1], [], []>} : vector<32x80xbf16>, vector<80x178xbf16>, vector<32x178xf32> -> vector<32x178xf32>
      %39 = arith.addf %31, %38 : vector<32x178xf32>
      %c4 = arith.constant 4 : index
      %c0_32 = arith.constant 0 : index
      %c0_33 = arith.constant 0 : index
      %40 = vector.load %arg2[%c4, %c0_32, %c0_33] : memref<5x32x80xbf16, #tpu.memory_space<vmem>>, vector<1x32x80xbf16>
      %41 = vector.shape_cast %40 : vector<1x32x80xbf16> to vector<32x80xbf16>
      %c4_i32 = arith.constant 4 : i32
      %42 = arith.addi %6, %c4_i32 : i32
      %43 = arith.index_cast %42 : i32 to index
      %c0_34 = arith.constant 0 : index
      %c0_35 = arith.constant 0 : index
      %44 = vector.load %arg6[%43, %c0_34, %c0_35] : memref<222x80x178xbf16, #tpu.memory_space<vmem>>, vector<1x80x178xbf16>
      %45 = vector.shape_cast %44 : vector<1x80x178xbf16> to vector<80x178xbf16>
      %cst_36 = arith.constant dense<0.000000e+00> : vector<32x178xf32>
      %46 = tpu.matmul %41, %45, %cst_36 {dimension_numbers = #tpu.dot_dimension_numbers<[1], [0], [0], [1], [0, 0, 1, 1], [], []>} : vector<32x80xbf16>, vector<80x178xbf16>, vector<32x178xf32> -> vector<32x178xf32>
      %47 = arith.addf %39, %46 : vector<32x178xf32>
      %48 = arith.addf %47, %2 : vector<32x178xf32>
      %cst_37 = arith.constant 2.000000e-01 : f32
      %49 = vector.broadcast %cst_37 : f32 to vector<32x178xf32>
      %50 = arith.mulf %49, %48 : vector<32x178xf32>
      %51 = arith.maximumf %48, %50 : vector<32x178xf32>
      %52 = arith.truncf %51 : vector<32x178xf32> to vector<32x178xbf16>
      %c0_38 = arith.constant 0 : index
      %c0_39 = arith.constant 0 : index
      %53 = vector.load %arg4[%c0_38, %c0_39] : memref<178x89xbf16, #tpu.memory_space<vmem>>, vector<178x89xbf16>
      %cst_40 = arith.constant dense<0.000000e+00> : vector<32x89xf32>
      %54 = tpu.matmul %52, %53, %cst_40 {dimension_numbers = #tpu.dot_dimension_numbers<[1], [0], [0], [1], [0, 0, 1, 1], [], []>} : vector<32x178xbf16>, vector<178x89xbf16>, vector<32x89xf32> -> vector<32x89xf32>
      %55 = arith.index_cast %arg8 : i32 to index
      %c0_41 = arith.constant 0 : index
      %c0_42 = arith.constant 0 : index
      %56 = vector.load %arg7[%55, %c0_41, %c0_42] : memref<218x32x89xf32, #tpu.memory_space<vmem>>, vector<1x32x89xf32>
      %57 = vector.shape_cast %56 : vector<1x32x89xf32> to vector<32x89xf32>
      %58 = vector.shape_cast %54 : vector<32x89xf32> to vector<1x32x89xf32>
      tpu.vector_store %arg7[%55, %c0_41, %c0_42], %58 {strides = array<i32>} : memref<218x32x89xf32, #tpu.memory_space<vmem>>, vector<1x32x89xf32>,
    }
    %c218_i32_4 = arith.constant 218 : i32
    %c0_i32_5 = arith.constant 0 : i32
    %c109_i32 = arith.constant 109 : i32
    %5 = arith.addi %c0_i32_5, %c109_i32 : i32
    %c1_i32_6 = arith.constant 1 : i32
    scf.for %arg8 = %c0_i32_5 to %5 step %c1_i32_6  : i32 {
      %c2_i32 = arith.constant 2 : i32
      %6 = arith.muli %c2_i32, %arg8 : i32
      %7 = arith.index_cast %6 : i32 to index
      %c0_8 = arith.constant 0 : index
      %c0_9 = arith.constant 0 : index
      %8 = vector.load %arg7[%7, %c0_8, %c0_9] : memref<218x32x89xf32, #tpu.memory_space<vmem>>, vector<1x32x89xf32>
      %9 = vector.shape_cast %8 : vector<1x32x89xf32> to vector<32x89xf32>
      %c2_i32_10 = arith.constant 2 : i32
      %10 = arith.muli %c2_i32_10, %arg8 : i32
      %c1_i32_11 = arith.constant 1 : i32
      %11 = arith.addi %10, %c1_i32_11 : i32
      %12 = arith.index_cast %11 : i32 to index
      %c0_12 = arith.constant 0 : index
      %c0_13 = arith.constant 0 : index
      %13 = vector.load %arg7[%12, %c0_12, %c0_13] : memref<218x32x89xf32, #tpu.memory_space<vmem>>, vector<1x32x89xf32>
      %14 = vector.shape_cast %13 : vector<1x32x89xf32> to vector<32x89xf32>
      %15 = arith.addf %9, %14 : vector<32x89xf32>
      %cst = arith.constant 2.500000e-01 : f32
      %16 = vector.broadcast %cst : f32 to vector<32x89xf32>
      %17 = arith.mulf %15, %16 : vector<32x89xf32>
      %18 = arith.truncf %17 : vector<32x89xf32> to vector<32x89xbf16>
      %c0_14 = arith.constant 0 : index
      %19 = arith.index_cast %arg8 : i32 to index
      %c0_15 = arith.constant 0 : index
      %c0_16 = arith.constant 0 : index
      %20 = vector.load %arg5[%c0_14, %19, %c0_15, %c0_16] : memref<1x109x32x89xbf16, #tpu.memory_space<vmem>>, vector<1x1x32x89xbf16>
      %21 = vector.shape_cast %20 : vector<1x1x32x89xbf16> to vector<32x89xbf16>
      %22 = vector.shape_cast %18 : vector<32x89xbf16> to vector<1x1x32x89xbf16>
      tpu.vector_store %arg5[%c0_14, %19, %c0_15, %c0_16], %22 {strides = array<i32>} : memref<1x109x32x89xbf16, #tpu.memory_space<vmem>>, vector<1x1x32x89xbf16>,
    }
    %c109_i32_7 = arith.constant 109 : i32
    return
  }
  func.func @transform_0(%arg0: i32) -> (i32, i32, i32, i32) {
    %c0_i32 = arith.constant 0 : i32
    %c0_i32_0 = arith.constant 0 : i32
    %c0_i32_1 = arith.constant 0 : i32
    %c0_i32_2 = arith.constant 0 : i32
    return %arg0, %c0_i32, %c0_i32_0, %c0_i32_1 : i32, i32, i32, i32
  }
  func.func @transform_1(%arg0: i32) -> (i32, i32, i32) {
    %c0_i32 = arith.constant 0 : i32
    %c0_i32_0 = arith.constant 0 : i32
    %c0_i32_1 = arith.constant 0 : i32
    %c0_i32_2 = arith.constant 0 : i32
    return %c0_i32, %c0_i32_0, %c0_i32_1 : i32, i32, i32
  }
  func.func @transform_2(%arg0: i32) -> (i32, i32) {
    %c0_i32 = arith.constant 0 : i32
    %c0_i32_0 = arith.constant 0 : i32
    %c0_i32_1 = arith.constant 0 : i32
    return %c0_i32, %c0_i32_0 : i32, i32
  }
  func.func @transform_3(%arg0: i32) -> (i32, i32) {
    %c0_i32 = arith.constant 0 : i32
    %c0_i32_0 = arith.constant 0 : i32
    %c0_i32_1 = arith.constant 0 : i32
    return %c0_i32, %c0_i32_0 : i32, i32
  }
  func.func @transform_4(%arg0: i32) -> (i32, i32, i32, i32) {
    %c0_i32 = arith.constant 0 : i32
    %c0_i32_0 = arith.constant 0 : i32
    %c0_i32_1 = arith.constant 0 : i32
    %c0_i32_2 = arith.constant 0 : i32
    return %arg0, %c0_i32, %c0_i32_0, %c0_i32_1 : i32, i32, i32, i32
  }
}

module attributes {stable_mosaic.version = 11 : i64} {
  func.func @_conv_lrelu_pool_kernel(%arg0: i32, %arg1: memref<1x113x32x93xbf16, #tpu.memory_space<vmem>>, %arg2: memref<5x32x160xbf16, #tpu.memory_space<vmem>>, %arg3: memref<32x1xf32, #tpu.memory_space<vmem>>, %arg4: memref<89x44xbf16, #tpu.memory_space<vmem>>, %arg5: memref<1x54x32x44xbf16, #tpu.memory_space<vmem>>, %arg6: memref<113x160x89xbf16, #tpu.memory_space<vmem>>, %arg7: memref<109x32x44xf32, #tpu.memory_space<vmem>>) attributes {dimension_semantics = [#tpu.dimension_semantics<parallel>], iteration_bounds = array<i64: 2>, scalar_prefetch = 0 : i64, scratch_operands = 2 : i64, tpu.core_type = #tpu.core_type<tc>, window_params = [{transform_indices = @transform_0, window_bounds = array<i64: 1, 113, 32, 93>}, {pipeline_mode = #tpu.pipeline_mode<synchronous>, transform_indices = @transform_1, window_bounds = array<i64: 5, 32, 160>}, {pipeline_mode = #tpu.pipeline_mode<synchronous>, transform_indices = @transform_2, window_bounds = array<i64: 32, 1>}, {pipeline_mode = #tpu.pipeline_mode<synchronous>, transform_indices = @transform_3, window_bounds = array<i64: 89, 44>}, {transform_indices = @transform_4, window_bounds = array<i64: 1, 54, 32, 44>}]} {
    %c0 = arith.constant 0 : index
    %c0_0 = arith.constant 0 : index
    %0 = vector.load %arg3[%c0, %c0_0] : memref<32x1xf32, #tpu.memory_space<vmem>>, vector<32x1xf32>
    %1 = vector.shape_cast %0 : vector<32x1xf32> to vector<32x1xf32>
    %2 = vector.broadcast %1 : vector<32x1xf32> to vector<32x89xf32>
    %c0_i32 = arith.constant 0 : i32
    %c113_i32 = arith.constant 113 : i32
    %3 = arith.addi %c0_i32, %c113_i32 : i32
    %c1_i32 = arith.constant 1 : i32
    scf.for %arg8 = %c0_i32 to %3 step %c1_i32  : i32 {
      %c0_8 = arith.constant 0 : index
      %6 = arith.index_cast %arg8 : i32 to index
      %c0_9 = arith.constant 0 : index
      %c0_10 = arith.constant 0 : index
      %7 = vector.load %arg1[%c0_8, %6, %c0_9, %c0_10] : memref<1x113x32x93xbf16, #tpu.memory_space<vmem>>, vector<1x1x32x93xbf16>
      %8 = vector.shape_cast %7 : vector<1x1x32x93xbf16> to vector<32x93xbf16>
      %9 = vector.extract_strided_slice %8 {offsets = [0, 0], sizes = [32, 89], strides = [1, 1]} : vector<32x93xbf16> to vector<32x89xbf16>
      %10 = arith.index_cast %arg8 : i32 to index
      %c0_11 = arith.constant 0 : index
      %c0_12 = arith.constant 0 : index
      %11 = vector.load %arg6[%10, %c0_11, %c0_12] : memref<113x160x89xbf16, #tpu.memory_space<vmem>>, vector<1x32x89xbf16>
      %12 = vector.shape_cast %11 : vector<1x32x89xbf16> to vector<32x89xbf16>
      %13 = vector.shape_cast %9 : vector<32x89xbf16> to vector<1x32x89xbf16>
      tpu.vector_store %arg6[%10, %c0_11, %c0_12], %13 {strides = array<i32>} : memref<113x160x89xbf16, #tpu.memory_space<vmem>>, vector<1x32x89xbf16>,
      %14 = vector.extract_strided_slice %8 {offsets = [0, 1], sizes = [32, 89], strides = [1, 1]} : vector<32x93xbf16> to vector<32x89xbf16>
      %15 = arith.index_cast %arg8 : i32 to index
      %c32 = arith.constant 32 : index
      %c0_13 = arith.constant 0 : index
      %16 = vector.load %arg6[%15, %c32, %c0_13] : memref<113x160x89xbf16, #tpu.memory_space<vmem>>, vector<1x32x89xbf16>
      %17 = vector.shape_cast %16 : vector<1x32x89xbf16> to vector<32x89xbf16>
      %18 = vector.shape_cast %14 : vector<32x89xbf16> to vector<1x32x89xbf16>
      tpu.vector_store %arg6[%15, %c32, %c0_13], %18 {strides = array<i32>} : memref<113x160x89xbf16, #tpu.memory_space<vmem>>, vector<1x32x89xbf16>,
      %19 = vector.extract_strided_slice %8 {offsets = [0, 2], sizes = [32, 89], strides = [1, 1]} : vector<32x93xbf16> to vector<32x89xbf16>
      %20 = arith.index_cast %arg8 : i32 to index
      %c64 = arith.constant 64 : index
      %c0_14 = arith.constant 0 : index
      %21 = vector.load %arg6[%20, %c64, %c0_14] : memref<113x160x89xbf16, #tpu.memory_space<vmem>>, vector<1x32x89xbf16>
      %22 = vector.shape_cast %21 : vector<1x32x89xbf16> to vector<32x89xbf16>
      %23 = vector.shape_cast %19 : vector<32x89xbf16> to vector<1x32x89xbf16>
      tpu.vector_store %arg6[%20, %c64, %c0_14], %23 {strides = array<i32>} : memref<113x160x89xbf16, #tpu.memory_space<vmem>>, vector<1x32x89xbf16>,
      %24 = vector.extract_strided_slice %8 {offsets = [0, 3], sizes = [32, 89], strides = [1, 1]} : vector<32x93xbf16> to vector<32x89xbf16>
      %25 = arith.index_cast %arg8 : i32 to index
      %c96 = arith.constant 96 : index
      %c0_15 = arith.constant 0 : index
      %26 = vector.load %arg6[%25, %c96, %c0_15] : memref<113x160x89xbf16, #tpu.memory_space<vmem>>, vector<1x32x89xbf16>
      %27 = vector.shape_cast %26 : vector<1x32x89xbf16> to vector<32x89xbf16>
      %28 = vector.shape_cast %24 : vector<32x89xbf16> to vector<1x32x89xbf16>
      tpu.vector_store %arg6[%25, %c96, %c0_15], %28 {strides = array<i32>} : memref<113x160x89xbf16, #tpu.memory_space<vmem>>, vector<1x32x89xbf16>,
      %29 = vector.extract_strided_slice %8 {offsets = [0, 4], sizes = [32, 89], strides = [1, 1]} : vector<32x93xbf16> to vector<32x89xbf16>
      %30 = arith.index_cast %arg8 : i32 to index
      %c128 = arith.constant 128 : index
      %c0_16 = arith.constant 0 : index
      %31 = vector.load %arg6[%30, %c128, %c0_16] : memref<113x160x89xbf16, #tpu.memory_space<vmem>>, vector<1x32x89xbf16>
      %32 = vector.shape_cast %31 : vector<1x32x89xbf16> to vector<32x89xbf16>
      %33 = vector.shape_cast %29 : vector<32x89xbf16> to vector<1x32x89xbf16>
      tpu.vector_store %arg6[%30, %c128, %c0_16], %33 {strides = array<i32>} : memref<113x160x89xbf16, #tpu.memory_space<vmem>>, vector<1x32x89xbf16>,
    }
    %c113_i32_1 = arith.constant 113 : i32
    %c0_i32_2 = arith.constant 0 : i32
    %c109_i32 = arith.constant 109 : i32
    %4 = arith.addi %c0_i32_2, %c109_i32 : i32
    %c1_i32_3 = arith.constant 1 : i32
    scf.for %arg8 = %c0_i32_2 to %4 step %c1_i32_3  : i32 {
      %c1_i32_8 = arith.constant 1 : i32
      %6 = arith.muli %c1_i32_8, %arg8 : i32
      %cst = arith.constant 0.000000e+00 : f32
      %7 = vector.broadcast %cst : f32 to vector<32x89xf32>
      %c0_9 = arith.constant 0 : index
      %c0_10 = arith.constant 0 : index
      %c0_11 = arith.constant 0 : index
      %8 = vector.load %arg2[%c0_9, %c0_10, %c0_11] : memref<5x32x160xbf16, #tpu.memory_space<vmem>>, vector<1x32x160xbf16>
      %9 = vector.shape_cast %8 : vector<1x32x160xbf16> to vector<32x160xbf16>
      %c0_i32_12 = arith.constant 0 : i32
      %10 = arith.addi %6, %c0_i32_12 : i32
      %11 = arith.index_cast %10 : i32 to index
      %c0_13 = arith.constant 0 : index
      %c0_14 = arith.constant 0 : index
      %12 = vector.load %arg6[%11, %c0_13, %c0_14] : memref<113x160x89xbf16, #tpu.memory_space<vmem>>, vector<1x160x89xbf16>
      %13 = vector.shape_cast %12 : vector<1x160x89xbf16> to vector<160x89xbf16>
      %cst_15 = arith.constant dense<0.000000e+00> : vector<32x89xf32>
      %14 = tpu.matmul %9, %13, %cst_15 {dimension_numbers = #tpu.dot_dimension_numbers<[1], [0], [0], [1], [0, 0, 1, 1], [], []>} : vector<32x160xbf16>, vector<160x89xbf16>, vector<32x89xf32> -> vector<32x89xf32>
      %15 = arith.addf %7, %14 : vector<32x89xf32>
      %c1 = arith.constant 1 : index
      %c0_16 = arith.constant 0 : index
      %c0_17 = arith.constant 0 : index
      %16 = vector.load %arg2[%c1, %c0_16, %c0_17] : memref<5x32x160xbf16, #tpu.memory_space<vmem>>, vector<1x32x160xbf16>
      %17 = vector.shape_cast %16 : vector<1x32x160xbf16> to vector<32x160xbf16>
      %c1_i32_18 = arith.constant 1 : i32
      %18 = arith.addi %6, %c1_i32_18 : i32
      %19 = arith.index_cast %18 : i32 to index
      %c0_19 = arith.constant 0 : index
      %c0_20 = arith.constant 0 : index
      %20 = vector.load %arg6[%19, %c0_19, %c0_20] : memref<113x160x89xbf16, #tpu.memory_space<vmem>>, vector<1x160x89xbf16>
      %21 = vector.shape_cast %20 : vector<1x160x89xbf16> to vector<160x89xbf16>
      %cst_21 = arith.constant dense<0.000000e+00> : vector<32x89xf32>
      %22 = tpu.matmul %17, %21, %cst_21 {dimension_numbers = #tpu.dot_dimension_numbers<[1], [0], [0], [1], [0, 0, 1, 1], [], []>} : vector<32x160xbf16>, vector<160x89xbf16>, vector<32x89xf32> -> vector<32x89xf32>
      %23 = arith.addf %15, %22 : vector<32x89xf32>
      %c2 = arith.constant 2 : index
      %c0_22 = arith.constant 0 : index
      %c0_23 = arith.constant 0 : index
      %24 = vector.load %arg2[%c2, %c0_22, %c0_23] : memref<5x32x160xbf16, #tpu.memory_space<vmem>>, vector<1x32x160xbf16>
      %25 = vector.shape_cast %24 : vector<1x32x160xbf16> to vector<32x160xbf16>
      %c2_i32 = arith.constant 2 : i32
      %26 = arith.addi %6, %c2_i32 : i32
      %27 = arith.index_cast %26 : i32 to index
      %c0_24 = arith.constant 0 : index
      %c0_25 = arith.constant 0 : index
      %28 = vector.load %arg6[%27, %c0_24, %c0_25] : memref<113x160x89xbf16, #tpu.memory_space<vmem>>, vector<1x160x89xbf16>
      %29 = vector.shape_cast %28 : vector<1x160x89xbf16> to vector<160x89xbf16>
      %cst_26 = arith.constant dense<0.000000e+00> : vector<32x89xf32>
      %30 = tpu.matmul %25, %29, %cst_26 {dimension_numbers = #tpu.dot_dimension_numbers<[1], [0], [0], [1], [0, 0, 1, 1], [], []>} : vector<32x160xbf16>, vector<160x89xbf16>, vector<32x89xf32> -> vector<32x89xf32>
      %31 = arith.addf %23, %30 : vector<32x89xf32>
      %c3 = arith.constant 3 : index
      %c0_27 = arith.constant 0 : index
      %c0_28 = arith.constant 0 : index
      %32 = vector.load %arg2[%c3, %c0_27, %c0_28] : memref<5x32x160xbf16, #tpu.memory_space<vmem>>, vector<1x32x160xbf16>
      %33 = vector.shape_cast %32 : vector<1x32x160xbf16> to vector<32x160xbf16>
      %c3_i32 = arith.constant 3 : i32
      %34 = arith.addi %6, %c3_i32 : i32
      %35 = arith.index_cast %34 : i32 to index
      %c0_29 = arith.constant 0 : index
      %c0_30 = arith.constant 0 : index
      %36 = vector.load %arg6[%35, %c0_29, %c0_30] : memref<113x160x89xbf16, #tpu.memory_space<vmem>>, vector<1x160x89xbf16>
      %37 = vector.shape_cast %36 : vector<1x160x89xbf16> to vector<160x89xbf16>
      %cst_31 = arith.constant dense<0.000000e+00> : vector<32x89xf32>
      %38 = tpu.matmul %33, %37, %cst_31 {dimension_numbers = #tpu.dot_dimension_numbers<[1], [0], [0], [1], [0, 0, 1, 1], [], []>} : vector<32x160xbf16>, vector<160x89xbf16>, vector<32x89xf32> -> vector<32x89xf32>
      %39 = arith.addf %31, %38 : vector<32x89xf32>
      %c4 = arith.constant 4 : index
      %c0_32 = arith.constant 0 : index
      %c0_33 = arith.constant 0 : index
      %40 = vector.load %arg2[%c4, %c0_32, %c0_33] : memref<5x32x160xbf16, #tpu.memory_space<vmem>>, vector<1x32x160xbf16>
      %41 = vector.shape_cast %40 : vector<1x32x160xbf16> to vector<32x160xbf16>
      %c4_i32 = arith.constant 4 : i32
      %42 = arith.addi %6, %c4_i32 : i32
      %43 = arith.index_cast %42 : i32 to index
      %c0_34 = arith.constant 0 : index
      %c0_35 = arith.constant 0 : index
      %44 = vector.load %arg6[%43, %c0_34, %c0_35] : memref<113x160x89xbf16, #tpu.memory_space<vmem>>, vector<1x160x89xbf16>
      %45 = vector.shape_cast %44 : vector<1x160x89xbf16> to vector<160x89xbf16>
      %cst_36 = arith.constant dense<0.000000e+00> : vector<32x89xf32>
      %46 = tpu.matmul %41, %45, %cst_36 {dimension_numbers = #tpu.dot_dimension_numbers<[1], [0], [0], [1], [0, 0, 1, 1], [], []>} : vector<32x160xbf16>, vector<160x89xbf16>, vector<32x89xf32> -> vector<32x89xf32>
      %47 = arith.addf %39, %46 : vector<32x89xf32>
      %48 = arith.addf %47, %2 : vector<32x89xf32>
      %cst_37 = arith.constant 2.000000e-01 : f32
      %49 = vector.broadcast %cst_37 : f32 to vector<32x89xf32>
      %50 = arith.mulf %49, %48 : vector<32x89xf32>
      %51 = arith.maximumf %48, %50 : vector<32x89xf32>
      %52 = arith.truncf %51 : vector<32x89xf32> to vector<32x89xbf16>
      %c0_38 = arith.constant 0 : index
      %c0_39 = arith.constant 0 : index
      %53 = vector.load %arg4[%c0_38, %c0_39] : memref<89x44xbf16, #tpu.memory_space<vmem>>, vector<89x44xbf16>
      %cst_40 = arith.constant dense<0.000000e+00> : vector<32x44xf32>
      %54 = tpu.matmul %52, %53, %cst_40 {dimension_numbers = #tpu.dot_dimension_numbers<[1], [0], [0], [1], [0, 0, 1, 1], [], []>} : vector<32x89xbf16>, vector<89x44xbf16>, vector<32x44xf32> -> vector<32x44xf32>
      %55 = arith.index_cast %arg8 : i32 to index
      %c0_41 = arith.constant 0 : index
      %c0_42 = arith.constant 0 : index
      %56 = vector.load %arg7[%55, %c0_41, %c0_42] : memref<109x32x44xf32, #tpu.memory_space<vmem>>, vector<1x32x44xf32>
      %57 = vector.shape_cast %56 : vector<1x32x44xf32> to vector<32x44xf32>
      %58 = vector.shape_cast %54 : vector<32x44xf32> to vector<1x32x44xf32>
      tpu.vector_store %arg7[%55, %c0_41, %c0_42], %58 {strides = array<i32>} : memref<109x32x44xf32, #tpu.memory_space<vmem>>, vector<1x32x44xf32>,
    }
    %c109_i32_4 = arith.constant 109 : i32
    %c0_i32_5 = arith.constant 0 : i32
    %c54_i32 = arith.constant 54 : i32
    %5 = arith.addi %c0_i32_5, %c54_i32 : i32
    %c1_i32_6 = arith.constant 1 : i32
    scf.for %arg8 = %c0_i32_5 to %5 step %c1_i32_6  : i32 {
      %c2_i32 = arith.constant 2 : i32
      %6 = arith.muli %c2_i32, %arg8 : i32
      %7 = arith.index_cast %6 : i32 to index
      %c0_8 = arith.constant 0 : index
      %c0_9 = arith.constant 0 : index
      %8 = vector.load %arg7[%7, %c0_8, %c0_9] : memref<109x32x44xf32, #tpu.memory_space<vmem>>, vector<1x32x44xf32>
      %9 = vector.shape_cast %8 : vector<1x32x44xf32> to vector<32x44xf32>
      %c2_i32_10 = arith.constant 2 : i32
      %10 = arith.muli %c2_i32_10, %arg8 : i32
      %c1_i32_11 = arith.constant 1 : i32
      %11 = arith.addi %10, %c1_i32_11 : i32
      %12 = arith.index_cast %11 : i32 to index
      %c0_12 = arith.constant 0 : index
      %c0_13 = arith.constant 0 : index
      %13 = vector.load %arg7[%12, %c0_12, %c0_13] : memref<109x32x44xf32, #tpu.memory_space<vmem>>, vector<1x32x44xf32>
      %14 = vector.shape_cast %13 : vector<1x32x44xf32> to vector<32x44xf32>
      %15 = arith.addf %9, %14 : vector<32x44xf32>
      %cst = arith.constant 2.500000e-01 : f32
      %16 = vector.broadcast %cst : f32 to vector<32x44xf32>
      %17 = arith.mulf %15, %16 : vector<32x44xf32>
      %18 = arith.truncf %17 : vector<32x44xf32> to vector<32x44xbf16>
      %c0_14 = arith.constant 0 : index
      %19 = arith.index_cast %arg8 : i32 to index
      %c0_15 = arith.constant 0 : index
      %c0_16 = arith.constant 0 : index
      %20 = vector.load %arg5[%c0_14, %19, %c0_15, %c0_16] : memref<1x54x32x44xbf16, #tpu.memory_space<vmem>>, vector<1x1x32x44xbf16>
      %21 = vector.shape_cast %20 : vector<1x1x32x44xbf16> to vector<32x44xbf16>
      %22 = vector.shape_cast %18 : vector<32x44xbf16> to vector<1x1x32x44xbf16>
      tpu.vector_store %arg5[%c0_14, %19, %c0_15, %c0_16], %22 {strides = array<i32>} : memref<1x54x32x44xbf16, #tpu.memory_space<vmem>>, vector<1x1x32x44xbf16>,
    }
    %c54_i32_7 = arith.constant 54 : i32
    return
  }
  func.func @transform_0(%arg0: i32) -> (i32, i32, i32, i32) {
    %c0_i32 = arith.constant 0 : i32
    %c0_i32_0 = arith.constant 0 : i32
    %c0_i32_1 = arith.constant 0 : i32
    %c0_i32_2 = arith.constant 0 : i32
    return %arg0, %c0_i32, %c0_i32_0, %c0_i32_1 : i32, i32, i32, i32
  }
  func.func @transform_1(%arg0: i32) -> (i32, i32, i32) {
    %c0_i32 = arith.constant 0 : i32
    %c0_i32_0 = arith.constant 0 : i32
    %c0_i32_1 = arith.constant 0 : i32
    %c0_i32_2 = arith.constant 0 : i32
    return %c0_i32, %c0_i32_0, %c0_i32_1 : i32, i32, i32
  }
  func.func @transform_2(%arg0: i32) -> (i32, i32) {
    %c0_i32 = arith.constant 0 : i32
    %c0_i32_0 = arith.constant 0 : i32
    %c0_i32_1 = arith.constant 0 : i32
    return %c0_i32, %c0_i32_0 : i32, i32
  }
  func.func @transform_3(%arg0: i32) -> (i32, i32) {
    %c0_i32 = arith.constant 0 : i32
    %c0_i32_0 = arith.constant 0 : i32
    %c0_i32_1 = arith.constant 0 : i32
    return %c0_i32, %c0_i32_0 : i32, i32
  }
  func.func @transform_4(%arg0: i32) -> (i32, i32, i32, i32) {
    %c0_i32 = arith.constant 0 : i32
    %c0_i32_0 = arith.constant 0 : i32
    %c0_i32_1 = arith.constant 0 : i32
    %c0_i32_2 = arith.constant 0 : i32
    return %arg0, %c0_i32, %c0_i32_0, %c0_i32_1 : i32, i32, i32, i32
  }
}

module attributes {stable_mosaic.version = 11 : i64} {
  func.func @_conv_lrelu_pool_kernel(%arg0: i32, %arg1: memref<1x58x32x24xbf16, #tpu.memory_space<vmem>>, %arg2: memref<1x58x32x24xbf16, #tpu.memory_space<vmem>>, %arg3: memref<5x64x160xbf16, #tpu.memory_space<vmem>>, %arg4: memref<64x1xf32, #tpu.memory_space<vmem>>, %arg5: memref<22x6xbf16, #tpu.memory_space<vmem>>, %arg6: memref<1x8x64x6xbf16, #tpu.memory_space<vmem>>, %arg7: memref<57x160x22xbf16, #tpu.memory_space<vmem>>, %arg8: memref<27x64x6xf32, #tpu.memory_space<vmem>>) attributes {dimension_semantics = [#tpu.dimension_semantics<parallel>], iteration_bounds = array<i64: 2>, scalar_prefetch = 0 : i64, scratch_operands = 2 : i64, tpu.core_type = #tpu.core_type<tc>, window_params = [{transform_indices = @transform_0, window_bounds = array<i64: 1, 58, 32, 24>}, {transform_indices = @transform_1, window_bounds = array<i64: 1, 58, 32, 24>}, {pipeline_mode = #tpu.pipeline_mode<synchronous>, transform_indices = @transform_2, window_bounds = array<i64: 5, 64, 160>}, {pipeline_mode = #tpu.pipeline_mode<synchronous>, transform_indices = @transform_3, window_bounds = array<i64: 64, 1>}, {pipeline_mode = #tpu.pipeline_mode<synchronous>, transform_indices = @transform_4, window_bounds = array<i64: 22, 6>}, {transform_indices = @transform_5, window_bounds = array<i64: 1, 8, 64, 6>}]} {
    %c0 = arith.constant 0 : index
    %c0_0 = arith.constant 0 : index
    %0 = vector.load %arg4[%c0, %c0_0] : memref<64x1xf32, #tpu.memory_space<vmem>>, vector<64x1xf32>
    %1 = vector.shape_cast %0 : vector<64x1xf32> to vector<64x1xf32>
    %2 = vector.broadcast %1 : vector<64x1xf32> to vector<64x22xf32>
    %c0_i32 = arith.constant 0 : i32
    %c57_i32 = arith.constant 57 : i32
    %3 = arith.addi %c0_i32, %c57_i32 : i32
    %c1_i32 = arith.constant 1 : i32
    scf.for %arg9 = %c0_i32 to %3 step %c1_i32  : i32 {
      %c0_8 = arith.constant 0 : index
      %6 = arith.index_cast %arg9 : i32 to index
      %c0_9 = arith.constant 0 : index
      %c0_10 = arith.constant 0 : index
      %7 = vector.load %arg1[%c0_8, %6, %c0_9, %c0_10] : memref<1x58x32x24xbf16, #tpu.memory_space<vmem>>, vector<1x1x32x24xbf16>
      %8 = vector.shape_cast %7 : vector<1x1x32x24xbf16> to vector<32x24xbf16>
      %c0_11 = arith.constant 0 : index
      %9 = arith.index_cast %arg9 : i32 to index
      %c0_12 = arith.constant 0 : index
      %c0_13 = arith.constant 0 : index
      %10 = vector.load %arg2[%c0_11, %9, %c0_12, %c0_13] : memref<1x58x32x24xbf16, #tpu.memory_space<vmem>>, vector<1x1x32x24xbf16>
      %11 = vector.shape_cast %10 : vector<1x1x32x24xbf16> to vector<32x24xbf16>
      %12 = vector.extract_strided_slice %8 {offsets = [0, 0], sizes = [32, 22], strides = [1, 1]} : vector<32x24xbf16> to vector<32x22xbf16>
      %13 = arith.index_cast %arg9 : i32 to index
      %c0_14 = arith.constant 0 : index
      %c0_15 = arith.constant 0 : index
      %14 = vector.load %arg7[%13, %c0_14, %c0_15] : memref<57x160x22xbf16, #tpu.memory_space<vmem>>, vector<1x32x22xbf16>
      %15 = vector.shape_cast %14 : vector<1x32x22xbf16> to vector<32x22xbf16>
      %16 = vector.shape_cast %12 : vector<32x22xbf16> to vector<1x32x22xbf16>
      tpu.vector_store %arg7[%13, %c0_14, %c0_15], %16 {strides = array<i32>} : memref<57x160x22xbf16, #tpu.memory_space<vmem>>, vector<1x32x22xbf16>,
      %17 = vector.extract_strided_slice %11 {offsets = [0, 0], sizes = [32, 22], strides = [1, 1]} : vector<32x24xbf16> to vector<32x22xbf16>
      %18 = arith.index_cast %arg9 : i32 to index
      %c32 = arith.constant 32 : index
      %c0_16 = arith.constant 0 : index
      %19 = vector.load %arg7[%18, %c32, %c0_16] : memref<57x160x22xbf16, #tpu.memory_space<vmem>>, vector<1x32x22xbf16>
      %20 = vector.shape_cast %19 : vector<1x32x22xbf16> to vector<32x22xbf16>
      %21 = vector.shape_cast %17 : vector<32x22xbf16> to vector<1x32x22xbf16>
      tpu.vector_store %arg7[%18, %c32, %c0_16], %21 {strides = array<i32>} : memref<57x160x22xbf16, #tpu.memory_space<vmem>>, vector<1x32x22xbf16>,
      %22 = vector.extract_strided_slice %8 {offsets = [0, 1], sizes = [32, 22], strides = [1, 1]} : vector<32x24xbf16> to vector<32x22xbf16>
      %23 = arith.index_cast %arg9 : i32 to index
      %c64 = arith.constant 64 : index
      %c0_17 = arith.constant 0 : index
      %24 = vector.load %arg7[%23, %c64, %c0_17] : memref<57x160x22xbf16, #tpu.memory_space<vmem>>, vector<1x32x22xbf16>
      %25 = vector.shape_cast %24 : vector<1x32x22xbf16> to vector<32x22xbf16>
      %26 = vector.shape_cast %22 : vector<32x22xbf16> to vector<1x32x22xbf16>
      tpu.vector_store %arg7[%23, %c64, %c0_17], %26 {strides = array<i32>} : memref<57x160x22xbf16, #tpu.memory_space<vmem>>, vector<1x32x22xbf16>,
      %27 = vector.extract_strided_slice %11 {offsets = [0, 1], sizes = [32, 22], strides = [1, 1]} : vector<32x24xbf16> to vector<32x22xbf16>
      %28 = arith.index_cast %arg9 : i32 to index
      %c96 = arith.constant 96 : index
      %c0_18 = arith.constant 0 : index
      %29 = vector.load %arg7[%28, %c96, %c0_18] : memref<57x160x22xbf16, #tpu.memory_space<vmem>>, vector<1x32x22xbf16>
      %30 = vector.shape_cast %29 : vector<1x32x22xbf16> to vector<32x22xbf16>
      %31 = vector.shape_cast %27 : vector<32x22xbf16> to vector<1x32x22xbf16>
      tpu.vector_store %arg7[%28, %c96, %c0_18], %31 {strides = array<i32>} : memref<57x160x22xbf16, #tpu.memory_space<vmem>>, vector<1x32x22xbf16>,
      %32 = vector.extract_strided_slice %8 {offsets = [0, 2], sizes = [32, 22], strides = [1, 1]} : vector<32x24xbf16> to vector<32x22xbf16>
      %33 = arith.index_cast %arg9 : i32 to index
      %c128 = arith.constant 128 : index
      %c0_19 = arith.constant 0 : index
      %34 = vector.load %arg7[%33, %c128, %c0_19] : memref<57x160x22xbf16, #tpu.memory_space<vmem>>, vector<1x32x22xbf16>
      %35 = vector.shape_cast %34 : vector<1x32x22xbf16> to vector<32x22xbf16>
      %36 = vector.shape_cast %32 : vector<32x22xbf16> to vector<1x32x22xbf16>
      tpu.vector_store %arg7[%33, %c128, %c0_19], %36 {strides = array<i32>} : memref<57x160x22xbf16, #tpu.memory_space<vmem>>, vector<1x32x22xbf16>,
    }
    %c57_i32_1 = arith.constant 57 : i32
    %c0_i32_2 = arith.constant 0 : i32
    %c27_i32 = arith.constant 27 : i32
    %4 = arith.addi %c0_i32_2, %c27_i32 : i32
    %c1_i32_3 = arith.constant 1 : i32
    scf.for %arg9 = %c0_i32_2 to %4 step %c1_i32_3  : i32 {
      %c2_i32 = arith.constant 2 : i32
      %6 = arith.muli %c2_i32, %arg9 : i32
      %cst = arith.constant 0.000000e+00 : f32
      %7 = vector.broadcast %cst : f32 to vector<64x22xf32>
      %c0_8 = arith.constant 0 : index
      %c0_9 = arith.constant 0 : index
      %c0_10 = arith.constant 0 : index
      %8 = vector.load %arg3[%c0_8, %c0_9, %c0_10] : memref<5x64x160xbf16, #tpu.memory_space<vmem>>, vector<1x64x160xbf16>
      %9 = vector.shape_cast %8 : vector<1x64x160xbf16> to vector<64x160xbf16>
      %c0_i32_11 = arith.constant 0 : i32
      %10 = arith.addi %6, %c0_i32_11 : i32
      %11 = arith.index_cast %10 : i32 to index
      %c0_12 = arith.constant 0 : index
      %c0_13 = arith.constant 0 : index
      %12 = vector.load %arg7[%11, %c0_12, %c0_13] : memref<57x160x22xbf16, #tpu.memory_space<vmem>>, vector<1x160x22xbf16>
      %13 = vector.shape_cast %12 : vector<1x160x22xbf16> to vector<160x22xbf16>
      %cst_14 = arith.constant dense<0.000000e+00> : vector<64x22xf32>
      %14 = tpu.matmul %9, %13, %cst_14 {dimension_numbers = #tpu.dot_dimension_numbers<[1], [0], [0], [1], [0, 0, 1, 1], [], []>} : vector<64x160xbf16>, vector<160x22xbf16>, vector<64x22xf32> -> vector<64x22xf32>
      %15 = arith.addf %7, %14 : vector<64x22xf32>
      %c1 = arith.constant 1 : index
      %c0_15 = arith.constant 0 : index
      %c0_16 = arith.constant 0 : index
      %16 = vector.load %arg3[%c1, %c0_15, %c0_16] : memref<5x64x160xbf16, #tpu.memory_space<vmem>>, vector<1x64x160xbf16>
      %17 = vector.shape_cast %16 : vector<1x64x160xbf16> to vector<64x160xbf16>
      %c1_i32_17 = arith.constant 1 : i32
      %18 = arith.addi %6, %c1_i32_17 : i32
      %19 = arith.index_cast %18 : i32 to index
      %c0_18 = arith.constant 0 : index
      %c0_19 = arith.constant 0 : index
      %20 = vector.load %arg7[%19, %c0_18, %c0_19] : memref<57x160x22xbf16, #tpu.memory_space<vmem>>, vector<1x160x22xbf16>
      %21 = vector.shape_cast %20 : vector<1x160x22xbf16> to vector<160x22xbf16>
      %cst_20 = arith.constant dense<0.000000e+00> : vector<64x22xf32>
      %22 = tpu.matmul %17, %21, %cst_20 {dimension_numbers = #tpu.dot_dimension_numbers<[1], [0], [0], [1], [0, 0, 1, 1], [], []>} : vector<64x160xbf16>, vector<160x22xbf16>, vector<64x22xf32> -> vector<64x22xf32>
      %23 = arith.addf %15, %22 : vector<64x22xf32>
      %c2 = arith.constant 2 : index
      %c0_21 = arith.constant 0 : index
      %c0_22 = arith.constant 0 : index
      %24 = vector.load %arg3[%c2, %c0_21, %c0_22] : memref<5x64x160xbf16, #tpu.memory_space<vmem>>, vector<1x64x160xbf16>
      %25 = vector.shape_cast %24 : vector<1x64x160xbf16> to vector<64x160xbf16>
      %c2_i32_23 = arith.constant 2 : i32
      %26 = arith.addi %6, %c2_i32_23 : i32
      %27 = arith.index_cast %26 : i32 to index
      %c0_24 = arith.constant 0 : index
      %c0_25 = arith.constant 0 : index
      %28 = vector.load %arg7[%27, %c0_24, %c0_25] : memref<57x160x22xbf16, #tpu.memory_space<vmem>>, vector<1x160x22xbf16>
      %29 = vector.shape_cast %28 : vector<1x160x22xbf16> to vector<160x22xbf16>
      %cst_26 = arith.constant dense<0.000000e+00> : vector<64x22xf32>
      %30 = tpu.matmul %25, %29, %cst_26 {dimension_numbers = #tpu.dot_dimension_numbers<[1], [0], [0], [1], [0, 0, 1, 1], [], []>} : vector<64x160xbf16>, vector<160x22xbf16>, vector<64x22xf32> -> vector<64x22xf32>
      %31 = arith.addf %23, %30 : vector<64x22xf32>
      %c3 = arith.constant 3 : index
      %c0_27 = arith.constant 0 : index
      %c0_28 = arith.constant 0 : index
      %32 = vector.load %arg3[%c3, %c0_27, %c0_28] : memref<5x64x160xbf16, #tpu.memory_space<vmem>>, vector<1x64x160xbf16>
      %33 = vector.shape_cast %32 : vector<1x64x160xbf16> to vector<64x160xbf16>
      %c3_i32 = arith.constant 3 : i32
      %34 = arith.addi %6, %c3_i32 : i32
      %35 = arith.index_cast %34 : i32 to index
      %c0_29 = arith.constant 0 : index
      %c0_30 = arith.constant 0 : index
      %36 = vector.load %arg7[%35, %c0_29, %c0_30] : memref<57x160x22xbf16, #tpu.memory_space<vmem>>, vector<1x160x22xbf16>
      %37 = vector.shape_cast %36 : vector<1x160x22xbf16> to vector<160x22xbf16>
      %cst_31 = arith.constant dense<0.000000e+00> : vector<64x22xf32>
      %38 = tpu.matmul %33, %37, %cst_31 {dimension_numbers = #tpu.dot_dimension_numbers<[1], [0], [0], [1], [0, 0, 1, 1], [], []>} : vector<64x160xbf16>, vector<160x22xbf16>, vector<64x22xf32> -> vector<64x22xf32>
      %39 = arith.addf %31, %38 : vector<64x22xf32>
      %c4 = arith.constant 4 : index
      %c0_32 = arith.constant 0 : index
      %c0_33 = arith.constant 0 : index
      %40 = vector.load %arg3[%c4, %c0_32, %c0_33] : memref<5x64x160xbf16, #tpu.memory_space<vmem>>, vector<1x64x160xbf16>
      %41 = vector.shape_cast %40 : vector<1x64x160xbf16> to vector<64x160xbf16>
      %c4_i32 = arith.constant 4 : i32
      %42 = arith.addi %6, %c4_i32 : i32
      %43 = arith.index_cast %42 : i32 to index
      %c0_34 = arith.constant 0 : index
      %c0_35 = arith.constant 0 : index
      %44 = vector.load %arg7[%43, %c0_34, %c0_35] : memref<57x160x22xbf16, #tpu.memory_space<vmem>>, vector<1x160x22xbf16>
      %45 = vector.shape_cast %44 : vector<1x160x22xbf16> to vector<160x22xbf16>
      %cst_36 = arith.constant dense<0.000000e+00> : vector<64x22xf32>
      %46 = tpu.matmul %41, %45, %cst_36 {dimension_numbers = #tpu.dot_dimension_numbers<[1], [0], [0], [1], [0, 0, 1, 1], [], []>} : vector<64x160xbf16>, vector<160x22xbf16>, vector<64x22xf32> -> vector<64x22xf32>
      %47 = arith.addf %39, %46 : vector<64x22xf32>
      %48 = arith.addf %47, %2 : vector<64x22xf32>
      %cst_37 = arith.constant 2.000000e-01 : f32
      %49 = vector.broadcast %cst_37 : f32 to vector<64x22xf32>
      %50 = arith.mulf %49, %48 : vector<64x22xf32>
      %51 = arith.maximumf %48, %50 : vector<64x22xf32>
      %52 = arith.truncf %51 : vector<64x22xf32> to vector<64x22xbf16>
      %c0_38 = arith.constant 0 : index
      %c0_39 = arith.constant 0 : index
      %53 = vector.load %arg5[%c0_38, %c0_39] : memref<22x6xbf16, #tpu.memory_space<vmem>>, vector<22x6xbf16>
      %cst_40 = arith.constant dense<0.000000e+00> : vector<64x6xf32>
      %54 = tpu.matmul %52, %53, %cst_40 {dimension_numbers = #tpu.dot_dimension_numbers<[1], [0], [0], [1], [0, 0, 1, 1], [], []>} : vector<64x22xbf16>, vector<22x6xbf16>, vector<64x6xf32> -> vector<64x6xf32>
      %55 = arith.index_cast %arg9 : i32 to index
      %c0_41 = arith.constant 0 : index
      %c0_42 = arith.constant 0 : index
      %56 = vector.load %arg8[%55, %c0_41, %c0_42] : memref<27x64x6xf32, #tpu.memory_space<vmem>>, vector<1x64x6xf32>
      %57 = vector.shape_cast %56 : vector<1x64x6xf32> to vector<64x6xf32>
      %58 = vector.shape_cast %54 : vector<64x6xf32> to vector<1x64x6xf32>
      tpu.vector_store %arg8[%55, %c0_41, %c0_42], %58 {strides = array<i32>} : memref<27x64x6xf32, #tpu.memory_space<vmem>>, vector<1x64x6xf32>,
    }
    %c27_i32_4 = arith.constant 27 : i32
    %c0_i32_5 = arith.constant 0 : i32
    %c8_i32 = arith.constant 8 : i32
    %5 = arith.addi %c0_i32_5, %c8_i32 : i32
    %c1_i32_6 = arith.constant 1 : i32
    scf.for %arg9 = %c0_i32_5 to %5 step %c1_i32_6  : i32 {
      %c3_i32 = arith.constant 3 : i32
      %6 = arith.muli %c3_i32, %arg9 : i32
      %7 = arith.index_cast %6 : i32 to index
      %c0_8 = arith.constant 0 : index
      %c0_9 = arith.constant 0 : index
      %8 = vector.load %arg8[%7, %c0_8, %c0_9] : memref<27x64x6xf32, #tpu.memory_space<vmem>>, vector<1x64x6xf32>
      %9 = vector.shape_cast %8 : vector<1x64x6xf32> to vector<64x6xf32>
      %c3_i32_10 = arith.constant 3 : i32
      %10 = arith.muli %c3_i32_10, %arg9 : i32
      %c1_i32_11 = arith.constant 1 : i32
      %11 = arith.addi %10, %c1_i32_11 : i32
      %12 = arith.index_cast %11 : i32 to index
      %c0_12 = arith.constant 0 : index
      %c0_13 = arith.constant 0 : index
      %13 = vector.load %arg8[%12, %c0_12, %c0_13] : memref<27x64x6xf32, #tpu.memory_space<vmem>>, vector<1x64x6xf32>
      %14 = vector.shape_cast %13 : vector<1x64x6xf32> to vector<64x6xf32>
      %15 = arith.addf %9, %14 : vector<64x6xf32>
      %c3_i32_14 = arith.constant 3 : i32
      %16 = arith.muli %c3_i32_14, %arg9 : i32
      %c2_i32 = arith.constant 2 : i32
      %17 = arith.addi %16, %c2_i32 : i32
      %18 = arith.index_cast %17 : i32 to index
      %c0_15 = arith.constant 0 : index
      %c0_16 = arith.constant 0 : index
      %19 = vector.load %arg8[%18, %c0_15, %c0_16] : memref<27x64x6xf32, #tpu.memory_space<vmem>>, vector<1x64x6xf32>
      %20 = vector.shape_cast %19 : vector<1x64x6xf32> to vector<64x6xf32>
      %21 = arith.addf %15, %20 : vector<64x6xf32>
      %c3_i32_17 = arith.constant 3 : i32
      %22 = arith.muli %c3_i32_17, %arg9 : i32
      %c3_i32_18 = arith.constant 3 : i32
      %23 = arith.addi %22, %c3_i32_18 : i32
      %24 = arith.index_cast %23 : i32 to index
      %c0_19 = arith.constant 0 : index
      %c0_20 = arith.constant 0 : index
      %25 = vector.load %arg8[%24, %c0_19, %c0_20] : memref<27x64x6xf32, #tpu.memory_space<vmem>>, vector<1x64x6xf32>
      %26 = vector.shape_cast %25 : vector<1x64x6xf32> to vector<64x6xf32>
      %27 = arith.addf %21, %26 : vector<64x6xf32>
      %c3_i32_21 = arith.constant 3 : i32
      %28 = arith.muli %c3_i32_21, %arg9 : i32
      %c4_i32 = arith.constant 4 : i32
      %29 = arith.addi %28, %c4_i32 : i32
      %30 = arith.index_cast %29 : i32 to index
      %c0_22 = arith.constant 0 : index
      %c0_23 = arith.constant 0 : index
      %31 = vector.load %arg8[%30, %c0_22, %c0_23] : memref<27x64x6xf32, #tpu.memory_space<vmem>>, vector<1x64x6xf32>
      %32 = vector.shape_cast %31 : vector<1x64x6xf32> to vector<64x6xf32>
      %33 = arith.addf %27, %32 : vector<64x6xf32>
      %cst = arith.constant 4.000000e-02 : f32
      %34 = vector.broadcast %cst : f32 to vector<64x6xf32>
      %35 = arith.mulf %33, %34 : vector<64x6xf32>
      %36 = arith.truncf %35 : vector<64x6xf32> to vector<64x6xbf16>
      %c0_24 = arith.constant 0 : index
      %37 = arith.index_cast %arg9 : i32 to index
      %c0_25 = arith.constant 0 : index
      %c0_26 = arith.constant 0 : index
      %38 = vector.load %arg6[%c0_24, %37, %c0_25, %c0_26] : memref<1x8x64x6xbf16, #tpu.memory_space<vmem>>, vector<1x1x64x6xbf16>
      %39 = vector.shape_cast %38 : vector<1x1x64x6xbf16> to vector<64x6xbf16>
      %40 = vector.shape_cast %36 : vector<64x6xbf16> to vector<1x1x64x6xbf16>
      tpu.vector_store %arg6[%c0_24, %37, %c0_25, %c0_26], %40 {strides = array<i32>} : memref<1x8x64x6xbf16, #tpu.memory_space<vmem>>, vector<1x1x64x6xbf16>,
    }
    %c8_i32_7 = arith.constant 8 : i32
    return
  }
  func.func @transform_0(%arg0: i32) -> (i32, i32, i32, i32) {
    %c0_i32 = arith.constant 0 : i32
    %c0_i32_0 = arith.constant 0 : i32
    %c0_i32_1 = arith.constant 0 : i32
    %c0_i32_2 = arith.constant 0 : i32
    return %arg0, %c0_i32, %c0_i32_0, %c0_i32_1 : i32, i32, i32, i32
  }
  func.func @transform_1(%arg0: i32) -> (i32, i32, i32, i32) {
    %c0_i32 = arith.constant 0 : i32
    %c0_i32_0 = arith.constant 0 : i32
    %c0_i32_1 = arith.constant 0 : i32
    %c0_i32_2 = arith.constant 0 : i32
    return %arg0, %c0_i32, %c0_i32_0, %c0_i32_1 : i32, i32, i32, i32
  }
  func.func @transform_2(%arg0: i32) -> (i32, i32, i32) {
    %c0_i32 = arith.constant 0 : i32
    %c0_i32_0 = arith.constant 0 : i32
    %c0_i32_1 = arith.constant 0 : i32
    %c0_i32_2 = arith.constant 0 : i32
    return %c0_i32, %c0_i32_0, %c0_i32_1 : i32, i32, i32
  }
  func.func @transform_3(%arg0: i32) -> (i32, i32) {
    %c0_i32 = arith.constant 0 : i32
    %c0_i32_0 = arith.constant 0 : i32
    %c0_i32_1 = arith.constant 0 : i32
    return %c0_i32, %c0_i32_0 : i32, i32
  }
  func.func @transform_4(%arg0: i32) -> (i32, i32) {
    %c0_i32 = arith.constant 0 : i32
    %c0_i32_0 = arith.constant 0 : i32
    %c0_i32_1 = arith.constant 0 : i32
    return %c0_i32, %c0_i32_0 : i32, i32
  }
  func.func @transform_5(%arg0: i32) -> (i32, i32, i32, i32) {
    %c0_i32 = arith.constant 0 : i32
    %c0_i32_0 = arith.constant 0 : i32
    %c0_i32_1 = arith.constant 0 : i32
    %c0_i32_2 = arith.constant 0 : i32
    return %arg0, %c0_i32, %c0_i32_0, %c0_i32_1 : i32, i32, i32, i32
  }
}

module attributes {stable_mosaic.version = 11 : i64} {
  func.func @_fc_head_kernel(%arg0: i32, %arg1: memref<2x3072xbf16, #tpu.memory_space<vmem>>, %arg2: memref<3072x256xbf16, #tpu.memory_space<vmem>>, %arg3: memref<1x256xf32, #tpu.memory_space<vmem>>, %arg4: memref<1x256xbf16, #tpu.memory_space<vmem>>, %arg5: memref<1x1xf32, #tpu.memory_space<vmem>>, %arg6: memref<2x1xf32, #tpu.memory_space<vmem>>, %arg7: memref<2x1xf32, #tpu.memory_space<vmem>>) attributes {dimension_semantics = [#tpu.dimension_semantics<arbitrary>], iteration_bounds = array<i64: 4>, scalar_prefetch = 0 : i64, scratch_operands = 1 : i64, tpu.core_type = #tpu.core_type<tc>, window_params = [{pipeline_mode = #tpu.pipeline_mode<synchronous>, transform_indices = @transform_0, window_bounds = array<i64: 2, 3072>}, {transform_indices = @transform_1, window_bounds = array<i64: 3072, 256>}, {transform_indices = @transform_2, window_bounds = array<i64: 1, 256>}, {transform_indices = @transform_3, window_bounds = array<i64: 1, 256>}, {pipeline_mode = #tpu.pipeline_mode<synchronous>, transform_indices = @transform_4, window_bounds = array<i64: 1, 1>}, {pipeline_mode = #tpu.pipeline_mode<synchronous>, transform_indices = @transform_5, window_bounds = array<i64: 2, 1>}]} {
    %c0_i32 = arith.constant 0 : i32
    %0 = arith.cmpi eq, %arg0, %c0_i32 : i32
    %1 = arith.extui %0 : i1 to i32
    %c0_i32_0 = arith.constant 0 : i32
    %2 = arith.cmpi ne, %1, %c0_i32_0 : i32
    scf.if %2 {
      %cst_15 = arith.constant 0.000000e+00 : f32
      %24 = vector.broadcast %cst_15 : f32 to vector<2x1xf32>
      %c0_16 = arith.constant 0 : index
      %c0_17 = arith.constant 0 : index
      %25 = vector.load %arg7[%c0_16, %c0_17] : memref<2x1xf32, #tpu.memory_space<vmem>>, vector<2x1xf32>
      tpu.vector_store %arg7[%c0_16, %c0_17], %24 {strides = array<i32>} : memref<2x1xf32, #tpu.memory_space<vmem>>, vector<2x1xf32>,
    } else {
    }
    %c0 = arith.constant 0 : index
    %c0_1 = arith.constant 0 : index
    %3 = vector.load %arg1[%c0, %c0_1] : memref<2x3072xbf16, #tpu.memory_space<vmem>>, vector<2x3072xbf16>
    %c0_2 = arith.constant 0 : index
    %c0_3 = arith.constant 0 : index
    %4 = vector.load %arg2[%c0_2, %c0_3] : memref<3072x256xbf16, #tpu.memory_space<vmem>>, vector<3072x256xbf16>
    %cst = arith.constant dense<0.000000e+00> : vector<2x256xf32>
    %5 = tpu.matmul %3, %4, %cst {dimension_numbers = #tpu.dot_dimension_numbers<[1], [0], [0], [1], [0, 0, 1, 1], [], []>} : vector<2x3072xbf16>, vector<3072x256xbf16>, vector<2x256xf32> -> vector<2x256xf32>
    %c0_4 = arith.constant 0 : index
    %c0_5 = arith.constant 0 : index
    %6 = vector.load %arg3[%c0_4, %c0_5] : memref<1x256xf32, #tpu.memory_space<vmem>>, vector<1x256xf32>
    %7 = vector.broadcast %6 : vector<1x256xf32> to vector<2x256xf32>
    %8 = arith.addf %5, %7 : vector<2x256xf32>
    %cst_6 = arith.constant 2.000000e-01 : f32
    %9 = vector.broadcast %cst_6 : f32 to vector<2x256xf32>
    %10 = arith.mulf %9, %8 : vector<2x256xf32>
    %11 = arith.maximumf %8, %10 : vector<2x256xf32>
    %c0_7 = arith.constant 0 : index
    %c0_8 = arith.constant 0 : index
    %12 = vector.load %arg7[%c0_7, %c0_8] : memref<2x1xf32, #tpu.memory_space<vmem>>, vector<2x1xf32>
    %c0_9 = arith.constant 0 : index
    %c0_10 = arith.constant 0 : index
    %13 = vector.load %arg4[%c0_9, %c0_10] : memref<1x256xbf16, #tpu.memory_space<vmem>>, vector<1x256xbf16>
    %14 = arith.extf %13 : vector<1x256xbf16> to vector<1x256xf32>
    %15 = vector.broadcast %14 : vector<1x256xf32> to vector<2x256xf32>
    %16 = arith.mulf %11, %15 : vector<2x256xf32>
    %cst_11 = arith.constant dense<0.000000e+00> : vector<2xf32>
    %17 = vector.multi_reduction <add>, %16, %cst_11 [1] : vector<2x256xf32> to vector<2xf32>
    %18 = vector.shape_cast %17 : vector<2xf32> to vector<2x1xf32>
    %19 = arith.addf %12, %18 : vector<2x1xf32>
    %c0_12 = arith.constant 0 : index
    %c0_13 = arith.constant 0 : index
    %20 = vector.load %arg7[%c0_12, %c0_13] : memref<2x1xf32, #tpu.memory_space<vmem>>, vector<2x1xf32>
    tpu.vector_store %arg7[%c0_12, %c0_13], %19 {strides = array<i32>} : memref<2x1xf32, #tpu.memory_space<vmem>>, vector<2x1xf32>,
    %c3_i32 = arith.constant 3 : i32
    %21 = arith.cmpi eq, %arg0, %c3_i32 : i32
    %22 = arith.extui %21 : i1 to i32
    %c0_i32_14 = arith.constant 0 : i32
    %23 = arith.cmpi ne, %22, %c0_i32_14 : i32
    scf.if %23 {
      %c0_15 = arith.constant 0 : index
      %c0_16 = arith.constant 0 : index
      %24 = vector.load %arg7[%c0_15, %c0_16] : memref<2x1xf32, #tpu.memory_space<vmem>>, vector<2x1xf32>
      %c0_17 = arith.constant 0 : index
      %c0_18 = arith.constant 0 : index
      %25 = vector.load %arg5[%c0_17, %c0_18] : memref<1x1xf32, #tpu.memory_space<vmem>>, vector<1x1xf32>
      %26 = vector.broadcast %25 : vector<1x1xf32> to vector<2x1xf32>
      %27 = arith.addf %24, %26 : vector<2x1xf32>
      %cst_19 = arith.constant 0.000000e+00 : f32
      %28 = vector.broadcast %cst_19 : f32 to vector<2x1xf32>
      %29 = arith.subf %28, %27 : vector<2x1xf32>
      %30 = math.exp %29 : vector<2x1xf32>
      %cst_20 = arith.constant 1.000000e+00 : f32
      %31 = vector.broadcast %cst_20 : f32 to vector<2x1xf32>
      %32 = arith.addf %31, %30 : vector<2x1xf32>
      %cst_21 = arith.constant 1.000000e+00 : f32
      %33 = vector.broadcast %cst_21 : f32 to vector<2x1xf32>
      %34 = arith.divf %33, %32 : vector<2x1xf32>
      %c0_22 = arith.constant 0 : index
      %c0_23 = arith.constant 0 : index
      %35 = vector.load %arg6[%c0_22, %c0_23] : memref<2x1xf32, #tpu.memory_space<vmem>>, vector<2x1xf32>
      tpu.vector_store %arg6[%c0_22, %c0_23], %34 {strides = array<i32>} : memref<2x1xf32, #tpu.memory_space<vmem>>, vector<2x1xf32>,
    } else {
    }
    return
  }
  func.func @transform_0(%arg0: i32) -> (i32, i32) {
    %c0_i32 = arith.constant 0 : i32
    %c0_i32_0 = arith.constant 0 : i32
    %c0_i32_1 = arith.constant 0 : i32
    return %c0_i32, %c0_i32_0 : i32, i32
  }
  func.func @transform_1(%arg0: i32) -> (i32, i32) {
    %c0_i32 = arith.constant 0 : i32
    %c0_i32_0 = arith.constant 0 : i32
    return %c0_i32, %arg0 : i32, i32
  }
  func.func @transform_2(%arg0: i32) -> (i32, i32) {
    %c0_i32 = arith.constant 0 : i32
    %c0_i32_0 = arith.constant 0 : i32
    return %c0_i32, %arg0 : i32, i32
  }
  func.func @transform_3(%arg0: i32) -> (i32, i32) {
    %c0_i32 = arith.constant 0 : i32
    %c0_i32_0 = arith.constant 0 : i32
    return %c0_i32, %arg0 : i32, i32
  }
  func.func @transform_4(%arg0: i32) -> (i32, i32) {
    %c0_i32 = arith.constant 0 : i32
    %c0_i32_0 = arith.constant 0 : i32
    %c0_i32_1 = arith.constant 0 : i32
    return %c0_i32, %c0_i32_0 : i32, i32
  }
  func.func @transform_5(%arg0: i32) -> (i32, i32) {
    %c0_i32 = arith.constant 0 : i32
    %c0_i32_0 = arith.constant 0 : i32
    %c0_i32_1 = arith.constant 0 : i32
    return %c0_i32, %c0_i32_0 : i32, i32
  }
}

</mosaic_0001>

<bundles_post_ra>
// kernel: base_discriminator_forward.4
= control target key start
LH: loop header
LB: loop body
LE: loop exit
PB: predicated region body
PF: predicated region fallthrough
CT: control target
= control target key end

     0   :  { %s1820_s15 = smov 0   ;;  %s2142_s0 = inlined_call_operand.vmem [shape: bf16[2,222,16,182], index: 0, kind: input, shape index: {}]   ;;  %s2143_s1 = inlined_call_operand.vmem [shape: bf16[5,32,80], index: 1, kind: input, shape index: {}]   ;;  %s2144_s2 = inlined_call_operand.vmem [shape: f32[32,1], index: 2, kind: input, shape index: {}]   ;;  %s2145_s3 = inlined_call_operand.vmem [shape: bf16[178,89], index: 3, kind: input, shape index: {}]   ;;  %s2146_s4 = inlined_call_operand.vmem [shape: bf16[2,109,32,89], index: 4, kind: output, shape index: {}]  }
   0x1 LB: > { %s1254_s16 = sadd.s32 4294967295, %s1776_s15   ;;  %p1258_p0 = scmp.ge.s32.totalorder %s1776_s15, 1  ;;  %s1776_s15 = sphi %s1820_s15, %s14_s15  }
   0x2   : > { %p162_p1 = scmp.lt.s32.totalorder %s1776_s15, 3 }
   0x4   : > { %p163_p2 = pnand %p1258_p0, %p162_p1 }
   0x5   : > { %p188_p3 = scmp.lt.s32.totalorder (!%p163_p2), %s1254_s16, 1  ;;  %s1858_s7 = smov (!%p163_p2), 0  }
   0x6   : > { %166 = sbr.rel (%p163_p2) target bundleno = 689 (0x2b1), region = 36 }
   0xb   : > { %v201_v0 = vld [vmem:[%s2144_s2 + $0x10] sm:$0xff]  ;;  %v199_v1 = vld [vmem:[%s2144_s2] sm:$0xff]  ;;  %v1790_v2 = vmov 0   ;;  %s2150_s16 = smov (!%p188_p3, %s1254_s16), 1  ;;  %v202_v3 = vld [vmem:[%s2144_s2 + $0x18] sm:$0xff] }
   0xc   : > { %1757 = vset.pattern.permute.xlu1 %v1790_v2  ;;  %1756 = vset.pattern.permute.xlu0 %v1790_v2  ;;  %s1717_s21 = smul.u32 3552, %s2150_s16  ;;  %v200_v4 = vld [vmem:[%s2144_s2 + $0x8] sm:$0xff] }
   0xd   : > { %215 = vperm.xlu1 %1757, %v201_v0   ;;  %205 = vperm.xlu0 %1756, %v199_v1   ;;  %s1718_s22 = smul.u32 1744, %s2150_s16 }
   0xe   : > { %s1837_s25 = scalar_lea.vmem %s2142_s0, %s1717_s21 }
   0xf   : > { %s1848_s6 = scalar_lea.vmem %s2146_s4, %s1718_s22 }
  0x15   : > { %220 = vperm.xlu1 %1757, %v202_v3   ;;  %210 = vperm.xlu0 %1756, %v200_v4  }
  0x7f   : > { %v1850_v5 = vpop.permute.xlu1 %215  ;;  %v1852_v6 = vpop.permute.xlu0 %205 }
  0x87   : > { %v1854_v7 = vpop.permute.xlu1 %220  ;;  %v1856_v8 = vpop.permute.xlu0 %210 }
  0x88 LB: >> { %vm237_vm0 = vcmask 1043456   ;;  %vm238_vm1 = vcmask 408580   ;;  %s1640_s8 = sshll.u32 %s1780_s7, 4  ;;  %s1641_s9 = smul.u32 80, %s1780_s7  ;;  %vm276_vm3 = vcmask 1022976   ;;  %vm263_vm4 = vcmask 1031168   ;;  %s1780_s7 = sphi %s1858_s7, %s228_s7  }
  0x89   : >> { %s231_s10 = scalar_lea.vmem %s1837_s25, %s1640_s8  ;;  %vm1866_vm2 = vmor %vm238_vm1, %vm237_vm0  ;;  %s1791_s11 = smov 126   ;;  %vm250_vm5 = vcmask 1039360   ;;  %vm289_vm6 = vcmask 1014784  }
  0x8a   : >> { %v232_v9 = vld [vmem:[%s231_s10] sm:$0xff]  ;;  %s1870_s12 = scalar_lea.vmem [#allocation2], %s1641_s9  ;;  %s1792_s13 = smov 127   ;;  %v233_v11 = vld [vmem:[%s231_s10 + $0x8] sm:$0xff] }
  0x8b   : >> { %257 = vrot.lane.b32.xlu1 %v232_v9, %s1791_s11  ;;  %240 = vst.msk [vmem:[%s1870_s12] sm:$0xff] %vm1866_vm2, %v232_v9  ;;  %244 = vrot.lane.b32.xlu0 %v232_v9, %s1792_s13  ;;  %s1793_s14 = smov 125   ;;  %s1794_s16 = smov 124  }
  0x8c   : >> { %241 = vst.msk [vmem:[%s1870_s12 + $0x8] sm:$0xff] %vm1866_vm2, %v233_v11  ;;  %270 = vrot.lane.b32.xlu2 %v232_v9, %s1793_s14  ;;  %s228_s7 = sadd.s32 1, %s1780_s7  }
  0x8d   : >> { %p225_p4 = scmp.ge.s32.totalorder %s228_s7, 222  }
  0x8e   : > { %s1905_s17 = smov (%p225_p4), 0  }
  0x93   : >> { %259 = vrot.lane.b32.xlu1 %v233_v11, %s1791_s11  ;;  %246 = vrot.lane.b32.xlu0 %v233_v11, %s1792_s13 }
  0x94   : >> { %272 = vrot.lane.b32.xlu2 %v233_v11, %s1793_s14 }
  0x9b   : >> { %285 = vrot.lane.b32.xlu1 %v233_v11, %s1794_s16  ;;  %283 = vrot.lane.b32.xlu0 %v232_v9, %s1794_s16 }
  0xe6   : >> { %v271_v12 = vpop.permute.xlu2 %270 }
  0xe7   : >> { %v274_v13 = vrot.slane %v271_v12, 4 }
  0xe9   : >> { %v277_v14 = vsel %vm276_vm3, %v271_v12, %v274_v13 }
  0xea   : >> { %281 = vst.msk [vmem:[%s1870_s12 + $0x30] sm:$0xff] %vm1866_vm2, %v277_v14 }
  0xee   : >> { %v273_v15 = vpop.permute.xlu2 %272 }
  0xef   : >> { %v275_v16 = vrot.slane %v273_v15, 4 }
  0xf1   : >> { %v278_v17 = vsel %vm276_vm3, %v273_v15, %v275_v16 }
  0xf2   : >> { %282 = vst.msk [vmem:[%s1870_s12 + $0x38] sm:$0xff] %vm1866_vm2, %v278_v17 }
  0xfd   : >> { %v258_v18 = vpop.permute.xlu1 %257  ;;  %v245_v19 = vpop.permute.xlu0 %244 }
  0xfe   : >> { %v261_v20 = vrot.slane %v258_v18, 4  ;;  %v248_v21 = vrot.slane %v245_v19, 4 }
 0x100   : >> { %v264_v22 = vsel %vm263_vm4, %v258_v18, %v261_v20  ;;  %v251_v23 = vsel %vm250_vm5, %v245_v19, %v248_v21 }
 0x101   : >> { %268 = vst.msk [vmem:[%s1870_s12 + $0x20] sm:$0xff] %vm1866_vm2, %v264_v22 }
 0x102   : >> { %255 = vst.msk [vmem:[%s1870_s12 + $0x10] sm:$0xff] %vm1866_vm2, %v251_v23 }
 0x105   : >> { %v260_v24 = vpop.permute.xlu1 %259  ;;  %v247_v25 = vpop.permute.xlu0 %246 }
 0x106   : >> { %v262_v26 = vrot.slane %v260_v24, 4  ;;  %v249_v27 = vrot.slane %v247_v25, 4 }
 0x108   : >> { %v265_v28 = vsel %vm263_vm4, %v260_v24, %v262_v26  ;;  %v252_v29 = vsel %vm250_vm5, %v247_v25, %v249_v27 }
 0x109   : >> { %269 = vst.msk [vmem:[%s1870_s12 + $0x28] sm:$0xff] %vm1866_vm2, %v265_v28 }
 0x10a   : >> { %256 = vst.msk [vmem:[%s1870_s12 + $0x18] sm:$0xff] %vm1866_vm2, %v252_v29 }
 0x10d   : >> { %v286_v30 = vpop.permute.xlu1 %285  ;;  %v284_v31 = vpop.permute.xlu0 %283 }
 0x10e   : >> { %v288_v32 = vrot.slane %v286_v30, 4  ;;  %v287_v33 = vrot.slane %v284_v31, 4  ;;  %227 = sbr.rel (!%p225_p4) target bundleno = 136 (0x88), region = 102 }
 0x110   : >> { %v291_v34 = vsel %vm289_vm6, %v286_v30, %v288_v32  ;;  %v290_v35 = vsel %vm289_vm6, %v284_v31, %v287_v33 }
 0x111   : >> { %295 = vst.msk [vmem:[%s1870_s12 + $0x48] sm:$0xff] %vm1866_vm2, %v291_v34 }
 0x112   : >> { %294 = vst.msk [vmem:[%s1870_s12 + $0x40] sm:$0xff] %vm1866_vm2, %v290_v35 }
 0x113 LB: >> { %s1644_s18 = smul.u32 80, %s1784_s17  ;;  %vm398_vm7 = vcmask 654336   ;;  %vm1067_vm8 = vcmask 1040384   ;;  %vm1060_vm9 = vcmask 408576   ;;  %vm1111_vm10 = vcmask 728064   ;;  %s1784_s17 = sphi %s1905_s17, %s301_s17  }
 0x115   : >> { %s1911_s19 = scalar_lea.vmem [#allocation2], %s1644_s18  ;;  %s1627_s18 = sshll.u32 %s1784_s17, 5 }
 0x116   : >> { %s301_s17 = sadd.s32 1, %s1784_s17  }
 0x117   : >> { %p298_p5 = scmp.ge.s32.totalorder %s301_s17, 218  }
 0x118   : > { %s2128_s20 = smov (%p298_p5), 0  }
 0x119   : >> { %v1321_v36 = vld [vmem:[%s1911_s19 + $0x90] sm:$0xf]  ;;  %v1666_v37 = vld [vmem:[%s1911_s19 + $0x94] sm:$0xf0]  ;;  %v1665_v38 = vld [vmem:[%s1911_s19 + $0x94] sm:$0xf] }
 0x11a   : >> { %v1322_v39 = vor.u32 %v1666_v37, %v1321_v36  ;;  %v1323_v40 = vld [vmem:[%s1911_s19 + $0x98] sm:$0xf0]  ;;  %v1373_v41 = vld [vmem:[%s1911_s19 + $0x40] sm:$0xf]  ;;  %v1654_v42 = vld [vmem:[%s1911_s19 + $0x44] sm:$0xf0] }
 0x11b   : >> { %v1326_v43 = vor.u32 %v1665_v38, %v1323_v40  ;;  %v1374_v44 = vor.u32 %v1654_v42, %v1373_v41  ;;  %v1653_v45 = vld [vmem:[%s1911_s19 + $0x44] sm:$0xf]  ;;  %v1375_v46 = vld [vmem:[%s1911_s19 + $0x48] sm:$0xf0]  ;;  %v1313_v47 = vld [vmem:[%s1911_s19 + $0x80] sm:$0xf] }
 0x11c   : >> { %408 = vmatpush.bf16.msra.mxu0 %v1322_v39  ;;  %v1378_v48 = vor.u32 %v1653_v45, %v1375_v46  ;;  %v1664_v49 = vld [vmem:[%s1911_s19 + $0x84] sm:$0xf0]  ;;  %v1663_v50 = vld [vmem:[%s1911_s19 + $0x84] sm:$0xf]  ;;  %v1315_v51 = vld [vmem:[%s1911_s19 + $0x88] sm:$0xf0] }
 0x11d   : >> { %427 = vmatpush.bf16.msra.mxu1 %v1326_v43  ;;  %512 = vmatpush.bf16.msra.mxu2 %v1374_v44  ;;  %v1314_v52 = vor.u32 %v1664_v49, %v1313_v47  ;;  %v1318_v53 = vor.u32 %v1663_v50, %v1315_v51  ;;  %v1365_v54 = vld [vmem:[%s1911_s19 + $0x30] sm:$0xf]  ;;  %v1652_v55 = vld [vmem:[%s1911_s19 + $0x34] sm:$0xf0]  ;;  %v1651_v56 = vld [vmem:[%s1911_s19 + $0x34] sm:$0xf] }
 0x11e   : >> { %531 = vmatpush.bf16.msra.mxu3 %v1378_v48  ;;  %v1366_v57 = vor.u32 %v1652_v55, %v1365_v54  ;;  %v1367_v58 = vld [vmem:[%s1911_s19 + $0x38] sm:$0xf0]  ;;  %v1305_v59 = vld [vmem:[%s1911_s19 + $0x70] sm:$0xf]  ;;  %v1662_v60 = vld [vmem:[%s1911_s19 + $0x74] sm:$0xf0] }
 0x11f   : >> { %v1370_v61 = vor.u32 %v1651_v56, %v1367_v58  ;;  %v1661_v62 = vld [vmem:[%s1911_s19 + $0x74] sm:$0xf]  ;;  %v1307_v63 = vld [vmem:[%s1911_s19 + $0x78] sm:$0xf0]  ;;  %v1357_v0 = vld [vmem:[%s1911_s19 + $0x20] sm:$0xf]  ;;  %v1306_v1 = vor.u32 %v1662_v60, %v1305_v59 }
 0x120   : >> { %409 = vmatpush.bf16.msra.mxu0 %v1314_v52  ;;  %v1650_v2 = vld [vmem:[%s1911_s19 + $0x24] sm:$0xf0]  ;;  %v1649_v3 = vld [vmem:[%s1911_s19 + $0x24] sm:$0xf]  ;;  %v1359_v4 = vld [vmem:[%s1911_s19 + $0x28] sm:$0xf0]  ;;  %v1310_v9 = vor.u32 %v1661_v62, %v1307_v63 }
 0x121   : >> { %428 = vmatpush.bf16.msra.mxu1 %v1318_v53  ;;  %513 = vmatpush.bf16.msra.mxu2 %v1366_v57  ;;  %v1358_v10 = vor.u32 %v1650_v2, %v1357_v0  ;;  %v1297_v11 = vld [vmem:[%s1911_s19 + $0x60] sm:$0xf]  ;;  %v1660_v12 = vld [vmem:[%s1911_s19 + $0x64] sm:$0xf0]  ;;  %v1659_v13 = vld [vmem:[%s1911_s19 + $0x64] sm:$0xf]  ;;  %v1362_v14 = vor.u32 %v1649_v3, %v1359_v4 }
 0x122   : >> { %532 = vmatpush.bf16.msra.mxu3 %v1370_v61  ;;  %v1299_v15 = vld [vmem:[%s1911_s19 + $0x68] sm:$0xf0]  ;;  %v1349_v16 = vld [vmem:[%s1911_s19 + $0x10] sm:$0xf]  ;;  %v1648_v17 = vld [vmem:[%s1911_s19 + $0x14] sm:$0xf0]  ;;  %v1298_v20 = vor.u32 %v1660_v12, %v1297_v11 }
 0x123   : >> { %v1647_v18 = vld [vmem:[%s1911_s19 + $0x14] sm:$0xf]  ;;  %v1351_v19 = vld [vmem:[%s1911_s19 + $0x18] sm:$0xf0]  ;;  %v1289_v21 = vld [vmem:[%s1911_s19 + $0x50] sm:$0xf]  ;;  %v1302_v22 = vor.u32 %v1659_v13, %v1299_v15  ;;  %v1350_v23 = vor.u32 %v1648_v17, %v1349_v16 }
 0x124   : >> { %410 = vmatpush.bf16.msra.mxu0 %v1306_v1  ;;  %v1658_v24 = vld [vmem:[%s1911_s19 + $0x54] sm:$0xf0]  ;;  %v1657_v25 = vld [vmem:[%s1911_s19 + $0x54] sm:$0xf]  ;;  %v1291_v26 = vld [vmem:[%s1911_s19 + $0x58] sm:$0xf0]  ;;  %v1354_v27 = vor.u32 %v1647_v18, %v1351_v19 }
 0x125   : >> { %429 = vmatpush.bf16.msra.mxu1 %v1310_v9  ;;  %514 = vmatpush.bf16.msra.mxu2 %v1358_v10  ;;  %v1341_v28 = vld [vmem:[%s1911_s19] sm:$0xf]  ;;  %v1646_v29 = vld [vmem:[%s1911_s19 + $0x4] sm:$0xf0]  ;;  %v1645_v30 = vld [vmem:[%s1911_s19 + $0x4] sm:$0xf]  ;;  %v1290_v34 = vor.u32 %v1658_v24, %v1289_v21  ;;  %v1294_v37 = vor.u32 %v1657_v25, %v1291_v26 }
 0x126   : >> { %533 = vmatpush.bf16.msra.mxu3 %v1362_v14  ;;  %v1343_v31 = vld [vmem:[%s1911_s19 + $0x8] sm:$0xf0]  ;;  %v1439_v32 = vld [vmem:[%s1911_s19 + $0xe0] sm:$0xf]  ;;  %v1678_v33 = vld [vmem:[%s1911_s19 + $0xe4] sm:$0xf0]  ;;  %v1342_v38 = vor.u32 %v1646_v29, %v1341_v28 }
 0x127   : >> { %v1677_v35 = vld [vmem:[%s1911_s19 + $0xe4] sm:$0xf]  ;;  %v1441_v36 = vld [vmem:[%s1911_s19 + $0xe8] sm:$0xf0]  ;;  %v1655_v39 = vld [vmem:[%s2143_s1 + $0x10] sm:$0xff]  ;;  %v1346_v40 = vor.u32 %v1645_v30, %v1343_v31  ;;  %v1440_v41 = vor.u32 %v1678_v33, %v1439_v32 }
 0x128   : >> { %411 = vmatpush.bf16.msra.mxu0 %v1298_v20  ;;  %v1431_v42 = vld [vmem:[%s1911_s19 + $0xd0] sm:$0xf]  ;;  %v1690_v44 = vld [vmem:[%s1911_s19 + $0x134] sm:$0xf0]  ;;  %v1444_v45 = vor.u32 %v1677_v35, %v1441_v36  ;;  %v1689_v47 = vld [vmem:[%s1911_s19 + $0x134] sm:$0xf] }
 0x129   : >> { %430 = vmatpush.bf16.msra.mxu1 %v1302_v22  ;;  %515 = vmatpush.bf16.msra.mxu2 %v1350_v23  ;;  %v1505_v43 = vld [vmem:[%s1911_s19 + $0x130] sm:$0xf]  ;;  %v1676_v46 = vld [vmem:[%s1911_s19 + $0xd4] sm:$0xf0]  ;;  %v1507_v48 = vld [vmem:[%s1911_s19 + $0x138] sm:$0xf0] }
 0x12a   : >> { %534 = vmatpush.bf16.msra.mxu3 %v1354_v27  ;;  %v1642_v49 = vld [vmem:[%s2143_s1] sm:$0xff]  ;;  %v1675_v50 = vld [vmem:[%s1911_s19 + $0xd4] sm:$0xf]  ;;  %v1433_v51 = vld [vmem:[%s1911_s19 + $0xd8] sm:$0xf0]  ;;  %v1506_v52 = vor.u32 %v1690_v44, %v1505_v43  ;;  %v1432_v53 = vor.u32 %v1676_v46, %v1431_v42  ;;  %v1510_v55 = vor.u32 %v1689_v47, %v1507_v48 }
 0x12b   : >> { %v1423_v54 = vld [vmem:[%s1911_s19 + $0xc0] sm:$0xf]  ;;  %v1688_v57 = vld [vmem:[%s1911_s19 + $0x124] sm:$0xf0]  ;;  %v1436_v58 = vor.u32 %v1675_v50, %v1433_v51  ;;  %v1687_v60 = vld [vmem:[%s1911_s19 + $0x124] sm:$0xf] }
 0x12c   : >> { %412 = vmatpush.bf16.msra.mxu0 %v1290_v34  ;;  %v1497_v56 = vld [vmem:[%s1911_s19 + $0x120] sm:$0xf]  ;;  %v1674_v59 = vld [vmem:[%s1911_s19 + $0xc4] sm:$0xf0]  ;;  %v1499_v61 = vld [vmem:[%s1911_s19 + $0x128] sm:$0xf0] }
 0x12d   : >> { %431 = vmatpush.bf16.msra.mxu1 %v1294_v37  ;;  %516 = vmatpush.bf16.msra.mxu2 %v1342_v38  ;;  %v1673_v62 = vld [vmem:[%s1911_s19 + $0xc4] sm:$0xf]  ;;  %v1425_v63 = vld [vmem:[%s1911_s19 + $0xc8] sm:$0xf0]  ;;  %v1498_v0 = vor.u32 %v1688_v57, %v1497_v56  ;;  %v1424_v1 = vor.u32 %v1674_v59, %v1423_v54  ;;  %v1502_v2 = vor.u32 %v1687_v60, %v1499_v61  ;;  %v1415_v3 = vld [vmem:[%s1911_s19 + $0xb0] sm:$0xf] }
 0x12e   : >> { %535 = vmatpush.bf16.msra.mxu3 %v1346_v40  ;;  %v1489_v4 = vld [vmem:[%s1911_s19 + $0x110] sm:$0xf]  ;;  %v1686_v9 = vld [vmem:[%s1911_s19 + $0x114] sm:$0xf0]  ;;  %v1428_v10 = vor.u32 %v1673_v62, %v1425_v63  ;;  %v1685_v12 = vld [vmem:[%s1911_s19 + $0x114] sm:$0xf] }
 0x12f   : >> { %1327 = vmatmul.msk.bf16.vlgmr.msra.gmra.mxu0 %vm398_vm7, %v1655_v39  ;;  %v1672_v11 = vld [vmem:[%s1911_s19 + $0xb4] sm:$0xf0]  ;;  %v1491_v13 = vld [vmem:[%s1911_s19 + $0x118] sm:$0xf0]  ;;  %v1671_v14 = vld [vmem:[%s1911_s19 + $0xb4] sm:$0xf]  ;;  %v1490_v16 = vor.u32 %v1686_v9, %v1489_v4 }
 0x130   : >> { %635 = vmatpush.bf16.msrb.mxu0 %v1440_v41  ;;  %1329 = vmatmul.msk.bf16.vlgmr.msra.gmra.mxu1 %vm398_vm7, %v1655_v39  ;;  %v1417_v15 = vld [vmem:[%s1911_s19 + $0xb8] sm:$0xf0]  ;;  %v1416_v17 = vor.u32 %v1672_v11, %v1415_v3  ;;  %v1494_v18 = vor.u32 %v1685_v12, %v1491_v13  ;;  %v1481_v19 = vld [vmem:[%s1911_s19 + $0x100] sm:$0xf]  ;;  %v1684_v20 = vld [vmem:[%s1911_s19 + $0x104] sm:$0xf0] }
 0x131   : >> { %654 = vmatpush.bf16.msrb.mxu1 %v1444_v45  ;;  %1379 = vmatmul.msk.bf16.vlgmr.msra.gmra.mxu2 %vm398_vm7, %v1642_v49  ;;  %v1683_v21 = vld [vmem:[%s1911_s19 + $0x104] sm:$0xf]  ;;  %v1420_v22 = vor.u32 %v1671_v14, %v1417_v15  ;;  %v1483_v23 = vld [vmem:[%s1911_s19 + $0x108] sm:$0xf0]  ;;  %v1407_v24 = vld [vmem:[%s1911_s19 + $0xa0] sm:$0xf]  ;;  %v1482_v29 = vor.u32 %v1684_v20, %v1481_v19 }
 0x132   : >> { %1381 = vmatmul.msk.bf16.vlgmr.msra.gmra.mxu3 %vm398_vm7, %v1642_v49  ;;  %766 = vmatpush.bf16.msrb.mxu2 %v1506_v52  ;;  %v1670_v25 = vld [vmem:[%s1911_s19 + $0xa4] sm:$0xf0]  ;;  %v1669_v26 = vld [vmem:[%s1911_s19 + $0xa4] sm:$0xf]  ;;  %v1409_v27 = vld [vmem:[%s1911_s19 + $0xa8] sm:$0xf0]  ;;  %v1486_v30 = vor.u32 %v1683_v21, %v1483_v23 }
 0x133   : >> { %785 = vmatpush.bf16.msrb.mxu3 %v1510_v55  ;;  %v1656_v28 = vld [vmem:[%s2143_s1 + $0x18] sm:$0xff]  ;;  %v1408_v31 = vor.u32 %v1670_v25, %v1407_v24  ;;  %v1473_v32 = vld [vmem:[%s1911_s19 + $0xf0] sm:$0xf]  ;;  %v1681_v34 = vld [vmem:[%s1911_s19 + $0xf4] sm:$0xf]  ;;  %v1412_v35 = vor.u32 %v1669_v26, %v1409_v27 }
 0x134   : >> { %636 = vmatpush.bf16.msrb.mxu0 %v1432_v53  ;;  %v1682_v33 = vld [vmem:[%s1911_s19 + $0xf4] sm:$0xf0]  ;;  %v1475_v36 = vld [vmem:[%s1911_s19 + $0xf8] sm:$0xf0]  ;;  %v1571_v37 = vld [vmem:[%s1911_s19 + $0x180] sm:$0xf] }
 0x135   : >> { %655 = vmatpush.bf16.msrb.mxu1 %v1436_v58  ;;  %v1702_v38 = vld [vmem:[%s1911_s19 + $0x184] sm:$0xf0]  ;;  %v1701_v40 = vld [vmem:[%s1911_s19 + $0x184] sm:$0xf]  ;;  %v1573_v41 = vld [vmem:[%s1911_s19 + $0x188] sm:$0xf0]  ;;  %v1474_v42 = vor.u32 %v1682_v33, %v1473_v32  ;;  %v1478_v43 = vor.u32 %v1681_v34, %v1475_v36 }
 0x136   : >> { %767 = vmatpush.bf16.msrb.mxu2 %v1498_v0  ;;  %v1643_v39 = vld [vmem:[%s2143_s1 + $0x8] sm:$0xff]  ;;  %v1572_v44 = vor.u32 %v1702_v38, %v1571_v37  ;;  %v1576_v45 = vor.u32 %v1701_v40, %v1573_v41  ;;  %v1563_v46 = vld [vmem:[%s1911_s19 + $0x170] sm:$0xf]  ;;  %v1700_v47 = vld [vmem:[%s1911_s19 + $0x174] sm:$0xf0] }
 0x137   : >> { %786 = vmatpush.bf16.msrb.mxu3 %v1502_v2  ;;  %v1699_v48 = vld [vmem:[%s1911_s19 + $0x174] sm:$0xf]  ;;  %v1565_v49 = vld [vmem:[%s1911_s19 + $0x178] sm:$0xf0]  ;;  %v1564_v50 = vor.u32 %v1700_v47, %v1563_v46  ;;  %v1555_v52 = vld [vmem:[%s1911_s19 + $0x160] sm:$0xf] }
 0x138   : >> { %637 = vmatpush.bf16.msrb.mxu0 %v1424_v1  ;;  %v1568_v51 = vor.u32 %v1699_v48, %v1565_v49  ;;  %v1698_v53 = vld [vmem:[%s1911_s19 + $0x164] sm:$0xf0]  ;;  %v1697_v54 = vld [vmem:[%s1911_s19 + $0x164] sm:$0xf]  ;;  %v1557_v55 = vld [vmem:[%s1911_s19 + $0x168] sm:$0xf0] }
 0x139   : >> { %656 = vmatpush.bf16.msrb.mxu1 %v1428_v10  ;;  %v1556_v56 = vor.u32 %v1698_v53, %v1555_v52  ;;  %v1560_v57 = vor.u32 %v1697_v54, %v1557_v55  ;;  %v1547_v58 = vld [vmem:[%s1911_s19 + $0x150] sm:$0xf]  ;;  %v1696_v59 = vld [vmem:[%s1911_s19 + $0x154] sm:$0xf0]  ;;  %v1695_v60 = vld [vmem:[%s1911_s19 + $0x154] sm:$0xf] }
 0x13a   : >> { %768 = vmatpush.bf16.msrb.mxu2 %v1490_v16  ;;  %v1549_v61 = vld [vmem:[%s1911_s19 + $0x158] sm:$0xf0]  ;;  %v1548_v62 = vor.u32 %v1696_v59, %v1547_v58  ;;  %v1667_v63 = vld [vmem:[%s2143_s1 + $0x20] sm:$0xff]  ;;  %v1694_v2 = vld [vmem:[%s1911_s19 + $0x144] sm:$0xf0] }
 0x13b   : >> { %787 = vmatpush.bf16.msrb.mxu3 %v1494_v18  ;;  %v1552_v0 = vor.u32 %v1695_v60, %v1549_v61  ;;  %v1539_v1 = vld [vmem:[%s1911_s19 + $0x140] sm:$0xf]  ;;  %v1679_v3 = vld [vmem:[%s2143_s1 + $0x30] sm:$0xff]  ;;  %v1693_v4 = vld [vmem:[%s1911_s19 + $0x144] sm:$0xf] }
 0x13c   : >> { %638 = vmatpush.bf16.msrb.mxu0 %v1416_v17  ;;  %v1541_v9 = vld [vmem:[%s1911_s19 + $0x148] sm:$0xf0]  ;;  %v1540_v10 = vor.u32 %v1694_v2, %v1539_v1  ;;  %v1680_v13 = vld [vmem:[%s2143_s1 + $0x38] sm:$0xff]  ;;  %v1691_v14 = vld [vmem:[%s2143_s1 + $0x40] sm:$0xff]  ;;  %s1110_s19 = scalar_lea.vmem [#allocation3], %s1627_s18 }
 0x13d   : >> { %657 = vmatpush.bf16.msrb.mxu1 %v1420_v22  ;;  %v1544_v11 = vor.u32 %v1693_v4, %v1541_v9  ;;  %v1668_v12 = vld [vmem:[%s2143_s1 + $0x28] sm:$0xff]  ;;  %v1710_v24 = vld [vmem:[%s2145_s3 + $0x38] sm:$0xff]  ;;  %v1707_v37 = vld [vmem:[%s2145_s3 + $0x20] sm:$0xff] }
 0x13e   : >> { %769 = vmatpush.bf16.msrb.mxu2 %v1482_v29  ;;  %v1692_v15 = vld [vmem:[%s2143_s1 + $0x48] sm:$0xff]  ;;  %v990_v25 = vld [vmem:[%s2145_s3 + $0x58] sm:$0x1] }
 0x13f   : >> { %788 = vmatpush.bf16.msrb.mxu3 %v1486_v30  ;;  %1328 = vmatmul.msk.bf16.gmra.mxu0 %vm398_vm7, %v1656_v28  ;;  %v1036_v26 = vunpack.c.l.b16 %v990_v25  ;;  %v1708_v34 = vld [vmem:[%s2145_s3 + $0x28] sm:$0xff]  ;;  %v1706_v41 = vld [vmem:[%s2145_s3 + $0x18] sm:$0xff] }
 0x140   : >> { %639 = vmatpush.bf16.msrb.mxu0 %v1408_v31  ;;  %1330 = vmatmul.msk.bf16.gmra.mxu1 %vm398_vm7, %v1656_v28  ;;  %v1709_v31 = vld [vmem:[%s2145_s3 + $0x30] sm:$0xff]  ;;  %v1704_v47 = vld [vmem:[%s2145_s3 + $0x8] sm:$0xff] }
 0x141   : >> { %658 = vmatpush.bf16.msrb.mxu1 %v1412_v35  ;;  %1380 = vmatmul.msk.bf16.gmra.mxu2 %vm398_vm7, %v1643_v39  ;;  %v1048_v27 = vpack.c.b16 %v1036_v26, %v1036_v26  ;;  %v1713_v35 = vld [vmem:[%s2145_s3 + $0x50] sm:$0xff] }
 0x142   : >> { %1382 = vmatmul.msk.bf16.gmra.mxu3 %vm398_vm7, %v1643_v39  ;;  %770 = vmatpush.bf16.msrb.mxu2 %v1474_v42 }
 0x143   : >> { %789 = vmatpush.bf16.msrb.mxu3 %v1478_v43  ;;  %v1069_v28 = vsel %vm1067_vm8, %v1048_v27, 0  ;;  %v1712_v43 = vld [vmem:[%s2145_s3 + $0x48] sm:$0xff] }
 0x144   : >> { %897 = vmatpush.bf16.msra.mxu0 %v1572_v44  ;;  %v1705_v44 = vld [vmem:[%s2145_s3 + $0x10] sm:$0xff] }
 0x145   : >> { %916 = vmatpush.bf16.msra.mxu1 %v1576_v45 }
 0x146   : >> { %1071 = vmatpush.bf16.msra.mxu2 %v1710_v24 }
 0x147   : >> { %1094 = vmatpush.bf16.msra.mxu3 %v1069_v28 }
 0x148   : >> { %898 = vmatpush.bf16.msra.mxu0 %v1564_v50  ;;  %v1711_v50 = vld [vmem:[%s2145_s3 + $0x40] sm:$0xff] }
 0x149   : >> { %917 = vmatpush.bf16.msra.mxu1 %v1568_v51  ;;  %v1703_v51 = vld [vmem:[%s2145_s3] sm:$0xff] }
 0x14a   : >> { %1072 = vmatpush.bf16.msra.mxu2 %v1709_v31 }
 0x14b   : >> { %1095 = vmatpush.bf16.msra.mxu3 %v1713_v35 }
 0x14c   : >> { %899 = vmatpush.bf16.msra.mxu0 %v1556_v56 }
 0x14d   : >> { %918 = vmatpush.bf16.msra.mxu1 %v1560_v57 }
 0x14e   : >> { %1073 = vmatpush.bf16.msra.mxu2 %v1708_v34 }
 0x14f   : >> { %1445 = vmatmul.msk.bf16.vlgmr.msrb.gmra.mxu0 %vm398_vm7, %v1667_v63  ;;  %1096 = vmatpush.bf16.msra.mxu3 %v1712_v43 }
 0x150   : >> { %900 = vmatpush.bf16.msra.mxu0 %v1548_v62  ;;  %1447 = vmatmul.msk.bf16.vlgmr.msrb.gmra.mxu1 %vm398_vm7, %v1667_v63 }
 0x151   : >> { %919 = vmatpush.bf16.msra.mxu1 %v1552_v0  ;;  %1511 = vmatmul.msk.bf16.vlgmr.msrb.gmra.mxu2 %vm398_vm7, %v1679_v3 }
 0x152   : >> { %1513 = vmatmul.msk.bf16.vlgmr.msrb.gmra.mxu3 %vm398_vm7, %v1679_v3  ;;  %1074 = vmatpush.bf16.msra.mxu2 %v1707_v37 }
 0x153   : >> { %1097 = vmatpush.bf16.msra.mxu3 %v1711_v50 }
 0x154   : >> { %901 = vmatpush.bf16.msra.mxu0 %v1540_v10 }
 0x155   : >> { %920 = vmatpush.bf16.msra.mxu1 %v1544_v11 }
 0x156   : >> { %1075 = vmatpush.bf16.msra.mxu2 %v1706_v41 }
 0x15a   : >> { %1076 = vmatpush.bf16.msra.mxu2 %v1705_v44 }
 0x15e   : >> { %1077 = vmatpush.bf16.msra.mxu2 %v1704_v47 }
 0x15f   : >> { %1446 = vmatmul.msk.bf16.gmra.mxu0 %vm398_vm7, %v1668_v12 }
 0x160   : >> { %1448 = vmatmul.msk.bf16.gmra.mxu1 %vm398_vm7, %v1668_v12 }
 0x161   : >> { %1512 = vmatmul.msk.bf16.gmra.mxu2 %vm398_vm7, %v1680_v13 }
 0x162   : >> { %1514 = vmatmul.msk.bf16.gmra.mxu3 %vm398_vm7, %v1680_v13  ;;  %1078 = vmatpush.bf16.msra.mxu2 %v1703_v51 }
 0x16f   : >> { %1577 = vmatmul.msk.bf16.vlgmr.msra.gmra.mxu0 %vm398_vm7, %v1691_v14 }
 0x170   : >> { %1579 = vmatmul.msk.bf16.vlgmr.msra.gmra.mxu1 %vm398_vm7, %v1691_v14 }
 0x17f   : >> { %1578 = vmatmul.msk.bf16.gmra.mxu0 %vm398_vm7, %v1692_v15 }
 0x180   : >> { %1580 = vmatmul.msk.bf16.gmra.mxu1 %vm398_vm7, %v1692_v15 }
 0x1ac   : >> { %v414_v16 = vpop.f32.mrf.mxu0 }
 0x1ad   : >> { %v433_v17 = vpop.f32.mrf.mxu1 }
 0x1b4   : >> { %v416_v18 = vpop.f32.mrf.mxu0  ;;  %v518_v20 = vpop.f32.mrf.mxu2 }
 0x1b5   : >> { %v2063_v19 = vpop.f32.mrf.mxu1  ;;  %v537_v21 = vpop.f32.mrf.mxu3  ;;  %v519_v57 = vadd.f32 %v518_v20, %v414_v16 }
 0x1b6   : >> { %v538_v58 = vadd.f32 %v537_v21, %v433_v17 }
 0x1bc   : >> { %v2065_v22 = vpop.f32.mrf.mxu0  ;;  %v520_v29 = vpop.f32.mrf.mxu2 }
 0x1bd   : >> { %v2067_v23 = vpop.f32.mrf.mxu1  ;;  %v539_v32 = vpop.f32.mrf.mxu3  ;;  %v521_v3 = vadd.f32 %v520_v29, %v416_v18 }
 0x1be   : >> { %v540_v9 = vadd.f32 %v539_v32, %v2063_v19 }
 0x1c4   : >> { %v2075_v30 = vpop.f32.mrf.mxu0  ;;  %v523_v39 = vpop.f32.mrf.mxu2 }
 0x1c5   : >> { %v2080_v33 = vpop.f32.mrf.mxu1  ;;  %v542_v40 = vpop.f32.mrf.mxu3  ;;  %v524_v29 = vadd.f32 %v523_v39, %v2065_v22 }
 0x1c6   : >> { %v543_v32 = vadd.f32 %v542_v40, %v2067_v23 }
 0x1cc   : >> { %v641_v36 = vpop.f32.mrf.mxu0  ;;  %v525_v46 = vpop.f32.mrf.mxu2 }
 0x1cd   : >> { %v660_v38 = vpop.f32.mrf.mxu1  ;;  %v544_v48 = vpop.f32.mrf.mxu3  ;;  %v670_v59 = vadd.f32 %v641_v36, %v519_v57 }
 0x1ce   : >> { %v671_v60 = vadd.f32 %v660_v38, %v538_v58  ;;  %v545_v23 = vadd.f32 %v544_v48, %v2080_v33 }
 0x1d4   : >> { %v643_v42 = vpop.f32.mrf.mxu0  ;;  %v772_v53 = vpop.f32.mrf.mxu2 }
 0x1d5   : >> { %v662_v45 = vpop.f32.mrf.mxu1  ;;  %v791_v54 = vpop.f32.mrf.mxu3  ;;  %v801_v63 = vadd.f32 %v772_v53, %v670_v59  ;;  %v672_v11 = vadd.f32 %v643_v42, %v521_v3  ;;  %v526_v53 = vadd.f32 %v525_v46, %v2075_v30 }
 0x1d6   : >> { %v802_v2 = vadd.f32 %v791_v54, %v671_v60  ;;  %v673_v12 = vadd.f32 %v662_v45, %v540_v9 }
 0x1dc   : >> { %v646_v49 = vpop.f32.mrf.mxu0  ;;  %v774_v61 = vpop.f32.mrf.mxu2 }
 0x1dd   : >> { %v665_v52 = vpop.f32.mrf.mxu1  ;;  %v793_v0 = vpop.f32.mrf.mxu3  ;;  %v803_v13 = vadd.f32 %v774_v61, %v672_v11  ;;  %v674_v35 = vadd.f32 %v646_v49, %v524_v29 }
 0x1de   : >> { %v804_v15 = vadd.f32 %v793_v0, %v673_v12  ;;  %v675_v38 = vadd.f32 %v665_v52, %v543_v32 }
 0x1e4   : >> { %v648_v55 = vpop.f32.mrf.mxu0  ;;  %v777_v24 = vpop.f32.mrf.mxu2 }
 0x1e5   : >> { %v667_v56 = vpop.f32.mrf.mxu1  ;;  %v796_v26 = vpop.f32.mrf.mxu3  ;;  %v805_v44 = vadd.f32 %v777_v24, %v674_v35  ;;  %v676_v49 = vadd.f32 %v648_v55, %v526_v53 }
 0x1e6   : >> { %v806_v50 = vadd.f32 %v796_v26, %v675_v38  ;;  %v677_v54 = vadd.f32 %v667_v56, %v545_v23 }
 0x1ec   : >> { %v903_v62 = vpop.f32.mrf.mxu0  ;;  %v779_v39 = vpop.f32.mrf.mxu2 }
 0x1ed   : >> { %v922_v1 = vpop.f32.mrf.mxu1  ;;  %v932_v4 = vadd.f32 %v903_v62, %v801_v63  ;;  %v798_v52 = vpop.f32.mrf.mxu3  ;;  %v807_v57 = vadd.f32 %v779_v39, %v676_v49 }
 0x1ee   : >> { %v933_v10 = vadd.f32 %v922_v1, %v802_v2  ;;  %v808_v59 = vadd.f32 %v798_v52, %v677_v54 }
 0x1ef   : >> { %v940_v14 = vadd.f32 %v932_v4, %v1852_v6 }
 0x1f0   : >> { %v941_v16 = vadd.f32 %v933_v10, %v1852_v6 }
 0x1f1   : >> { %v948_v27 = vmul.f32 0.2, %v940_v14 }
 0x1f2   : >> { %v949_v28 = vmul.f32 0.2, %v941_v16 }
 0x1f3   : >> { %v956_v36 = vmax.f32 %v940_v14, %v948_v27 }
 0x1f4   : >> { %v905_v17 = vpop.f32.mrf.mxu0  ;;  %v957_v41 = vmax.f32 %v941_v16, %v949_v28 }
 0x1f5   : >> { %v934_v20 = vadd.f32 %v905_v17, %v803_v13  ;;  %v924_v21 = vpop.f32.mrf.mxu1 }
 0x1f6   : >> { %v935_v25 = vadd.f32 %v924_v21, %v804_v15 }
 0x1f7   : >> { %v942_v18 = vadd.f32 %v934_v20, %v1856_v8 }
 0x1f8   : >> { %v943_v19 = vadd.f32 %v935_v25, %v1856_v8 }
 0x1f9   : >> { %v950_v31 = vmul.f32 0.2, %v942_v18 }
 0x1fa   : >> { %v951_v34 = vmul.f32 0.2, %v943_v19 }
 0x1fb   : >> { %v958_v37 = vmax.f32 %v942_v18, %v950_v31 }
 0x1fc   : >> { %v959_v42 = vmax.f32 %v943_v19, %v951_v34  ;;  %v908_v43 = vpop.f32.mrf.mxu0 }
 0x1fd   : >> { %v964_v45 = vpack.c.bf16 %v958_v37, %v956_v36  ;;  %v927_v47 = vpop.f32.mrf.mxu1  ;;  %v936_v22 = vadd.f32 %v908_v43, %v805_v44 }
 0x1fe   : >> { %v965_v51 = vpack.c.bf16 %v959_v42, %v957_v41  ;;  %v937_v40 = vadd.f32 %v927_v47, %v806_v50 }
 0x1ff   : >> { %1079 = vmatmul.bf16.vlgmr.msra.gmra.mxu2 %v964_v45  ;;  %v944_v58 = vadd.f32 %v936_v22, %v1850_v5 }
 0x200   : >> { %1625 = vmatmul.msk.bf16.vlgmr.msra.gmra.mxu3 %vm1060_vm9, %v965_v51  ;;  %v945_v60 = vadd.f32 %v937_v40, %v1850_v5 }
 0x201   : >> { %v952_v63 = vmul.f32 0.2, %v944_v58 }
 0x202   : >> { %v953_v48 = vmul.f32 0.2, %v945_v60 }
 0x203   : >> { %v960_v56 = vmax.f32 %v944_v58, %v952_v63 }
 0x204   : >> { %v910_v61 = vpop.f32.mrf.mxu0  ;;  %v961_v3 = vmax.f32 %v945_v60, %v953_v48 }
 0x205   : >> { %v938_v62 = vadd.f32 %v910_v61, %v807_v57  ;;  %v929_v30 = vpop.f32.mrf.mxu1 }
 0x206   : >> { %v939_v46 = vadd.f32 %v929_v30, %v808_v59 }
 0x207   : >> { %v946_v33 = vadd.f32 %v938_v62, %v1854_v7 }
 0x208   : >> { %v947_v0 = vadd.f32 %v939_v46, %v1854_v7 }
 0x209   : >> { %v954_v55 = vmul.f32 0.2, %v946_v33 }
 0x20a   : >> { %v955_v1 = vmul.f32 0.2, %v947_v0 }
 0x20b   : >> { %v962_v2 = vmax.f32 %v946_v33, %v954_v55 }
 0x20c   : >> { %v963_v4 = vmax.f32 %v947_v0, %v955_v1 }
 0x20d   : >> { %v966_v9 = vpack.c.bf16 %v962_v2, %v960_v56 }
 0x20e   : >> { %v967_v10 = vpack.c.bf16 %v963_v4, %v961_v3 }
 0x20f   : >> { %1084 = vmatmul.bf16.gmra.mxu2 %v966_v9 }
 0x210   : >> { %1626 = vmatmul.msk.bf16.gmra.mxu3 %vm1060_vm9, %v967_v10 }
 0x282   : >> { %v1080_v11 = vpop.f32.mrf.mxu2 }
 0x283   : >> { %v1099_v12 = vpop.f32.mrf.mxu3 }
 0x284   : >> { %v1100_v13 = vadd.f32 %v1099_v12, %v1080_v11 }
 0x286   : >> { %1112 = vst.msk [vmem:[%s1110_s19] sm:$0xff] %vm1111_vm10, %v1100_v13 }
 0x28a   : >> { %v1082_v14 = vpop.f32.mrf.mxu2 }
 0x28b   : >> { %v1101_v15 = vpop.f32.mrf.mxu3 }
 0x28c   : >> { %v1102_v16 = vadd.f32 %v1101_v15, %v1082_v14 }
 0x28e   : >> { %1113 = vst.msk [vmem:[%s1110_s19 + $0x8] sm:$0xff] %vm1111_vm10, %v1102_v16 }
 0x292   : >> { %v1085_v17 = vpop.f32.mrf.mxu2 }
 0x293   : >> { %v1104_v20 = vpop.f32.mrf.mxu3 }
 0x294   : >> { %v1105_v21 = vadd.f32 %v1104_v20, %v1085_v17 }
 0x296   : >> { %1114 = vst.msk [vmem:[%s1110_s19 + $0x10] sm:$0xff] %vm1111_vm10, %v1105_v21 }
 0x29a   : >> { %v1087_v24 = vpop.f32.mrf.mxu2  ;;  %300 = sbr.rel (!%p298_p5) target bundleno = 275 (0x113), region = 113 }
 0x29b   : >> { %v1106_v25 = vpop.f32.mrf.mxu3 }
 0x29c   : >> { %v1107_v26 = vadd.f32 %v1106_v25, %v1087_v24 }
 0x29e   : >> { %1115 = vst.msk [vmem:[%s1110_s19 + $0x18] sm:$0xff] %vm1111_vm10, %v1107_v26 }
 0x29f LB: >> { %s1714_s21 = sshll.u32 %s1788_s20, 6  ;;  %s1716_s23 = sshll.u32 %s1788_s20, 4  ;;  %vm1151_vm11 = vcmask 723968   ;;  %s1788_s20 = sphi %s2128_s20, %s1121_s20  }
 0x2a0   : >> { %s1124_s22 = scalar_lea.vmem [#allocation3], %s1714_s21  ;;  %s1150_s17 = scalar_lea.vmem %s1848_s6, %s1716_s23 }
 0x2a1   : >> { %s1121_s20 = sadd.s32 1, %s1788_s20  }
 0x2a2   : >> { %p1118_p6 = scmp.ge.s32.totalorder %s1121_s20, 109  }
 0x2a5   : >> { %v1125_v27 = vld [vmem:[%s1124_s22] sm:$0xff]  ;;  %v1126_v28 = vld [vmem:[%s1124_s22 + $0x8] sm:$0xff]  ;;  %v1127_v31 = vld [vmem:[%s1124_s22 + $0x10] sm:$0xff] }
 0x2a6   : >> { %v1632_v18 = vld [vmem:[%s1124_s22 + $0x20] sm:$0xff]  ;;  %v1633_v29 = vld [vmem:[%s1124_s22 + $0x28] sm:$0xff]  ;;  %v1634_v32 = vld [vmem:[%s1124_s22 + $0x30] sm:$0xff] }
 0x2a7   : >> { %v1136_v19 = vadd.f32 %v1632_v18, %v1125_v27  ;;  %v1137_v5 = vadd.f32 %v1633_v29, %v1126_v28  ;;  %v1138_v6 = vadd.f32 %v1634_v32, %v1127_v31  ;;  %v1128_v7 = vld [vmem:[%s1124_s22 + $0x18] sm:$0xff] }
 0x2a8   : >> { %v1635_v8 = vld [vmem:[%s1124_s22 + $0x38] sm:$0xff] }
 0x2a9   : >> { %v1140_v34 = vmul.f32 0.25, %v1136_v19  ;;  %v1139_v35 = vadd.f32 %v1635_v8, %v1128_v7  ;;  %v1141_v36 = vmul.f32 0.25, %v1137_v5  ;;  %v1142_v37 = vmul.f32 0.25, %v1138_v6 }
 0x2ab   : >> { %v1144_v38 = vpack.c.bf16 %v1140_v34, %v1140_v34  ;;  %v1143_v41 = vmul.f32 0.25, %v1139_v35  ;;  %v1145_v42 = vpack.c.bf16 %v1141_v36, %v1141_v36  ;;  %v1146_v43 = vpack.c.bf16 %v1142_v37, %v1142_v37 }
 0x2ac   : > { %1120 = sbr.rel (!%p1118_p6) target bundleno = 671 (0x29f), region = 124 }
 0x2ad   : >> { %1152 = vst.msk [vmem:[%s1150_s17] sm:$0xf] %vm1151_vm11, %v1144_v38  ;;  %v1147_v44 = vpack.c.bf16 %v1143_v41, %v1143_v41 }
 0x2ae   : >> { %1153 = vst.msk [vmem:[%s1150_s17 + $0x4] sm:$0xf] %vm1151_vm11, %v1145_v42 }
 0x2af   : >> { %1154 = vst.msk [vmem:[%s1150_s17 + $0x8] sm:$0xf] %vm1151_vm11, %v1146_v43 }
 0x2b0   : >> { %1155 = vst.msk [vmem:[%s1150_s17 + $0xc] sm:$0xf] %vm1151_vm11, %v1147_v44 }
 0x2b1 PF: > { %s14_s15 = sadd.s32 1, %s1776_s15  }
 0x2b2   : > { %p11_p7 = scmp.ge.s32.totalorder %s14_s15, 4  }
 0x2b4   :  { %13 = sbr.rel (!%p11_p7) target bundleno = 1 (0x1), region = 135 }

// kernel: base_discriminator_forward.5
= control target key start
LH: loop header
LB: loop body
LE: loop exit
PB: predicated region body
PF: predicated region fallthrough
CT: control target
= control target key end

     0   :  { %s1952_s15 = smov 0   ;;  %s2285_s0 = inlined_call_operand.vmem [shape: bf16[2,113,32,93], index: 0, kind: input, shape index: {}]   ;;  %s2286_s1 = inlined_call_operand.vmem [shape: bf16[5,32,160], index: 1, kind: input, shape index: {}]   ;;  %s2287_s2 = inlined_call_operand.vmem [shape: f32[32,1], index: 2, kind: input, shape index: {}]   ;;  %s2288_s3 = inlined_call_operand.vmem [shape: bf16[89,44], index: 3, kind: input, shape index: {}]   ;;  %s2289_s4 = inlined_call_operand.vmem [shape: bf16[2,54,32,44], index: 4, kind: output, shape index: {}]  }
   0x1 LB: > { %s1323_s16 = sadd.s32 4294967295, %s1907_s15   ;;  %p1327_p0 = scmp.ge.s32.totalorder %s1907_s15, 1  ;;  %s1907_s15 = sphi %s1952_s15, %s14_s15  }
   0x2   : > { %p162_p1 = scmp.lt.s32.totalorder %s1907_s15, 3 }
   0x4   : > { %p163_p2 = pnand %p1327_p0, %p162_p1 }
   0x5   : > { %p188_p3 = scmp.lt.s32.totalorder (!%p163_p2), %s1323_s16, 1  ;;  %s1990_s7 = smov (!%p163_p2), 0  }
   0x6   : > { %166 = sbr.rel (%p163_p2) target bundleno = 701 (0x2bd), region = 36 }
   0xb   : > { %v201_v0 = vld [vmem:[%s2287_s2 + $0x10] sm:$0xff]  ;;  %v199_v1 = vld [vmem:[%s2287_s2] sm:$0xff]  ;;  %v1921_v2 = vmov 0   ;;  %s2291_s16 = smov (!%p188_p3, %s1323_s16), 1  ;;  %v202_v3 = vld [vmem:[%s2287_s2 + $0x18] sm:$0xff] }
   0xc   : > { %1888 = vset.pattern.permute.xlu1 %v1921_v2  ;;  %1887 = vset.pattern.permute.xlu0 %v1921_v2  ;;  %s1847_s21 = smul.u32 1808, %s2291_s16  ;;  %v200_v4 = vld [vmem:[%s2287_s2 + $0x8] sm:$0xff] }
   0xd   : > { %215 = vperm.xlu1 %1888, %v201_v0   ;;  %205 = vperm.xlu0 %1887, %v199_v1   ;;  %s1848_s22 = smul.u32 864, %s2291_s16 }
   0xe   : > { %s1969_s25 = scalar_lea.vmem %s2285_s0, %s1847_s21 }
   0xf   : > { %s1980_s6 = scalar_lea.vmem %s2289_s4, %s1848_s22 }
  0x15   : > { %220 = vperm.xlu1 %1888, %v202_v3   ;;  %210 = vperm.xlu0 %1887, %v200_v4  }
  0x7f   : > { %v1982_v5 = vpop.permute.xlu1 %215  ;;  %v1984_v6 = vpop.permute.xlu0 %205 }
  0x87   : > { %v1986_v7 = vpop.permute.xlu1 %220  ;;  %v1988_v8 = vpop.permute.xlu0 %210 }
  0x88 LB: >> { %s1759_s8 = sshll.u32 %s1911_s7, 4  ;;  %s1760_s9 = smul.u32 80, %s1911_s7  ;;  %vm239_vm0 = vcmask 723968   ;;  %s1911_s7 = sphi %s1990_s7, %s228_s7  }
  0x89   : >> { %s231_s10 = scalar_lea.vmem %s1969_s25, %s1759_s8  ;;  %s1922_s11 = smov 127  }
  0x8a   : >> { %v232_v9 = vld [vmem:[%s231_s10] sm:$0xf]  ;;  %v234_v10 = vld [vmem:[%s231_s10 + $0x8] sm:$0xf]  ;;  %s1998_s12 = scalar_lea.vmem [#allocation2], %s1760_s9  ;;  %s1923_s13 = smov 126  }
  0x8b   : >> { %248 = vrot.lane.b32.xlu0 %v232_v9, %s1922_s11  ;;  %240 = vst.msk [vmem:[%s1998_s12] sm:$0xf] %vm239_vm0, %v232_v9  ;;  %252 = vrot.lane.b32.xlu1 %v234_v10, %s1922_s11  ;;  %v233_v11 = vld [vmem:[%s231_s10 + $0x4] sm:$0xf]  ;;  %s1924_s14 = smov 125   ;;  %s1925_s16 = smov 124  }
  0x8c   : >> { %242 = vst.msk [vmem:[%s1998_s12 + $0x8] sm:$0xf] %vm239_vm0, %v234_v10  ;;  %264 = vrot.lane.b32.xlu2 %v232_v9, %s1923_s13  ;;  %v235_v12 = vld [vmem:[%s231_s10 + $0xc] sm:$0xf]  ;;  %s228_s7 = sadd.s32 1, %s1911_s7  }
  0x8d   : >> { %241 = vst.msk [vmem:[%s1998_s12 + $0x4] sm:$0xf] %vm239_vm0, %v233_v11  ;;  %p225_p4 = scmp.ge.s32.totalorder %s228_s7, 113  }
  0x8e   : >> { %243 = vst.msk [vmem:[%s1998_s12 + $0xc] sm:$0xf] %vm239_vm0, %v235_v12  ;;  %s2043_s17 = smov (%p225_p4), 0  }
  0x93   : >> { %250 = vrot.lane.b32.xlu0 %v233_v11, %s1922_s11  ;;  %254 = vrot.lane.b32.xlu1 %v235_v12, %s1922_s11 }
  0x94   : >> { %266 = vrot.lane.b32.xlu2 %v233_v11, %s1923_s13 }
  0x9b   : >> { %268 = vrot.lane.b32.xlu0 %v234_v10, %s1923_s13  ;;  %270 = vrot.lane.b32.xlu1 %v235_v12, %s1923_s13 }
  0x9c   : >> { %280 = vrot.lane.b32.xlu2 %v232_v9, %s1924_s14 }
  0xa3   : >> { %282 = vrot.lane.b32.xlu0 %v233_v11, %s1924_s14  ;;  %284 = vrot.lane.b32.xlu1 %v234_v10, %s1924_s14 }
  0xa4   : >> { %286 = vrot.lane.b32.xlu2 %v235_v12, %s1924_s14 }
  0xab   : >> { %296 = vrot.lane.b32.xlu0 %v232_v9, %s1925_s16  ;;  %298 = vrot.lane.b32.xlu1 %v233_v11, %s1925_s16 }
  0xac   : >> { %300 = vrot.lane.b32.xlu2 %v234_v10, %s1925_s16 }
  0xb3   : >> { %302 = vrot.lane.b32.xlu0 %v235_v12, %s1925_s16 }
  0xe6   : >> { %v265_v13 = vpop.permute.xlu2 %264 }
  0xe7   : >> { %276 = vst.msk [vmem:[%s1998_s12 + $0x20] sm:$0xf] %vm239_vm0, %v265_v13 }
  0xee   : >> { %v267_v14 = vpop.permute.xlu2 %266 }
  0xef   : >> { %277 = vst.msk [vmem:[%s1998_s12 + $0x24] sm:$0xf] %vm239_vm0, %v267_v14 }
  0xf6   : >> { %v281_v15 = vpop.permute.xlu2 %280 }
  0xf7   : >> { %292 = vst.msk [vmem:[%s1998_s12 + $0x30] sm:$0xf] %vm239_vm0, %v281_v15 }
  0xfd   : >> { %v249_v16 = vpop.permute.xlu0 %248  ;;  %v253_v17 = vpop.permute.xlu1 %252 }
  0xfe   : >> { %260 = vst.msk [vmem:[%s1998_s12 + $0x10] sm:$0xf] %vm239_vm0, %v249_v16  ;;  %v287_v18 = vpop.permute.xlu2 %286 }
  0xff   : >> { %262 = vst.msk [vmem:[%s1998_s12 + $0x18] sm:$0xf] %vm239_vm0, %v253_v17 }
 0x100   : >> { %295 = vst.msk [vmem:[%s1998_s12 + $0x3c] sm:$0xf] %vm239_vm0, %v287_v18 }
 0x105   : >> { %v251_v19 = vpop.permute.xlu0 %250  ;;  %v255_v20 = vpop.permute.xlu1 %254 }
 0x106   : >> { %261 = vst.msk [vmem:[%s1998_s12 + $0x14] sm:$0xf] %vm239_vm0, %v251_v19  ;;  %v301_v21 = vpop.permute.xlu2 %300 }
 0x107   : >> { %263 = vst.msk [vmem:[%s1998_s12 + $0x1c] sm:$0xf] %vm239_vm0, %v255_v20 }
 0x108   : >> { %310 = vst.msk [vmem:[%s1998_s12 + $0x48] sm:$0xf] %vm239_vm0, %v301_v21 }
 0x10d   : >> { %v269_v22 = vpop.permute.xlu0 %268  ;;  %v271_v23 = vpop.permute.xlu1 %270 }
 0x10e   : >> { %278 = vst.msk [vmem:[%s1998_s12 + $0x28] sm:$0xf] %vm239_vm0, %v269_v22 }
 0x10f   : >> { %279 = vst.msk [vmem:[%s1998_s12 + $0x2c] sm:$0xf] %vm239_vm0, %v271_v23 }
 0x115   : >> { %v283_v24 = vpop.permute.xlu0 %282  ;;  %v285_v25 = vpop.permute.xlu1 %284 }
 0x116   : >> { %293 = vst.msk [vmem:[%s1998_s12 + $0x34] sm:$0xf] %vm239_vm0, %v283_v24 }
 0x117   : >> { %294 = vst.msk [vmem:[%s1998_s12 + $0x38] sm:$0xf] %vm239_vm0, %v285_v25 }
 0x11d   : >> { %v297_v26 = vpop.permute.xlu0 %296  ;;  %v299_v27 = vpop.permute.xlu1 %298 }
 0x11e   : >> { %308 = vst.msk [vmem:[%s1998_s12 + $0x40] sm:$0xf] %vm239_vm0, %v297_v26 }
 0x11f   : >> { %309 = vst.msk [vmem:[%s1998_s12 + $0x44] sm:$0xf] %vm239_vm0, %v299_v27 }
 0x122   : > { %227 = sbr.rel (!%p225_p4) target bundleno = 136 (0x88), region = 102 }
 0x125   : >> { %v303_v28 = vpop.permute.xlu0 %302 }
 0x126   : >> { %311 = vst.msk [vmem:[%s1998_s12 + $0x4c] sm:$0xf] %vm239_vm0, %v303_v28 }
 0x127 LB: >> { %s1765_s18 = smul.u32 80, %s1915_s17  ;;  %v1776_v33 = vld [vmem:[%s2286_s1 + $0x24] sm:$0xf]  ;;  %v1362_v34 = vld [vmem:[%s2286_s1 + $0x28] sm:$0xf0]  ;;  %vm452_vm1 = vcmask 261120   ;;  %s1915_s17 = sphi %s2043_s17, %s317_s17  }
 0x128   : >> { %v1761_v37 = vld [vmem:[%s2286_s1 + $0x4] sm:$0xf]  ;;  %v1420_v40 = vld [vmem:[%s2286_s1 + $0x8] sm:$0xf0]  ;;  %v1365_v43 = vor.u32 %v1776_v33, %v1362_v34  ;;  %v1778_v57 = vld [vmem:[%s2286_s1 + $0x34] sm:$0xf] }
 0x129   : >> { %s2049_s19 = scalar_lea.vmem [#allocation2], %s1765_s18  ;;  %v1423_v44 = vor.u32 %v1761_v37, %v1420_v40  ;;  %v1370_v58 = vld [vmem:[%s2286_s1 + $0x38] sm:$0xf0]  ;;  %v1763_v60 = vld [vmem:[%s2286_s1 + $0x14] sm:$0xf]  ;;  %vm1152_vm2 = vcmask 1043456  }
 0x12a   : >> { %v1428_v61 = vld [vmem:[%s2286_s1 + $0x18] sm:$0xf0]  ;;  %v1373_v63 = vor.u32 %v1778_v57, %v1370_v58  ;;  %v1360_v4 = vld [vmem:[%s2286_s1 + $0x20] sm:$0xf]  ;;  %v1777_v9 = vld [vmem:[%s2286_s1 + $0x24] sm:$0xf0] }
 0x12b   : >> { %v1431_v0 = vor.u32 %v1763_v60, %v1428_v61  ;;  %v1418_v13 = vld [vmem:[%s2286_s1] sm:$0xf]  ;;  %v1762_v14 = vld [vmem:[%s2286_s1 + $0x4] sm:$0xf0]  ;;  %v1361_v18 = vor.u32 %v1777_v9, %v1360_v4  ;;  %v1790_v26 = vld [vmem:[%s2286_s1 + $0x44] sm:$0xf] }
 0x12c   : >> { %v1419_v19 = vor.u32 %v1762_v14, %v1418_v13  ;;  %v1500_v24 = vld [vmem:[%s2286_s1 + $0x40] sm:$0xf]  ;;  %v1791_v25 = vld [vmem:[%s2286_s1 + $0x44] sm:$0xf0]  ;;  %v1502_v27 = vld [vmem:[%s2286_s1 + $0x48] sm:$0xf0] }
 0x12d   : >> { %v1787_v29 = vld [vmem:[%s2049_s19 + $0x88] sm:$0xff]  ;;  %v1789_v30 = vld [vmem:[%s2049_s19 + $0x98] sm:$0xff]  ;;  %v1786_v35 = vld [vmem:[%s2049_s19 + $0x80] sm:$0xff]  ;;  %vm1153_vm3 = vcmask 1044480   ;;  %vm1145_vm4 = vcmask 728064   ;;  %s1746_s24 = sshll.u32 %s1915_s17, 5 }
 0x12e   : >> { %v1773_v31 = vld [vmem:[%s2049_s19 + $0x38] sm:$0xff]  ;;  %v1775_v32 = vld [vmem:[%s2049_s19 + $0x48] sm:$0xff]  ;;  %459 = vmatpush.bf16.msra.mxu0 %v1787_v29  ;;  %484 = vmatpush.bf16.msra.mxu1 %v1789_v30  ;;  %v1788_v36 = vld [vmem:[%s2049_s19 + $0x90] sm:$0xff]  ;;  %v1501_v29 = vor.u32 %v1791_v25, %v1500_v24  ;;  %v1505_v30 = vor.u32 %v1790_v26, %v1502_v27  ;;  %vm1180_vm5 = vcmask 359424   ;;  %s1179_s25 = scalar_lea.vmem [#allocation3], %s1746_s24  ;;  %s317_s17 = sadd.s32 1, %s1915_s17  }
 0x12f   : >> { %581 = vmatpush.bf16.msra.mxu2 %v1773_v31  ;;  %606 = vmatpush.bf16.msra.mxu3 %v1775_v32  ;;  %v1772_v38 = vld [vmem:[%s2049_s19 + $0x30] sm:$0xff]  ;;  %v1774_v39 = vld [vmem:[%s2049_s19 + $0x40] sm:$0xff]  ;;  %v1803_v41 = vld [vmem:[%s2049_s19 + $0xe8] sm:$0xff]  ;;  %p314_p5 = scmp.ge.s32.totalorder %s317_s17, 109  }
 0x130   : >> { %v1801_v42 = vld [vmem:[%s2049_s19 + $0xd8] sm:$0xff]  ;;  %v1771_v46 = vld [vmem:[%s2049_s19 + $0x28] sm:$0xff]  ;;  %v1800_v47 = vld [vmem:[%s2049_s19 + $0xd0] sm:$0xff]  ;;  %s2271_s26 = smov (%p314_p5), 0  }
 0x131   : >> { %v1785_v45 = vld [vmem:[%s2049_s19 + $0x78] sm:$0xff]  ;;  %v1802_v48 = vld [vmem:[%s2049_s19 + $0xe0] sm:$0xff]  ;;  %v1784_v49 = vld [vmem:[%s2049_s19 + $0x70] sm:$0xff] }
 0x132   : >> { %460 = vmatpush.bf16.msra.mxu0 %v1786_v35  ;;  %485 = vmatpush.bf16.msra.mxu1 %v1788_v36  ;;  %v1770_v50 = vld [vmem:[%s2049_s19 + $0x20] sm:$0xff]  ;;  %v1799_v51 = vld [vmem:[%s2049_s19 + $0xc8] sm:$0xff]  ;;  %v1769_v54 = vld [vmem:[%s2049_s19 + $0x18] sm:$0xff] }
 0x133   : >> { %582 = vmatpush.bf16.msra.mxu2 %v1772_v38  ;;  %607 = vmatpush.bf16.msra.mxu3 %v1774_v39  ;;  %v1831_v52 = vld [vmem:[%s2049_s19 + $0x188] sm:$0xff]  ;;  %v1798_v55 = vld [vmem:[%s2049_s19 + $0xc0] sm:$0xff]  ;;  %v1768_v59 = vld [vmem:[%s2049_s19 + $0x10] sm:$0xff] }
 0x134   : >> { %v1783_v53 = vld [vmem:[%s2049_s19 + $0x68] sm:$0xff]  ;;  %v1782_v56 = vld [vmem:[%s2049_s19 + $0x60] sm:$0xff]  ;;  %v1797_v62 = vld [vmem:[%s2049_s19 + $0xb8] sm:$0xff] }
 0x135   : >> { %1414 = vmatmul.msk.bf16.vlgmr.msra.gmra.mxu1 %vm452_vm1, %v1365_v43  ;;  %v1781_v1 = vld [vmem:[%s2049_s19 + $0x58] sm:$0xff]  ;;  %v1767_v2 = vld [vmem:[%s2049_s19 + $0x8] sm:$0xff]  ;;  %v1796_v3 = vld [vmem:[%s2049_s19 + $0xb0] sm:$0xff] }
 0x136   : >> { %732 = vmatpush.bf16.msrb.mxu1 %v1801_v42  ;;  %1472 = vmatmul.msk.bf16.vlgmr.msra.gmra.mxu3 %vm452_vm1, %v1423_v44  ;;  %v1780_v10 = vld [vmem:[%s2049_s19 + $0x50] sm:$0xff]  ;;  %v1766_v11 = vld [vmem:[%s2049_s19] sm:$0xff]  ;;  %v1815_v15 = vld [vmem:[%s2049_s19 + $0x128] sm:$0xff] }
 0x137   : >> { %757 = vmatpush.bf16.msrb.mxu3 %v1803_v41  ;;  %461 = vmatpush.bf16.msra.mxu0 %v1785_v45  ;;  %v1830_v12 = vld [vmem:[%s2049_s19 + $0x180] sm:$0xff]  ;;  %v1795_v16 = vld [vmem:[%s2049_s19 + $0xa8] sm:$0xff]  ;;  %v1817_v17 = vld [vmem:[%s2049_s19 + $0x138] sm:$0xff] }
 0x138   : >> { %583 = vmatpush.bf16.msra.mxu2 %v1771_v46  ;;  %v1814_v20 = vld [vmem:[%s2049_s19 + $0x120] sm:$0xff]  ;;  %v1816_v22 = vld [vmem:[%s2049_s19 + $0x130] sm:$0xff]  ;;  %v1829_v23 = vld [vmem:[%s2049_s19 + $0x178] sm:$0xff] }
 0x139   : >> { %v1794_v21 = vld [vmem:[%s2049_s19 + $0xa0] sm:$0xff]  ;;  %v1813_v28 = vld [vmem:[%s2049_s19 + $0x118] sm:$0xff]  ;;  %v1828_v31 = vld [vmem:[%s2049_s19 + $0x170] sm:$0xff] }
 0x13a   : >> { %733 = vmatpush.bf16.msrb.mxu1 %v1800_v47  ;;  %v1812_v32 = vld [vmem:[%s2049_s19 + $0x110] sm:$0xff]  ;;  %v1779_v34 = vld [vmem:[%s2286_s1 + $0x34] sm:$0xf0]  ;;  %v1827_v35 = vld [vmem:[%s2049_s19 + $0x168] sm:$0xff] }
 0x13b   : >> { %758 = vmatpush.bf16.msrb.mxu3 %v1802_v48  ;;  %462 = vmatpush.bf16.msra.mxu0 %v1784_v49  ;;  %v1368_v33 = vld [vmem:[%s2286_s1 + $0x30] sm:$0xf]  ;;  %v1764_v37 = vld [vmem:[%s2286_s1 + $0x14] sm:$0xf0]  ;;  %v1811_v38 = vld [vmem:[%s2049_s19 + $0x108] sm:$0xff] }
 0x13c   : >> { %584 = vmatpush.bf16.msra.mxu2 %v1770_v50  ;;  %v1426_v36 = vld [vmem:[%s2286_s1 + $0x10] sm:$0xf]  ;;  %v1369_v39 = vor.u32 %v1779_v34, %v1368_v33  ;;  %v1826_v41 = vld [vmem:[%s2049_s19 + $0x160] sm:$0xff]  ;;  %v1793_v44 = vld [vmem:[%s2286_s1 + $0x54] sm:$0xf0] }
 0x13d   : >> { %v1427_v40 = vor.u32 %v1764_v37, %v1426_v36  ;;  %v1810_v42 = vld [vmem:[%s2049_s19 + $0x100] sm:$0xff]  ;;  %v1508_v43 = vld [vmem:[%s2286_s1 + $0x50] sm:$0xf]  ;;  %v1825_v45 = vld [vmem:[%s2049_s19 + $0x158] sm:$0xff]  ;;  %v1926_v36 = vmov 65535  }
 0x13e   : >> { %734 = vmatpush.bf16.msrb.mxu1 %v1799_v51  ;;  %v1792_v46 = vld [vmem:[%s2286_s1 + $0x54] sm:$0xf]  ;;  %v1510_v47 = vld [vmem:[%s2286_s1 + $0x58] sm:$0xf0]  ;;  %v1509_v49 = vor.u32 %v1793_v44, %v1508_v43  ;;  %v1584_v57 = vld [vmem:[%s2286_s1 + $0x68] sm:$0xf0] }
 0x13f   : >> { %1067 = vmatpush.bf16.msra.mxu3 %v1831_v52  ;;  %463 = vmatpush.bf16.msra.mxu0 %v1783_v53  ;;  %v1809_v48 = vld [vmem:[%s2049_s19 + $0xf8] sm:$0xff]  ;;  %v1513_v50 = vor.u32 %v1792_v46, %v1510_v47  ;;  %v1824_v51 = vld [vmem:[%s2049_s19 + $0x150] sm:$0xff]  ;;  %v1823_v53 = vld [vmem:[%s2049_s19 + $0x148] sm:$0xff]  ;;  %v1154_v37 = vsel %vm1152_vm2, 4294967295, %v1926_v36 }
 0x140   : >> { %585 = vmatpush.bf16.msra.mxu2 %v1769_v54  ;;  %v1808_v52 = vld [vmem:[%s2049_s19 + $0xf0] sm:$0xff]  ;;  %v1582_v54 = vld [vmem:[%s2286_s1 + $0x60] sm:$0xf]  ;;  %v1807_v4 = vld [vmem:[%s2286_s1 + $0x74] sm:$0xf0] }
 0x141   : >> { %v1822_v60 = vld [vmem:[%s2049_s19 + $0x140] sm:$0xff]  ;;  %v1806_v9 = vld [vmem:[%s2286_s1 + $0x74] sm:$0xf]  ;;  %v1672_v13 = vld [vmem:[%s2286_s1 + $0x90] sm:$0xf] }
 0x142   : >> { %735 = vmatpush.bf16.msrb.mxu1 %v1798_v55  ;;  %v1805_v55 = vld [vmem:[%s2286_s1 + $0x64] sm:$0xf0]  ;;  %v1664_v61 = vld [vmem:[%s2286_s1 + $0x80] sm:$0xf]  ;;  %v1821_v14 = vld [vmem:[%s2286_s1 + $0x94] sm:$0xf0] }
 0x143   : >> { %464 = vmatpush.bf16.msra.mxu0 %v1782_v56  ;;  %1068 = vmatpush.bf16.msra.mxu3 %v1830_v12  ;;  %v1804_v56 = vld [vmem:[%s2286_s1 + $0x64] sm:$0xf]  ;;  %v1583_v58 = vor.u32 %v1805_v55, %v1582_v54  ;;  %v1742_v33 = vld [vmem:[%s2288_s3 + $0x28] sm:$0xf]  ;;  %v1837_v34 = vld [vmem:[%s2288_s3 + $0x28] sm:$0x10] }
 0x144   : >> { %586 = vmatpush.bf16.msra.mxu2 %v1768_v59  ;;  %v1587_v59 = vor.u32 %v1804_v56, %v1584_v57  ;;  %v1836_v43 = vld [vmem:[%s2288_s3 + $0x20] sm:$0xff]  ;;  %v1835_v46 = vld [vmem:[%s2288_s3 + $0x18] sm:$0xff]  ;;  %v1833_v54 = vld [vmem:[%s2288_s3 + $0x8] sm:$0xff] }
 0x145   : >> { %1415 = vmatmul.msk.bf16.gmra.mxu1 %vm452_vm1, %v1373_v63  ;;  %v1818_v63 = vld [vmem:[%s2286_s1 + $0x84] sm:$0xf] }
 0x146   : >> { %736 = vmatpush.bf16.msrb.mxu1 %v1797_v62  ;;  %1473 = vmatmul.msk.bf16.gmra.mxu3 %vm452_vm1, %v1431_v0  ;;  %v1819_v62 = vld [vmem:[%s2286_s1 + $0x84] sm:$0xf0]  ;;  %v1666_v0 = vld [vmem:[%s2286_s1 + $0x88] sm:$0xf0] }
 0x147   : >> { %465 = vmatpush.bf16.msra.mxu0 %v1781_v1  ;;  %v1665_v1 = vor.u32 %v1819_v62, %v1664_v61 }
 0x148   : >> { %587 = vmatpush.bf16.msra.mxu2 %v1767_v2  ;;  %v1669_v2 = vor.u32 %v1818_v63, %v1666_v0 }
 0x14a   : >> { %737 = vmatpush.bf16.msrb.mxu1 %v1796_v3  ;;  %v1590_v3 = vld [vmem:[%s2286_s1 + $0x70] sm:$0xf] }
 0x14b   : >> { %466 = vmatpush.bf16.msra.mxu0 %v1780_v10  ;;  %v1592_v10 = vld [vmem:[%s2286_s1 + $0x78] sm:$0xf0] }
 0x14c   : >> { %588 = vmatpush.bf16.msra.mxu2 %v1766_v11  ;;  %v1591_v11 = vor.u32 %v1807_v4, %v1590_v3  ;;  %v1595_v12 = vor.u32 %v1806_v9, %v1592_v10 }
 0x14e   : >> { %738 = vmatpush.bf16.msrb.mxu1 %v1795_v16  ;;  %467 = vmatmul.bf16.vlgmr.msra.gmra.mxu0 %v1361_v18  ;;  %v1674_v16 = vld [vmem:[%s2286_s1 + $0x98] sm:$0xf0] }
 0x14f   : >> { %887 = vmatpush.bf16.msrb.mxu0 %v1815_v15  ;;  %589 = vmatmul.bf16.vlgmr.msra.gmra.mxu2 %v1419_v19  ;;  %v1820_v15 = vld [vmem:[%s2286_s1 + $0x94] sm:$0xf] }
 0x150   : >> { %912 = vmatpush.bf16.msrb.mxu2 %v1817_v17  ;;  %v1673_v17 = vor.u32 %v1821_v14, %v1672_v13  ;;  %v1677_v18 = vor.u32 %v1820_v15, %v1674_v16 }
 0x152   : >> { %739 = vmatpush.bf16.msrb.mxu1 %v1794_v21 }
 0x153   : >> { %888 = vmatpush.bf16.msrb.mxu0 %v1814_v20 }
 0x154   : >> { %913 = vmatpush.bf16.msrb.mxu2 %v1816_v22 }
 0x155   : >> { %740 = vmatmul.bf16.vlgmr.msrb.gmra.mxu1 %v1501_v29 }
 0x156   : >> { %1042 = vmatpush.bf16.msra.mxu1 %v1829_v23  ;;  %1554 = vmatmul.msk.bf16.vlgmr.msrb.gmra.mxu3 %vm452_vm1, %v1505_v30 }
 0x157   : >> { %889 = vmatpush.bf16.msrb.mxu0 %v1813_v28 }
 0x15a   : >> { %1043 = vmatpush.bf16.msra.mxu1 %v1828_v31 }
 0x15b   : >> { %890 = vmatpush.bf16.msrb.mxu0 %v1812_v32 }
 0x15e   : >> { %1044 = vmatpush.bf16.msra.mxu1 %v1827_v35  ;;  %472 = vmatmul.bf16.gmra.mxu0 %v1369_v39  ;;  %v1743_v35 = vor.u32 %v1837_v34, %v1742_v33  ;;  %v1155_v39 = vsel %vm1153_vm3, %v1154_v37, 0 }
 0x15f   : >> { %891 = vmatpush.bf16.msrb.mxu0 %v1811_v38  ;;  %594 = vmatmul.bf16.gmra.mxu2 %v1427_v40 }
 0x160   : >> { %v1157_v40 = vand.u32 %v1743_v35, %v1155_v39 }
 0x162   : >> { %1045 = vmatpush.bf16.msra.mxu1 %v1826_v41  ;;  %1841 = vmatpush.bf16.msra.mxu2 %v1157_v40 }
 0x163   : >> { %892 = vmatpush.bf16.msrb.mxu0 %v1810_v42 }
 0x165   : >> { %745 = vmatmul.bf16.gmra.mxu1 %v1509_v49 }
 0x166   : >> { %1046 = vmatpush.bf16.msra.mxu1 %v1825_v45  ;;  %1555 = vmatmul.msk.bf16.gmra.mxu3 %vm452_vm1, %v1513_v50  ;;  %v1834_v50 = vld [vmem:[%s2288_s3 + $0x10] sm:$0xff] }
 0x167   : >> { %893 = vmatpush.bf16.msrb.mxu0 %v1809_v48  ;;  %1842 = vmatpush.bf16.msra.mxu2 %v1836_v43 }
 0x16a   : >> { %1047 = vmatpush.bf16.msra.mxu1 %v1824_v51 }
 0x16b   : >> { %894 = vmatpush.bf16.msrb.mxu0 %v1808_v52  ;;  %1843 = vmatpush.bf16.msra.mxu2 %v1835_v46 }
 0x16e   : >> { %1048 = vmatpush.bf16.msra.mxu1 %v1823_v53  ;;  %895 = vmatmul.bf16.vlgmr.msrb.gmra.mxu0 %v1583_v58  ;;  %v1832_v58 = vld [vmem:[%s2288_s3] sm:$0xff] }
 0x16f   : >> { %1636 = vmatmul.msk.bf16.vlgmr.msrb.gmra.mxu2 %vm452_vm1, %v1587_v59  ;;  %1161 = vmatpush.bf16.msra.mxu0 %v1157_v40 }
 0x170   : >> { %1844 = vmatpush.bf16.msra.mxu2 %v1834_v50 }
 0x172   : >> { %1049 = vmatpush.bf16.msra.mxu1 %v1822_v60 }
 0x173   : >> { %1162 = vmatpush.bf16.msra.mxu0 %v1836_v43 }
 0x174   : >> { %1845 = vmatpush.bf16.msra.mxu2 %v1833_v54 }
 0x175   : >> { %1050 = vmatmul.bf16.vlgmr.msra.gmra.mxu1 %v1665_v1 }
 0x176   : >> { %1718 = vmatmul.msk.bf16.vlgmr.msra.gmra.mxu3 %vm452_vm1, %v1669_v2 }
 0x177   : >> { %1163 = vmatpush.bf16.msra.mxu0 %v1835_v46 }
 0x178   : >> { %1846 = vmatpush.bf16.msra.mxu2 %v1832_v58 }
 0x17b   : >> { %1164 = vmatpush.bf16.msra.mxu0 %v1834_v50 }
 0x17e   : >> { %900 = vmatmul.bf16.gmra.mxu0 %v1591_v11 }
 0x17f   : >> { %1637 = vmatmul.msk.bf16.gmra.mxu2 %vm452_vm1, %v1595_v12  ;;  %1165 = vmatpush.bf16.msra.mxu0 %v1833_v54 }
 0x183   : >> { %1166 = vmatpush.bf16.msra.mxu0 %v1832_v58 }
 0x185   : >> { %1055 = vmatmul.bf16.gmra.mxu1 %v1673_v17 }
 0x186   : >> { %1719 = vmatmul.msk.bf16.gmra.mxu3 %vm452_vm1, %v1677_v18 }
 0x1b2   : >> { %v487_v19 = vpop.f32.mrf.mxu1 }
 0x1b9   : >> { %v609_v20 = vpop.f32.mrf.mxu3 }
 0x1ba   : >> { %v489_v21 = vpop.f32.mrf.mxu1 }
 0x1c1   : >> { %v2231_v22 = vpop.f32.mrf.mxu3 }
 0x1c2   : >> { %v492_v23 = vpop.f32.mrf.mxu1 }
 0x1c9   : >> { %v614_v24 = vpop.f32.mrf.mxu3 }
 0x1ca   : >> { %v2233_v26 = vpop.f32.mrf.mxu1 }
 0x1cb   : >> { %v468_v25 = vpop.f32.mrf.mxu0 }
 0x1cc   : >> { %v488_v27 = vadd.f32 %v487_v19, %v468_v25 }
 0x1d1   : >> { %v2235_v29 = vpop.f32.mrf.mxu3 }
 0x1d2   : >> { %v590_v28 = vpop.f32.mrf.mxu2  ;;  %v741_v32 = vpop.f32.mrf.mxu1 }
 0x1d3   : >> { %v591_v30 = vadd.f32 %v590_v28, %v488_v27  ;;  %v470_v31 = vpop.f32.mrf.mxu0 }
 0x1d4   : >> { %v490_v1 = vadd.f32 %v489_v21, %v470_v31 }
 0x1d5   : >> { %v610_v38 = vadd.f32 %v609_v20, %v591_v30 }
 0x1d9   : >> { %v760_v42 = vpop.f32.mrf.mxu3 }
 0x1da   : >> { %v592_v41 = vpop.f32.mrf.mxu2  ;;  %v743_v44 = vpop.f32.mrf.mxu1  ;;  %v761_v0 = vadd.f32 %v760_v42, %v741_v32 }
 0x1db   : >> { %v473_v45 = vpop.f32.mrf.mxu0  ;;  %v593_v10 = vadd.f32 %v592_v41, %v490_v1 }
 0x1dc   : >> { %v493_v47 = vadd.f32 %v492_v23, %v473_v45  ;;  %v770_v11 = vadd.f32 %v761_v0, %v610_v38 }
 0x1dd   : >> { %v612_v16 = vadd.f32 %v2231_v22, %v593_v10 }
 0x1e1   : >> { %v762_v49 = vpop.f32.mrf.mxu3 }
 0x1e2   : >> { %v595_v48 = vpop.f32.mrf.mxu2  ;;  %v746_v52 = vpop.f32.mrf.mxu1  ;;  %v763_v13 = vadd.f32 %v762_v49, %v743_v44 }
 0x1e3   : >> { %v596_v51 = vadd.f32 %v595_v48, %v493_v47  ;;  %v475_v55 = vpop.f32.mrf.mxu0 }
 0x1e4   : >> { %v771_v19 = vadd.f32 %v763_v13, %v612_v16  ;;  %v495_v33 = vadd.f32 %v2233_v26, %v475_v55 }
 0x1e5   : >> { %v615_v53 = vadd.f32 %v614_v24, %v596_v51 }
 0x1e9   : >> { %v765_v57 = vpop.f32.mrf.mxu3 }
 0x1ea   : >> { %v597_v56 = vpop.f32.mrf.mxu2  ;;  %v748_v59 = vpop.f32.mrf.mxu1  ;;  %v766_v30 = vadd.f32 %v765_v57, %v746_v52 }
 0x1eb   : >> { %v896_v60 = vpop.f32.mrf.mxu0  ;;  %v598_v36 = vadd.f32 %v597_v56, %v495_v33 }
 0x1ec   : >> { %v772_v38 = vadd.f32 %v766_v30, %v615_v53 }
 0x1ed   : >> { %v617_v47 = vadd.f32 %v2235_v29, %v598_v36 }
 0x1f1   : >> { %v767_v61 = vpop.f32.mrf.mxu3 }
 0x1f2   : >> { %v915_v62 = vpop.f32.mrf.mxu2  ;;  %v1051_v63 = vpop.f32.mrf.mxu1  ;;  %v768_v43 = vadd.f32 %v767_v61, %v748_v59 }
 0x1f3   : >> { %v916_v2 = vadd.f32 %v915_v62, %v896_v60  ;;  %v898_v3 = vpop.f32.mrf.mxu0 }
 0x1f4   : >> { %v773_v26 = vadd.f32 %v768_v43, %v617_v47 }
 0x1f5   : >> { %v925_v14 = vadd.f32 %v916_v2, %v770_v11 }
 0x1f9   : >> { %v1070_v9 = vpop.f32.mrf.mxu3 }
 0x1fa   : >> { %v917_v4 = vpop.f32.mrf.mxu2  ;;  %v1071_v12 = vadd.f32 %v1070_v9, %v1051_v63  ;;  %v1053_v15 = vpop.f32.mrf.mxu1 }
 0x1fb   : >> { %v918_v17 = vadd.f32 %v917_v4, %v898_v3  ;;  %v901_v27 = vpop.f32.mrf.mxu0 }
 0x1fc   : >> { %v1080_v18 = vadd.f32 %v1071_v12, %v925_v14 }
 0x1fd   : >> { %v926_v24 = vadd.f32 %v918_v17, %v771_v19 }
 0x1fe   : >> { %v1084_v21 = vadd.f32 %v1080_v18, %v1984_v6 }
 0x200   : >> { %v1088_v31 = vmul.f32 0.2, %v1084_v21 }
 0x201   : >> { %v1072_v23 = vpop.f32.mrf.mxu3 }
 0x202   : >> { %v920_v20 = vpop.f32.mrf.mxu2  ;;  %v1073_v25 = vadd.f32 %v1072_v23, %v1053_v15  ;;  %v1056_v34 = vpop.f32.mrf.mxu1  ;;  %v1092_v39 = vmax.f32 %v1084_v21, %v1088_v31 }
 0x203   : >> { %v921_v35 = vadd.f32 %v920_v20, %v901_v27  ;;  %v903_v46 = vpop.f32.mrf.mxu0 }
 0x204   : >> { %v1081_v28 = vadd.f32 %v1073_v25, %v926_v24 }
 0x205   : >> { %v927_v44 = vadd.f32 %v921_v35, %v772_v38 }
 0x206   : >> { %v1085_v32 = vadd.f32 %v1081_v28, %v1988_v8 }
 0x208   : >> { %v1089_v22 = vmul.f32 0.2, %v1085_v32 }
 0x209   : >> { %v1075_v37 = vpop.f32.mrf.mxu3 }
 0x20a   : >> { %v1093_v40 = vmax.f32 %v1085_v32, %v1089_v22  ;;  %v1076_v41 = vadd.f32 %v1075_v37, %v1056_v34  ;;  %v922_v42 = vpop.f32.mrf.mxu2  ;;  %v1058_v50 = vpop.f32.mrf.mxu1 }
 0x20b   : >> { %v923_v48 = vadd.f32 %v922_v42, %v903_v46 }
 0x20c   : >> { %v1096_v45 = vpack.c.bf16 %v1093_v40, %v1092_v39  ;;  %v1082_v49 = vadd.f32 %v1076_v41, %v927_v44 }
 0x20d   : >> { %v928_v52 = vadd.f32 %v923_v48, %v773_v26 }
 0x20e   : >> { %1744 = vmatmul.msk.bf16.vlgmr.msra.gmra.mxu0 %vm1145_vm4, %v1096_v45  ;;  %v1086_v53 = vadd.f32 %v1082_v49, %v1982_v5 }
 0x210   : >> { %v1090_v56 = vmul.f32 0.2, %v1086_v53 }
 0x211   : >> { %v1077_v51 = vpop.f32.mrf.mxu3 }
 0x212   : >> { %v1078_v54 = vadd.f32 %v1077_v51, %v1058_v50  ;;  %v1094_v59 = vmax.f32 %v1086_v53, %v1090_v56 }
 0x214   : >> { %v1083_v55 = vadd.f32 %v1078_v54, %v928_v52 }
 0x216   : >> { %v1087_v57 = vadd.f32 %v1083_v55, %v1986_v7 }
 0x218   : >> { %v1091_v58 = vmul.f32 0.2, %v1087_v57 }
 0x21a   : >> { %v1095_v60 = vmax.f32 %v1087_v57, %v1091_v58 }
 0x21c   : >> { %v1097_v29 = vpack.c.bf16 %v1095_v60, %v1094_v59 }
 0x21e   : >> { %1745 = vmatmul.msk.bf16.vlgmr.msra.gmra.mxu2 %vm1145_vm4, %v1097_v29 }
 0x28b   : >> { %v1168_v61 = vpop.f32.mrf.mxu0 }
 0x28c   : >> { %1181 = vst.msk [vmem:[%s1179_s25] sm:$0xff] %vm1180_vm5, %v1168_v61 }
 0x293   : >> { %v1170_v62 = vpop.f32.mrf.mxu0 }
 0x294   : >> { %1182 = vst.msk [vmem:[%s1179_s25 + $0x8] sm:$0xff] %vm1180_vm5, %v1170_v62 }
 0x2a1   : >> { %v1173_v63 = vpop.f32.mrf.mxu2 }
 0x2a2   : >> { %1183 = vst.msk [vmem:[%s1179_s25 + $0x10] sm:$0xff] %vm1180_vm5, %v1173_v63 }
 0x2a6   : > { %316 = sbr.rel (!%p314_p5) target bundleno = 295 (0x127), region = 113 }
 0x2a9   : >> { %v1175_v0 = vpop.f32.mrf.mxu2 }
 0x2aa   : >> { %1184 = vst.msk [vmem:[%s1179_s25 + $0x18] sm:$0xff] %vm1180_vm5, %v1175_v0 }
 0x2ab LB: >> { %s1838_s27 = sshll.u32 %s1919_s26, 6  ;;  %s1840_s29 = sshll.u32 %s1919_s26, 4  ;;  %vm1220_vm6 = vcmask 355328   ;;  %s1919_s26 = sphi %s2271_s26, %s1190_s26  }
 0x2ac   : >> { %s1193_s28 = scalar_lea.vmem [#allocation3], %s1838_s27  ;;  %s1219_s17 = scalar_lea.vmem %s1980_s6, %s1840_s29 }
 0x2ad   : >> { %s1190_s26 = sadd.s32 1, %s1919_s26  }
 0x2ae   : >> { %p1187_p6 = scmp.ge.s32.totalorder %s1190_s26, 54  }
 0x2b1   : >> { %v1194_v1 = vld [vmem:[%s1193_s28] sm:$0xff]  ;;  %v1195_v3 = vld [vmem:[%s1193_s28 + $0x8] sm:$0xff]  ;;  %v1196_v10 = vld [vmem:[%s1193_s28 + $0x10] sm:$0xff] }
 0x2b2   : >> { %v1751_v2 = vld [vmem:[%s1193_s28 + $0x20] sm:$0xff]  ;;  %v1752_v9 = vld [vmem:[%s1193_s28 + $0x28] sm:$0xff]  ;;  %v1753_v11 = vld [vmem:[%s1193_s28 + $0x30] sm:$0xff] }
 0x2b3   : >> { %v1205_v4 = vadd.f32 %v1751_v2, %v1194_v1  ;;  %v1206_v5 = vadd.f32 %v1752_v9, %v1195_v3  ;;  %v1207_v6 = vadd.f32 %v1753_v11, %v1196_v10  ;;  %v1197_v7 = vld [vmem:[%s1193_s28 + $0x18] sm:$0xff] }
 0x2b4   : >> { %v1754_v8 = vld [vmem:[%s1193_s28 + $0x38] sm:$0xff] }
 0x2b5   : >> { %v1209_v12 = vmul.f32 0.25, %v1205_v4  ;;  %v1208_v13 = vadd.f32 %v1754_v8, %v1197_v7  ;;  %v1210_v14 = vmul.f32 0.25, %v1206_v5  ;;  %v1211_v15 = vmul.f32 0.25, %v1207_v6 }
 0x2b7   : >> { %v1213_v16 = vpack.c.bf16 %v1209_v12, %v1209_v12  ;;  %v1212_v17 = vmul.f32 0.25, %v1208_v13  ;;  %v1214_v18 = vpack.c.bf16 %v1210_v14, %v1210_v14  ;;  %v1215_v19 = vpack.c.bf16 %v1211_v15, %v1211_v15 }
 0x2b8   : > { %1189 = sbr.rel (!%p1187_p6) target bundleno = 683 (0x2ab), region = 124 }
 0x2b9   : >> { %1221 = vst.msk [vmem:[%s1219_s17] sm:$0xf] %vm1220_vm6, %v1213_v16  ;;  %v1216_v20 = vpack.c.bf16 %v1212_v17, %v1212_v17 }
 0x2ba   : >> { %1222 = vst.msk [vmem:[%s1219_s17 + $0x4] sm:$0xf] %vm1220_vm6, %v1214_v18 }
 0x2bb   : >> { %1223 = vst.msk [vmem:[%s1219_s17 + $0x8] sm:$0xf] %vm1220_vm6, %v1215_v19 }
 0x2bc   : >> { %1224 = vst.msk [vmem:[%s1219_s17 + $0xc] sm:$0xf] %vm1220_vm6, %v1216_v20 }
 0x2bd PF: > { %s14_s15 = sadd.s32 1, %s1907_s15  }
 0x2be   : > { %p11_p7 = scmp.ge.s32.totalorder %s14_s15, 4  }
 0x2c0   :  { %13 = sbr.rel (!%p11_p7) target bundleno = 1 (0x1), region = 135 }

// kernel: base_discriminator_forward.6
= control target key start
LH: loop header
LB: loop body
LE: loop exit
PB: predicated region body
PF: predicated region fallthrough
CT: control target
= control target key end

     0   :  { %s2527_s18 = smov 0   ;;  %s3132_s0 = inlined_call_operand.vmem [shape: bf16[2,58,32,24], index: 0, kind: input, shape index: {}]   ;;  %s3133_s1 = inlined_call_operand.vmem [shape: bf16[2,58,32,24], index: 1, kind: input, shape index: {}]   ;;  %s3134_s2 = inlined_call_operand.vmem [shape: bf16[5,64,160], index: 2, kind: input, shape index: {}]   ;;  %s3135_s3 = inlined_call_operand.vmem [shape: f32[64,1], index: 3, kind: input, shape index: {}]   ;;  %s3136_s4 = inlined_call_operand.vmem [shape: bf16[22,6], index: 4, kind: input, shape index: {}]   ;;  %s3137_s5 = inlined_call_operand.vmem [shape: bf16[2,8,64,6], index: 5, kind: output, shape index: {}]  }
   0x1 LB: > { %s1752_s19 = sadd.s32 4294967295, %s2480_s18   ;;  %p1756_p0 = scmp.ge.s32.totalorder %s2480_s18, 1  ;;  %s2480_s18 = sphi %s2527_s18, %s15_s18  }
   0x2   : > { %p197_p1 = scmp.lt.s32.totalorder %s2480_s18, 3 }
   0x4   : > { %p198_p2 = pnand %p1756_p0, %p197_p1 }
   0x5   : > { %p230_p3 = scmp.lt.s32.totalorder (!%p198_p2), %s1752_s19, 1  ;;  %s2590_s23 = smov (!%p198_p2), 0  }
   0x6   : > { %201 = sbr.rel (%p198_p2) target bundleno = 798 (0x31e), region = 40 }
   0xb   : > { %v248_v0 = vld [vmem:[%s3135_s3 + $0x10] sm:$0xff]  ;;  %v246_v1 = vld [vmem:[%s3135_s3] sm:$0xff]  ;;  %v2494_v2 = vmov 0   ;;  %s3139_s19 = smov (!%p230_p3, %s1752_s19), 1  ;;  %v249_v4 = vld [vmem:[%s3135_s3 + $0x18] sm:$0xff] }
   0xc   : > { %2460 = vset.pattern.permute.xlu1 %v2494_v2  ;;  %2459 = vset.pattern.permute.xlu0 %v2494_v2  ;;  %v250_v3 = vld [vmem:[%s3135_s3 + $0x20] sm:$0xff]  ;;  %s2423_s26 = smul.u32 928, %s3139_s19  ;;  %s2318_s27 = sshll.u32 %s3139_s19, 8  ;;  %v247_v5 = vld [vmem:[%s3135_s3 + $0x8] sm:$0xff]  ;;  %v253_v7 = vld [vmem:[%s3135_s3 + $0x38] sm:$0xff] }
   0xd   : > { %266 = vperm.xlu1 %2460, %v248_v0   ;;  %256 = vperm.xlu0 %2459, %v246_v1   ;;  %s2547_s30 = scalar_lea.vmem %s3137_s5, %s2318_s27  ;;  %v251_v6 = vld [vmem:[%s3135_s3 + $0x28] sm:$0xff]  ;;  %v252_v8 = vld [vmem:[%s3135_s3 + $0x30] sm:$0xff] }
   0xe   : > { %2461 = vset.pattern.permute.xlu2 %v2494_v2  ;;  %s2552_s8 = scalar_lea.vmem %s3132_s0, %s2423_s26  ;;  %s2557_s11 = scalar_lea.vmem %s3133_s1, %s2423_s26 }
   0xf   : > { %276 = vperm.xlu2 %2461, %v250_v3  }
  0x15   : > { %271 = vperm.xlu1 %2460, %v249_v4   ;;  %261 = vperm.xlu0 %2459, %v247_v5  }
  0x17   : > { %281 = vperm.xlu2 %2461, %v251_v6  }
  0x1d   : > { %291 = vperm.xlu1 %2460, %v253_v7   ;;  %286 = vperm.xlu0 %2459, %v252_v8  }
  0x69   : > { %v2574_v9 = vpop.permute.xlu2 %276 }
  0x71   : > { %v2576_v10 = vpop.permute.xlu2 %281 }
  0x7f   : > { %v2578_v11 = vpop.permute.xlu1 %266  ;;  %v2580_v12 = vpop.permute.xlu0 %256 }
  0x87   : > { %v2582_v13 = vpop.permute.xlu1 %271  ;;  %v2584_v14 = vpop.permute.xlu0 %261 }
  0x8f   : > { %v2586_v15 = vpop.permute.xlu1 %291  ;;  %v2588_v16 = vpop.permute.xlu0 %286 }
  0x90 LB: >> { %s2319_s24 = sshll.u32 %s2484_s23, 4  ;;  %s2321_s25 = smul.u32 80, %s2484_s23  ;;  %vm316_vm0 = vcmask 175104   ;;  %s2484_s23 = sphi %s2590_s23, %s299_s23  }
  0x91   : >> { %s302_s26 = scalar_lea.vmem %s2552_s8, %s2319_s24  ;;  %s2495_s27 = smov 127  }
  0x92   : >> { %v305_v17 = vld [vmem:[%s302_s26 + $0x8] sm:$0xf]  ;;  %v303_v18 = vld [vmem:[%s302_s26] sm:$0xf]  ;;  %s2598_s28 = scalar_lea.vmem [#allocation2], %s2321_s25  ;;  %s308_s29 = scalar_lea.vmem %s2557_s11, %s2319_s24 }
  0x93   : >> { %333 = vrot.lane.b32.xlu1 %v305_v17, %s2495_s27  ;;  %319 = vst.msk [vmem:[%s2598_s28 + $0x8] sm:$0xf] %vm316_vm0, %v305_v17  ;;  %329 = vrot.lane.b32.xlu0 %v303_v18, %s2495_s27  ;;  %v306_v19 = vld [vmem:[%s302_s26 + $0xc] sm:$0xf]  ;;  %s2496_s6 = smov 126   ;;  %s299_s23 = sadd.s32 1, %s2484_s23  }
  0x94   : >> { %317 = vst.msk [vmem:[%s2598_s28] sm:$0xf] %vm316_vm0, %v303_v18  ;;  %v304_v20 = vld [vmem:[%s302_s26 + $0x4] sm:$0xf]  ;;  %v309_v21 = vld [vmem:[%s308_s29] sm:$0xf] }
  0x95   : >> { %320 = vst.msk [vmem:[%s2598_s28 + $0xc] sm:$0xf] %vm316_vm0, %v306_v19  ;;  %v312_v22 = vld [vmem:[%s308_s29 + $0xc] sm:$0xf]  ;;  %349 = vrot.lane.b32.xlu2 %v309_v21, %s2495_s27  ;;  %v311_v23 = vld [vmem:[%s308_s29 + $0x8] sm:$0xf] }
  0x96   : >> { %318 = vst.msk [vmem:[%s2598_s28 + $0x4] sm:$0xf] %vm316_vm0, %v304_v20  ;;  %v310_v24 = vld [vmem:[%s308_s29 + $0x4] sm:$0xf]  ;;  %p296_p4 = scmp.ge.s32.totalorder %s299_s23, 57  }
  0x97   : >> { %324 = vst.msk [vmem:[%s2598_s28 + $0x1c] sm:$0xf] %vm316_vm0, %v312_v22  ;;  %s2644_s7 = smov (%p296_p4), 0  }
  0x98   : >> { %323 = vst.msk [vmem:[%s2598_s28 + $0x18] sm:$0xf] %vm316_vm0, %v311_v23 }
  0x99   : >> { %321 = vst.msk [vmem:[%s2598_s28 + $0x10] sm:$0xf] %vm316_vm0, %v309_v21 }
  0x9a   : >> { %322 = vst.msk [vmem:[%s2598_s28 + $0x14] sm:$0xf] %vm316_vm0, %v310_v24 }
  0x9b   : >> { %335 = vrot.lane.b32.xlu1 %v306_v19, %s2495_s27  ;;  %331 = vrot.lane.b32.xlu0 %v304_v20, %s2495_s27 }
  0x9d   : >> { %351 = vrot.lane.b32.xlu2 %v310_v24, %s2495_s27 }
  0xa3   : >> { %355 = vrot.lane.b32.xlu1 %v312_v22, %s2495_s27  ;;  %353 = vrot.lane.b32.xlu0 %v311_v23, %s2495_s27 }
  0xa5   : >> { %365 = vrot.lane.b32.xlu2 %v303_v18, %s2496_s6 }
  0xab   : >> { %369 = vrot.lane.b32.xlu1 %v305_v17, %s2496_s6  ;;  %367 = vrot.lane.b32.xlu0 %v304_v20, %s2496_s6 }
  0xad   : >> { %371 = vrot.lane.b32.xlu2 %v306_v19, %s2496_s6 }
  0xef   : >> { %v350_v25 = vpop.permute.xlu2 %349 }
  0xf0   : >> { %361 = vst.msk [vmem:[%s2598_s28 + $0x30] sm:$0xf] %vm316_vm0, %v350_v25 }
  0xf7   : >> { %v352_v26 = vpop.permute.xlu2 %351 }
  0xf8   : >> { %362 = vst.msk [vmem:[%s2598_s28 + $0x34] sm:$0xf] %vm316_vm0, %v352_v26 }
  0xff   : >> { %v366_v27 = vpop.permute.xlu2 %365 }
 0x100   : >> { %377 = vst.msk [vmem:[%s2598_s28 + $0x40] sm:$0xf] %vm316_vm0, %v366_v27 }
 0x105   : >> { %v334_v28 = vpop.permute.xlu1 %333  ;;  %v330_v29 = vpop.permute.xlu0 %329 }
 0x106   : >> { %343 = vst.msk [vmem:[%s2598_s28 + $0x28] sm:$0xf] %vm316_vm0, %v334_v28 }
 0x107   : >> { %341 = vst.msk [vmem:[%s2598_s28 + $0x20] sm:$0xf] %vm316_vm0, %v330_v29  ;;  %v372_v30 = vpop.permute.xlu2 %371 }
 0x108   : >> { %380 = vst.msk [vmem:[%s2598_s28 + $0x4c] sm:$0xf] %vm316_vm0, %v372_v30 }
 0x10d   : >> { %v336_v31 = vpop.permute.xlu1 %335  ;;  %v332_v32 = vpop.permute.xlu0 %331 }
 0x10e   : >> { %344 = vst.msk [vmem:[%s2598_s28 + $0x2c] sm:$0xf] %vm316_vm0, %v336_v31 }
 0x10f   : >> { %342 = vst.msk [vmem:[%s2598_s28 + $0x24] sm:$0xf] %vm316_vm0, %v332_v32 }
 0x115   : >> { %v356_v33 = vpop.permute.xlu1 %355  ;;  %v354_v34 = vpop.permute.xlu0 %353 }
 0x116   : >> { %364 = vst.msk [vmem:[%s2598_s28 + $0x3c] sm:$0xf] %vm316_vm0, %v356_v33 }
 0x117   : >> { %363 = vst.msk [vmem:[%s2598_s28 + $0x38] sm:$0xf] %vm316_vm0, %v354_v34 }
 0x11b   : > { %298 = sbr.rel (!%p296_p4) target bundleno = 144 (0x90), region = 113 }
 0x11d   : >> { %v370_v35 = vpop.permute.xlu1 %369  ;;  %v368_v36 = vpop.permute.xlu0 %367 }
 0x11e   : >> { %379 = vst.msk [vmem:[%s2598_s28 + $0x48] sm:$0xf] %vm316_vm0, %v370_v35 }
 0x11f   : >> { %378 = vst.msk [vmem:[%s2598_s28 + $0x44] sm:$0xf] %vm316_vm0, %v368_v36 }
 0x120 LB: >> { %s2330_s9 = smul.u32 160, %s2488_s7  ;;  %v2341_v40 = vld [vmem:[%s3134_s2 + $0x44] sm:$0xf]  ;;  %v1802_v42 = vld [vmem:[%s3134_s2 + $0x48] sm:$0xf0]  ;;  %vm548_vm1 = vcmask 261120   ;;  %s2488_s7 = sphi %s2644_s7, %s386_s7  }
 0x121   : >> { %v2322_v43 = vld [vmem:[%s3134_s2 + $0x4] sm:$0xf]  ;;  %v1878_v46 = vld [vmem:[%s3134_s2 + $0x8] sm:$0xf0]  ;;  %v1805_v49 = vor.u32 %v2341_v40, %v1802_v42  ;;  %v2343_v58 = vld [vmem:[%s3134_s2 + $0x54] sm:$0xf] }
 0x122   : >> { %s2650_s10 = scalar_lea.vmem [#allocation2], %s2330_s9  ;;  %v1881_v50 = vor.u32 %v2322_v43, %v1878_v46  ;;  %v1810_v59 = vld [vmem:[%s3134_s2 + $0x58] sm:$0xf0]  ;;  %v2324_v61 = vld [vmem:[%s3134_s2 + $0x14] sm:$0xf]  ;;  %vm1459_vm2 = vcmask 1042432  }
 0x123   : >> { %v1886_v62 = vld [vmem:[%s3134_s2 + $0x18] sm:$0xf0]  ;;  %v1813_v0 = vor.u32 %v2343_v58, %v1810_v59  ;;  %v1800_v4 = vld [vmem:[%s3134_s2 + $0x40] sm:$0xf]  ;;  %v2342_v5 = vld [vmem:[%s3134_s2 + $0x44] sm:$0xf0] }
 0x124   : >> { %v1889_v1 = vor.u32 %v2324_v61, %v1886_v62  ;;  %v1816_v7 = vld [vmem:[%s3134_s2 + $0x60] sm:$0xf]  ;;  %v2346_v8 = vld [vmem:[%s3134_s2 + $0x64] sm:$0xf0]  ;;  %v1801_v19 = vor.u32 %v2342_v5, %v1800_v4  ;;  %v2345_v22 = vld [vmem:[%s3134_s2 + $0x64] sm:$0xf] }
 0x125   : >> { %v1817_v20 = vor.u32 %v2346_v8, %v1816_v7  ;;  %v1818_v24 = vld [vmem:[%s3134_s2 + $0x68] sm:$0xf0]  ;;  %v2326_v25 = vld [vmem:[%s3134_s2 + $0x24] sm:$0xf]  ;;  %v1808_v31 = vld [vmem:[%s3134_s2 + $0x50] sm:$0xf] }
 0x126   : >> { %v2356_v37 = vld [vmem:[%s2650_s10 + $0x88] sm:$0xff]  ;;  %v2358_v38 = vld [vmem:[%s2650_s10 + $0x98] sm:$0xff]  ;;  %v2355_v41 = vld [vmem:[%s2650_s10 + $0x80] sm:$0xff]  ;;  %v1821_v28 = vor.u32 %v2345_v22, %v1818_v24  ;;  %vm1446_vm3 = vcmask 179200   ;;  %s2276_s24 = sshll.u32 %s2488_s7, 6  ;;  %vm1494_vm4 = vcmask 48128  }
 0x127   : >> { %v2340_v39 = vld [vmem:[%s2650_s10 + $0x48] sm:$0xff]  ;;  %561 = vmatpush.bf16.msra.mxu0 %v2356_v37  ;;  %2415 = vmatpush.bf16.msra.mxu2 %v2356_v37  ;;  %v2357_v44 = vld [vmem:[%s2650_s10 + $0x90] sm:$0xff]  ;;  %v2339_v45 = vld [vmem:[%s2650_s10 + $0x40] sm:$0xff]  ;;  %s1493_s25 = scalar_lea.vmem [#allocation3], %s2276_s24  ;;  %s386_s7 = sadd.s32 1, %s2488_s7  }
 0x128   : >> { %596 = vmatpush.bf16.msra.mxu1 %v2358_v38  ;;  %762 = vmatpush.bf16.msra.mxu3 %v2340_v39  ;;  %v2376_v47 = vld [vmem:[%s2650_s10 + $0xe8] sm:$0xff]  ;;  %v2374_v48 = vld [vmem:[%s2650_s10 + $0xd8] sm:$0xff]  ;;  %v2373_v52 = vld [vmem:[%s2650_s10 + $0xd0] sm:$0xff]  ;;  %p383_p5 = scmp.ge.s32.totalorder %s386_s7, 27  }
 0x129   : >> { %v2354_v51 = vld [vmem:[%s2650_s10 + $0x78] sm:$0xff]  ;;  %v2375_v53 = vld [vmem:[%s2650_s10 + $0xe0] sm:$0xff]  ;;  %v2353_v54 = vld [vmem:[%s2650_s10 + $0x70] sm:$0xff]  ;;  %s3058_s26 = smov (%p383_p5), 0  }
 0x12a   : >> { %v2372_v55 = vld [vmem:[%s2650_s10 + $0xc8] sm:$0xff]  ;;  %v2371_v57 = vld [vmem:[%s2650_s10 + $0xc0] sm:$0xff]  ;;  %v2370_v63 = vld [vmem:[%s2650_s10 + $0xb8] sm:$0xff] }
 0x12b   : >> { %562 = vmatpush.bf16.msra.mxu0 %v2355_v41  ;;  %2416 = vmatpush.bf16.msra.mxu2 %v2355_v41  ;;  %v2352_v56 = vld [vmem:[%s2650_s10 + $0x68] sm:$0xff]  ;;  %v2351_v60 = vld [vmem:[%s2650_s10 + $0x60] sm:$0xff]  ;;  %v2350_v2 = vld [vmem:[%s2650_s10 + $0x58] sm:$0xff] }
 0x12c   : >> { %597 = vmatpush.bf16.msra.mxu1 %v2357_v44  ;;  %763 = vmatpush.bf16.msra.mxu3 %v2339_v45  ;;  %v2369_v3 = vld [vmem:[%s2650_s10 + $0xb0] sm:$0xff]  ;;  %v2338_v17 = vld [vmem:[%s2650_s10 + $0x38] sm:$0xff]  ;;  %v2368_v18 = vld [vmem:[%s2650_s10 + $0xa8] sm:$0xff] }
 0x12d   : >> { %v2349_v6 = vld [vmem:[%s2650_s10 + $0x50] sm:$0xff]  ;;  %v2367_v23 = vld [vmem:[%s2650_s10 + $0xa0] sm:$0xff]  ;;  %v1894_v26 = vld [vmem:[%s3134_s2 + $0x28] sm:$0xf0] }
 0x12e   : >> { %v2337_v21 = vld [vmem:[%s2650_s10 + $0x30] sm:$0xff]  ;;  %v2336_v27 = vld [vmem:[%s2650_s10 + $0x28] sm:$0xff]  ;;  %v1897_v29 = vor.u32 %v2326_v25, %v1894_v26  ;;  %v2335_v30 = vld [vmem:[%s2650_s10 + $0x20] sm:$0xff] }
 0x12f   : >> { %1870 = vmatmul.msk.bf16.vlgmr.msra.gmra.mxu1 %vm548_vm1, %v1805_v49  ;;  %1946 = vmatmul.msk.bf16.vlgmr.msra.gmra.mxu3 %vm548_vm1, %v1881_v50  ;;  %v2412_v32 = vld [vmem:[%s2650_s10 + $0x188] sm:$0xff]  ;;  %v2410_v33 = vld [vmem:[%s2650_s10 + $0x178] sm:$0xff]  ;;  %v1824_v35 = vld [vmem:[%s3134_s2 + $0x70] sm:$0xf] }
 0x130   : >> { %961 = vmatpush.bf16.msrb.mxu3 %v2376_v47  ;;  %926 = vmatpush.bf16.msrb.mxu1 %v2374_v48  ;;  %v2344_v34 = vld [vmem:[%s3134_s2 + $0x54] sm:$0xf0]  ;;  %v2333_v40 = vld [vmem:[%s2650_s10 + $0x10] sm:$0xff]  ;;  %v1826_v43 = vld [vmem:[%s3134_s2 + $0x78] sm:$0xf0] }
 0x131   : >> { %563 = vmatpush.bf16.msra.mxu0 %v2354_v51  ;;  %2417 = vmatpush.bf16.msra.mxu2 %v2354_v51  ;;  %v2348_v36 = vld [vmem:[%s3134_s2 + $0x74] sm:$0xf0]  ;;  %v1809_v38 = vor.u32 %v2344_v34, %v1808_v31  ;;  %v2347_v41 = vld [vmem:[%s3134_s2 + $0x74] sm:$0xf]  ;;  %v1902_v45 = vld [vmem:[%s3134_s2 + $0x38] sm:$0xf0] }
 0x132   : >> { %v2334_v37 = vld [vmem:[%s2650_s10 + $0x18] sm:$0xff]  ;;  %v1825_v39 = vor.u32 %v2348_v36, %v1824_v35  ;;  %v2409_v42 = vld [vmem:[%s2650_s10 + $0x170] sm:$0xff]  ;;  %v2332_v46 = vld [vmem:[%s2650_s10 + $0x8] sm:$0xff]  ;;  %v1829_v47 = vor.u32 %v2347_v41, %v1826_v43 }
 0x133   : >> { %v2328_v44 = vld [vmem:[%s3134_s2 + $0x34] sm:$0xf]  ;;  %v2331_v49 = vld [vmem:[%s2650_s10] sm:$0xff]  ;;  %v2394_v50 = vld [vmem:[%s2650_s10 + $0x138] sm:$0xff] }
 0x134   : >> { %927 = vmatpush.bf16.msrb.mxu1 %v2373_v52  ;;  %962 = vmatpush.bf16.msrb.mxu3 %v2375_v53  ;;  %v1905_v48 = vor.u32 %v2328_v44, %v1902_v45  ;;  %v2408_v51 = vld [vmem:[%s2650_s10 + $0x168] sm:$0xff]  ;;  %v1876_v52 = vld [vmem:[%s3134_s2] sm:$0xf]  ;;  %v2325_v4 = vld [vmem:[%s3134_s2 + $0x14] sm:$0xf0] }
 0x135   : >> { %564 = vmatpush.bf16.msra.mxu0 %v2353_v54  ;;  %2418 = vmatpush.bf16.msra.mxu2 %v2353_v54  ;;  %v2323_v53 = vld [vmem:[%s3134_s2 + $0x4] sm:$0xf0]  ;;  %v2407_v58 = vld [vmem:[%s2650_s10 + $0x160] sm:$0xff]  ;;  %v1984_v61 = vld [vmem:[%s3134_s2 + $0x88] sm:$0xf0] }
 0x136   : >> { %v1877_v54 = vor.u32 %v2323_v53, %v1876_v52  ;;  %v2360_v59 = vld [vmem:[%s3134_s2 + $0x84] sm:$0xf0]  ;;  %v2390_v5 = vld [vmem:[%s2650_s10 + $0x118] sm:$0xff]  ;;  %v2389_v7 = vld [vmem:[%s2650_s10 + $0x110] sm:$0xff] }
 0x137   : >> { %v1990_v8 = vld [vmem:[%s3134_s2 + $0x90] sm:$0xf]  ;;  %v2387_v24 = vld [vmem:[%s2650_s10 + $0x100] sm:$0xff]  ;;  %v2404_v25 = vld [vmem:[%s2650_s10 + $0x148] sm:$0xff] }
 0x138   : >> { %928 = vmatpush.bf16.msrb.mxu1 %v2372_v55  ;;  %1375 = vmatpush.bf16.msra.mxu3 %v2412_v32  ;;  %v1982_v55 = vld [vmem:[%s3134_s2 + $0x80] sm:$0xf]  ;;  %v2364_v34 = vld [vmem:[%s3134_s2 + $0xa4] sm:$0xf0]  ;;  %v2363_v35 = vld [vmem:[%s3134_s2 + $0xa4] sm:$0xf] }
 0x139   : >> { %565 = vmatpush.bf16.msra.mxu0 %v2352_v56  ;;  %2419 = vmatpush.bf16.msra.mxu2 %v2352_v56  ;;  %v2392_v56 = vld [vmem:[%s2650_s10 + $0x128] sm:$0xff]  ;;  %v1983_v62 = vor.u32 %v2360_v59, %v1982_v55  ;;  %v1892_v26 = vld [vmem:[%s3134_s2 + $0x20] sm:$0xf]  ;;  %v1900_v41 = vld [vmem:[%s3134_s2 + $0x30] sm:$0xf] }
 0x13a   : >> { %v1998_v31 = vld [vmem:[%s3134_s2 + $0xa0] sm:$0xf]  ;;  %v2000_v36 = vld [vmem:[%s3134_s2 + $0xa8] sm:$0xf0]  ;;  %v2006_v44 = vld [vmem:[%s3134_s2 + $0xb0] sm:$0xf] }
 0x13b   : >> { %v2088_v32 = vld [vmem:[%s3134_s2 + $0xc0] sm:$0xf]  ;;  %v2366_v45 = vld [vmem:[%s3134_s2 + $0xb4] sm:$0xf0]  ;;  %v2377_v53 = vld [vmem:[%s3134_s2 + $0xc4] sm:$0xf] }
 0x13c   : >> { %929 = vmatpush.bf16.msrb.mxu1 %v2371_v57  ;;  %v2393_v57 = vld [vmem:[%s2650_s10 + $0x130] sm:$0xff]  ;;  %v2196_v59 = vld [vmem:[%s3134_s2 + $0x108] sm:$0xf0] }
 0x13d   : >> { %566 = vmatpush.bf16.msra.mxu0 %v2351_v60  ;;  %2420 = vmatpush.bf16.msra.mxu2 %v2351_v60  ;;  %v2359_v60 = vld [vmem:[%s3134_s2 + $0x84] sm:$0xf] }
 0x13f   : >> { %1871 = vmatmul.msk.bf16.gmra.mxu1 %vm548_vm1, %v1813_v0  ;;  %1947 = vmatmul.msk.bf16.gmra.mxu3 %vm548_vm1, %v1889_v1  ;;  %v2391_v0 = vld [vmem:[%s2650_s10 + $0x120] sm:$0xff] }
 0x140   : >> { %930 = vmatpush.bf16.msrb.mxu1 %v2370_v63  ;;  %v1987_v63 = vor.u32 %v2359_v60, %v1984_v61  ;;  %v2411_v1 = vld [vmem:[%s2650_s10 + $0x180] sm:$0xff]  ;;  %v2382_v61 = vld [vmem:[%s3134_s2 + $0xe4] sm:$0xf0] }
 0x141   : >> { %567 = vmatpush.bf16.msra.mxu0 %v2350_v2  ;;  %2421 = vmatpush.bf16.msra.mxu2 %v2350_v2  ;;  %v2406_v2 = vld [vmem:[%s2650_s10 + $0x158] sm:$0xff]  ;;  %v2104_v60 = vld [vmem:[%s3134_s2 + $0xe0] sm:$0xf] }
 0x142   : >> { %1376 = vmatpush.bf16.msra.mxu3 %v2411_v1 }
 0x144   : >> { %931 = vmatpush.bf16.msrb.mxu1 %v2369_v3  ;;  %v1884_v3 = vld [vmem:[%s3134_s2 + $0x10] sm:$0xf] }
 0x145   : >> { %568 = vmatpush.bf16.msra.mxu0 %v2349_v6  ;;  %2422 = vmatpush.bf16.msra.mxu2 %v2349_v6  ;;  %v1885_v6 = vor.u32 %v2325_v4, %v1884_v3  ;;  %v2098_v3 = vld [vmem:[%s3134_s2 + $0xd8] sm:$0xf0] }
 0x148   : >> { %932 = vmatpush.bf16.msrb.mxu1 %v2368_v18  ;;  %569 = vmatmul.bf16.vlgmr.msra.gmra.mxu0 %v1801_v19  ;;  %v2405_v18 = vld [vmem:[%s2650_s10 + $0x150] sm:$0xff] }
 0x149   : >> { %727 = vmatpush.bf16.msrb.mxu2 %v2338_v17  ;;  %1133 = vmatpush.bf16.msrb.mxu0 %v2392_v56  ;;  %v2362_v17 = vld [vmem:[%s3134_s2 + $0x94] sm:$0xf0]  ;;  %v2361_v19 = vld [vmem:[%s3134_s2 + $0x94] sm:$0xf]  ;;  %v2194_v56 = vld [vmem:[%s3134_s2 + $0x100] sm:$0xf] }
 0x14a   : >> { %579 = vmatmul.bf16.vlgmr.msra.gmra.mxu2 %v1817_v20  ;;  %v1992_v20 = vld [vmem:[%s3134_s2 + $0x98] sm:$0xf0]  ;;  %v1991_v22 = vor.u32 %v2362_v17, %v1990_v8  ;;  %v2398_v8 = vld [vmem:[%s3134_s2 + $0x114] sm:$0xf0]  ;;  %v2397_v17 = vld [vmem:[%s3134_s2 + $0x114] sm:$0xf] }
 0x14c   : >> { %933 = vmatpush.bf16.msrb.mxu1 %v2367_v23  ;;  %v1995_v23 = vor.u32 %v2361_v19, %v1992_v20  ;;  %v2112_v19 = vld [vmem:[%s3134_s2 + $0xf0] sm:$0xf]  ;;  %v2384_v20 = vld [vmem:[%s3134_s2 + $0xf4] sm:$0xf0] }
 0x14d   : >> { %728 = vmatpush.bf16.msrb.mxu2 %v2337_v21  ;;  %1134 = vmatpush.bf16.msrb.mxu0 %v2391_v0  ;;  %v2388_v21 = vld [vmem:[%s2650_s10 + $0x108] sm:$0xff] }
 0x14f   : >> { %1872 = vmatmul.msk.bf16.gmra.mxu1 %vm548_vm1, %v1821_v28  ;;  %1948 = vmatmul.msk.bf16.gmra.mxu3 %vm548_vm1, %v1897_v29  ;;  %v2386_v28 = vld [vmem:[%s2650_s10 + $0xf8] sm:$0xff] }
 0x150   : >> { %1340 = vmatpush.bf16.msra.mxu1 %v2410_v33  ;;  %v2378_v33 = vld [vmem:[%s3134_s2 + $0xc4] sm:$0xf0] }
 0x151   : >> { %729 = vmatpush.bf16.msrb.mxu2 %v2336_v27  ;;  %1135 = vmatpush.bf16.msrb.mxu0 %v2390_v5  ;;  %v2327_v27 = vld [vmem:[%s3134_s2 + $0x24] sm:$0xf0] }
 0x152   : >> { %v1893_v29 = vor.u32 %v2327_v27, %v1892_v26  ;;  %v2381_v26 = vld [vmem:[%s3134_s2 + $0xe4] sm:$0xf]  ;;  %v2106_v27 = vld [vmem:[%s3134_s2 + $0xe8] sm:$0xf0] }
 0x154   : >> { %1341 = vmatpush.bf16.msra.mxu1 %v2409_v42  ;;  %v2329_v42 = vld [vmem:[%s3134_s2 + $0x34] sm:$0xf0] }
 0x155   : >> { %730 = vmatpush.bf16.msrb.mxu2 %v2335_v30  ;;  %1136 = vmatpush.bf16.msrb.mxu0 %v2389_v7  ;;  %v2385_v30 = vld [vmem:[%s2650_s10 + $0xf0] sm:$0xff]  ;;  %v1901_v43 = vor.u32 %v2329_v42, %v1900_v41  ;;  %v2114_v42 = vld [vmem:[%s3134_s2 + $0xf8] sm:$0xf0] }
 0x156   : >> { %v2202_v7 = vld [vmem:[%s3134_s2 + $0x110] sm:$0xf]  ;;  %v2383_v41 = vld [vmem:[%s3134_s2 + $0xf4] sm:$0xf] }
 0x158   : >> { %574 = vmatmul.bf16.gmra.mxu0 %v1809_v38  ;;  %1342 = vmatpush.bf16.msra.mxu1 %v2408_v51  ;;  %v2403_v38 = vld [vmem:[%s2650_s10 + $0x140] sm:$0xff]  ;;  %v2007_v51 = vor.u32 %v2366_v45, %v2006_v44  ;;  %v2117_v45 = vor.u32 %v2383_v41, %v2114_v42 }
 0x159   : >> { %731 = vmatpush.bf16.msrb.mxu2 %v2334_v37  ;;  %1137 = vmatpush.bf16.msrb.mxu0 %v2388_v21  ;;  %v2089_v37 = vor.u32 %v2378_v33, %v2088_v32  ;;  %v2113_v21 = vor.u32 %v2384_v20, %v2112_v19  ;;  %v2400_v32 = vld [vmem:[%s3134_s2 + $0x124] sm:$0xf0]  ;;  %v2399_v33 = vld [vmem:[%s3134_s2 + $0x124] sm:$0xf] }
 0x15a   : >> { %584 = vmatmul.bf16.gmra.mxu2 %v1825_v39  ;;  %v1999_v39 = vor.u32 %v2364_v34, %v1998_v31  ;;  %v2210_v31 = vld [vmem:[%s3134_s2 + $0x120] sm:$0xf]  ;;  %v2212_v34 = vld [vmem:[%s3134_s2 + $0x128] sm:$0xf0] }
 0x15c   : >> { %1343 = vmatpush.bf16.msra.mxu1 %v2407_v58  ;;  %v2395_v58 = vld [vmem:[%s3134_s2 + $0x104] sm:$0xf] }
 0x15d   : >> { %732 = vmatpush.bf16.msrb.mxu2 %v2333_v40  ;;  %1138 = vmatpush.bf16.msrb.mxu0 %v2387_v24  ;;  %v2003_v40 = vor.u32 %v2363_v35, %v2000_v36  ;;  %v2199_v0 = vor.u32 %v2395_v58, %v2196_v59 }
 0x15f   : >> { %1873 = vmatmul.msk.bf16.gmra.mxu1 %vm548_vm1, %v1829_v47  ;;  %1949 = vmatmul.msk.bf16.gmra.mxu3 %vm548_vm1, %v1905_v48  ;;  %v2008_v47 = vld [vmem:[%s3134_s2 + $0xb8] sm:$0xf0]  ;;  %v2096_v48 = vld [vmem:[%s3134_s2 + $0xd0] sm:$0xf] }
 0x160   : >> { %1344 = vmatpush.bf16.msra.mxu1 %v2406_v2  ;;  %v2379_v2 = vld [vmem:[%s3134_s2 + $0xd4] sm:$0xf] }
 0x161   : >> { %733 = vmatpush.bf16.msrb.mxu2 %v2332_v46  ;;  %1139 = vmatpush.bf16.msrb.mxu0 %v2386_v28  ;;  %v2365_v46 = vld [vmem:[%s3134_s2 + $0xb4] sm:$0xf]  ;;  %v2101_v5 = vor.u32 %v2379_v2, %v2098_v3 }
 0x162   : >> { %v2011_v52 = vor.u32 %v2365_v46, %v2008_v47 }
 0x164   : >> { %1345 = vmatpush.bf16.msra.mxu1 %v2405_v18  ;;  %v2204_v18 = vld [vmem:[%s3134_s2 + $0x118] sm:$0xf0] }
 0x165   : >> { %734 = vmatpush.bf16.msrb.mxu2 %v2331_v49  ;;  %1140 = vmatpush.bf16.msrb.mxu0 %v2385_v30  ;;  %v2380_v49 = vld [vmem:[%s3134_s2 + $0xd4] sm:$0xf0]  ;;  %v2207_v24 = vor.u32 %v2397_v17, %v2204_v18 }
 0x168   : >> { %1346 = vmatpush.bf16.msra.mxu1 %v2404_v25  ;;  %1141 = vmatmul.bf16.vlgmr.msrb.gmra.mxu0 %v2089_v37  ;;  %v2211_v37 = vor.u32 %v2400_v32, %v2210_v31 }
 0x169   : >> { %1168 = vmatpush.bf16.msra.mxu2 %v2394_v50  ;;  %v2097_v50 = vor.u32 %v2380_v49, %v2096_v48  ;;  %v2218_v48 = vld [vmem:[%s3134_s2 + $0x130] sm:$0xf]  ;;  %v2402_v49 = vld [vmem:[%s3134_s2 + $0x134] sm:$0xf0] }
 0x16a   : >> { %735 = vmatmul.bf16.vlgmr.msrb.gmra.mxu2 %v1877_v54  ;;  %v2090_v54 = vld [vmem:[%s3134_s2 + $0xc8] sm:$0xf0] }
 0x16b   : >> { %v2093_v55 = vor.u32 %v2377_v53, %v2090_v54  ;;  %v2219_v54 = vor.u32 %v2402_v49, %v2218_v48 }
 0x16c   : >> { %1347 = vmatpush.bf16.msra.mxu1 %v2403_v38  ;;  %v2215_v38 = vor.u32 %v2399_v33, %v2212_v34 }
 0x16d   : >> { %1169 = vmatpush.bf16.msra.mxu2 %v2393_v57  ;;  %v2396_v57 = vld [vmem:[%s3134_s2 + $0x104] sm:$0xf0] }
 0x16f   : >> { %934 = vmatmul.bf16.vlgmr.msrb.gmra.mxu1 %v1983_v62  ;;  %2052 = vmatmul.msk.bf16.vlgmr.msrb.gmra.mxu3 %vm548_vm1, %v1987_v63  ;;  %v2105_v62 = vor.u32 %v2382_v61, %v2104_v60  ;;  %v2195_v63 = vor.u32 %v2396_v57, %v2194_v56 }
 0x178   : >> { %1146 = vmatmul.bf16.gmra.mxu0 %v2097_v50  ;;  %v2401_v50 = vld [vmem:[%s3134_s2 + $0x134] sm:$0xf] }
 0x17a   : >> { %740 = vmatmul.bf16.gmra.mxu2 %v1885_v6 }
 0x17f   : >> { %939 = vmatmul.bf16.gmra.mxu1 %v1991_v22  ;;  %2053 = vmatmul.msk.bf16.gmra.mxu3 %vm548_vm1, %v1995_v23  ;;  %v2203_v23 = vor.u32 %v2398_v8, %v2202_v7 }
 0x188   : >> { %1151 = vmatmul.bf16.gmra.mxu0 %v2105_v62 }
 0x18a   : >> { %745 = vmatmul.bf16.gmra.mxu2 %v1893_v29  ;;  %v2109_v29 = vor.u32 %v2381_v26, %v2106_v27 }
 0x18f   : >> { %944 = vmatmul.bf16.gmra.mxu1 %v1999_v39  ;;  %2054 = vmatmul.msk.bf16.gmra.mxu3 %vm548_vm1, %v2003_v40 }
 0x198   : >> { %1156 = vmatmul.bf16.gmra.mxu0 %v2113_v21 }
 0x19a   : >> { %750 = vmatmul.bf16.gmra.mxu2 %v1901_v43 }
 0x19f   : >> { %949 = vmatmul.bf16.gmra.mxu1 %v2007_v51  ;;  %2055 = vmatmul.msk.bf16.gmra.mxu3 %vm548_vm1, %v2011_v52  ;;  %v2220_v51 = vld [vmem:[%s3134_s2 + $0x138] sm:$0xf0] }
 0x1aa   : >> { %2158 = vmatmul.msk.bf16.vlgmr.msra.gmra.mxu2 %vm548_vm1, %v2093_v55  ;;  %v2223_v55 = vor.u32 %v2401_v50, %v2220_v51 }
 0x1ac   : >> { %v2895_v1 = vpop.f32.mrf.mxu1 }
 0x1af   : >> { %1348 = vmatmul.bf16.vlgmr.msra.gmra.mxu1 %v2195_v63  ;;  %2264 = vmatmul.msk.bf16.vlgmr.msra.gmra.mxu3 %vm548_vm1, %v2199_v0  ;;  %v1436_v63 = vld [vmem:[%s3136_s4 + $0x8] sm:$0x7] }
 0x1b0   : >> { %v1442_v0 = vunpack.c.l.b16 %v1436_v63 }
 0x1b2   : >> { %v2904_v4 = vpop.f32.mrf.mxu3  ;;  %v1444_v2 = vpack.c.b16 %v1442_v0, %v1442_v0 }
 0x1b4   : >> { %v2906_v6 = vpop.f32.mrf.mxu1  ;;  %v1461_v17 = vsel %vm1459_vm2, %v1444_v2, 0 }
 0x1b5   : >> { %1469 = vmatpush.bf16.msra.mxu0 %v1461_v17 }
 0x1ba   : >> { %2159 = vmatmul.msk.bf16.gmra.mxu2 %vm548_vm1, %v2101_v5  ;;  %v2927_v22 = vpop.f32.mrf.mxu3 }
 0x1bc   : >> { %v2929_v25 = vpop.f32.mrf.mxu1 }
 0x1bf   : >> { %1353 = vmatmul.bf16.gmra.mxu1 %v2203_v23  ;;  %2265 = vmatmul.msk.bf16.gmra.mxu3 %vm548_vm1, %v2207_v24 }
 0x1c2   : >> { %v2938_v28 = vpop.f32.mrf.mxu3 }
 0x1c4   : >> { %v2940_v30 = vpop.f32.mrf.mxu1 }
 0x1c5   : >> { %v570_v58 = vpop.f32.mrf.mxu0 }
 0x1c6   : >> { %v600_v3 = vadd.f32 %v2895_v1, %v570_v58 }
 0x1ca   : >> { %2160 = vmatmul.msk.bf16.gmra.mxu2 %vm548_vm1, %v2109_v29  ;;  %v2955_v36 = vpop.f32.mrf.mxu3 }
 0x1cc   : >> { %v609_v39 = vpop.f32.mrf.mxu1 }
 0x1cd   : >> { %v580_v35 = vpop.f32.mrf.mxu2  ;;  %v572_v5 = vpop.f32.mrf.mxu0 }
 0x1ce   : >> { %v2957_v40 = vadd.f32 %v609_v39, %v580_v35  ;;  %v602_v21 = vadd.f32 %v2906_v6, %v572_v5 }
 0x1cf   : >> { %1358 = vmatmul.bf16.gmra.mxu1 %v2211_v37  ;;  %2266 = vmatmul.msk.bf16.gmra.mxu3 %vm548_vm1, %v2215_v38 }
 0x1d2   : >> { %v2966_v44 = vpop.f32.mrf.mxu3 }
 0x1d4   : >> { %v611_v46 = vpop.f32.mrf.mxu1 }
 0x1d5   : >> { %v582_v43 = vpop.f32.mrf.mxu2  ;;  %v575_v29 = vpop.f32.mrf.mxu0 }
 0x1d6   : >> { %v2968_v47 = vadd.f32 %v611_v46, %v582_v43  ;;  %v605_v33 = vadd.f32 %v2929_v25, %v575_v29  ;;  %v2413_v25 = vld [vmem:[%s3136_s4] sm:$0xff] }
 0x1d7   : >> { %1470 = vmatpush.bf16.msra.mxu0 %v2413_v25 }
 0x1da   : >> { %2161 = vmatmul.msk.bf16.gmra.mxu2 %vm548_vm1, %v2117_v45  ;;  %v777_v53 = vpop.f32.mrf.mxu3 }
 0x1dc   : >> { %v614_v56 = vpop.f32.mrf.mxu1 }
 0x1dd   : >> { %v585_v52 = vpop.f32.mrf.mxu2 }
 0x1de   : >> { %v615_v57 = vadd.f32 %v614_v56, %v585_v52 }
 0x1df   : >> { %1363 = vmatmul.bf16.gmra.mxu1 %v2219_v54  ;;  %2267 = vmatmul.msk.bf16.gmra.mxu3 %vm548_vm1, %v2223_v55 }
 0x1e2   : >> { %v780_v60 = vpop.f32.mrf.mxu3 }
 0x1e4   : >> { %v616_v61 = vpop.f32.mrf.mxu1 }
 0x1e5   : >> { %v587_v59 = vpop.f32.mrf.mxu2 }
 0x1e6   : >> { %v617_v62 = vadd.f32 %v616_v61, %v587_v59 }
 0x1ea   : >> { %v782_v8 = vpop.f32.mrf.mxu3 }
 0x1ec   : >> { %v935_v19 = vpop.f32.mrf.mxu1 }
 0x1ed   : >> { %v736_v7 = vpop.f32.mrf.mxu2 }
 0x1ee   : >> { %v737_v18 = vadd.f32 %v736_v7, %v600_v3 }
 0x1f0   : >> { %v766_v20 = vadd.f32 %v2904_v4, %v737_v18  ;;  %v577_v4 = vpop.f32.mrf.mxu0 }
 0x1f1   : >> { %v607_v6 = vadd.f32 %v2940_v30, %v577_v4 }
 0x1f2   : >> { %v964_v24 = vpop.f32.mrf.mxu3 }
 0x1f3   : >> { %v965_v27 = vadd.f32 %v964_v24, %v935_v19 }
 0x1f4   : >> { %v937_v31 = vpop.f32.mrf.mxu1 }
 0x1f5   : >> { %v738_v23 = vpop.f32.mrf.mxu2  ;;  %v984_v1 = vadd.f32 %v965_v27, %v766_v20 }
 0x1f6   : >> { %v739_v26 = vadd.f32 %v738_v23, %v602_v21 }
 0x1f8   : >> { %v768_v32 = vadd.f32 %v2927_v22, %v739_v26  ;;  %v1142_v3 = vpop.f32.mrf.mxu0 }
 0x1fa   : >> { %v966_v35 = vpop.f32.mrf.mxu3 }
 0x1fc   : >> { %v940_v38 = vpop.f32.mrf.mxu1 }
 0x1fd   : >> { %v741_v34 = vpop.f32.mrf.mxu2 }
 0x1fe   : >> { %v742_v37 = vadd.f32 %v741_v34, %v605_v33  ;;  %v967_v33 = vadd.f32 %v966_v35, %v937_v31 }
 0x200   : >> { %v771_v39 = vadd.f32 %v2938_v28, %v742_v37 }
 0x202   : >> { %v969_v42 = vpop.f32.mrf.mxu3 }
 0x203   : >> { %v970_v45 = vadd.f32 %v969_v42, %v940_v38  ;;  %v985_v38 = vadd.f32 %v967_v33, %v768_v32 }
 0x204   : >> { %v2994_v46 = vpop.f32.mrf.mxu1 }
 0x205   : >> { %v743_v41 = vpop.f32.mrf.mxu2  ;;  %v2999_v48 = vadd.f32 %v970_v45, %v771_v39 }
 0x206   : >> { %v744_v43 = vadd.f32 %v743_v41, %v607_v6 }
 0x208   : >> { %v2997_v22 = vadd.f32 %v2955_v36, %v744_v43 }
 0x20a   : >> { %v971_v49 = vpop.f32.mrf.mxu3 }
 0x20c   : >> { %v945_v50 = vpop.f32.mrf.mxu1 }
 0x20d   : >> { %v746_v28 = vpop.f32.mrf.mxu2 }
 0x20e   : >> { %v747_v30 = vadd.f32 %v746_v28, %v2957_v40 }
 0x210   : >> { %v776_v51 = vadd.f32 %v2966_v44, %v747_v30 }
 0x212   : >> { %v974_v54 = vpop.f32.mrf.mxu3 }
 0x213   : >> { %v975_v36 = vadd.f32 %v974_v54, %v945_v50  ;;  %v972_v54 = vadd.f32 %v971_v49, %v2994_v46 }
 0x214   : >> { %v3007_v56 = vpop.f32.mrf.mxu1 }
 0x215   : >> { %v748_v52 = vpop.f32.mrf.mxu2  ;;  %v3011_v59 = vadd.f32 %v975_v36, %v776_v51 }
 0x216   : >> { %v749_v55 = vadd.f32 %v748_v52, %v2968_v47 }
 0x218   : >> { %v3009_v58 = vadd.f32 %v777_v53, %v749_v55  ;;  %v1144_v53 = vpop.f32.mrf.mxu0 }
 0x21a   : >> { %v3013_v63 = vpop.f32.mrf.mxu3 }
 0x21c   : >> { %v950_v2 = vpop.f32.mrf.mxu1 }
 0x21d   : >> { %v751_v61 = vpop.f32.mrf.mxu2 }
 0x21e   : >> { %v752_v0 = vadd.f32 %v751_v61, %v615_v57 }
 0x220   : >> { %v781_v40 = vadd.f32 %v780_v60, %v752_v0  ;;  %v1147_v27 = vpop.f32.mrf.mxu0 }
 0x222   : >> { %v979_v44 = vpop.f32.mrf.mxu3 }
 0x223   : >> { %v980_v17 = vadd.f32 %v979_v44, %v950_v2 }
 0x224   : >> { %v3015_v18 = vpop.f32.mrf.mxu1 }
 0x225   : >> { %v753_v5 = vpop.f32.mrf.mxu2  ;;  %v3019_v19 = vadd.f32 %v980_v17, %v781_v40  ;;  %v987_v40 = vadd.f32 %v972_v54, %v2997_v22  ;;  %v977_v22 = vadd.f32 %v3013_v63, %v3007_v56 }
 0x226   : >> { %v754_v7 = vadd.f32 %v753_v5, %v617_v62 }
 0x228   : >> { %v3017_v47 = vadd.f32 %v782_v8, %v754_v7  ;;  %v1149_v45 = vpop.f32.mrf.mxu0 }
 0x22a   : >> { %v3021_v20 = vpop.f32.mrf.mxu3 }
 0x22c   : >> { %v1349_v23 = vpop.f32.mrf.mxu1 }
 0x22d   : >> { %v1171_v21 = vpop.f32.mrf.mxu2 }
 0x22e   : >> { %v1172_v24 = vadd.f32 %v1171_v21, %v1142_v3 }
 0x230   : >> { %v1191_v62 = vadd.f32 %v1172_v24, %v984_v1  ;;  %v1152_v2 = vpop.f32.mrf.mxu0 }
 0x232   : >> { %v1378_v26 = vpop.f32.mrf.mxu3 }
 0x233   : >> { %v1379_v60 = vadd.f32 %v1378_v26, %v1349_v23 }
 0x234   : >> { %v1351_v29 = vpop.f32.mrf.mxu1 }
 0x235   : >> { %v1173_v57 = vpop.f32.mrf.mxu2  ;;  %v1398_v37 = vadd.f32 %v1379_v60, %v1191_v62 }
 0x236   : >> { %v1174_v34 = vadd.f32 %v1173_v57, %v1144_v53 }
 0x237   : >> { %v1406_v6 = vadd.f32 %v1398_v37, %v2580_v12 }
 0x238   : >> { %v1192_v4 = vadd.f32 %v1174_v34, %v985_v38  ;;  %v1154_v24 = vpop.f32.mrf.mxu0 }
 0x239   : >> { %v1414_v25 = vmul.f32 0.2, %v1406_v6 }
 0x23a   : >> { %v1380_v39 = vpop.f32.mrf.mxu3 }
 0x23b   : >> { %v1381_v41 = vadd.f32 %v1380_v39, %v1351_v29  ;;  %v1422_v1 = vmax.f32 %v1406_v6, %v1414_v25 }
 0x23c   : >> { %v1354_v42 = vpop.f32.mrf.mxu1 }
 0x23d   : >> { %v1176_v8 = vpop.f32.mrf.mxu2  ;;  %v1399_v43 = vadd.f32 %v1381_v41, %v1192_v4 }
 0x23e   : >> { %v1177_v30 = vadd.f32 %v1176_v8, %v1147_v27  ;;  %v989_v8 = vadd.f32 %v977_v22, %v3009_v58  ;;  %v982_v58 = vadd.f32 %v3021_v20, %v3015_v18 }
 0x23f   : >> { %v1407_v28 = vadd.f32 %v1399_v43, %v2584_v14 }
 0x240   : >> { %v1193_v55 = vadd.f32 %v1177_v30, %v2999_v48  ;;  %v1157_v43 = vpop.f32.mrf.mxu0 }
 0x241   : >> { %v1415_v50 = vmul.f32 0.2, %v1407_v28 }
 0x242   : >> { %v1383_v31 = vpop.f32.mrf.mxu3 }
 0x243   : >> { %v1423_v35 = vmax.f32 %v1407_v28, %v1415_v50  ;;  %v1384_v52 = vadd.f32 %v1383_v31, %v1354_v42 }
 0x244   : >> { %v1356_v32 = vpop.f32.mrf.mxu1 }
 0x245   : >> { %v1178_v51 = vpop.f32.mrf.mxu2  ;;  %v1430_v36 = vpack.c.bf16 %v1423_v35, %v1422_v1  ;;  %v1400_v0 = vadd.f32 %v1384_v52, %v1193_v55 }
 0x246   : >> { %v1179_v61 = vadd.f32 %v1178_v51, %v1149_v45 }
 0x247   : >> { %2272 = vmatmul.msk.bf16.vlgmr.msra.gmra.mxu0 %vm1446_vm3, %v1430_v36  ;;  %v1408_v7 = vadd.f32 %v1400_v0, %v2578_v11  ;;  %v991_v36 = vadd.f32 %v982_v58, %v3017_v47 }
 0x248   : >> { %v1194_v44 = vadd.f32 %v1179_v61, %v987_v40 }
 0x249   : >> { %v1416_v23 = vmul.f32 0.2, %v1408_v7 }
 0x24a   : >> { %v1385_v5 = vpop.f32.mrf.mxu3 }
 0x24b   : >> { %v1386_v17 = vadd.f32 %v1385_v5, %v1356_v32  ;;  %v1424_v60 = vmax.f32 %v1408_v7, %v1416_v23  ;;  %v1159_v32 = vpop.f32.mrf.mxu0 }
 0x24c   : >> { %v1359_v53 = vpop.f32.mrf.mxu1 }
 0x24d   : >> { %v1181_v3 = vpop.f32.mrf.mxu2  ;;  %v1401_v21 = vadd.f32 %v1386_v17, %v1194_v44 }
 0x24e   : >> { %v1182_v48 = vadd.f32 %v1181_v3, %v1152_v2 }
 0x24f   : >> { %v1409_v46 = vadd.f32 %v1401_v21, %v2582_v13 }
 0x250   : >> { %v1195_v33 = vadd.f32 %v1182_v48, %v3011_v59 }
 0x251   : >> { %v1417_v49 = vmul.f32 0.2, %v1409_v46 }
 0x252   : >> { %v1388_v26 = vpop.f32.mrf.mxu3 }
 0x253   : >> { %v1425_v27 = vmax.f32 %v1409_v46, %v1417_v49  ;;  %v1389_v29 = vadd.f32 %v1388_v26, %v1359_v53 }
 0x254   : >> { %v1361_v34 = vpop.f32.mrf.mxu1 }
 0x255   : >> { %v1183_v57 = vpop.f32.mrf.mxu2  ;;  %v1431_v62 = vpack.c.bf16 %v1425_v27, %v1424_v60  ;;  %v1402_v38 = vadd.f32 %v1389_v29, %v1195_v33 }
 0x256   : >> { %v1184_v37 = vadd.f32 %v1183_v57, %v1154_v24 }
 0x257   : >> { %2273 = vmatmul.msk.bf16.gmra.mxu0 %vm1446_vm3, %v1431_v62  ;;  %v1410_v41 = vadd.f32 %v1402_v38, %v2574_v9 }
 0x258   : >> { %v1196_v6 = vadd.f32 %v1184_v37, %v989_v8 }
 0x259   : >> { %v1418_v25 = vmul.f32 0.2, %v1410_v41 }
 0x25a   : >> { %v1390_v4 = vpop.f32.mrf.mxu3 }
 0x25b   : >> { %v1391_v42 = vadd.f32 %v1390_v4, %v1361_v34  ;;  %v1426_v50 = vmax.f32 %v1410_v41, %v1418_v25 }
 0x25c   : >> { %v1364_v59 = vpop.f32.mrf.mxu1 }
 0x25d   : >> { %v1186_v39 = vpop.f32.mrf.mxu2  ;;  %v1403_v45 = vadd.f32 %v1391_v42, %v1196_v6 }
 0x25e   : >> { %v1187_v63 = vadd.f32 %v1186_v39, %v1157_v43 }
 0x25f   : >> { %v1411_v56 = vadd.f32 %v1403_v45, %v2576_v10 }
 0x260   : >> { %v1197_v35 = vadd.f32 %v1187_v63, %v3019_v19 }
 0x261   : >> { %v1419_v28 = vmul.f32 0.2, %v1411_v56 }
 0x262   : >> { %v1393_v30 = vpop.f32.mrf.mxu3 }
 0x263   : >> { %v1427_v51 = vmax.f32 %v1411_v56, %v1419_v28  ;;  %v1394_v31 = vadd.f32 %v1393_v30, %v1364_v59 }
 0x264   : >> { %v1366_v61 = vpop.f32.mrf.mxu1 }
 0x265   : >> { %v1188_v1 = vpop.f32.mrf.mxu2  ;;  %v1432_v52 = vpack.c.bf16 %v1427_v51, %v1426_v50  ;;  %v1404_v55 = vadd.f32 %v1394_v31, %v1197_v35 }
 0x266   : >> { %v1189_v54 = vadd.f32 %v1188_v1, %v1159_v32 }
 0x267   : >> { %2274 = vmatmul.msk.bf16.gmra.mxu0 %vm1446_vm3, %v1432_v52  ;;  %v1412_v40 = vadd.f32 %v1404_v55, %v2588_v16 }
 0x268   : >> { %v1198_v2 = vadd.f32 %v1189_v54, %v991_v36 }
 0x269   : >> { %v1420_v44 = vmul.f32 0.2, %v1412_v40 }
 0x26a   : >> { %v1395_v0 = vpop.f32.mrf.mxu3 }
 0x26b   : >> { %v1396_v3 = vadd.f32 %v1395_v0, %v1366_v61  ;;  %v1428_v20 = vmax.f32 %v1412_v40, %v1420_v44 }
 0x26d   : >> { %v1405_v5 = vadd.f32 %v1396_v3, %v1198_v2 }
 0x26f   : >> { %v1413_v18 = vadd.f32 %v1405_v5, %v2586_v15 }
 0x271   : >> { %v1421_v19 = vmul.f32 0.2, %v1413_v18 }
 0x273   : >> { %v1429_v7 = vmax.f32 %v1413_v18, %v1421_v19 }
 0x275   : >> { %v1433_v17 = vpack.c.bf16 %v1429_v7, %v1428_v20 }
 0x277   : >> { %2275 = vmatmul.msk.bf16.gmra.mxu0 %vm1446_vm3, %v1433_v17 }
 0x2c4   : >> { %v1472_v53 = vpop.f32.mrf.mxu0 }
 0x2c5   : >> { %1495 = vst.msk [vmem:[%s1493_s25] sm:$0xff] %vm1494_vm4, %v1472_v53 }
 0x2cc   : >> { %v1474_v47 = vpop.f32.mrf.mxu0 }
 0x2cd   : >> { %1496 = vst.msk [vmem:[%s1493_s25 + $0x8] sm:$0xff] %vm1494_vm4, %v1474_v47 }
 0x2d4   : >> { %v1477_v21 = vpop.f32.mrf.mxu0 }
 0x2d5   : >> { %1497 = vst.msk [vmem:[%s1493_s25 + $0x10] sm:$0xff] %vm1494_vm4, %v1477_v21 }
 0x2dc   : >> { %v1479_v23 = vpop.f32.mrf.mxu0 }
 0x2dd   : >> { %1498 = vst.msk [vmem:[%s1493_s25 + $0x18] sm:$0xff] %vm1494_vm4, %v1479_v23 }
 0x2e4   : >> { %v1482_v46 = vpop.f32.mrf.mxu0 }
 0x2e5   : >> { %1499 = vst.msk [vmem:[%s1493_s25 + $0x20] sm:$0xff] %vm1494_vm4, %v1482_v46 }
 0x2ec   : >> { %v1484_v48 = vpop.f32.mrf.mxu0 }
 0x2ed   : >> { %1500 = vst.msk [vmem:[%s1493_s25 + $0x28] sm:$0xff] %vm1494_vm4, %v1484_v48 }
 0x2f4   : >> { %v1487_v49 = vpop.f32.mrf.mxu0 }
 0x2f5   : >> { %1501 = vst.msk [vmem:[%s1493_s25 + $0x30] sm:$0xff] %vm1494_vm4, %v1487_v49 }
 0x2f9   : > { %385 = sbr.rel (!%p383_p5) target bundleno = 288 (0x120), region = 124 }
 0x2fc   : >> { %v1489_v24 = vpop.f32.mrf.mxu0 }
 0x2fd   : >> { %1502 = vst.msk [vmem:[%s1493_s25 + $0x38] sm:$0xff] %vm1494_vm4, %v1489_v24 }
 0x2fe LB: >> { %s2277_s27 = smul.u32 192, %s2492_s26  ;;  %s2414_s7 = sshll.u32 %s2492_s26, 5  ;;  %vm1615_vm5 = vcmask 44032   ;;  %s2492_s26 = sphi %s3058_s26, %s1508_s26  }
 0x2ff   : >> { %s3096_s29 = scalar_lea.vmem %s2547_s30, %s2414_s7  ;;  %s1508_s26 = sadd.s32 1, %s2492_s26  }
 0x300   : >> { %s3064_s28 = scalar_lea.vmem [#allocation3], %s2277_s27  ;;  %p1505_p6 = scmp.ge.s32.totalorder %s1508_s26, 8  }
 0x304   : >> { %v1512_v9 = vld [vmem:[%s3064_s28] sm:$0xff]  ;;  %v1513_v13 = vld [vmem:[%s3064_s28 + $0x8] sm:$0xff]  ;;  %v1514_v27 = vld [vmem:[%s3064_s28 + $0x10] sm:$0xff] }
 0x305   : >> { %v2279_v10 = vld [vmem:[%s3064_s28 + $0x40] sm:$0xff]  ;;  %v2280_v15 = vld [vmem:[%s3064_s28 + $0x48] sm:$0xff]  ;;  %v2281_v29 = vld [vmem:[%s3064_s28 + $0x50] sm:$0xff] }
 0x306   : >> { %v2288_v11 = vld [vmem:[%s3064_s28 + $0x80] sm:$0xff]  ;;  %v1531_v12 = vadd.f32 %v2279_v10, %v1512_v9  ;;  %v2289_v16 = vld [vmem:[%s3064_s28 + $0x88] sm:$0xff]  ;;  %v1532_v60 = vadd.f32 %v2280_v15, %v1513_v13  ;;  %v1533_v33 = vadd.f32 %v2281_v29, %v1514_v27  ;;  %v2290_v62 = vld [vmem:[%s3064_s28 + $0x90] sm:$0xff] }
 0x307   : >> { %v2297_v14 = vld [vmem:[%s3064_s28 + $0xc0] sm:$0xff]  ;;  %v2298_v22 = vld [vmem:[%s3064_s28 + $0xc8] sm:$0xff]  ;;  %v2299_v34 = vld [vmem:[%s3064_s28 + $0xd0] sm:$0xff] }
 0x308   : >> { %v1550_v57 = vadd.f32 %v2288_v11, %v1531_v12  ;;  %v2306_v26 = vld [vmem:[%s3064_s28 + $0x100] sm:$0xff]  ;;  %v1551_v38 = vadd.f32 %v2289_v16, %v1532_v60  ;;  %v1515_v8 = vld [vmem:[%s3064_s28 + $0x18] sm:$0xff]  ;;  %v2307_v6 = vld [vmem:[%s3064_s28 + $0x108] sm:$0xff]  ;;  %v1552_v41 = vadd.f32 %v2290_v62, %v1533_v33 }
 0x309   : >> { %v2282_v39 = vld [vmem:[%s3064_s28 + $0x58] sm:$0xff]  ;;  %v2308_v42 = vld [vmem:[%s3064_s28 + $0x110] sm:$0xff]  ;;  %v1516_v45 = vld [vmem:[%s3064_s28 + $0x20] sm:$0xff] }
 0x30a   : >> { %v1569_v37 = vadd.f32 %v2297_v14, %v1550_v57  ;;  %v2291_v4 = vld [vmem:[%s3064_s28 + $0x98] sm:$0xff]  ;;  %v1534_v43 = vadd.f32 %v2282_v39, %v1515_v8  ;;  %v1570_v56 = vadd.f32 %v2298_v22, %v1551_v38  ;;  %v2283_v63 = vld [vmem:[%s3064_s28 + $0x60] sm:$0xff]  ;;  %v1571_v30 = vadd.f32 %v2299_v34, %v1552_v41  ;;  %v1517_v1 = vld [vmem:[%s3064_s28 + $0x28] sm:$0xff] }
 0x30b   : >> { %v2300_v59 = vld [vmem:[%s3064_s28 + $0xd8] sm:$0xff]  ;;  %v2292_v28 = vld [vmem:[%s3064_s28 + $0xa0] sm:$0xff]  ;;  %v1535_v31 = vadd.f32 %v2283_v63, %v1516_v45  ;;  %v2284_v58 = vld [vmem:[%s3064_s28 + $0x68] sm:$0xff] }
 0x30c   : >> { %v1588_v25 = vadd.f32 %v2306_v26, %v1569_v37  ;;  %v1553_v50 = vadd.f32 %v2291_v4, %v1534_v43  ;;  %v2309_v51 = vld [vmem:[%s3064_s28 + $0x118] sm:$0xff]  ;;  %v1589_v52 = vadd.f32 %v2307_v6, %v1570_v56  ;;  %v2301_v32 = vld [vmem:[%s3064_s28 + $0xe0] sm:$0xff]  ;;  %v1536_v54 = vadd.f32 %v2284_v58, %v1517_v1  ;;  %v2293_v55 = vld [vmem:[%s3064_s28 + $0xa8] sm:$0xff] }
 0x30d   : >> { %v2302_v36 = vld [vmem:[%s3064_s28 + $0xe8] sm:$0xff]  ;;  %v1590_v61 = vadd.f32 %v2308_v42, %v1571_v30  ;;  %v1554_v2 = vadd.f32 %v2292_v28, %v1535_v31  ;;  %v1518_v40 = vld [vmem:[%s3064_s28 + $0x30] sm:$0xff]  ;;  %v2310_v19 = vld [vmem:[%s3064_s28 + $0x120] sm:$0xff] }
 0x30e   : >> { %v1596_v35 = vmul.f32 0.04, %v1588_v25  ;;  %v1572_v0 = vadd.f32 %v2300_v59, %v1553_v50  ;;  %v2285_v3 = vld [vmem:[%s3064_s28 + $0x70] sm:$0xff]  ;;  %v1597_v18 = vmul.f32 0.04, %v1589_v52  ;;  %v1555_v20 = vadd.f32 %v2293_v55, %v1536_v54  ;;  %v2311_v7 = vld [vmem:[%s3064_s28 + $0x128] sm:$0xff] }
 0x30f   : >> { %v2294_v5 = vld [vmem:[%s3064_s28 + $0xb0] sm:$0xff]  ;;  %v1537_v17 = vadd.f32 %v2285_v3, %v1518_v40  ;;  %v1519_v53 = vld [vmem:[%s3064_s28 + $0x38] sm:$0xff]  ;;  %v1598_v47 = vmul.f32 0.04, %v1590_v61  ;;  %v1573_v23 = vadd.f32 %v2301_v32, %v1554_v2 }
 0x310   : >> { %v1604_v44 = vpack.c.bf16 %v1596_v35, %v1596_v35  ;;  %v1591_v21 = vadd.f32 %v2309_v51, %v1572_v0  ;;  %v2303_v46 = vld [vmem:[%s3064_s28 + $0xf0] sm:$0xff]  ;;  %v2286_v48 = vld [vmem:[%s3064_s28 + $0x78] sm:$0xff]  ;;  %v1605_v24 = vpack.c.bf16 %v1597_v18, %v1597_v18  ;;  %v1574_v9 = vadd.f32 %v2302_v36, %v1555_v20 }
 0x311   : >> { %v2295_v49 = vld [vmem:[%s3064_s28 + $0xb8] sm:$0xff]  ;;  %v1556_v10 = vadd.f32 %v2294_v5, %v1537_v17  ;;  %v1538_v11 = vadd.f32 %v2286_v48, %v1519_v53  ;;  %v1606_v12 = vpack.c.bf16 %v1598_v47, %v1598_v47  ;;  %v1592_v14 = vadd.f32 %v2310_v19, %v1573_v23  ;;  %v2312_v15 = vld [vmem:[%s3064_s28 + $0x130] sm:$0xff] }
 0x312   : >> { %1616 = vst.msk [vmem:[%s3096_s29] sm:$0xf] %vm1615_vm5, %v1604_v44  ;;  %v1599_v13 = vmul.f32 0.04, %v1591_v21  ;;  %v2304_v16 = vld [vmem:[%s3064_s28 + $0xf8] sm:$0xff]  ;;  %v1593_v57 = vadd.f32 %v2311_v7, %v1574_v9 }
 0x313   : >> { %1617 = vst.msk [vmem:[%s3096_s29 + $0x4] sm:$0xf] %vm1615_vm5, %v1605_v24  ;;  %v1575_v26 = vadd.f32 %v2303_v46, %v1556_v10  ;;  %v1557_v60 = vadd.f32 %v2295_v49, %v1538_v11  ;;  %v1600_v29 = vmul.f32 0.04, %v1592_v14  ;;  %v2313_v22 = vld [vmem:[%s3064_s28 + $0x138] sm:$0xff] }
 0x314   : >> { %1618 = vst.msk [vmem:[%s3096_s29 + $0x8] sm:$0xf] %vm1615_vm5, %v1606_v12  ;;  %v1607_v27 = vpack.c.bf16 %v1599_v13, %v1599_v13  ;;  %v1601_v33 = vmul.f32 0.04, %v1593_v57 }
 0x315   : >> { %v1594_v62 = vadd.f32 %v2312_v15, %v1575_v26  ;;  %v1576_v34 = vadd.f32 %v2304_v16, %v1557_v60  ;;  %v1608_v37 = vpack.c.bf16 %v1600_v29, %v1600_v29 }
 0x316   : >> { %1619 = vst.msk [vmem:[%s3096_s29 + $0xc] sm:$0xf] %vm1615_vm5, %v1607_v27  ;;  %v1609_v38 = vpack.c.bf16 %v1601_v33, %v1601_v33 }
 0x317   : >> { %v1602_v8 = vmul.f32 0.04, %v1594_v62  ;;  %v1595_v39 = vadd.f32 %v2313_v22, %v1576_v34  ;;  %1620 = vst.msk [vmem:[%s3096_s29 + $0x10] sm:$0xf] %vm1615_vm5, %v1608_v37 }
 0x318   : >> { %1621 = vst.msk [vmem:[%s3096_s29 + $0x14] sm:$0xf] %vm1615_vm5, %v1609_v38 }
 0x319   : >> { %v1610_v4 = vpack.c.bf16 %v1602_v8, %v1602_v8  ;;  %v1603_v6 = vmul.f32 0.04, %v1595_v39  ;;  %1507 = sbr.rel (!%p1505_p6) target bundleno = 766 (0x2fe), region = 135 }
 0x31b   : >> { %1622 = vst.msk [vmem:[%s3096_s29 + $0x18] sm:$0xf] %vm1615_vm5, %v1610_v4  ;;  %v1611_v41 = vpack.c.bf16 %v1603_v6, %v1603_v6 }
 0x31d   : >> { %1623 = vst.msk [vmem:[%s3096_s29 + $0x1c] sm:$0xf] %vm1615_vm5, %v1611_v41 }
 0x31e PF: > { %s15_s18 = sadd.s32 1, %s2480_s18  }
 0x31f   : > { %p12_p7 = scmp.ge.s32.totalorder %s15_s18, 4  }
 0x321   :  { %14 = sbr.rel (!%p12_p7) target bundleno = 1 (0x1), region = 146 }

// kernel: base_discriminator_forward.7
= control target key start
LH: loop header
LB: loop body
LE: loop exit
PB: predicated region body
PF: predicated region fallthrough
CT: control target
= control target key end

     0   :  { %s10243_s0 = inlined_call_operand.vmem [shape: bf16[2,3072], index: 0, kind: input, shape index: {}]   ;;  %s10244_s1 = inlined_call_operand.vmem [shape: bf16[3072,1024], index: 1, kind: input, shape index: {}]   ;;  %s10245_s2 = inlined_call_operand.vmem [shape: f32[1,1024], index: 2, kind: input, shape index: {}]   ;;  %s10246_s3 = inlined_call_operand.vmem [shape: bf16[1,1024], index: 3, kind: input, shape index: {}]   ;;  %s10247_s4 = inlined_call_operand.<no memory space> [shape: f32[1,1], index: 4, kind: input, shape index: {}]   ;;  %s10248_s5 = inlined_call_operand.vmem [shape: f32[2,1], index: 5, kind: output, shape index: {}]  }
   0x1   :  { %v10_v0 = vstv %s10247_s4 }
   0x2   :  { %11 = vst [vmem:[#allocation3] sm:$0x1] %v10_v0 }
   0x3   :  { %s8536_s20 = smov 0   ;;  %s8538_s21 = smov 0  }
   0x4   :  { %s8540_s22 = smov 0  }
   0x5 LB: > { %s8552_s4 = sadd.s32 4294967295, %s8500_s22   ;;  %s8555_s23 = sadd.s32 1, %s8500_s22   ;;  %s8500_s22 = sphi %s8540_s22, %s10251_s22   ;;  %s8496_s21 = sphi %s8538_s21, %s10250_s21   ;;  %s8492_s20 = sphi %s8536_s20, %s10249_s20  }
   0x6   : > { %s42_s24 = ssub.s32 %s8500_s22, %s8555_s23  ;;  %s45_s25 = sadd.s32 1, %s8496_s21 }
   0x7   : > { %p43_p0 = scmp.eq.s32.totalorder %s42_s24, 0  ;;  %p52_p1 = scmp.ne.s32.totalorder %s8496_s21, %s8492_s20 }
   0x8   : > { %p53_p2 = scmp.eq.s32.totalorder %s8500_s22, 0  ;;  %p6506_p4 = scmp.ge.s32.totalorder %s8500_s22, 4 }
   0x9   : > { %s8564_s26 = scalar_select %p43_p0, %s8496_s21, %s45_s25  }
   0xa   : > { %p54_p3 = por %p53_p2, %p52_p1  ;;  %178 = sbr.rel (%p6506_p4) target bundleno = 403 (0x193), region = 24 }
   0xf   : > { %181 = sbr.rel (!%p54_p3) target bundleno = 403 (0x193), region = 28  ;;  %s183_s27 = sand.u32 (%p54_p3), 1, %s8496_s21  }
  0x10   : > { %s8052_s28 = sshll.u32 (%p54_p3), %s8500_s22, 3  ;;  %s8437_s29 = smul.u32 (%p54_p3), 3072, %s183_s27 }
  0x11   : > { %s8572_s7 = scalar_lea.vmem (%p54_p3), %s10244_s1, %s8052_s28 }
  0x12   : > { %v984_v1 = vld [vmem:[%s8572_s7] sm:$0xff] (%p54_p3)  ;;  %s8577_s8 = scalar_lea.vmem (%p54_p3), [#allocation4], %s8437_s29 }
  0x13   : > { %v986_v2 = vld [vmem:[%s8572_s7 + $0x20] sm:$0xff] (%p54_p3)  ;;  %985 = vst [vmem:[%s8577_s8] sm:$0xff] (%p54_p3), %v984_v1 }
  0x14   : > { %v988_v3 = vld [vmem:[%s8572_s7 + $0x40] sm:$0xff]  ;;  %987 = vst [vmem:[%s8577_s8 + $0x8] sm:$0xff] %v986_v2 }
  0x15   : > { %v990_v4 = vld [vmem:[%s8572_s7 + $0x60] sm:$0xff]  ;;  %989 = vst [vmem:[%s8577_s8 + $0x10] sm:$0xff] %v988_v3 }
  0x16   : > { %v992_v5 = vld [vmem:[%s8572_s7 + $0x80] sm:$0xff]  ;;  %991 = vst [vmem:[%s8577_s8 + $0x18] sm:$0xff] %v990_v4 }
  0x17   : > { %v994_v6 = vld [vmem:[%s8572_s7 + $0xa0] sm:$0xff]  ;;  %993 = vst [vmem:[%s8577_s8 + $0x20] sm:$0xff] %v992_v5 }
  0x18   : > { %v996_v7 = vld [vmem:[%s8572_s7 + $0xc0] sm:$0xff]  ;;  %995 = vst [vmem:[%s8577_s8 + $0x28] sm:$0xff] %v994_v6 }
  0x19   : > { %v998_v8 = vld [vmem:[%s8572_s7 + $0xe0] sm:$0xff]  ;;  %997 = vst [vmem:[%s8577_s8 + $0x30] sm:$0xff] %v996_v7 }
  0x1a   : > { %v1000_v9 = vld [vmem:[%s8572_s7 + $0x100] sm:$0xff]  ;;  %999 = vst [vmem:[%s8577_s8 + $0x38] sm:$0xff] %v998_v8 }
  0x1b   : > { %v1002_v10 = vld [vmem:[%s8572_s7 + $0x120] sm:$0xff]  ;;  %1001 = vst [vmem:[%s8577_s8 + $0x40] sm:$0xff] %v1000_v9 }
  0x1c   : > { %v1004_v11 = vld [vmem:[%s8572_s7 + $0x140] sm:$0xff]  ;;  %1003 = vst [vmem:[%s8577_s8 + $0x48] sm:$0xff] %v1002_v10 }
  0x1d   : > { %v1006_v12 = vld [vmem:[%s8572_s7 + $0x160] sm:$0xff]  ;;  %1005 = vst [vmem:[%s8577_s8 + $0x50] sm:$0xff] %v1004_v11 }
  0x1e   : > { %v1008_v13 = vld [vmem:[%s8572_s7 + $0x180] sm:$0xff]  ;;  %1007 = vst [vmem:[%s8577_s8 + $0x58] sm:$0xff] %v1006_v12 }
  0x1f   : > { %v1010_v14 = vld [vmem:[%s8572_s7 + $0x1a0] sm:$0xff]  ;;  %1009 = vst [vmem:[%s8577_s8 + $0x60] sm:$0xff] %v1008_v13 }
  0x20   : > { %v1012_v15 = vld [vmem:[%s8572_s7 + $0x1c0] sm:$0xff]  ;;  %1011 = vst [vmem:[%s8577_s8 + $0x68] sm:$0xff] %v1010_v14 }
  0x21   : > { %v1014_v16 = vld [vmem:[%s8572_s7 + $0x1e0] sm:$0xff]  ;;  %1013 = vst [vmem:[%s8577_s8 + $0x70] sm:$0xff] %v1012_v15 }
  0x22   : > { %v1016_v17 = vld [vmem:[%s8572_s7 + $0x200] sm:$0xff]  ;;  %1015 = vst [vmem:[%s8577_s8 + $0x78] sm:$0xff] %v1014_v16 }
  0x23   : > { %v1018_v18 = vld [vmem:[%s8572_s7 + $0x220] sm:$0xff]  ;;  %1017 = vst [vmem:[%s8577_s8 + $0x80] sm:$0xff] %v1016_v17 }
  0x24   : > { %v1020_v19 = vld [vmem:[%s8572_s7 + $0x240] sm:$0xff]  ;;  %1019 = vst [vmem:[%s8577_s8 + $0x88] sm:$0xff] %v1018_v18 }
  0x25   : > { %v1022_v20 = vld [vmem:[%s8572_s7 + $0x260] sm:$0xff]  ;;  %1021 = vst [vmem:[%s8577_s8 + $0x90] sm:$0xff] %v1020_v19 }
  0x26   : > { %v1024_v21 = vld [vmem:[%s8572_s7 + $0x280] sm:$0xff]  ;;  %1023 = vst [vmem:[%s8577_s8 + $0x98] sm:$0xff] %v1022_v20 }
  0x27   : > { %v1026_v22 = vld [vmem:[%s8572_s7 + $0x2a0] sm:$0xff]  ;;  %1025 = vst [vmem:[%s8577_s8 + $0xa0] sm:$0xff] %v1024_v21 }
  0x28   : > { %v1028_v23 = vld [vmem:[%s8572_s7 + $0x2c0] sm:$0xff]  ;;  %1027 = vst [vmem:[%s8577_s8 + $0xa8] sm:$0xff] %v1026_v22 }
  0x29   : > { %v1030_v24 = vld [vmem:[%s8572_s7 + $0x2e0] sm:$0xff]  ;;  %1029 = vst [vmem:[%s8577_s8 + $0xb0] sm:$0xff] %v1028_v23 }
  0x2a   : > { %v1032_v25 = vld [vmem:[%s8572_s7 + $0x300] sm:$0xff]  ;;  %1031 = vst [vmem:[%s8577_s8 + $0xb8] sm:$0xff] %v1030_v24 }
  0x2b   : > { %v1034_v26 = vld [vmem:[%s8572_s7 + $0x320] sm:$0xff]  ;;  %1033 = vst [vmem:[%s8577_s8 + $0xc0] sm:$0xff] %v1032_v25 }
  0x2c   : > { %v1036_v27 = vld [vmem:[%s8572_s7 + $0x340] sm:$0xff]  ;;  %1035 = vst [vmem:[%s8577_s8 + $0xc8] sm:$0xff] %v1034_v26 }
  0x2d   : > { %v1038_v28 = vld [vmem:[%s8572_s7 + $0x360] sm:$0xff]  ;;  %1037 = vst [vmem:[%s8577_s8 + $0xd0] sm:$0xff] %v1036_v27 }
  0x2e   : > { %v1040_v29 = vld [vmem:[%s8572_s7 + $0x380] sm:$0xff]  ;;  %1039 = vst [vmem:[%s8577_s8 + $0xd8] sm:$0xff] %v1038_v28 }
  0x2f   : > { %v1042_v30 = vld [vmem:[%s8572_s7 + $0x3a0] sm:$0xff]  ;;  %1041 = vst [vmem:[%s8577_s8 + $0xe0] sm:$0xff] %v1040_v29 }
  0x30   : > { %v1044_v31 = vld [vmem:[%s8572_s7 + $0x3c0] sm:$0xff]  ;;  %1043 = vst [vmem:[%s8577_s8 + $0xe8] sm:$0xff] %v1042_v30 }
  0x31   : > { %v1046_v32 = vld [vmem:[%s8572_s7 + $0x3e0] sm:$0xff]  ;;  %1045 = vst [vmem:[%s8577_s8 + $0xf0] sm:$0xff] %v1044_v31 }
  0x32   : > { %v1048_v33 = vld [vmem:[%s8572_s7 + $0x400] sm:$0xff]  ;;  %1047 = vst [vmem:[%s8577_s8 + $0xf8] sm:$0xff] %v1046_v32 }
  0x33   : > { %v1050_v34 = vld [vmem:[%s8572_s7 + $0x420] sm:$0xff]  ;;  %1049 = vst [vmem:[%s8577_s8 + $0x100] sm:$0xff] %v1048_v33 }
  0x34   : > { %v1052_v35 = vld [vmem:[%s8572_s7 + $0x440] sm:$0xff]  ;;  %1051 = vst [vmem:[%s8577_s8 + $0x108] sm:$0xff] %v1050_v34 }
  0x35   : > { %v1054_v36 = vld [vmem:[%s8572_s7 + $0x460] sm:$0xff]  ;;  %1053 = vst [vmem:[%s8577_s8 + $0x110] sm:$0xff] %v1052_v35 }
  0x36   : > { %v1056_v37 = vld [vmem:[%s8572_s7 + $0x480] sm:$0xff]  ;;  %1055 = vst [vmem:[%s8577_s8 + $0x118] sm:$0xff] %v1054_v36 }
  0x37   : > { %v1058_v38 = vld [vmem:[%s8572_s7 + $0x4a0] sm:$0xff]  ;;  %1057 = vst [vmem:[%s8577_s8 + $0x120] sm:$0xff] %v1056_v37 }
  0x38   : > { %v1060_v39 = vld [vmem:[%s8572_s7 + $0x4c0] sm:$0xff]  ;;  %1059 = vst [vmem:[%s8577_s8 + $0x128] sm:$0xff] %v1058_v38 }
  0x39   : > { %v1062_v40 = vld [vmem:[%s8572_s7 + $0x4e0] sm:$0xff]  ;;  %1061 = vst [vmem:[%s8577_s8 + $0x130] sm:$0xff] %v1060_v39 }
  0x3a   : > { %v1064_v41 = vld [vmem:[%s8572_s7 + $0x500] sm:$0xff]  ;;  %1063 = vst [vmem:[%s8577_s8 + $0x138] sm:$0xff] %v1062_v40 }
  0x3b   : > { %v1066_v42 = vld [vmem:[%s8572_s7 + $0x520] sm:$0xff]  ;;  %1065 = vst [vmem:[%s8577_s8 + $0x140] sm:$0xff] %v1064_v41 }
  0x3c   : > { %v1068_v43 = vld [vmem:[%s8572_s7 + $0x540] sm:$0xff]  ;;  %1067 = vst [vmem:[%s8577_s8 + $0x148] sm:$0xff] %v1066_v42 }
  0x3d   : > { %v1070_v44 = vld [vmem:[%s8572_s7 + $0x560] sm:$0xff]  ;;  %1069 = vst [vmem:[%s8577_s8 + $0x150] sm:$0xff] %v1068_v43 }
  0x3e   : > { %v1072_v45 = vld [vmem:[%s8572_s7 + $0x580] sm:$0xff]  ;;  %1071 = vst [vmem:[%s8577_s8 + $0x158] sm:$0xff] %v1070_v44 }
  0x3f   : > { %v1074_v46 = vld [vmem:[%s8572_s7 + $0x5a0] sm:$0xff]  ;;  %1073 = vst [vmem:[%s8577_s8 + $0x160] sm:$0xff] %v1072_v45 }
  0x40   : > { %v1076_v47 = vld [vmem:[%s8572_s7 + $0x5c0] sm:$0xff]  ;;  %1075 = vst [vmem:[%s8577_s8 + $0x168] sm:$0xff] %v1074_v46 }
  0x41   : > { %v1078_v48 = vld [vmem:[%s8572_s7 + $0x5e0] sm:$0xff]  ;;  %1077 = vst [vmem:[%s8577_s8 + $0x170] sm:$0xff] %v1076_v47 }
  0x42   : > { %v1080_v49 = vld [vmem:[%s8572_s7 + $0x600] sm:$0xff]  ;;  %1079 = vst [vmem:[%s8577_s8 + $0x178] sm:$0xff] %v1078_v48 }
  0x43   : > { %v1082_v50 = vld [vmem:[%s8572_s7 + $0x620] sm:$0xff]  ;;  %1081 = vst [vmem:[%s8577_s8 + $0x180] sm:$0xff] %v1080_v49 }
  0x44   : > { %v1084_v51 = vld [vmem:[%s8572_s7 + $0x640] sm:$0xff]  ;;  %1083 = vst [vmem:[%s8577_s8 + $0x188] sm:$0xff] %v1082_v50 }
  0x45   : > { %v1086_v52 = vld [vmem:[%s8572_s7 + $0x660] sm:$0xff]  ;;  %1085 = vst [vmem:[%s8577_s8 + $0x190] sm:$0xff] %v1084_v51 }
  0x46   : > { %v1088_v53 = vld [vmem:[%s8572_s7 + $0x680] sm:$0xff]  ;;  %1087 = vst [vmem:[%s8577_s8 + $0x198] sm:$0xff] %v1086_v52 }
  0x47   : > { %v1090_v54 = vld [vmem:[%s8572_s7 + $0x6a0] sm:$0xff]  ;;  %1089 = vst [vmem:[%s8577_s8 + $0x1a0] sm:$0xff] %v1088_v53 }
  0x48   : > { %v1092_v55 = vld [vmem:[%s8572_s7 + $0x6c0] sm:$0xff]  ;;  %1091 = vst [vmem:[%s8577_s8 + $0x1a8] sm:$0xff] %v1090_v54 }
  0x49   : > { %v1094_v56 = vld [vmem:[%s8572_s7 + $0x6e0] sm:$0xff]  ;;  %1093 = vst [vmem:[%s8577_s8 + $0x1b0] sm:$0xff] %v1092_v55 }
  0x4a   : > { %v1096_v57 = vld [vmem:[%s8572_s7 + $0x700] sm:$0xff]  ;;  %1095 = vst [vmem:[%s8577_s8 + $0x1b8] sm:$0xff] %v1094_v56 }
  0x4b   : > { %v1098_v58 = vld [vmem:[%s8572_s7 + $0x720] sm:$0xff]  ;;  %1097 = vst [vmem:[%s8577_s8 + $0x1c0] sm:$0xff] %v1096_v57 }
  0x4c   : > { %v1100_v59 = vld [vmem:[%s8572_s7 + $0x740] sm:$0xff]  ;;  %1099 = vst [vmem:[%s8577_s8 + $0x1c8] sm:$0xff] %v1098_v58 }
  0x4d   : > { %v1102_v60 = vld [vmem:[%s8572_s7 + $0x760] sm:$0xff]  ;;  %1101 = vst [vmem:[%s8577_s8 + $0x1d0] sm:$0xff] %v1100_v59 }
  0x4e   : > { %v1104_v61 = vld [vmem:[%s8572_s7 + $0x780] sm:$0xff]  ;;  %1103 = vst [vmem:[%s8577_s8 + $0x1d8] sm:$0xff] %v1102_v60 }
  0x4f   : > { %v1106_v62 = vld [vmem:[%s8572_s7 + $0x7a0] sm:$0xff]  ;;  %1105 = vst [vmem:[%s8577_s8 + $0x1e0] sm:$0xff] %v1104_v61 }
  0x50   : > { %v1108_v63 = vld [vmem:[%s8572_s7 + $0x7c0] sm:$0xff]  ;;  %1107 = vst [vmem:[%s8577_s8 + $0x1e8] sm:$0xff] %v1106_v62 }
  0x51   : > { %v1110_v0 = vld [vmem:[%s8572_s7 + $0x7e0] sm:$0xff]  ;;  %1109 = vst [vmem:[%s8577_s8 + $0x1f0] sm:$0xff] %v1108_v63 }
  0x52   : > { %v1112_v1 = vld [vmem:[%s8572_s7 + $0x800] sm:$0xff]  ;;  %1111 = vst [vmem:[%s8577_s8 + $0x1f8] sm:$0xff] %v1110_v0 }
  0x53   : > { %v1114_v2 = vld [vmem:[%s8572_s7 + $0x820] sm:$0xff]  ;;  %1113 = vst [vmem:[%s8577_s8 + $0x200] sm:$0xff] %v1112_v1 }
  0x54   : > { %v1116_v3 = vld [vmem:[%s8572_s7 + $0x840] sm:$0xff]  ;;  %1115 = vst [vmem:[%s8577_s8 + $0x208] sm:$0xff] %v1114_v2 }
  0x55   : > { %v1118_v4 = vld [vmem:[%s8572_s7 + $0x860] sm:$0xff]  ;;  %1117 = vst [vmem:[%s8577_s8 + $0x210] sm:$0xff] %v1116_v3 }
  0x56   : > { %v1120_v5 = vld [vmem:[%s8572_s7 + $0x880] sm:$0xff]  ;;  %1119 = vst [vmem:[%s8577_s8 + $0x218] sm:$0xff] %v1118_v4 }
  0x57   : > { %v1122_v6 = vld [vmem:[%s8572_s7 + $0x8a0] sm:$0xff]  ;;  %1121 = vst [vmem:[%s8577_s8 + $0x220] sm:$0xff] %v1120_v5 }
  0x58   : > { %v1124_v7 = vld [vmem:[%s8572_s7 + $0x8c0] sm:$0xff]  ;;  %1123 = vst [vmem:[%s8577_s8 + $0x228] sm:$0xff] %v1122_v6 }
  0x59   : > { %v1126_v8 = vld [vmem:[%s8572_s7 + $0x8e0] sm:$0xff]  ;;  %1125 = vst [vmem:[%s8577_s8 + $0x230] sm:$0xff] %v1124_v7 }
  0x5a   : > { %v1128_v9 = vld [vmem:[%s8572_s7 + $0x900] sm:$0xff]  ;;  %1127 = vst [vmem:[%s8577_s8 + $0x238] sm:$0xff] %v1126_v8 }
  0x5b   : > { %v1130_v10 = vld [vmem:[%s8572_s7 + $0x920] sm:$0xff]  ;;  %1129 = vst [vmem:[%s8577_s8 + $0x240] sm:$0xff] %v1128_v9 }
  0x5c   : > { %v1132_v11 = vld [vmem:[%s8572_s7 + $0x940] sm:$0xff]  ;;  %1131 = vst [vmem:[%s8577_s8 + $0x248] sm:$0xff] %v1130_v10 }
  0x5d   : > { %v1134_v12 = vld [vmem:[%s8572_s7 + $0x960] sm:$0xff]  ;;  %1133 = vst [vmem:[%s8577_s8 + $0x250] sm:$0xff] %v1132_v11 }
  0x5e   : > { %v1136_v13 = vld [vmem:[%s8572_s7 + $0x980] sm:$0xff]  ;;  %1135 = vst [vmem:[%s8577_s8 + $0x258] sm:$0xff] %v1134_v12 }
  0x5f   : > { %v1138_v14 = vld [vmem:[%s8572_s7 + $0x9a0] sm:$0xff]  ;;  %1137 = vst [vmem:[%s8577_s8 + $0x260] sm:$0xff] %v1136_v13 }
  0x60   : > { %v1140_v15 = vld [vmem:[%s8572_s7 + $0x9c0] sm:$0xff]  ;;  %1139 = vst [vmem:[%s8577_s8 + $0x268] sm:$0xff] %v1138_v14 }
  0x61   : > { %v1142_v16 = vld [vmem:[%s8572_s7 + $0x9e0] sm:$0xff]  ;;  %1141 = vst [vmem:[%s8577_s8 + $0x270] sm:$0xff] %v1140_v15 }
  0x62   : > { %v1144_v17 = vld [vmem:[%s8572_s7 + $0xa00] sm:$0xff]  ;;  %1143 = vst [vmem:[%s8577_s8 + $0x278] sm:$0xff] %v1142_v16 }
  0x63   : > { %v1146_v18 = vld [vmem:[%s8572_s7 + $0xa20] sm:$0xff]  ;;  %1145 = vst [vmem:[%s8577_s8 + $0x280] sm:$0xff] %v1144_v17 }
  0x64   : > { %v1148_v19 = vld [vmem:[%s8572_s7 + $0xa40] sm:$0xff]  ;;  %1147 = vst [vmem:[%s8577_s8 + $0x288] sm:$0xff] %v1146_v18 }
  0x65   : > { %v1150_v20 = vld [vmem:[%s8572_s7 + $0xa60] sm:$0xff]  ;;  %1149 = vst [vmem:[%s8577_s8 + $0x290] sm:$0xff] %v1148_v19 }
  0x66   : > { %v1152_v21 = vld [vmem:[%s8572_s7 + $0xa80] sm:$0xff]  ;;  %1151 = vst [vmem:[%s8577_s8 + $0x298] sm:$0xff] %v1150_v20 }
  0x67   : > { %v1154_v22 = vld [vmem:[%s8572_s7 + $0xaa0] sm:$0xff]  ;;  %1153 = vst [vmem:[%s8577_s8 + $0x2a0] sm:$0xff] %v1152_v21 }
  0x68   : > { %v1156_v23 = vld [vmem:[%s8572_s7 + $0xac0] sm:$0xff]  ;;  %1155 = vst [vmem:[%s8577_s8 + $0x2a8] sm:$0xff] %v1154_v22 }
  0x69   : > { %v1158_v24 = vld [vmem:[%s8572_s7 + $0xae0] sm:$0xff]  ;;  %1157 = vst [vmem:[%s8577_s8 + $0x2b0] sm:$0xff] %v1156_v23 }
  0x6a   : > { %v1160_v25 = vld [vmem:[%s8572_s7 + $0xb00] sm:$0xff]  ;;  %1159 = vst [vmem:[%s8577_s8 + $0x2b8] sm:$0xff] %v1158_v24 }
  0x6b   : > { %v1162_v26 = vld [vmem:[%s8572_s7 + $0xb20] sm:$0xff]  ;;  %1161 = vst [vmem:[%s8577_s8 + $0x2c0] sm:$0xff] %v1160_v25 }
  0x6c   : > { %v1164_v27 = vld [vmem:[%s8572_s7 + $0xb40] sm:$0xff]  ;;  %1163 = vst [vmem:[%s8577_s8 + $0x2c8] sm:$0xff] %v1162_v26 }
  0x6d   : > { %v1166_v28 = vld [vmem:[%s8572_s7 + $0xb60] sm:$0xff]  ;;  %1165 = vst [vmem:[%s8577_s8 + $0x2d0] sm:$0xff] %v1164_v27 }
  0x6e   : > { %v1168_v29 = vld [vmem:[%s8572_s7 + $0xb80] sm:$0xff]  ;;  %1167 = vst [vmem:[%s8577_s8 + $0x2d8] sm:$0xff] %v1166_v28 }
  0x6f   : > { %v1170_v30 = vld [vmem:[%s8572_s7 + $0xba0] sm:$0xff]  ;;  %1169 = vst [vmem:[%s8577_s8 + $0x2e0] sm:$0xff] %v1168_v29 }
  0x70   : > { %v1172_v31 = vld [vmem:[%s8572_s7 + $0xbc0] sm:$0xff]  ;;  %1171 = vst [vmem:[%s8577_s8 + $0x2e8] sm:$0xff] %v1170_v30 }
  0x71   : > { %v1174_v32 = vld [vmem:[%s8572_s7 + $0xbe0] sm:$0xff]  ;;  %1173 = vst [vmem:[%s8577_s8 + $0x2f0] sm:$0xff] %v1172_v31 }
  0x72   : > { %v1176_v33 = vld [vmem:[%s8572_s7 + $0xc00] sm:$0xff]  ;;  %1175 = vst [vmem:[%s8577_s8 + $0x2f8] sm:$0xff] %v1174_v32 }
  0x73   : > { %v1178_v34 = vld [vmem:[%s8572_s7 + $0xc20] sm:$0xff]  ;;  %1177 = vst [vmem:[%s8577_s8 + $0x300] sm:$0xff] %v1176_v33 }
  0x74   : > { %v1180_v35 = vld [vmem:[%s8572_s7 + $0xc40] sm:$0xff]  ;;  %1179 = vst [vmem:[%s8577_s8 + $0x308] sm:$0xff] %v1178_v34 }
  0x75   : > { %v1182_v36 = vld [vmem:[%s8572_s7 + $0xc60] sm:$0xff]  ;;  %1181 = vst [vmem:[%s8577_s8 + $0x310] sm:$0xff] %v1180_v35 }
  0x76   : > { %v1184_v37 = vld [vmem:[%s8572_s7 + $0xc80] sm:$0xff]  ;;  %1183 = vst [vmem:[%s8577_s8 + $0x318] sm:$0xff] %v1182_v36 }
  0x77   : > { %v1186_v38 = vld [vmem:[%s8572_s7 + $0xca0] sm:$0xff]  ;;  %1185 = vst [vmem:[%s8577_s8 + $0x320] sm:$0xff] %v1184_v37 }
  0x78   : > { %v1188_v39 = vld [vmem:[%s8572_s7 + $0xcc0] sm:$0xff]  ;;  %1187 = vst [vmem:[%s8577_s8 + $0x328] sm:$0xff] %v1186_v38 }
  0x79   : > { %v1190_v40 = vld [vmem:[%s8572_s7 + $0xce0] sm:$0xff]  ;;  %1189 = vst [vmem:[%s8577_s8 + $0x330] sm:$0xff] %v1188_v39 }
  0x7a   : > { %v1192_v41 = vld [vmem:[%s8572_s7 + $0xd00] sm:$0xff]  ;;  %1191 = vst [vmem:[%s8577_s8 + $0x338] sm:$0xff] %v1190_v40 }
  0x7b   : > { %v1194_v42 = vld [vmem:[%s8572_s7 + $0xd20] sm:$0xff]  ;;  %1193 = vst [vmem:[%s8577_s8 + $0x340] sm:$0xff] %v1192_v41 }
  0x7c   : > { %v1196_v43 = vld [vmem:[%s8572_s7 + $0xd40] sm:$0xff]  ;;  %1195 = vst [vmem:[%s8577_s8 + $0x348] sm:$0xff] %v1194_v42 }
  0x7d   : > { %v1198_v44 = vld [vmem:[%s8572_s7 + $0xd60] sm:$0xff]  ;;  %1197 = vst [vmem:[%s8577_s8 + $0x350] sm:$0xff] %v1196_v43 }
  0x7e   : > { %v1200_v45 = vld [vmem:[%s8572_s7 + $0xd80] sm:$0xff]  ;;  %1199 = vst [vmem:[%s8577_s8 + $0x358] sm:$0xff] %v1198_v44 }
  0x7f   : > { %v1202_v46 = vld [vmem:[%s8572_s7 + $0xda0] sm:$0xff]  ;;  %1201 = vst [vmem:[%s8577_s8 + $0x360] sm:$0xff] %v1200_v45 }
  0x80   : > { %v1204_v47 = vld [vmem:[%s8572_s7 + $0xdc0] sm:$0xff]  ;;  %1203 = vst [vmem:[%s8577_s8 + $0x368] sm:$0xff] %v1202_v46 }
  0x81   : > { %v1206_v48 = vld [vmem:[%s8572_s7 + $0xde0] sm:$0xff]  ;;  %1205 = vst [vmem:[%s8577_s8 + $0x370] sm:$0xff] %v1204_v47 }
  0x82   : > { %v1208_v49 = vld [vmem:[%s8572_s7 + $0xe00] sm:$0xff]  ;;  %1207 = vst [vmem:[%s8577_s8 + $0x378] sm:$0xff] %v1206_v48 }
  0x83   : > { %v1210_v50 = vld [vmem:[%s8572_s7 + $0xe20] sm:$0xff]  ;;  %1209 = vst [vmem:[%s8577_s8 + $0x380] sm:$0xff] %v1208_v49 }
  0x84   : > { %v1212_v51 = vld [vmem:[%s8572_s7 + $0xe40] sm:$0xff]  ;;  %1211 = vst [vmem:[%s8577_s8 + $0x388] sm:$0xff] %v1210_v50 }
  0x85   : > { %v1214_v52 = vld [vmem:[%s8572_s7 + $0xe60] sm:$0xff]  ;;  %1213 = vst [vmem:[%s8577_s8 + $0x390] sm:$0xff] %v1212_v51 }
  0x86   : > { %v1216_v53 = vld [vmem:[%s8572_s7 + $0xe80] sm:$0xff]  ;;  %1215 = vst [vmem:[%s8577_s8 + $0x398] sm:$0xff] %v1214_v52 }
  0x87   : > { %v1218_v54 = vld [vmem:[%s8572_s7 + $0xea0] sm:$0xff]  ;;  %1217 = vst [vmem:[%s8577_s8 + $0x3a0] sm:$0xff] %v1216_v53 }
  0x88   : > { %v1220_v55 = vld [vmem:[%s8572_s7 + $0xec0] sm:$0xff]  ;;  %1219 = vst [vmem:[%s8577_s8 + $0x3a8] sm:$0xff] %v1218_v54 }
  0x89   : > { %v1222_v56 = vld [vmem:[%s8572_s7 + $0xee0] sm:$0xff]  ;;  %1221 = vst [vmem:[%s8577_s8 + $0x3b0] sm:$0xff] %v1220_v55 }
  0x8a   : > { %v1224_v57 = vld [vmem:[%s8572_s7 + $0xf00] sm:$0xff]  ;;  %1223 = vst [vmem:[%s8577_s8 + $0x3b8] sm:$0xff] %v1222_v56 }
  0x8b   : > { %v1226_v58 = vld [vmem:[%s8572_s7 + $0xf20] sm:$0xff]  ;;  %1225 = vst [vmem:[%s8577_s8 + $0x3c0] sm:$0xff] %v1224_v57 }
  0x8c   : > { %v1228_v59 = vld [vmem:[%s8572_s7 + $0xf40] sm:$0xff]  ;;  %1227 = vst [vmem:[%s8577_s8 + $0x3c8] sm:$0xff] %v1226_v58 }
  0x8d   : > { %v1230_v60 = vld [vmem:[%s8572_s7 + $0xf60] sm:$0xff]  ;;  %1229 = vst [vmem:[%s8577_s8 + $0x3d0] sm:$0xff] %v1228_v59 }
  0x8e   : > { %v1232_v61 = vld [vmem:[%s8572_s7 + $0xf80] sm:$0xff]  ;;  %1231 = vst [vmem:[%s8577_s8 + $0x3d8] sm:$0xff] %v1230_v60 }
  0x8f   : > { %v1234_v62 = vld [vmem:[%s8572_s7 + $0xfa0] sm:$0xff]  ;;  %1233 = vst [vmem:[%s8577_s8 + $0x3e0] sm:$0xff] %v1232_v61 }
  0x90   : > { %v1236_v63 = vld [vmem:[%s8572_s7 + $0xfc0] sm:$0xff]  ;;  %1235 = vst [vmem:[%s8577_s8 + $0x3e8] sm:$0xff] %v1234_v62 }
  0x91   : > { %v1238_v0 = vld [vmem:[%s8572_s7 + $0xfe0] sm:$0xff]  ;;  %1237 = vst [vmem:[%s8577_s8 + $0x3f0] sm:$0xff] %v1236_v63 }
  0x92   : > { %v1240_v1 = vld [vmem:[%s8572_s7 + $0x1000] sm:$0xff]  ;;  %1239 = vst [vmem:[%s8577_s8 + $0x3f8] sm:$0xff] %v1238_v0 }
  0x93   : > { %v1242_v2 = vld [vmem:[%s8572_s7 + $0x1020] sm:$0xff]  ;;  %1241 = vst [vmem:[%s8577_s8 + $0x400] sm:$0xff] %v1240_v1 }
  0x94   : > { %v1244_v3 = vld [vmem:[%s8572_s7 + $0x1040] sm:$0xff]  ;;  %1243 = vst [vmem:[%s8577_s8 + $0x408] sm:$0xff] %v1242_v2 }
  0x95   : > { %v1246_v4 = vld [vmem:[%s8572_s7 + $0x1060] sm:$0xff]  ;;  %1245 = vst [vmem:[%s8577_s8 + $0x410] sm:$0xff] %v1244_v3 }
  0x96   : > { %v1248_v5 = vld [vmem:[%s8572_s7 + $0x1080] sm:$0xff]  ;;  %1247 = vst [vmem:[%s8577_s8 + $0x418] sm:$0xff] %v1246_v4 }
  0x97   : > { %v1250_v6 = vld [vmem:[%s8572_s7 + $0x10a0] sm:$0xff]  ;;  %1249 = vst [vmem:[%s8577_s8 + $0x420] sm:$0xff] %v1248_v5 }
  0x98   : > { %v1252_v7 = vld [vmem:[%s8572_s7 + $0x10c0] sm:$0xff]  ;;  %1251 = vst [vmem:[%s8577_s8 + $0x428] sm:$0xff] %v1250_v6 }
  0x99   : > { %v1254_v8 = vld [vmem:[%s8572_s7 + $0x10e0] sm:$0xff]  ;;  %1253 = vst [vmem:[%s8577_s8 + $0x430] sm:$0xff] %v1252_v7 }
  0x9a   : > { %v1256_v9 = vld [vmem:[%s8572_s7 + $0x1100] sm:$0xff]  ;;  %1255 = vst [vmem:[%s8577_s8 + $0x438] sm:$0xff] %v1254_v8 }
  0x9b   : > { %v1258_v10 = vld [vmem:[%s8572_s7 + $0x1120] sm:$0xff]  ;;  %1257 = vst [vmem:[%s8577_s8 + $0x440] sm:$0xff] %v1256_v9 }
  0x9c   : > { %v1260_v11 = vld [vmem:[%s8572_s7 + $0x1140] sm:$0xff]  ;;  %1259 = vst [vmem:[%s8577_s8 + $0x448] sm:$0xff] %v1258_v10 }
  0x9d   : > { %v1262_v12 = vld [vmem:[%s8572_s7 + $0x1160] sm:$0xff]  ;;  %1261 = vst [vmem:[%s8577_s8 + $0x450] sm:$0xff] %v1260_v11 }
  0x9e   : > { %v1264_v13 = vld [vmem:[%s8572_s7 + $0x1180] sm:$0xff]  ;;  %1263 = vst [vmem:[%s8577_s8 + $0x458] sm:$0xff] %v1262_v12 }
  0x9f   : > { %v1266_v14 = vld [vmem:[%s8572_s7 + $0x11a0] sm:$0xff]  ;;  %1265 = vst [vmem:[%s8577_s8 + $0x460] sm:$0xff] %v1264_v13 }
  0xa0   : > { %v1268_v15 = vld [vmem:[%s8572_s7 + $0x11c0] sm:$0xff]  ;;  %1267 = vst [vmem:[%s8577_s8 + $0x468] sm:$0xff] %v1266_v14 }
  0xa1   : > { %v1270_v16 = vld [vmem:[%s8572_s7 + $0x11e0] sm:$0xff]  ;;  %1269 = vst [vmem:[%s8577_s8 + $0x470] sm:$0xff] %v1268_v15 }
  0xa2   : > { %v1272_v17 = vld [vmem:[%s8572_s7 + $0x1200] sm:$0xff]  ;;  %1271 = vst [vmem:[%s8577_s8 + $0x478] sm:$0xff] %v1270_v16 }
  0xa3   : > { %v1274_v18 = vld [vmem:[%s8572_s7 + $0x1220] sm:$0xff]  ;;  %1273 = vst [vmem:[%s8577_s8 + $0x480] sm:$0xff] %v1272_v17 }
  0xa4   : > { %v1276_v19 = vld [vmem:[%s8572_s7 + $0x1240] sm:$0xff]  ;;  %1275 = vst [vmem:[%s8577_s8 + $0x488] sm:$0xff] %v1274_v18 }
  0xa5   : > { %v1278_v20 = vld [vmem:[%s8572_s7 + $0x1260] sm:$0xff]  ;;  %1277 = vst [vmem:[%s8577_s8 + $0x490] sm:$0xff] %v1276_v19 }
  0xa6   : > { %v1280_v21 = vld [vmem:[%s8572_s7 + $0x1280] sm:$0xff]  ;;  %1279 = vst [vmem:[%s8577_s8 + $0x498] sm:$0xff] %v1278_v20 }
  0xa7   : > { %v1282_v22 = vld [vmem:[%s8572_s7 + $0x12a0] sm:$0xff]  ;;  %1281 = vst [vmem:[%s8577_s8 + $0x4a0] sm:$0xff] %v1280_v21 }
  0xa8   : > { %v1284_v23 = vld [vmem:[%s8572_s7 + $0x12c0] sm:$0xff]  ;;  %1283 = vst [vmem:[%s8577_s8 + $0x4a8] sm:$0xff] %v1282_v22 }
  0xa9   : > { %v1286_v24 = vld [vmem:[%s8572_s7 + $0x12e0] sm:$0xff]  ;;  %1285 = vst [vmem:[%s8577_s8 + $0x4b0] sm:$0xff] %v1284_v23 }
  0xaa   : > { %v1288_v25 = vld [vmem:[%s8572_s7 + $0x1300] sm:$0xff]  ;;  %1287 = vst [vmem:[%s8577_s8 + $0x4b8] sm:$0xff] %v1286_v24 }
  0xab   : > { %v1290_v26 = vld [vmem:[%s8572_s7 + $0x1320] sm:$0xff]  ;;  %1289 = vst [vmem:[%s8577_s8 + $0x4c0] sm:$0xff] %v1288_v25 }
  0xac   : > { %v1292_v27 = vld [vmem:[%s8572_s7 + $0x1340] sm:$0xff]  ;;  %1291 = vst [vmem:[%s8577_s8 + $0x4c8] sm:$0xff] %v1290_v26 }
  0xad   : > { %v1294_v28 = vld [vmem:[%s8572_s7 + $0x1360] sm:$0xff]  ;;  %1293 = vst [vmem:[%s8577_s8 + $0x4d0] sm:$0xff] %v1292_v27 }
  0xae   : > { %v1296_v29 = vld [vmem:[%s8572_s7 + $0x1380] sm:$0xff]  ;;  %1295 = vst [vmem:[%s8577_s8 + $0x4d8] sm:$0xff] %v1294_v28 }
  0xaf   : > { %v1298_v30 = vld [vmem:[%s8572_s7 + $0x13a0] sm:$0xff]  ;;  %1297 = vst [vmem:[%s8577_s8 + $0x4e0] sm:$0xff] %v1296_v29 }
  0xb0   : > { %v1300_v31 = vld [vmem:[%s8572_s7 + $0x13c0] sm:$0xff]  ;;  %1299 = vst [vmem:[%s8577_s8 + $0x4e8] sm:$0xff] %v1298_v30 }
  0xb1   : > { %v1302_v32 = vld [vmem:[%s8572_s7 + $0x13e0] sm:$0xff]  ;;  %1301 = vst [vmem:[%s8577_s8 + $0x4f0] sm:$0xff] %v1300_v31 }
  0xb2   : > { %v1304_v33 = vld [vmem:[%s8572_s7 + $0x1400] sm:$0xff]  ;;  %1303 = vst [vmem:[%s8577_s8 + $0x4f8] sm:$0xff] %v1302_v32 }
  0xb3   : > { %v1306_v34 = vld [vmem:[%s8572_s7 + $0x1420] sm:$0xff]  ;;  %1305 = vst [vmem:[%s8577_s8 + $0x500] sm:$0xff] %v1304_v33 }
  0xb4   : > { %v1308_v35 = vld [vmem:[%s8572_s7 + $0x1440] sm:$0xff]  ;;  %1307 = vst [vmem:[%s8577_s8 + $0x508] sm:$0xff] %v1306_v34 }
  0xb5   : > { %v1310_v36 = vld [vmem:[%s8572_s7 + $0x1460] sm:$0xff]  ;;  %1309 = vst [vmem:[%s8577_s8 + $0x510] sm:$0xff] %v1308_v35 }
  0xb6   : > { %v1312_v37 = vld [vmem:[%s8572_s7 + $0x1480] sm:$0xff]  ;;  %1311 = vst [vmem:[%s8577_s8 + $0x518] sm:$0xff] %v1310_v36 }
  0xb7   : > { %v1314_v38 = vld [vmem:[%s8572_s7 + $0x14a0] sm:$0xff]  ;;  %1313 = vst [vmem:[%s8577_s8 + $0x520] sm:$0xff] %v1312_v37 }
  0xb8   : > { %v1316_v39 = vld [vmem:[%s8572_s7 + $0x14c0] sm:$0xff]  ;;  %1315 = vst [vmem:[%s8577_s8 + $0x528] sm:$0xff] %v1314_v38 }
  0xb9   : > { %v1318_v40 = vld [vmem:[%s8572_s7 + $0x14e0] sm:$0xff]  ;;  %1317 = vst [vmem:[%s8577_s8 + $0x530] sm:$0xff] %v1316_v39 }
  0xba   : > { %v1320_v41 = vld [vmem:[%s8572_s7 + $0x1500] sm:$0xff]  ;;  %1319 = vst [vmem:[%s8577_s8 + $0x538] sm:$0xff] %v1318_v40 }
  0xbb   : > { %v1322_v42 = vld [vmem:[%s8572_s7 + $0x1520] sm:$0xff]  ;;  %1321 = vst [vmem:[%s8577_s8 + $0x540] sm:$0xff] %v1320_v41 }
  0xbc   : > { %v1324_v43 = vld [vmem:[%s8572_s7 + $0x1540] sm:$0xff]  ;;  %1323 = vst [vmem:[%s8577_s8 + $0x548] sm:$0xff] %v1322_v42 }
  0xbd   : > { %v1326_v44 = vld [vmem:[%s8572_s7 + $0x1560] sm:$0xff]  ;;  %1325 = vst [vmem:[%s8577_s8 + $0x550] sm:$0xff] %v1324_v43 }
  0xbe   : > { %v1328_v45 = vld [vmem:[%s8572_s7 + $0x1580] sm:$0xff]  ;;  %1327 = vst [vmem:[%s8577_s8 + $0x558] sm:$0xff] %v1326_v44 }
  0xbf   : > { %v1330_v46 = vld [vmem:[%s8572_s7 + $0x15a0] sm:$0xff]  ;;  %1329 = vst [vmem:[%s8577_s8 + $0x560] sm:$0xff] %v1328_v45 }
  0xc0   : > { %v1332_v47 = vld [vmem:[%s8572_s7 + $0x15c0] sm:$0xff]  ;;  %1331 = vst [vmem:[%s8577_s8 + $0x568] sm:$0xff] %v1330_v46 }
  0xc1   : > { %v1334_v48 = vld [vmem:[%s8572_s7 + $0x15e0] sm:$0xff]  ;;  %1333 = vst [vmem:[%s8577_s8 + $0x570] sm:$0xff] %v1332_v47 }
  0xc2   : > { %v1336_v49 = vld [vmem:[%s8572_s7 + $0x1600] sm:$0xff]  ;;  %1335 = vst [vmem:[%s8577_s8 + $0x578] sm:$0xff] %v1334_v48 }
  0xc3   : > { %v1338_v50 = vld [vmem:[%s8572_s7 + $0x1620] sm:$0xff]  ;;  %1337 = vst [vmem:[%s8577_s8 + $0x580] sm:$0xff] %v1336_v49 }
  0xc4   : > { %v1340_v51 = vld [vmem:[%s8572_s7 + $0x1640] sm:$0xff]  ;;  %1339 = vst [vmem:[%s8577_s8 + $0x588] sm:$0xff] %v1338_v50 }
  0xc5   : > { %v1342_v52 = vld [vmem:[%s8572_s7 + $0x1660] sm:$0xff]  ;;  %1341 = vst [vmem:[%s8577_s8 + $0x590] sm:$0xff] %v1340_v51 }
  0xc6   : > { %v1344_v53 = vld [vmem:[%s8572_s7 + $0x1680] sm:$0xff]  ;;  %1343 = vst [vmem:[%s8577_s8 + $0x598] sm:$0xff] %v1342_v52 }
  0xc7   : > { %v1346_v54 = vld [vmem:[%s8572_s7 + $0x16a0] sm:$0xff]  ;;  %1345 = vst [vmem:[%s8577_s8 + $0x5a0] sm:$0xff] %v1344_v53 }
  0xc8   : > { %v1348_v55 = vld [vmem:[%s8572_s7 + $0x16c0] sm:$0xff]  ;;  %1347 = vst [vmem:[%s8577_s8 + $0x5a8] sm:$0xff] %v1346_v54 }
  0xc9   : > { %v1350_v56 = vld [vmem:[%s8572_s7 + $0x16e0] sm:$0xff]  ;;  %1349 = vst [vmem:[%s8577_s8 + $0x5b0] sm:$0xff] %v1348_v55 }
  0xca   : > { %v1352_v57 = vld [vmem:[%s8572_s7 + $0x1700] sm:$0xff]  ;;  %1351 = vst [vmem:[%s8577_s8 + $0x5b8] sm:$0xff] %v1350_v56 }
  0xcb   : > { %v1354_v58 = vld [vmem:[%s8572_s7 + $0x1720] sm:$0xff]  ;;  %1353 = vst [vmem:[%s8577_s8 + $0x5c0] sm:$0xff] %v1352_v57 }
  0xcc   : > { %v1356_v59 = vld [vmem:[%s8572_s7 + $0x1740] sm:$0xff]  ;;  %1355 = vst [vmem:[%s8577_s8 + $0x5c8] sm:$0xff] %v1354_v58 }
  0xcd   : > { %v1358_v60 = vld [vmem:[%s8572_s7 + $0x1760] sm:$0xff]  ;;  %1357 = vst [vmem:[%s8577_s8 + $0x5d0] sm:$0xff] %v1356_v59 }
  0xce   : > { %v1360_v61 = vld [vmem:[%s8572_s7 + $0x1780] sm:$0xff]  ;;  %1359 = vst [vmem:[%s8577_s8 + $0x5d8] sm:$0xff] %v1358_v60 }
  0xcf   : > { %v1362_v62 = vld [vmem:[%s8572_s7 + $0x17a0] sm:$0xff]  ;;  %1361 = vst [vmem:[%s8577_s8 + $0x5e0] sm:$0xff] %v1360_v61 }
  0xd0   : > { %v1364_v63 = vld [vmem:[%s8572_s7 + $0x17c0] sm:$0xff]  ;;  %1363 = vst [vmem:[%s8577_s8 + $0x5e8] sm:$0xff] %v1362_v62 }
  0xd1   : > { %v1366_v0 = vld [vmem:[%s8572_s7 + $0x17e0] sm:$0xff]  ;;  %1365 = vst [vmem:[%s8577_s8 + $0x5f0] sm:$0xff] %v1364_v63 }
  0xd2   : > { %v1368_v1 = vld [vmem:[%s8572_s7 + $0x1800] sm:$0xff]  ;;  %1367 = vst [vmem:[%s8577_s8 + $0x5f8] sm:$0xff] %v1366_v0 }
  0xd3   : > { %v1370_v2 = vld [vmem:[%s8572_s7 + $0x1820] sm:$0xff]  ;;  %1369 = vst [vmem:[%s8577_s8 + $0x600] sm:$0xff] %v1368_v1 }
  0xd4   : > { %v1372_v3 = vld [vmem:[%s8572_s7 + $0x1840] sm:$0xff]  ;;  %1371 = vst [vmem:[%s8577_s8 + $0x608] sm:$0xff] %v1370_v2 }
  0xd5   : > { %v1374_v4 = vld [vmem:[%s8572_s7 + $0x1860] sm:$0xff]  ;;  %1373 = vst [vmem:[%s8577_s8 + $0x610] sm:$0xff] %v1372_v3 }
  0xd6   : > { %v1376_v5 = vld [vmem:[%s8572_s7 + $0x1880] sm:$0xff]  ;;  %1375 = vst [vmem:[%s8577_s8 + $0x618] sm:$0xff] %v1374_v4 }
  0xd7   : > { %v1378_v6 = vld [vmem:[%s8572_s7 + $0x18a0] sm:$0xff]  ;;  %1377 = vst [vmem:[%s8577_s8 + $0x620] sm:$0xff] %v1376_v5 }
  0xd8   : > { %v1380_v7 = vld [vmem:[%s8572_s7 + $0x18c0] sm:$0xff]  ;;  %1379 = vst [vmem:[%s8577_s8 + $0x628] sm:$0xff] %v1378_v6 }
  0xd9   : > { %v1382_v8 = vld [vmem:[%s8572_s7 + $0x18e0] sm:$0xff]  ;;  %1381 = vst [vmem:[%s8577_s8 + $0x630] sm:$0xff] %v1380_v7 }
  0xda   : > { %v1384_v9 = vld [vmem:[%s8572_s7 + $0x1900] sm:$0xff]  ;;  %1383 = vst [vmem:[%s8577_s8 + $0x638] sm:$0xff] %v1382_v8 }
  0xdb   : > { %v1386_v10 = vld [vmem:[%s8572_s7 + $0x1920] sm:$0xff]  ;;  %1385 = vst [vmem:[%s8577_s8 + $0x640] sm:$0xff] %v1384_v9 }
  0xdc   : > { %v1388_v11 = vld [vmem:[%s8572_s7 + $0x1940] sm:$0xff]  ;;  %1387 = vst [vmem:[%s8577_s8 + $0x648] sm:$0xff] %v1386_v10 }
  0xdd   : > { %v1390_v12 = vld [vmem:[%s8572_s7 + $0x1960] sm:$0xff]  ;;  %1389 = vst [vmem:[%s8577_s8 + $0x650] sm:$0xff] %v1388_v11 }
  0xde   : > { %v1392_v13 = vld [vmem:[%s8572_s7 + $0x1980] sm:$0xff]  ;;  %1391 = vst [vmem:[%s8577_s8 + $0x658] sm:$0xff] %v1390_v12 }
  0xdf   : > { %v1394_v14 = vld [vmem:[%s8572_s7 + $0x19a0] sm:$0xff]  ;;  %1393 = vst [vmem:[%s8577_s8 + $0x660] sm:$0xff] %v1392_v13 }
  0xe0   : > { %v1396_v15 = vld [vmem:[%s8572_s7 + $0x19c0] sm:$0xff]  ;;  %1395 = vst [vmem:[%s8577_s8 + $0x668] sm:$0xff] %v1394_v14 }
  0xe1   : > { %v1398_v16 = vld [vmem:[%s8572_s7 + $0x19e0] sm:$0xff]  ;;  %1397 = vst [vmem:[%s8577_s8 + $0x670] sm:$0xff] %v1396_v15 }
  0xe2   : > { %v1400_v17 = vld [vmem:[%s8572_s7 + $0x1a00] sm:$0xff]  ;;  %1399 = vst [vmem:[%s8577_s8 + $0x678] sm:$0xff] %v1398_v16 }
  0xe3   : > { %v1402_v18 = vld [vmem:[%s8572_s7 + $0x1a20] sm:$0xff]  ;;  %1401 = vst [vmem:[%s8577_s8 + $0x680] sm:$0xff] %v1400_v17 }
  0xe4   : > { %v1404_v19 = vld [vmem:[%s8572_s7 + $0x1a40] sm:$0xff]  ;;  %1403 = vst [vmem:[%s8577_s8 + $0x688] sm:$0xff] %v1402_v18 }
  0xe5   : > { %v1406_v20 = vld [vmem:[%s8572_s7 + $0x1a60] sm:$0xff]  ;;  %1405 = vst [vmem:[%s8577_s8 + $0x690] sm:$0xff] %v1404_v19 }
  0xe6   : > { %v1408_v21 = vld [vmem:[%s8572_s7 + $0x1a80] sm:$0xff]  ;;  %1407 = vst [vmem:[%s8577_s8 + $0x698] sm:$0xff] %v1406_v20 }
  0xe7   : > { %v1410_v22 = vld [vmem:[%s8572_s7 + $0x1aa0] sm:$0xff]  ;;  %1409 = vst [vmem:[%s8577_s8 + $0x6a0] sm:$0xff] %v1408_v21 }
  0xe8   : > { %v1412_v23 = vld [vmem:[%s8572_s7 + $0x1ac0] sm:$0xff]  ;;  %1411 = vst [vmem:[%s8577_s8 + $0x6a8] sm:$0xff] %v1410_v22 }
  0xe9   : > { %v1414_v24 = vld [vmem:[%s8572_s7 + $0x1ae0] sm:$0xff]  ;;  %1413 = vst [vmem:[%s8577_s8 + $0x6b0] sm:$0xff] %v1412_v23 }
  0xea   : > { %v1416_v25 = vld [vmem:[%s8572_s7 + $0x1b00] sm:$0xff]  ;;  %1415 = vst [vmem:[%s8577_s8 + $0x6b8] sm:$0xff] %v1414_v24 }
  0xeb   : > { %v1418_v26 = vld [vmem:[%s8572_s7 + $0x1b20] sm:$0xff]  ;;  %1417 = vst [vmem:[%s8577_s8 + $0x6c0] sm:$0xff] %v1416_v25 }
  0xec   : > { %v1420_v27 = vld [vmem:[%s8572_s7 + $0x1b40] sm:$0xff]  ;;  %1419 = vst [vmem:[%s8577_s8 + $0x6c8] sm:$0xff] %v1418_v26 }
  0xed   : > { %v1422_v28 = vld [vmem:[%s8572_s7 + $0x1b60] sm:$0xff]  ;;  %1421 = vst [vmem:[%s8577_s8 + $0x6d0] sm:$0xff] %v1420_v27 }
  0xee   : > { %v1424_v29 = vld [vmem:[%s8572_s7 + $0x1b80] sm:$0xff]  ;;  %1423 = vst [vmem:[%s8577_s8 + $0x6d8] sm:$0xff] %v1422_v28 }
  0xef   : > { %v1426_v30 = vld [vmem:[%s8572_s7 + $0x1ba0] sm:$0xff]  ;;  %1425 = vst [vmem:[%s8577_s8 + $0x6e0] sm:$0xff] %v1424_v29 }
  0xf0   : > { %v1428_v31 = vld [vmem:[%s8572_s7 + $0x1bc0] sm:$0xff]  ;;  %1427 = vst [vmem:[%s8577_s8 + $0x6e8] sm:$0xff] %v1426_v30 }
  0xf1   : > { %v1430_v32 = vld [vmem:[%s8572_s7 + $0x1be0] sm:$0xff]  ;;  %1429 = vst [vmem:[%s8577_s8 + $0x6f0] sm:$0xff] %v1428_v31 }
  0xf2   : > { %v1432_v33 = vld [vmem:[%s8572_s7 + $0x1c00] sm:$0xff]  ;;  %1431 = vst [vmem:[%s8577_s8 + $0x6f8] sm:$0xff] %v1430_v32 }
  0xf3   : > { %v1434_v34 = vld [vmem:[%s8572_s7 + $0x1c20] sm:$0xff]  ;;  %1433 = vst [vmem:[%s8577_s8 + $0x700] sm:$0xff] %v1432_v33 }
  0xf4   : > { %v1436_v35 = vld [vmem:[%s8572_s7 + $0x1c40] sm:$0xff]  ;;  %1435 = vst [vmem:[%s8577_s8 + $0x708] sm:$0xff] %v1434_v34 }
  0xf5   : > { %v1438_v36 = vld [vmem:[%s8572_s7 + $0x1c60] sm:$0xff]  ;;  %1437 = vst [vmem:[%s8577_s8 + $0x710] sm:$0xff] %v1436_v35 }
  0xf6   : > { %v1440_v37 = vld [vmem:[%s8572_s7 + $0x1c80] sm:$0xff]  ;;  %1439 = vst [vmem:[%s8577_s8 + $0x718] sm:$0xff] %v1438_v36 }
  0xf7   : > { %v1442_v38 = vld [vmem:[%s8572_s7 + $0x1ca0] sm:$0xff]  ;;  %1441 = vst [vmem:[%s8577_s8 + $0x720] sm:$0xff] %v1440_v37 }
  0xf8   : > { %v1444_v39 = vld [vmem:[%s8572_s7 + $0x1cc0] sm:$0xff]  ;;  %1443 = vst [vmem:[%s8577_s8 + $0x728] sm:$0xff] %v1442_v38 }
  0xf9   : > { %v1446_v40 = vld [vmem:[%s8572_s7 + $0x1ce0] sm:$0xff]  ;;  %1445 = vst [vmem:[%s8577_s8 + $0x730] sm:$0xff] %v1444_v39 }
  0xfa   : > { %v1448_v41 = vld [vmem:[%s8572_s7 + $0x1d00] sm:$0xff]  ;;  %1447 = vst [vmem:[%s8577_s8 + $0x738] sm:$0xff] %v1446_v40 }
  0xfb   : > { %v1450_v42 = vld [vmem:[%s8572_s7 + $0x1d20] sm:$0xff]  ;;  %1449 = vst [vmem:[%s8577_s8 + $0x740] sm:$0xff] %v1448_v41 }
  0xfc   : > { %v1452_v43 = vld [vmem:[%s8572_s7 + $0x1d40] sm:$0xff]  ;;  %1451 = vst [vmem:[%s8577_s8 + $0x748] sm:$0xff] %v1450_v42 }
  0xfd   : > { %v1454_v44 = vld [vmem:[%s8572_s7 + $0x1d60] sm:$0xff]  ;;  %1453 = vst [vmem:[%s8577_s8 + $0x750] sm:$0xff] %v1452_v43 }
  0xfe   : > { %v1456_v45 = vld [vmem:[%s8572_s7 + $0x1d80] sm:$0xff]  ;;  %1455 = vst [vmem:[%s8577_s8 + $0x758] sm:$0xff] %v1454_v44 }
  0xff   : > { %v1458_v46 = vld [vmem:[%s8572_s7 + $0x1da0] sm:$0xff]  ;;  %1457 = vst [vmem:[%s8577_s8 + $0x760] sm:$0xff] %v1456_v45 }
 0x100   : > { %v1460_v47 = vld [vmem:[%s8572_s7 + $0x1dc0] sm:$0xff]  ;;  %1459 = vst [vmem:[%s8577_s8 + $0x768] sm:$0xff] %v1458_v46 }
 0x101   : > { %v1462_v48 = vld [vmem:[%s8572_s7 + $0x1de0] sm:$0xff]  ;;  %1461 = vst [vmem:[%s8577_s8 + $0x770] sm:$0xff] %v1460_v47 }
 0x102   : > { %v1464_v49 = vld [vmem:[%s8572_s7 + $0x1e00] sm:$0xff]  ;;  %1463 = vst [vmem:[%s8577_s8 + $0x778] sm:$0xff] %v1462_v48 }
 0x103   : > { %v1466_v50 = vld [vmem:[%s8572_s7 + $0x1e20] sm:$0xff]  ;;  %1465 = vst [vmem:[%s8577_s8 + $0x780] sm:$0xff] %v1464_v49 }
 0x104   : > { %v1468_v51 = vld [vmem:[%s8572_s7 + $0x1e40] sm:$0xff]  ;;  %1467 = vst [vmem:[%s8577_s8 + $0x788] sm:$0xff] %v1466_v50 }
 0x105   : > { %v1470_v52 = vld [vmem:[%s8572_s7 + $0x1e60] sm:$0xff]  ;;  %1469 = vst [vmem:[%s8577_s8 + $0x790] sm:$0xff] %v1468_v51 }
 0x106   : > { %v1472_v53 = vld [vmem:[%s8572_s7 + $0x1e80] sm:$0xff]  ;;  %1471 = vst [vmem:[%s8577_s8 + $0x798] sm:$0xff] %v1470_v52 }
 0x107   : > { %v1474_v54 = vld [vmem:[%s8572_s7 + $0x1ea0] sm:$0xff]  ;;  %1473 = vst [vmem:[%s8577_s8 + $0x7a0] sm:$0xff] %v1472_v53 }
 0x108   : > { %v1476_v55 = vld [vmem:[%s8572_s7 + $0x1ec0] sm:$0xff]  ;;  %1475 = vst [vmem:[%s8577_s8 + $0x7a8] sm:$0xff] %v1474_v54 }
 0x109   : > { %v1478_v56 = vld [vmem:[%s8572_s7 + $0x1ee0] sm:$0xff]  ;;  %1477 = vst [vmem:[%s8577_s8 + $0x7b0] sm:$0xff] %v1476_v55 }
 0x10a   : > { %v1480_v57 = vld [vmem:[%s8572_s7 + $0x1f00] sm:$0xff]  ;;  %1479 = vst [vmem:[%s8577_s8 + $0x7b8] sm:$0xff] %v1478_v56 }
 0x10b   : > { %v1482_v58 = vld [vmem:[%s8572_s7 + $0x1f20] sm:$0xff]  ;;  %1481 = vst [vmem:[%s8577_s8 + $0x7c0] sm:$0xff] %v1480_v57 }
 0x10c   : > { %v1484_v59 = vld [vmem:[%s8572_s7 + $0x1f40] sm:$0xff]  ;;  %1483 = vst [vmem:[%s8577_s8 + $0x7c8] sm:$0xff] %v1482_v58 }
 0x10d   : > { %v1486_v60 = vld [vmem:[%s8572_s7 + $0x1f60] sm:$0xff]  ;;  %1485 = vst [vmem:[%s8577_s8 + $0x7d0] sm:$0xff] %v1484_v59 }
 0x10e   : > { %v1488_v61 = vld [vmem:[%s8572_s7 + $0x1f80] sm:$0xff]  ;;  %1487 = vst [vmem:[%s8577_s8 + $0x7d8] sm:$0xff] %v1486_v60 }
 0x10f   : > { %v1490_v62 = vld [vmem:[%s8572_s7 + $0x1fa0] sm:$0xff]  ;;  %1489 = vst [vmem:[%s8577_s8 + $0x7e0] sm:$0xff] %v1488_v61 }
 0x110   : > { %v1492_v63 = vld [vmem:[%s8572_s7 + $0x1fc0] sm:$0xff]  ;;  %1491 = vst [vmem:[%s8577_s8 + $0x7e8] sm:$0xff] %v1490_v62 }
 0x111   : > { %v1494_v0 = vld [vmem:[%s8572_s7 + $0x1fe0] sm:$0xff]  ;;  %1493 = vst [vmem:[%s8577_s8 + $0x7f0] sm:$0xff] %v1492_v63 }
 0x112   : > { %v1496_v1 = vld [vmem:[%s8572_s7 + $0x2000] sm:$0xff]  ;;  %1495 = vst [vmem:[%s8577_s8 + $0x7f8] sm:$0xff] %v1494_v0 }
 0x113   : > { %v1498_v2 = vld [vmem:[%s8572_s7 + $0x2020] sm:$0xff]  ;;  %1497 = vst [vmem:[%s8577_s8 + $0x800] sm:$0xff] %v1496_v1 }
 0x114   : > { %v1500_v3 = vld [vmem:[%s8572_s7 + $0x2040] sm:$0xff]  ;;  %1499 = vst [vmem:[%s8577_s8 + $0x808] sm:$0xff] %v1498_v2 }
 0x115   : > { %v1502_v4 = vld [vmem:[%s8572_s7 + $0x2060] sm:$0xff]  ;;  %1501 = vst [vmem:[%s8577_s8 + $0x810] sm:$0xff] %v1500_v3 }
 0x116   : > { %v1504_v5 = vld [vmem:[%s8572_s7 + $0x2080] sm:$0xff]  ;;  %1503 = vst [vmem:[%s8577_s8 + $0x818] sm:$0xff] %v1502_v4 }
 0x117   : > { %v1506_v6 = vld [vmem:[%s8572_s7 + $0x20a0] sm:$0xff]  ;;  %1505 = vst [vmem:[%s8577_s8 + $0x820] sm:$0xff] %v1504_v5 }
 0x118   : > { %v1508_v7 = vld [vmem:[%s8572_s7 + $0x20c0] sm:$0xff]  ;;  %1507 = vst [vmem:[%s8577_s8 + $0x828] sm:$0xff] %v1506_v6 }
 0x119   : > { %v1510_v8 = vld [vmem:[%s8572_s7 + $0x20e0] sm:$0xff]  ;;  %1509 = vst [vmem:[%s8577_s8 + $0x830] sm:$0xff] %v1508_v7 }
 0x11a   : > { %v1512_v9 = vld [vmem:[%s8572_s7 + $0x2100] sm:$0xff]  ;;  %1511 = vst [vmem:[%s8577_s8 + $0x838] sm:$0xff] %v1510_v8 }
 0x11b   : > { %v1514_v10 = vld [vmem:[%s8572_s7 + $0x2120] sm:$0xff]  ;;  %1513 = vst [vmem:[%s8577_s8 + $0x840] sm:$0xff] %v1512_v9 }
 0x11c   : > { %v1516_v11 = vld [vmem:[%s8572_s7 + $0x2140] sm:$0xff]  ;;  %1515 = vst [vmem:[%s8577_s8 + $0x848] sm:$0xff] %v1514_v10 }
 0x11d   : > { %v1518_v12 = vld [vmem:[%s8572_s7 + $0x2160] sm:$0xff]  ;;  %1517 = vst [vmem:[%s8577_s8 + $0x850] sm:$0xff] %v1516_v11 }
 0x11e   : > { %v1520_v13 = vld [vmem:[%s8572_s7 + $0x2180] sm:$0xff]  ;;  %1519 = vst [vmem:[%s8577_s8 + $0x858] sm:$0xff] %v1518_v12 }
 0x11f   : > { %v1522_v14 = vld [vmem:[%s8572_s7 + $0x21a0] sm:$0xff]  ;;  %1521 = vst [vmem:[%s8577_s8 + $0x860] sm:$0xff] %v1520_v13 }
 0x120   : > { %v1524_v15 = vld [vmem:[%s8572_s7 + $0x21c0] sm:$0xff]  ;;  %1523 = vst [vmem:[%s8577_s8 + $0x868] sm:$0xff] %v1522_v14 }
 0x121   : > { %v1526_v16 = vld [vmem:[%s8572_s7 + $0x21e0] sm:$0xff]  ;;  %1525 = vst [vmem:[%s8577_s8 + $0x870] sm:$0xff] %v1524_v15 }
 0x122   : > { %v1528_v17 = vld [vmem:[%s8572_s7 + $0x2200] sm:$0xff]  ;;  %1527 = vst [vmem:[%s8577_s8 + $0x878] sm:$0xff] %v1526_v16 }
 0x123   : > { %v1530_v18 = vld [vmem:[%s8572_s7 + $0x2220] sm:$0xff]  ;;  %1529 = vst [vmem:[%s8577_s8 + $0x880] sm:$0xff] %v1528_v17 }
 0x124   : > { %v1532_v19 = vld [vmem:[%s8572_s7 + $0x2240] sm:$0xff]  ;;  %1531 = vst [vmem:[%s8577_s8 + $0x888] sm:$0xff] %v1530_v18 }
 0x125   : > { %v1534_v20 = vld [vmem:[%s8572_s7 + $0x2260] sm:$0xff]  ;;  %1533 = vst [vmem:[%s8577_s8 + $0x890] sm:$0xff] %v1532_v19 }
 0x126   : > { %v1536_v21 = vld [vmem:[%s8572_s7 + $0x2280] sm:$0xff]  ;;  %1535 = vst [vmem:[%s8577_s8 + $0x898] sm:$0xff] %v1534_v20 }
 0x127   : > { %v1538_v22 = vld [vmem:[%s8572_s7 + $0x22a0] sm:$0xff]  ;;  %1537 = vst [vmem:[%s8577_s8 + $0x8a0] sm:$0xff] %v1536_v21 }
 0x128   : > { %v1540_v23 = vld [vmem:[%s8572_s7 + $0x22c0] sm:$0xff]  ;;  %1539 = vst [vmem:[%s8577_s8 + $0x8a8] sm:$0xff] %v1538_v22 }
 0x129   : > { %v1542_v24 = vld [vmem:[%s8572_s7 + $0x22e0] sm:$0xff]  ;;  %1541 = vst [vmem:[%s8577_s8 + $0x8b0] sm:$0xff] %v1540_v23 }
 0x12a   : > { %v1544_v25 = vld [vmem:[%s8572_s7 + $0x2300] sm:$0xff]  ;;  %1543 = vst [vmem:[%s8577_s8 + $0x8b8] sm:$0xff] %v1542_v24 }
 0x12b   : > { %v1546_v26 = vld [vmem:[%s8572_s7 + $0x2320] sm:$0xff]  ;;  %1545 = vst [vmem:[%s8577_s8 + $0x8c0] sm:$0xff] %v1544_v25 }
 0x12c   : > { %v1548_v27 = vld [vmem:[%s8572_s7 + $0x2340] sm:$0xff]  ;;  %1547 = vst [vmem:[%s8577_s8 + $0x8c8] sm:$0xff] %v1546_v26 }
 0x12d   : > { %v1550_v28 = vld [vmem:[%s8572_s7 + $0x2360] sm:$0xff]  ;;  %1549 = vst [vmem:[%s8577_s8 + $0x8d0] sm:$0xff] %v1548_v27 }
 0x12e   : > { %v1552_v29 = vld [vmem:[%s8572_s7 + $0x2380] sm:$0xff]  ;;  %1551 = vst [vmem:[%s8577_s8 + $0x8d8] sm:$0xff] %v1550_v28 }
 0x12f   : > { %v1554_v30 = vld [vmem:[%s8572_s7 + $0x23a0] sm:$0xff]  ;;  %1553 = vst [vmem:[%s8577_s8 + $0x8e0] sm:$0xff] %v1552_v29 }
 0x130   : > { %v1556_v31 = vld [vmem:[%s8572_s7 + $0x23c0] sm:$0xff]  ;;  %1555 = vst [vmem:[%s8577_s8 + $0x8e8] sm:$0xff] %v1554_v30 }
 0x131   : > { %v1558_v32 = vld [vmem:[%s8572_s7 + $0x23e0] sm:$0xff]  ;;  %1557 = vst [vmem:[%s8577_s8 + $0x8f0] sm:$0xff] %v1556_v31 }
 0x132   : > { %v1560_v33 = vld [vmem:[%s8572_s7 + $0x2400] sm:$0xff]  ;;  %1559 = vst [vmem:[%s8577_s8 + $0x8f8] sm:$0xff] %v1558_v32 }
 0x133   : > { %v1562_v34 = vld [vmem:[%s8572_s7 + $0x2420] sm:$0xff]  ;;  %1561 = vst [vmem:[%s8577_s8 + $0x900] sm:$0xff] %v1560_v33 }
 0x134   : > { %v1564_v35 = vld [vmem:[%s8572_s7 + $0x2440] sm:$0xff]  ;;  %1563 = vst [vmem:[%s8577_s8 + $0x908] sm:$0xff] %v1562_v34 }
 0x135   : > { %v1566_v36 = vld [vmem:[%s8572_s7 + $0x2460] sm:$0xff]  ;;  %1565 = vst [vmem:[%s8577_s8 + $0x910] sm:$0xff] %v1564_v35 }
 0x136   : > { %v1568_v37 = vld [vmem:[%s8572_s7 + $0x2480] sm:$0xff]  ;;  %1567 = vst [vmem:[%s8577_s8 + $0x918] sm:$0xff] %v1566_v36 }
 0x137   : > { %v1570_v38 = vld [vmem:[%s8572_s7 + $0x24a0] sm:$0xff]  ;;  %1569 = vst [vmem:[%s8577_s8 + $0x920] sm:$0xff] %v1568_v37 }
 0x138   : > { %v1572_v39 = vld [vmem:[%s8572_s7 + $0x24c0] sm:$0xff]  ;;  %1571 = vst [vmem:[%s8577_s8 + $0x928] sm:$0xff] %v1570_v38 }
 0x139   : > { %v1574_v40 = vld [vmem:[%s8572_s7 + $0x24e0] sm:$0xff]  ;;  %1573 = vst [vmem:[%s8577_s8 + $0x930] sm:$0xff] %v1572_v39 }
 0x13a   : > { %v1576_v41 = vld [vmem:[%s8572_s7 + $0x2500] sm:$0xff]  ;;  %1575 = vst [vmem:[%s8577_s8 + $0x938] sm:$0xff] %v1574_v40 }
 0x13b   : > { %v1578_v42 = vld [vmem:[%s8572_s7 + $0x2520] sm:$0xff]  ;;  %1577 = vst [vmem:[%s8577_s8 + $0x940] sm:$0xff] %v1576_v41 }
 0x13c   : > { %v1580_v43 = vld [vmem:[%s8572_s7 + $0x2540] sm:$0xff]  ;;  %1579 = vst [vmem:[%s8577_s8 + $0x948] sm:$0xff] %v1578_v42 }
 0x13d   : > { %v1582_v44 = vld [vmem:[%s8572_s7 + $0x2560] sm:$0xff]  ;;  %1581 = vst [vmem:[%s8577_s8 + $0x950] sm:$0xff] %v1580_v43 }
 0x13e   : > { %v1584_v45 = vld [vmem:[%s8572_s7 + $0x2580] sm:$0xff]  ;;  %1583 = vst [vmem:[%s8577_s8 + $0x958] sm:$0xff] %v1582_v44 }
 0x13f   : > { %v1586_v46 = vld [vmem:[%s8572_s7 + $0x25a0] sm:$0xff]  ;;  %1585 = vst [vmem:[%s8577_s8 + $0x960] sm:$0xff] %v1584_v45 }
 0x140   : > { %v1588_v47 = vld [vmem:[%s8572_s7 + $0x25c0] sm:$0xff]  ;;  %1587 = vst [vmem:[%s8577_s8 + $0x968] sm:$0xff] %v1586_v46 }
 0x141   : > { %v1590_v48 = vld [vmem:[%s8572_s7 + $0x25e0] sm:$0xff]  ;;  %1589 = vst [vmem:[%s8577_s8 + $0x970] sm:$0xff] %v1588_v47 }
 0x142   : > { %v1592_v49 = vld [vmem:[%s8572_s7 + $0x2600] sm:$0xff]  ;;  %1591 = vst [vmem:[%s8577_s8 + $0x978] sm:$0xff] %v1590_v48 }
 0x143   : > { %v1594_v50 = vld [vmem:[%s8572_s7 + $0x2620] sm:$0xff]  ;;  %1593 = vst [vmem:[%s8577_s8 + $0x980] sm:$0xff] %v1592_v49 }
 0x144   : > { %v1596_v51 = vld [vmem:[%s8572_s7 + $0x2640] sm:$0xff]  ;;  %1595 = vst [vmem:[%s8577_s8 + $0x988] sm:$0xff] %v1594_v50 }
 0x145   : > { %v1598_v52 = vld [vmem:[%s8572_s7 + $0x2660] sm:$0xff]  ;;  %1597 = vst [vmem:[%s8577_s8 + $0x990] sm:$0xff] %v1596_v51 }
 0x146   : > { %v1600_v53 = vld [vmem:[%s8572_s7 + $0x2680] sm:$0xff]  ;;  %1599 = vst [vmem:[%s8577_s8 + $0x998] sm:$0xff] %v1598_v52 }
 0x147   : > { %v1602_v54 = vld [vmem:[%s8572_s7 + $0x26a0] sm:$0xff]  ;;  %1601 = vst [vmem:[%s8577_s8 + $0x9a0] sm:$0xff] %v1600_v53 }
 0x148   : > { %v1604_v55 = vld [vmem:[%s8572_s7 + $0x26c0] sm:$0xff]  ;;  %1603 = vst [vmem:[%s8577_s8 + $0x9a8] sm:$0xff] %v1602_v54 }
 0x149   : > { %v1606_v56 = vld [vmem:[%s8572_s7 + $0x26e0] sm:$0xff]  ;;  %1605 = vst [vmem:[%s8577_s8 + $0x9b0] sm:$0xff] %v1604_v55 }
 0x14a   : > { %v1608_v57 = vld [vmem:[%s8572_s7 + $0x2700] sm:$0xff]  ;;  %1607 = vst [vmem:[%s8577_s8 + $0x9b8] sm:$0xff] %v1606_v56 }
 0x14b   : > { %v1610_v58 = vld [vmem:[%s8572_s7 + $0x2720] sm:$0xff]  ;;  %1609 = vst [vmem:[%s8577_s8 + $0x9c0] sm:$0xff] %v1608_v57 }
 0x14c   : > { %v1612_v59 = vld [vmem:[%s8572_s7 + $0x2740] sm:$0xff]  ;;  %1611 = vst [vmem:[%s8577_s8 + $0x9c8] sm:$0xff] %v1610_v58 }
 0x14d   : > { %v1614_v60 = vld [vmem:[%s8572_s7 + $0x2760] sm:$0xff]  ;;  %1613 = vst [vmem:[%s8577_s8 + $0x9d0] sm:$0xff] %v1612_v59 }
 0x14e   : > { %v1616_v61 = vld [vmem:[%s8572_s7 + $0x2780] sm:$0xff]  ;;  %1615 = vst [vmem:[%s8577_s8 + $0x9d8] sm:$0xff] %v1614_v60 }
 0x14f   : > { %v1618_v62 = vld [vmem:[%s8572_s7 + $0x27a0] sm:$0xff]  ;;  %1617 = vst [vmem:[%s8577_s8 + $0x9e0] sm:$0xff] %v1616_v61 }
 0x150   : > { %v1620_v63 = vld [vmem:[%s8572_s7 + $0x27c0] sm:$0xff]  ;;  %1619 = vst [vmem:[%s8577_s8 + $0x9e8] sm:$0xff] %v1618_v62 }
 0x151   : > { %v1622_v0 = vld [vmem:[%s8572_s7 + $0x27e0] sm:$0xff]  ;;  %1621 = vst [vmem:[%s8577_s8 + $0x9f0] sm:$0xff] %v1620_v63 }
 0x152   : > { %v1624_v1 = vld [vmem:[%s8572_s7 + $0x2800] sm:$0xff]  ;;  %1623 = vst [vmem:[%s8577_s8 + $0x9f8] sm:$0xff] %v1622_v0 }
 0x153   : > { %v1626_v2 = vld [vmem:[%s8572_s7 + $0x2820] sm:$0xff]  ;;  %1625 = vst [vmem:[%s8577_s8 + $0xa00] sm:$0xff] %v1624_v1 }
 0x154   : > { %v1628_v3 = vld [vmem:[%s8572_s7 + $0x2840] sm:$0xff]  ;;  %1627 = vst [vmem:[%s8577_s8 + $0xa08] sm:$0xff] %v1626_v2 }
 0x155   : > { %v1630_v4 = vld [vmem:[%s8572_s7 + $0x2860] sm:$0xff]  ;;  %1629 = vst [vmem:[%s8577_s8 + $0xa10] sm:$0xff] %v1628_v3 }
 0x156   : > { %v1632_v5 = vld [vmem:[%s8572_s7 + $0x2880] sm:$0xff]  ;;  %1631 = vst [vmem:[%s8577_s8 + $0xa18] sm:$0xff] %v1630_v4 }
 0x157   : > { %v1634_v6 = vld [vmem:[%s8572_s7 + $0x28a0] sm:$0xff]  ;;  %1633 = vst [vmem:[%s8577_s8 + $0xa20] sm:$0xff] %v1632_v5 }
 0x158   : > { %v1636_v7 = vld [vmem:[%s8572_s7 + $0x28c0] sm:$0xff]  ;;  %1635 = vst [vmem:[%s8577_s8 + $0xa28] sm:$0xff] %v1634_v6 }
 0x159   : > { %v1638_v8 = vld [vmem:[%s8572_s7 + $0x28e0] sm:$0xff]  ;;  %1637 = vst [vmem:[%s8577_s8 + $0xa30] sm:$0xff] %v1636_v7 }
 0x15a   : > { %v1640_v9 = vld [vmem:[%s8572_s7 + $0x2900] sm:$0xff]  ;;  %1639 = vst [vmem:[%s8577_s8 + $0xa38] sm:$0xff] %v1638_v8 }
 0x15b   : > { %v1642_v10 = vld [vmem:[%s8572_s7 + $0x2920] sm:$0xff]  ;;  %1641 = vst [vmem:[%s8577_s8 + $0xa40] sm:$0xff] %v1640_v9 }
 0x15c   : > { %v1644_v11 = vld [vmem:[%s8572_s7 + $0x2940] sm:$0xff]  ;;  %1643 = vst [vmem:[%s8577_s8 + $0xa48] sm:$0xff] %v1642_v10 }
 0x15d   : > { %v1646_v12 = vld [vmem:[%s8572_s7 + $0x2960] sm:$0xff]  ;;  %1645 = vst [vmem:[%s8577_s8 + $0xa50] sm:$0xff] %v1644_v11 }
 0x15e   : > { %v1648_v13 = vld [vmem:[%s8572_s7 + $0x2980] sm:$0xff]  ;;  %1647 = vst [vmem:[%s8577_s8 + $0xa58] sm:$0xff] %v1646_v12 }
 0x15f   : > { %v1650_v14 = vld [vmem:[%s8572_s7 + $0x29a0] sm:$0xff]  ;;  %1649 = vst [vmem:[%s8577_s8 + $0xa60] sm:$0xff] %v1648_v13 }
 0x160   : > { %v1652_v15 = vld [vmem:[%s8572_s7 + $0x29c0] sm:$0xff]  ;;  %1651 = vst [vmem:[%s8577_s8 + $0xa68] sm:$0xff] %v1650_v14 }
 0x161   : > { %v1654_v16 = vld [vmem:[%s8572_s7 + $0x29e0] sm:$0xff]  ;;  %1653 = vst [vmem:[%s8577_s8 + $0xa70] sm:$0xff] %v1652_v15 }
 0x162   : > { %v1656_v17 = vld [vmem:[%s8572_s7 + $0x2a00] sm:$0xff]  ;;  %1655 = vst [vmem:[%s8577_s8 + $0xa78] sm:$0xff] %v1654_v16 }
 0x163   : > { %v1658_v18 = vld [vmem:[%s8572_s7 + $0x2a20] sm:$0xff]  ;;  %1657 = vst [vmem:[%s8577_s8 + $0xa80] sm:$0xff] %v1656_v17 }
 0x164   : > { %v1660_v19 = vld [vmem:[%s8572_s7 + $0x2a40] sm:$0xff]  ;;  %1659 = vst [vmem:[%s8577_s8 + $0xa88] sm:$0xff] %v1658_v18 }
 0x165   : > { %v1662_v20 = vld [vmem:[%s8572_s7 + $0x2a60] sm:$0xff]  ;;  %1661 = vst [vmem:[%s8577_s8 + $0xa90] sm:$0xff] %v1660_v19 }
 0x166   : > { %v1664_v21 = vld [vmem:[%s8572_s7 + $0x2a80] sm:$0xff]  ;;  %1663 = vst [vmem:[%s8577_s8 + $0xa98] sm:$0xff] %v1662_v20 }
 0x167   : > { %v1666_v22 = vld [vmem:[%s8572_s7 + $0x2aa0] sm:$0xff]  ;;  %1665 = vst [vmem:[%s8577_s8 + $0xaa0] sm:$0xff] %v1664_v21 }
 0x168   : > { %v1668_v23 = vld [vmem:[%s8572_s7 + $0x2ac0] sm:$0xff]  ;;  %1667 = vst [vmem:[%s8577_s8 + $0xaa8] sm:$0xff] %v1666_v22 }
 0x169   : > { %v1670_v24 = vld [vmem:[%s8572_s7 + $0x2ae0] sm:$0xff]  ;;  %1669 = vst [vmem:[%s8577_s8 + $0xab0] sm:$0xff] %v1668_v23 }
 0x16a   : > { %v1672_v25 = vld [vmem:[%s8572_s7 + $0x2b00] sm:$0xff]  ;;  %1671 = vst [vmem:[%s8577_s8 + $0xab8] sm:$0xff] %v1670_v24 }
 0x16b   : > { %v1674_v26 = vld [vmem:[%s8572_s7 + $0x2b20] sm:$0xff]  ;;  %1673 = vst [vmem:[%s8577_s8 + $0xac0] sm:$0xff] %v1672_v25 }
 0x16c   : > { %v1676_v27 = vld [vmem:[%s8572_s7 + $0x2b40] sm:$0xff]  ;;  %1675 = vst [vmem:[%s8577_s8 + $0xac8] sm:$0xff] %v1674_v26 }
 0x16d   : > { %v1678_v28 = vld [vmem:[%s8572_s7 + $0x2b60] sm:$0xff]  ;;  %1677 = vst [vmem:[%s8577_s8 + $0xad0] sm:$0xff] %v1676_v27 }
 0x16e   : > { %v1680_v29 = vld [vmem:[%s8572_s7 + $0x2b80] sm:$0xff]  ;;  %1679 = vst [vmem:[%s8577_s8 + $0xad8] sm:$0xff] %v1678_v28 }
 0x16f   : > { %v1682_v30 = vld [vmem:[%s8572_s7 + $0x2ba0] sm:$0xff]  ;;  %1681 = vst [vmem:[%s8577_s8 + $0xae0] sm:$0xff] %v1680_v29 }
 0x170   : > { %v1684_v31 = vld [vmem:[%s8572_s7 + $0x2bc0] sm:$0xff]  ;;  %1683 = vst [vmem:[%s8577_s8 + $0xae8] sm:$0xff] %v1682_v30 }
 0x171   : > { %v1686_v32 = vld [vmem:[%s8572_s7 + $0x2be0] sm:$0xff]  ;;  %1685 = vst [vmem:[%s8577_s8 + $0xaf0] sm:$0xff] %v1684_v31 }
 0x172   : > { %v1688_v33 = vld [vmem:[%s8572_s7 + $0x2c00] sm:$0xff]  ;;  %1687 = vst [vmem:[%s8577_s8 + $0xaf8] sm:$0xff] %v1686_v32 }
 0x173   : > { %v1690_v34 = vld [vmem:[%s8572_s7 + $0x2c20] sm:$0xff]  ;;  %1689 = vst [vmem:[%s8577_s8 + $0xb00] sm:$0xff] %v1688_v33 }
 0x174   : > { %v1692_v35 = vld [vmem:[%s8572_s7 + $0x2c40] sm:$0xff]  ;;  %1691 = vst [vmem:[%s8577_s8 + $0xb08] sm:$0xff] %v1690_v34 }
 0x175   : > { %v1694_v36 = vld [vmem:[%s8572_s7 + $0x2c60] sm:$0xff]  ;;  %1693 = vst [vmem:[%s8577_s8 + $0xb10] sm:$0xff] %v1692_v35 }
 0x176   : > { %v1696_v37 = vld [vmem:[%s8572_s7 + $0x2c80] sm:$0xff]  ;;  %1695 = vst [vmem:[%s8577_s8 + $0xb18] sm:$0xff] %v1694_v36 }
 0x177   : > { %v1698_v38 = vld [vmem:[%s8572_s7 + $0x2ca0] sm:$0xff]  ;;  %1697 = vst [vmem:[%s8577_s8 + $0xb20] sm:$0xff] %v1696_v37 }
 0x178   : > { %v1700_v39 = vld [vmem:[%s8572_s7 + $0x2cc0] sm:$0xff]  ;;  %1699 = vst [vmem:[%s8577_s8 + $0xb28] sm:$0xff] %v1698_v38 }
 0x179   : > { %v1702_v40 = vld [vmem:[%s8572_s7 + $0x2ce0] sm:$0xff]  ;;  %1701 = vst [vmem:[%s8577_s8 + $0xb30] sm:$0xff] %v1700_v39 }
 0x17a   : > { %v1704_v41 = vld [vmem:[%s8572_s7 + $0x2d00] sm:$0xff]  ;;  %1703 = vst [vmem:[%s8577_s8 + $0xb38] sm:$0xff] %v1702_v40 }
 0x17b   : > { %v1706_v42 = vld [vmem:[%s8572_s7 + $0x2d20] sm:$0xff]  ;;  %1705 = vst [vmem:[%s8577_s8 + $0xb40] sm:$0xff] %v1704_v41 }
 0x17c   : > { %v1708_v43 = vld [vmem:[%s8572_s7 + $0x2d40] sm:$0xff]  ;;  %1707 = vst [vmem:[%s8577_s8 + $0xb48] sm:$0xff] %v1706_v42 }
 0x17d   : > { %v1710_v44 = vld [vmem:[%s8572_s7 + $0x2d60] sm:$0xff]  ;;  %1709 = vst [vmem:[%s8577_s8 + $0xb50] sm:$0xff] %v1708_v43 }
 0x17e   : > { %v1712_v45 = vld [vmem:[%s8572_s7 + $0x2d80] sm:$0xff]  ;;  %1711 = vst [vmem:[%s8577_s8 + $0xb58] sm:$0xff] %v1710_v44 }
 0x17f   : > { %v1714_v46 = vld [vmem:[%s8572_s7 + $0x2da0] sm:$0xff]  ;;  %1713 = vst [vmem:[%s8577_s8 + $0xb60] sm:$0xff] %v1712_v45 }
 0x180   : > { %v1716_v47 = vld [vmem:[%s8572_s7 + $0x2dc0] sm:$0xff]  ;;  %1715 = vst [vmem:[%s8577_s8 + $0xb68] sm:$0xff] %v1714_v46 }
 0x181   : > { %v1718_v48 = vld [vmem:[%s8572_s7 + $0x2de0] sm:$0xff]  ;;  %1717 = vst [vmem:[%s8577_s8 + $0xb70] sm:$0xff] %v1716_v47 }
 0x182   : > { %v1720_v49 = vld [vmem:[%s8572_s7 + $0x2e00] sm:$0xff]  ;;  %1719 = vst [vmem:[%s8577_s8 + $0xb78] sm:$0xff] %v1718_v48 }
 0x183   : > { %v1722_v50 = vld [vmem:[%s8572_s7 + $0x2e20] sm:$0xff]  ;;  %1721 = vst [vmem:[%s8577_s8 + $0xb80] sm:$0xff] %v1720_v49 }
 0x184   : > { %v1724_v51 = vld [vmem:[%s8572_s7 + $0x2e40] sm:$0xff]  ;;  %1723 = vst [vmem:[%s8577_s8 + $0xb88] sm:$0xff] %v1722_v50 }
 0x185   : > { %v1726_v52 = vld [vmem:[%s8572_s7 + $0x2e60] sm:$0xff]  ;;  %1725 = vst [vmem:[%s8577_s8 + $0xb90] sm:$0xff] %v1724_v51 }
 0x186   : > { %v1728_v53 = vld [vmem:[%s8572_s7 + $0x2e80] sm:$0xff]  ;;  %1727 = vst [vmem:[%s8577_s8 + $0xb98] sm:$0xff] %v1726_v52 }
 0x187   : > { %v1730_v54 = vld [vmem:[%s8572_s7 + $0x2ea0] sm:$0xff]  ;;  %1729 = vst [vmem:[%s8577_s8 + $0xba0] sm:$0xff] %v1728_v53 }
 0x188   : > { %v1732_v55 = vld [vmem:[%s8572_s7 + $0x2ec0] sm:$0xff]  ;;  %1731 = vst [vmem:[%s8577_s8 + $0xba8] sm:$0xff] %v1730_v54 }
 0x189   : > { %v1734_v56 = vld [vmem:[%s8572_s7 + $0x2ee0] sm:$0xff]  ;;  %1733 = vst [vmem:[%s8577_s8 + $0xbb0] sm:$0xff] %v1732_v55 }
 0x18a   : > { %v1736_v57 = vld [vmem:[%s8572_s7 + $0x2f00] sm:$0xff]  ;;  %1735 = vst [vmem:[%s8577_s8 + $0xbb8] sm:$0xff] %v1734_v56 }
 0x18b   : > { %v1738_v58 = vld [vmem:[%s8572_s7 + $0x2f20] sm:$0xff]  ;;  %1737 = vst [vmem:[%s8577_s8 + $0xbc0] sm:$0xff] %v1736_v57 }
 0x18c   : > { %v1740_v59 = vld [vmem:[%s8572_s7 + $0x2f40] sm:$0xff]  ;;  %1739 = vst [vmem:[%s8577_s8 + $0xbc8] sm:$0xff] %v1738_v58 }
 0x18d   : > { %v1742_v60 = vld [vmem:[%s8572_s7 + $0x2f60] sm:$0xff]  ;;  %1741 = vst [vmem:[%s8577_s8 + $0xbd0] sm:$0xff] %v1740_v59 }
 0x18e   : > { %v1744_v61 = vld [vmem:[%s8572_s7 + $0x2f80] sm:$0xff]  ;;  %1743 = vst [vmem:[%s8577_s8 + $0xbd8] sm:$0xff] %v1742_v60 }
 0x18f   : > { %v1746_v62 = vld [vmem:[%s8572_s7 + $0x2fa0] sm:$0xff]  ;;  %1745 = vst [vmem:[%s8577_s8 + $0xbe0] sm:$0xff] %v1744_v61 }
 0x190   : > { %v1748_v63 = vld [vmem:[%s8572_s7 + $0x2fc0] sm:$0xff]  ;;  %1747 = vst [vmem:[%s8577_s8 + $0xbe8] sm:$0xff] %v1746_v62 }
 0x191   : > { %v1750_v0 = vld [vmem:[%s8572_s7 + $0x2fe0] sm:$0xff]  ;;  %1749 = vst [vmem:[%s8577_s8 + $0xbf0] sm:$0xff] %v1748_v63 }
 0x192   : > { %1751 = vst [vmem:[%s8577_s8 + $0xbf8] sm:$0xff] %v1750_v0 }
 0x193 PF: > { %p6509_p5 = scmp.ge.s32.totalorder %s8500_s22, 1  ;;  %p3343_p6 = scmp.lt.s32.totalorder %s8500_s22, 5 }
 0x195   : > { %p3344_p7 = pnand %p6509_p5, %p3343_p6 }
 0x196   : > { %s3350_s9 = sand.u32 (!%p3344_p7), 1, %s8492_s20   ;;  %s6510_s10 = sshll.u32 (!%p3344_p7), %s8552_s4, 1 }
 0x197   : > { %3347 = sbr.rel (%p3344_p7) target bundleno = 1111 (0x457), region = 88  ;;  %p3382_p8 = scmp.lt.s32.totalorder (!%p3344_p7), %s6510_s10, 7 }
 0x198   : > { %s8438_s11 = smul.u32 (!%p3344_p7), 3072, %s3350_s9  ;;  %p6512_p9 = scmp.ne.s32.totalorder (!%p3344_p7), %s8552_s4, 0 }
 0x19a   : > { %s9360_s18 = scalar_lea.vmem (!%p3344_p7), [#allocation4], %s8438_s11 }
 0x19c   : > { %s10253_s10 = smov (!%p3382_p8, %s6510_s10), 7  ;;  %3394 = sbr.rel (%p6512_p9) target bundleno = 419 (0x1a3), region = 96 }
 0x19d   : > { %s9354_s14 = scalar_lea.vmem %s10245_s2, %s10253_s10  ;;  %s3389_s17 = scalar_lea.vmem %s10246_s3, %s10253_s10 }
 0x1a1   : > { %vm3395_vm0 = vcmask 1024   ;;  %v8502_v1 = vmov 0.0  }
 0x1a2   : > { %3396 = vst.msk [vmem:[#allocation2] sm:$0x3] %vm3395_vm0, %v8502_v1 }
 0x1a3 PF: > { %v6571_v2 = vld [vmem:[%s9360_s18 + $0x70] sm:$0xf]  ;;  %v8068_v3 = vld [vmem:[%s9360_s18 + $0x74] sm:$0xf0]  ;;  %v6563_v13 = vld [vmem:[%s9360_s18 + $0x60] sm:$0xf] }
 0x1a4   : > { %v6635_v4 = vld [vmem:[%s9360_s18 + $0xf0] sm:$0xf]  ;;  %v6572_v5 = vor.u32 %v8068_v3, %v6571_v2  ;;  %v8084_v6 = vld [vmem:[%s9360_s18 + $0xf4] sm:$0xf0]  ;;  %v8066_v15 = vld [vmem:[%s9360_s18 + $0x64] sm:$0xf0] }
 0x1a5   : > { %v6699_v7 = vld [vmem:[%s9360_s18 + $0x170] sm:$0xf]  ;;  %v8100_v8 = vld [vmem:[%s9360_s18 + $0x174] sm:$0xf0]  ;;  %v6636_v9 = vor.u32 %v8084_v6, %v6635_v4  ;;  %v6627_v16 = vld [vmem:[%s9360_s18 + $0xe0] sm:$0xf]  ;;  %v6564_v18 = vor.u32 %v8066_v15, %v6563_v13 }
 0x1a6   : > { %v6700_v10 = vor.u32 %v8100_v8, %v6699_v7  ;;  %v6763_v11 = vld [vmem:[%s9360_s18 + $0x1f0] sm:$0xf]  ;;  %v8116_v12 = vld [vmem:[%s9360_s18 + $0x1f4] sm:$0xf0]  ;;  %5764 = vmatpush.bf16.msra.mxu0 %v6572_v5  ;;  %v8082_v17 = vld [vmem:[%s9360_s18 + $0xe4] sm:$0xf0] }
 0x1a7   : > { %v6764_v14 = vor.u32 %v8116_v12, %v6763_v11  ;;  %5777 = vmatpush.bf16.msra.mxu1 %v6636_v9  ;;  %v6628_v19 = vor.u32 %v8082_v17, %v6627_v16  ;;  %v6691_v20 = vld [vmem:[%s9360_s18 + $0x160] sm:$0xf]  ;;  %v8098_v21 = vld [vmem:[%s9360_s18 + $0x164] sm:$0xf0]  ;;  %v6555_v25 = vld [vmem:[%s9360_s18 + $0x50] sm:$0xf] }
 0x1a8   : > { %5790 = vmatpush.bf16.msra.mxu2 %v6700_v10  ;;  %v6755_v22 = vld [vmem:[%s9360_s18 + $0x1e0] sm:$0xf]  ;;  %v6692_v23 = vor.u32 %v8098_v21, %v6691_v20  ;;  %v8114_v24 = vld [vmem:[%s9360_s18 + $0x1e4] sm:$0xf0]  ;;  %v8064_v26 = vld [vmem:[%s9360_s18 + $0x54] sm:$0xf0] }
 0x1a9   : > { %5803 = vmatpush.bf16.msra.mxu3 %v6764_v14  ;;  %v6756_v27 = vor.u32 %v8114_v24, %v6755_v22  ;;  %v6619_v28 = vld [vmem:[%s9360_s18 + $0xd0] sm:$0xf]  ;;  %v8080_v29 = vld [vmem:[%s9360_s18 + $0xd4] sm:$0xf0]  ;;  %v6556_v31 = vor.u32 %v8064_v26, %v6555_v25  ;;  %v6547_v37 = vld [vmem:[%s9360_s18 + $0x40] sm:$0xf] }
 0x1aa   : > { %v6683_v30 = vld [vmem:[%s9360_s18 + $0x150] sm:$0xf]  ;;  %5765 = vmatpush.bf16.msra.mxu0 %v6564_v18  ;;  %v8096_v32 = vld [vmem:[%s9360_s18 + $0x154] sm:$0xf0]  ;;  %v6620_v35 = vor.u32 %v8080_v29, %v6619_v28  ;;  %v8062_v38 = vld [vmem:[%s9360_s18 + $0x44] sm:$0xf0] }
 0x1ab   : > { %v6747_v33 = vld [vmem:[%s9360_s18 + $0x1d0] sm:$0xf]  ;;  %v8112_v34 = vld [vmem:[%s9360_s18 + $0x1d4] sm:$0xf0]  ;;  %5778 = vmatpush.bf16.msra.mxu1 %v6628_v19  ;;  %v6684_v36 = vor.u32 %v8096_v32, %v6683_v30  ;;  %v6611_v39 = vld [vmem:[%s9360_s18 + $0xc0] sm:$0xf]  ;;  %v6548_v46 = vor.u32 %v8062_v38, %v6547_v37 }
 0x1ac   : > { %5791 = vmatpush.bf16.msra.mxu2 %v6692_v23  ;;  %v6748_v40 = vor.u32 %v8112_v34, %v6747_v33  ;;  %v8078_v41 = vld [vmem:[%s9360_s18 + $0xc4] sm:$0xf0]  ;;  %v6675_v42 = vld [vmem:[%s9360_s18 + $0x140] sm:$0xf]  ;;  %v6539_v49 = vld [vmem:[%s9360_s18 + $0x30] sm:$0xf] }
 0x1ad   : > { %5804 = vmatpush.bf16.msra.mxu3 %v6756_v27  ;;  %v8094_v43 = vld [vmem:[%s9360_s18 + $0x144] sm:$0xf0]  ;;  %v6739_v44 = vld [vmem:[%s9360_s18 + $0x1c0] sm:$0xf]  ;;  %v6612_v47 = vor.u32 %v8078_v41, %v6611_v39  ;;  %v8060_v50 = vld [vmem:[%s9360_s18 + $0x34] sm:$0xf0] }
 0x1ae   : > { %v8110_v45 = vld [vmem:[%s9360_s18 + $0x1c4] sm:$0xf0]  ;;  %5766 = vmatpush.bf16.msra.mxu0 %v6556_v31  ;;  %v6676_v48 = vor.u32 %v8094_v43, %v6675_v42  ;;  %v6603_v51 = vld [vmem:[%s9360_s18 + $0xb0] sm:$0xf]  ;;  %v8076_v53 = vld [vmem:[%s9360_s18 + $0xb4] sm:$0xf0]  ;;  %v6540_v58 = vor.u32 %v8060_v50, %v6539_v49 }
 0x1af   : > { %5779 = vmatpush.bf16.msra.mxu1 %v6620_v35  ;;  %v6740_v52 = vor.u32 %v8110_v45, %v6739_v44  ;;  %v6667_v54 = vld [vmem:[%s9360_s18 + $0x130] sm:$0xf]  ;;  %v8092_v55 = vld [vmem:[%s9360_s18 + $0x134] sm:$0xf0]  ;;  %v6604_v59 = vor.u32 %v8076_v53, %v6603_v51  ;;  %v6531_v61 = vld [vmem:[%s9360_s18 + $0x20] sm:$0xf] }
 0x1b0   : > { %5792 = vmatpush.bf16.msra.mxu2 %v6684_v36  ;;  %v6731_v56 = vld [vmem:[%s9360_s18 + $0x1b0] sm:$0xf]  ;;  %v8108_v57 = vld [vmem:[%s9360_s18 + $0x1b4] sm:$0xf0]  ;;  %v6668_v60 = vor.u32 %v8092_v55, %v6667_v54  ;;  %v8058_v62 = vld [vmem:[%s9360_s18 + $0x24] sm:$0xf0] }
 0x1b1   : > { %5805 = vmatpush.bf16.msra.mxu3 %v6748_v40  ;;  %v6595_v63 = vld [vmem:[%s9360_s18 + $0xa0] sm:$0xf]  ;;  %v6732_v0 = vor.u32 %v8108_v57, %v6731_v56  ;;  %v8074_v1 = vld [vmem:[%s9360_s18 + $0xa4] sm:$0xf0]  ;;  %v6532_v6 = vor.u32 %v8058_v62, %v6531_v61  ;;  %v6523_v9 = vld [vmem:[%s9360_s18 + $0x10] sm:$0xf] }
 0x1b2   : > { %5767 = vmatpush.bf16.msra.mxu0 %v6548_v46  ;;  %v6659_v2 = vld [vmem:[%s9360_s18 + $0x120] sm:$0xf]  ;;  %v8090_v3 = vld [vmem:[%s9360_s18 + $0x124] sm:$0xf0]  ;;  %v6596_v7 = vor.u32 %v8074_v1, %v6595_v63  ;;  %v8056_v10 = vld [vmem:[%s9360_s18 + $0x14] sm:$0xf0] }
 0x1b3   : > { %5780 = vmatpush.bf16.msra.mxu1 %v6612_v47  ;;  %v6723_v4 = vld [vmem:[%s9360_s18 + $0x1a0] sm:$0xf]  ;;  %v8106_v5 = vld [vmem:[%s9360_s18 + $0x1a4] sm:$0xf0]  ;;  %v6660_v8 = vor.u32 %v8090_v3, %v6659_v2  ;;  %v6587_v11 = vld [vmem:[%s9360_s18 + $0x90] sm:$0xf]  ;;  %v6524_v18 = vor.u32 %v8056_v10, %v6523_v9 }
 0x1b4   : > { %5793 = vmatpush.bf16.msra.mxu2 %v6676_v48  ;;  %v6724_v12 = vor.u32 %v8106_v5, %v6723_v4  ;;  %v8072_v13 = vld [vmem:[%s9360_s18 + $0x94] sm:$0xf0]  ;;  %v6651_v14 = vld [vmem:[%s9360_s18 + $0x110] sm:$0xf]  ;;  %v6515_v19 = vld [vmem:[%s9360_s18] sm:$0xf] }
 0x1b5   : > { %5806 = vmatpush.bf16.msra.mxu3 %v6740_v52  ;;  %v8088_v15 = vld [vmem:[%s9360_s18 + $0x114] sm:$0xf0]  ;;  %v6715_v16 = vld [vmem:[%s9360_s18 + $0x190] sm:$0xf]  ;;  %v8054_v20 = vld [vmem:[%s9360_s18 + $0x4] sm:$0xf0]  ;;  %v6588_v21 = vor.u32 %v8072_v13, %v6587_v11 }
 0x1b6   : > { %5768 = vmatpush.bf16.msra.mxu0 %v6540_v58  ;;  %v8104_v17 = vld [vmem:[%s9360_s18 + $0x194] sm:$0xf0]  ;;  %v6652_v22 = vor.u32 %v8088_v15, %v6651_v14  ;;  %v6579_v23 = vld [vmem:[%s9360_s18 + $0x80] sm:$0xf]  ;;  %v8070_v24 = vld [vmem:[%s9360_s18 + $0x84] sm:$0xf0]  ;;  %v6516_v33 = vor.u32 %v8054_v20, %v6515_v19 }
 0x1b7   : > { %5781 = vmatpush.bf16.msra.mxu1 %v6604_v59  ;;  %v6643_v25 = vld [vmem:[%s9360_s18 + $0x100] sm:$0xf]  ;;  %v6716_v26 = vor.u32 %v8104_v17, %v6715_v16  ;;  %v8086_v27 = vld [vmem:[%s9360_s18 + $0x104] sm:$0xf0]  ;;  %v6827_v30 = vld [vmem:[%s9360_s18 + $0x270] sm:$0xf]  ;;  %v6580_v37 = vor.u32 %v8070_v24, %v6579_v23 }
 0x1b8   : > { %5794 = vmatpush.bf16.msra.mxu2 %v6668_v60  ;;  %v6707_v28 = vld [vmem:[%s9360_s18 + $0x180] sm:$0xf]  ;;  %v8102_v29 = vld [vmem:[%s9360_s18 + $0x184] sm:$0xf0]  ;;  %v8132_v31 = vld [vmem:[%s9360_s18 + $0x274] sm:$0xf0]  ;;  %v6644_v38 = vor.u32 %v8086_v27, %v6643_v25 }
 0x1b9   : > { %5807 = vmatpush.bf16.msra.mxu3 %v6732_v0  ;;  %v6891_v32 = vld [vmem:[%s9360_s18 + $0x2f0] sm:$0xf]  ;;  %v8148_v34 = vld [vmem:[%s9360_s18 + $0x2f4] sm:$0xf0]  ;;  %v6708_v41 = vor.u32 %v8102_v29, %v6707_v28  ;;  %v6828_v42 = vor.u32 %v8132_v31, %v6827_v30  ;;  %v6819_v45 = vld [vmem:[%s9360_s18 + $0x260] sm:$0xf] }
 0x1ba   : > { %5769 = vmatpush.bf16.msra.mxu0 %v6532_v6  ;;  %v6955_v35 = vld [vmem:[%s9360_s18 + $0x370] sm:$0xf]  ;;  %v8164_v36 = vld [vmem:[%s9360_s18 + $0x374] sm:$0xf0]  ;;  %v6892_v43 = vor.u32 %v8148_v34, %v6891_v32  ;;  %v8130_v46 = vld [vmem:[%s9360_s18 + $0x264] sm:$0xf0] }
 0x1bb   : > { %5782 = vmatpush.bf16.msra.mxu1 %v6596_v7  ;;  %v7019_v39 = vld [vmem:[%s9360_s18 + $0x3f0] sm:$0xf]  ;;  %v8180_v40 = vld [vmem:[%s9360_s18 + $0x3f4] sm:$0xf0]  ;;  %v6956_v44 = vor.u32 %v8164_v36, %v6955_v35  ;;  %v6883_v47 = vld [vmem:[%s9360_s18 + $0x2e0] sm:$0xf]  ;;  %v6820_v54 = vor.u32 %v8130_v46, %v6819_v45 }
 0x1bc   : > { %5795 = vmatpush.bf16.msra.mxu2 %v6660_v8  ;;  %v7020_v48 = vor.u32 %v8180_v40, %v7019_v39  ;;  %v8146_v49 = vld [vmem:[%s9360_s18 + $0x2e4] sm:$0xf0]  ;;  %v6947_v50 = vld [vmem:[%s9360_s18 + $0x360] sm:$0xf]  ;;  %v6811_v57 = vld [vmem:[%s9360_s18 + $0x250] sm:$0xf] }
 0x1bd   : > { %5808 = vmatpush.bf16.msra.mxu3 %v6724_v12  ;;  %v8162_v51 = vld [vmem:[%s9360_s18 + $0x364] sm:$0xf0]  ;;  %v7011_v52 = vld [vmem:[%s9360_s18 + $0x3e0] sm:$0xf]  ;;  %v6884_v55 = vor.u32 %v8146_v49, %v6883_v47  ;;  %v8128_v58 = vld [vmem:[%s9360_s18 + $0x254] sm:$0xf0] }
 0x1be   : > { %5770 = vmatpush.bf16.msra.mxu0 %v6524_v18  ;;  %v8178_v53 = vld [vmem:[%s9360_s18 + $0x3e4] sm:$0xf0]  ;;  %v6948_v56 = vor.u32 %v8162_v51, %v6947_v50  ;;  %v6875_v59 = vld [vmem:[%s9360_s18 + $0x2d0] sm:$0xf]  ;;  %v8144_v61 = vld [vmem:[%s9360_s18 + $0x2d4] sm:$0xf0]  ;;  %v6812_v2 = vor.u32 %v8128_v58, %v6811_v57 }
 0x1bf   : > { %5783 = vmatpush.bf16.msra.mxu1 %v6588_v21  ;;  %v7012_v60 = vor.u32 %v8178_v53, %v7011_v52  ;;  %v6939_v62 = vld [vmem:[%s9360_s18 + $0x350] sm:$0xf]  ;;  %v8160_v63 = vld [vmem:[%s9360_s18 + $0x354] sm:$0xf0]  ;;  %v6803_v3 = vld [vmem:[%s9360_s18 + $0x240] sm:$0xf]  ;;  %v6876_v5 = vor.u32 %v8144_v61, %v6875_v59 }
 0x1c0   : > { %5796 = vmatpush.bf16.msra.mxu2 %v6652_v22  ;;  %v7003_v0 = vld [vmem:[%s9360_s18 + $0x3d0] sm:$0xf]  ;;  %v8176_v1 = vld [vmem:[%s9360_s18 + $0x3d4] sm:$0xf0]  ;;  %v6940_v6 = vor.u32 %v8160_v63, %v6939_v62  ;;  %v8126_v7 = vld [vmem:[%s9360_s18 + $0x244] sm:$0xf0] }
 0x1c1   : > { %5809 = vmatpush.bf16.msra.mxu3 %v6716_v26  ;;  %v3397_v4 = vld [vmem:[%s10243_s0] sm:$0xff]  ;;  %v6867_v8 = vld [vmem:[%s9360_s18 + $0x2c0] sm:$0xf]  ;;  %v7004_v9 = vor.u32 %v8176_v1, %v7003_v0  ;;  %v8142_v10 = vld [vmem:[%s9360_s18 + $0x2c4] sm:$0xf0]  ;;  %v6804_v15 = vor.u32 %v8126_v7, %v6803_v3  ;;  %vm6404_vm1 = vcmask 1041408  }
 0x1c2   : > { %5771 = vmatpush.bf16.msra.mxu0 %v6516_v33  ;;  %3791 = vst [vmem:[#allocation1] ss:$9 sm:$0xff] %v3397_v4  ;;  %v6931_v11 = vld [vmem:[%s9360_s18 + $0x340] sm:$0xf]  ;;  %v8158_v12 = vld [vmem:[%s9360_s18 + $0x344] sm:$0xf0]  ;;  %v6868_v16 = vor.u32 %v8142_v10, %v6867_v8 }
 0x1c3   : > { %5784 = vmatpush.bf16.msra.mxu1 %v6580_v37  ;;  %v6995_v13 = vld [vmem:[%s9360_s18 + $0x3c0] sm:$0xf]  ;;  %v8174_v14 = vld [vmem:[%s9360_s18 + $0x3c4] sm:$0xf0]  ;;  %v6932_v17 = vor.u32 %v8158_v12, %v6931_v11  ;;  %v6795_v18 = vld [vmem:[%s9360_s18 + $0x230] sm:$0xf] }
 0x1c4   : > { %5797 = vmatpush.bf16.msra.mxu2 %v6644_v38  ;;  %v8124_v19 = vld [vmem:[%s9360_s18 + $0x234] sm:$0xf0]  ;;  %v6859_v20 = vld [vmem:[%s9360_s18 + $0x2b0] sm:$0xf]  ;;  %v6996_v21 = vor.u32 %v8174_v14, %v6995_v13  ;;  %v6787_v27 = vld [vmem:[%s9360_s18 + $0x220] sm:$0xf] }
 0x1c5   : > { %5810 = vmatpush.bf16.msra.mxu3 %v6708_v41  ;;  %v8140_v22 = vld [vmem:[%s9360_s18 + $0x2b4] sm:$0xf0]  ;;  %v6923_v23 = vld [vmem:[%s9360_s18 + $0x330] sm:$0xf]  ;;  %v6796_v28 = vor.u32 %v8124_v19, %v6795_v18  ;;  %v8122_v34 = vld [vmem:[%s9360_s18 + $0x224] sm:$0xf0] }
 0x1c6   : > { %5816 = vmatpush.bf16.msrb.mxu0 %v6828_v42  ;;  %v8156_v24 = vld [vmem:[%s9360_s18 + $0x334] sm:$0xf0]  ;;  %v6987_v25 = vld [vmem:[%s9360_s18 + $0x3b0] sm:$0xf]  ;;  %v6860_v32 = vor.u32 %v8140_v22, %v6859_v20  ;;  %v6851_v35 = vld [vmem:[%s9360_s18 + $0x2a0] sm:$0xf] }
 0x1c7   : > { %5829 = vmatpush.bf16.msrb.mxu1 %v6892_v43  ;;  %v8172_v26 = vld [vmem:[%s9360_s18 + $0x3b4] sm:$0xf0]  ;;  %v6924_v33 = vor.u32 %v8156_v24, %v6923_v23  ;;  %v8138_v38 = vld [vmem:[%s9360_s18 + $0x2a4] sm:$0xf0]  ;;  %v6915_v39 = vld [vmem:[%s9360_s18 + $0x320] sm:$0xf]  ;;  %v6788_v43 = vor.u32 %v8122_v34, %v6787_v27 }
 0x1c8   : > { %5842 = vmatpush.bf16.msrb.mxu2 %v6956_v44  ;;  %v6988_v37 = vor.u32 %v8172_v26, %v6987_v25  ;;  %v8154_v40 = vld [vmem:[%s9360_s18 + $0x324] sm:$0xf0]  ;;  %v6979_v41 = vld [vmem:[%s9360_s18 + $0x3a0] sm:$0xf]  ;;  %v6779_v44 = vld [vmem:[%s9360_s18 + $0x210] sm:$0xf]  ;;  %v6852_v45 = vor.u32 %v8138_v38, %v6851_v35 }
 0x1c9   : > { %5855 = vmatpush.bf16.msrb.mxu3 %v7020_v48  ;;  %v9471_v29 = vld [vmem:[#allocation1 + $0x12] sm:$0xff]  ;;  %v9473_v30 = vld [vmem:[#allocation1] sm:$0xff]  ;;  %v9479_v36 = vld [vmem:[#allocation1 + $0x9] sm:$0xff]  ;;  %v6916_v46 = vor.u32 %v8154_v40, %v6915_v39  ;;  %vm6411_vm2 = vcmask 1024   ;;  %p8049_p10 = scmp.ne.s32.totalorder %s8552_s4, 3 }
 0x1ca   : > { %5817 = vmatpush.bf16.msrb.mxu0 %v6820_v54  ;;  %v9475_v31 = vld [vmem:[#allocation1 + $0x1b] sm:$0xff]  ;;  %5798 = vmatmul.bf16.vlgmr.msra.gmra.mxu2 %v9471_v29  ;;  %v8170_v42 = vld [vmem:[%s9360_s18 + $0x3a4] sm:$0xf0]  ;;  %v8120_v47 = vld [vmem:[%s9360_s18 + $0x214] sm:$0xf0] }
 0x1cb   : > { %5830 = vmatpush.bf16.msrb.mxu1 %v6884_v55  ;;  %5772 = vmatmul.bf16.vlgmr.msra.gmra.mxu0 %v9473_v30  ;;  %v6843_v48 = vld [vmem:[%s9360_s18 + $0x290] sm:$0xf]  ;;  %v8136_v49 = vld [vmem:[%s9360_s18 + $0x294] sm:$0xf0]  ;;  %v6980_v50 = vor.u32 %v8170_v42, %v6979_v41  ;;  %v6771_v55 = vld [vmem:[%s9360_s18 + $0x200] sm:$0xf]  ;;  %v6780_v57 = vor.u32 %v8120_v47, %v6779_v44 }
 0x1cc   : > { %5843 = vmatpush.bf16.msrb.mxu2 %v6948_v56  ;;  %5811 = vmatmul.bf16.vlgmr.msra.gmra.mxu3 %v9475_v31  ;;  %v6907_v51 = vld [vmem:[%s9360_s18 + $0x310] sm:$0xf]  ;;  %v8152_v52 = vld [vmem:[%s9360_s18 + $0x314] sm:$0xf0]  ;;  %v8118_v56 = vld [vmem:[%s9360_s18 + $0x204] sm:$0xf0]  ;;  %v6844_v0 = vor.u32 %v8136_v49, %v6843_v48 }
 0x1cd   : > { %5856 = vmatpush.bf16.msrb.mxu3 %v7012_v60  ;;  %5785 = vmatmul.bf16.vlgmr.msra.gmra.mxu1 %v9479_v36  ;;  %v6971_v53 = vld [vmem:[%s9360_s18 + $0x390] sm:$0xf]  ;;  %v8168_v54 = vld [vmem:[%s9360_s18 + $0x394] sm:$0xf0]  ;;  %v6835_v58 = vld [vmem:[%s9360_s18 + $0x280] sm:$0xf]  ;;  %v6908_v1 = vor.u32 %v8152_v52, %v6907_v51  ;;  %v6772_v11 = vor.u32 %v8118_v56, %v6771_v55 }
 0x1ce   : > { %5818 = vmatpush.bf16.msrb.mxu0 %v6812_v2  ;;  %v8134_v59 = vld [vmem:[%s9360_s18 + $0x284] sm:$0xf0]  ;;  %v6899_v60 = vld [vmem:[%s9360_s18 + $0x300] sm:$0xf]  ;;  %v9511_v3 = vld [vmem:[#allocation1 + $0x3f] sm:$0xff] }
 0x1cf   : > { %5831 = vmatpush.bf16.msrb.mxu1 %v6876_v5  ;;  %v8150_v61 = vld [vmem:[%s9360_s18 + $0x304] sm:$0xf0]  ;;  %v3398_v63 = vld [vmem:[%s10243_s0 + $0x8] sm:$0xff]  ;;  %v6972_v5 = vor.u32 %v8168_v54, %v6971_v53  ;;  %v7083_v8 = vld [vmem:[%s9360_s18 + $0x470] sm:$0xf] }
 0x1d0   : > { %5844 = vmatpush.bf16.msrb.mxu2 %v6940_v6  ;;  %v9504_v62 = vld [vmem:[#allocation1 + $0x36] sm:$0xff]  ;;  %v9509_v2 = vld [vmem:[#allocation1 + $0x24] sm:$0xff]  ;;  %v9513_v4 = vld [vmem:[#allocation1 + $0x2d] sm:$0xff] }
 0x1d1   : > { %5857 = vmatpush.bf16.msrb.mxu3 %v7004_v9  ;;  %v6963_v6 = vld [vmem:[%s9360_s18 + $0x380] sm:$0xf]  ;;  %v8166_v7 = vld [vmem:[%s9360_s18 + $0x384] sm:$0xf0]  ;;  %3801 = vst [vmem:[#allocation1] ss:$9 sm:$0xff] %v3398_v63 }
 0x1d2   : > { %5819 = vmatpush.bf16.msrb.mxu0 %v6804_v15  ;;  %v8196_v9 = vld [vmem:[%s9360_s18 + $0x474] sm:$0xf0]  ;;  %v7147_v10 = vld [vmem:[%s9360_s18 + $0x4f0] sm:$0xf]  ;;  %v6836_v15 = vor.u32 %v8134_v59, %v6835_v58  ;;  %v6964_v19 = vor.u32 %v8166_v7, %v6963_v6  ;;  %v7075_v23 = vld [vmem:[%s9360_s18 + $0x460] sm:$0xf] }
 0x1d3   : > { %5832 = vmatpush.bf16.msrb.mxu1 %v6868_v16  ;;  %v8212_v12 = vld [vmem:[%s9360_s18 + $0x4f4] sm:$0xf0]  ;;  %v7211_v13 = vld [vmem:[%s9360_s18 + $0x570] sm:$0xf]  ;;  %v6900_v16 = vor.u32 %v8150_v61, %v6899_v60  ;;  %v7084_v20 = vor.u32 %v8196_v9, %v7083_v8  ;;  %v8194_v24 = vld [vmem:[%s9360_s18 + $0x464] sm:$0xf0] }
 0x1d4   : > { %5845 = vmatpush.bf16.msrb.mxu2 %v6932_v17  ;;  %v8228_v14 = vld [vmem:[%s9360_s18 + $0x574] sm:$0xf0]  ;;  %v7275_v17 = vld [vmem:[%s9360_s18 + $0x5f0] sm:$0xf]  ;;  %v7139_v25 = vld [vmem:[%s9360_s18 + $0x4e0] sm:$0xf]  ;;  %v7076_v35 = vor.u32 %v8194_v24, %v7075_v23 }
 0x1d5   : > { %5858 = vmatpush.bf16.msrb.mxu3 %v6996_v21  ;;  %v8244_v18 = vld [vmem:[%s9360_s18 + $0x5f4] sm:$0xf0]  ;;  %v7148_v21 = vor.u32 %v8212_v12, %v7147_v10  ;;  %v7212_v22 = vor.u32 %v8228_v14, %v7211_v13  ;;  %v8210_v27 = vld [vmem:[%s9360_s18 + $0x4e4] sm:$0xf0]  ;;  %v7067_v39 = vld [vmem:[%s9360_s18 + $0x450] sm:$0xf] }
 0x1d6   : > { %5820 = vmatpush.bf16.msrb.mxu0 %v6796_v28  ;;  %v7276_v26 = vor.u32 %v8244_v18, %v7275_v17  ;;  %v7203_v28 = vld [vmem:[%s9360_s18 + $0x560] sm:$0xf]  ;;  %v8242_v34 = vld [vmem:[%s9360_s18 + $0x5e4] sm:$0xf0]  ;;  %v8192_v40 = vld [vmem:[%s9360_s18 + $0x454] sm:$0xf0] }
 0x1d7   : > { %5833 = vmatpush.bf16.msrb.mxu1 %v6860_v32  ;;  %v8226_v32 = vld [vmem:[%s9360_s18 + $0x564] sm:$0xf0]  ;;  %v7131_v41 = vld [vmem:[%s9360_s18 + $0x4d0] sm:$0xf]  ;;  %v8240_v47 = vld [vmem:[%s9360_s18 + $0x5d4] sm:$0xf0]  ;;  %v7068_v48 = vor.u32 %v8192_v40, %v7067_v39 }
 0x1d8   : > { %5846 = vmatpush.bf16.msrb.mxu2 %v6924_v33  ;;  %v7267_v33 = vld [vmem:[%s9360_s18 + $0x5e0] sm:$0xf]  ;;  %v7204_v38 = vor.u32 %v8226_v32, %v7203_v28  ;;  %v7195_v44 = vld [vmem:[%s9360_s18 + $0x550] sm:$0xf]  ;;  %v8190_v52 = vld [vmem:[%s9360_s18 + $0x444] sm:$0xf0] }
 0x1d9   : > { %5859 = vmatpush.bf16.msrb.mxu3 %v6988_v37  ;;  %v7140_v37 = vor.u32 %v8210_v27, %v7139_v25  ;;  %v7268_v42 = vor.u32 %v8242_v34, %v7267_v33  ;;  %v7059_v51 = vld [vmem:[%s9360_s18 + $0x440] sm:$0xf]  ;;  %v8206_v55 = vld [vmem:[%s9360_s18 + $0x4c4] sm:$0xf0]  ;;  %v8204_v7 = vld [vmem:[%s9360_s18 + $0x4b4] sm:$0xf0] }
 0x1da   : > { %5821 = vmatpush.bf16.msrb.mxu0 %v6788_v43  ;;  %v8208_v43 = vld [vmem:[%s9360_s18 + $0x4d4] sm:$0xf0]  ;;  %v7123_v53 = vld [vmem:[%s9360_s18 + $0x4c0] sm:$0xf]  ;;  %v8238_v59 = vld [vmem:[%s9360_s18 + $0x5c4] sm:$0xf0]  ;;  %v7060_v60 = vor.u32 %v8190_v52, %v7059_v51 }
 0x1db   : > { %5834 = vmatpush.bf16.msrb.mxu1 %v6852_v45  ;;  %v8224_v45 = vld [vmem:[%s9360_s18 + $0x554] sm:$0xf0]  ;;  %v7132_v49 = vor.u32 %v8208_v43, %v7131_v41  ;;  %v7187_v56 = vld [vmem:[%s9360_s18 + $0x540] sm:$0xf]  ;;  %v7124_v61 = vor.u32 %v8206_v55, %v7123_v53  ;;  %v7179_v8 = vld [vmem:[%s9360_s18 + $0x530] sm:$0xf] }
 0x1dc   : > { %5847 = vmatpush.bf16.msrb.mxu2 %v6916_v46  ;;  %v7259_v46 = vld [vmem:[%s9360_s18 + $0x5d0] sm:$0xf]  ;;  %v7251_v58 = vld [vmem:[%s9360_s18 + $0x5c0] sm:$0xf]  ;;  %v8220_v9 = vld [vmem:[%s9360_s18 + $0x534] sm:$0xf0] }
 0x1dd   : > { %5860 = vmatpush.bf16.msrb.mxu3 %v6980_v50  ;;  %v7196_v50 = vor.u32 %v8224_v45, %v7195_v44  ;;  %v7260_v54 = vor.u32 %v8240_v47, %v7259_v46  ;;  %v7252_v6 = vor.u32 %v8238_v59, %v7251_v58  ;;  %v7243_v10 = vld [vmem:[%s9360_s18 + $0x5b0] sm:$0xf]  ;;  %v7180_v14 = vor.u32 %v8220_v9, %v7179_v8  ;;  %v7107_v17 = vld [vmem:[%s9360_s18 + $0x4a0] sm:$0xf]  ;;  %v8234_v23 = vld [vmem:[%s9360_s18 + $0x5a4] sm:$0xf0] }
 0x1de   : > { %5822 = vmatpush.bf16.msrb.mxu0 %v6780_v57  ;;  %v8222_v57 = vld [vmem:[%s9360_s18 + $0x544] sm:$0xf0]  ;;  %v7035_v27 = vld [vmem:[%s9360_s18 + $0x410] sm:$0xf]  ;;  %v8184_v28 = vld [vmem:[%s9360_s18 + $0x414] sm:$0xf0] }
 0x1df   : > { %5835 = vmatpush.bf16.msrb.mxu1 %v6844_v0  ;;  %v7188_v63 = vor.u32 %v8222_v57, %v7187_v56  ;;  %v7051_v0 = vld [vmem:[%s9360_s18 + $0x430] sm:$0xf]  ;;  %v8200_v34 = vld [vmem:[%s9360_s18 + $0x494] sm:$0xf0]  ;;  %v7036_v40 = vor.u32 %v8184_v28, %v7035_v27  ;;  %v7027_v41 = vld [vmem:[%s9360_s18 + $0x400] sm:$0xf] }
 0x1e0   : > { %5848 = vmatpush.bf16.msrb.mxu2 %v6908_v1  ;;  %v8188_v1 = vld [vmem:[%s9360_s18 + $0x434] sm:$0xf0]  ;;  %v7099_v32 = vld [vmem:[%s9360_s18 + $0x490] sm:$0xf]  ;;  %v7091_v45 = vld [vmem:[%s9360_s18 + $0x480] sm:$0xf] }
 0x1e1   : > { %5861 = vmatpush.bf16.msrb.mxu3 %v6972_v5  ;;  %v7115_v5 = vld [vmem:[%s9360_s18 + $0x4b0] sm:$0xf]  ;;  %v7052_v12 = vor.u32 %v8188_v1, %v7051_v0  ;;  %v8232_v39 = vld [vmem:[%s9360_s18 + $0x594] sm:$0xf0]  ;;  %v7100_v43 = vor.u32 %v8200_v34, %v7099_v32  ;;  %v8198_v46 = vld [vmem:[%s9360_s18 + $0x484] sm:$0xf0] }
 0x1e2   : > { %5823 = vmatpush.bf16.msrb.mxu0 %v6772_v11  ;;  %v8236_v11 = vld [vmem:[%s9360_s18 + $0x5b4] sm:$0xf0]  ;;  %v7116_v13 = vor.u32 %v8204_v7, %v7115_v5  ;;  %v7155_v47 = vld [vmem:[%s9360_s18 + $0x500] sm:$0xf]  ;;  %v8230_v51 = vld [vmem:[%s9360_s18 + $0x584] sm:$0xf0]  ;;  %v7092_v59 = vor.u32 %v8198_v46, %v7091_v45 }
 0x1e3   : > { %5836 = vmatpush.bf16.msrb.mxu1 %v6836_v15  ;;  %v7043_v15 = vld [vmem:[%s9360_s18 + $0x420] sm:$0xf]  ;;  %v7244_v18 = vor.u32 %v8236_v11, %v7243_v10  ;;  %v7339_v52 = vld [vmem:[%s9360_s18 + $0x670] sm:$0xf]  ;;  %v8260_v53 = vld [vmem:[%s9360_s18 + $0x674] sm:$0xf0] }
 0x1e4   : > { %5849 = vmatpush.bf16.msrb.mxu2 %v6900_v16  ;;  %v8186_v16 = vld [vmem:[%s9360_s18 + $0x424] sm:$0xf0]  ;;  %v8276_v56 = vld [vmem:[%s9360_s18 + $0x6f4] sm:$0xf0]  ;;  %v7467_v57 = vld [vmem:[%s9360_s18 + $0x770] sm:$0xf]  ;;  %v7340_v1 = vor.u32 %v8260_v53, %v7339_v52 }
 0x1e5   : > { %5862 = vmatpush.bf16.msrb.mxu3 %v6964_v19  ;;  %5824 = vmatmul.bf16.vlgmr.msrb.gmra.mxu0 %v9509_v2  ;;  %v8202_v19 = vld [vmem:[%s9360_s18 + $0x4a4] sm:$0xf0]  ;;  %v7044_v24 = vor.u32 %v8186_v16, %v7043_v15  ;;  %v8292_v58 = vld [vmem:[%s9360_s18 + $0x774] sm:$0xf0]  ;;  %v7331_v7 = vld [vmem:[%s9360_s18 + $0x660] sm:$0xf] }
 0x1e6   : > { %5868 = vmatpush.bf16.msra.mxu0 %v7084_v20  ;;  %5837 = vmatmul.bf16.vlgmr.msrb.gmra.mxu1 %v9513_v4  ;;  %v7171_v20 = vld [vmem:[%s9360_s18 + $0x520] sm:$0xf]  ;;  %v7108_v25 = vor.u32 %v8202_v19, %v7107_v17  ;;  %v8258_v8 = vld [vmem:[%s9360_s18 + $0x664] sm:$0xf0]  ;;  %v9607_v19 = vld [vmem:[#allocation1 + $0x1b] sm:$0xff] }
 0x1e7   : > { %5881 = vmatpush.bf16.msra.mxu1 %v7148_v21  ;;  %5850 = vmatmul.bf16.vlgmr.msrb.gmra.mxu2 %v9504_v62  ;;  %v8218_v21 = vld [vmem:[%s9360_s18 + $0x524] sm:$0xf0]  ;;  %v7395_v9 = vld [vmem:[%s9360_s18 + $0x6e0] sm:$0xf]  ;;  %v8272_v27 = vld [vmem:[%s9360_s18 + $0x6d4] sm:$0xf0] }
 0x1e8   : > { %5894 = vmatpush.bf16.msra.mxu2 %v7212_v22  ;;  %5863 = vmatmul.bf16.vlgmr.msrb.gmra.mxu3 %v9511_v3  ;;  %v7235_v22 = vld [vmem:[%s9360_s18 + $0x5a0] sm:$0xf]  ;;  %v8274_v11 = vld [vmem:[%s9360_s18 + $0x6e4] sm:$0xf0]  ;;  %v7451_v28 = vld [vmem:[%s9360_s18 + $0x750] sm:$0xf] }
 0x1e9   : > { %5907 = vmatpush.bf16.msra.mxu3 %v7276_v26  ;;  %v7172_v26 = vor.u32 %v8218_v21, %v7171_v20  ;;  %v7236_v33 = vor.u32 %v8234_v23, %v7235_v22  ;;  %v7523_v15 = vld [vmem:[%s9360_s18 + $0x7e0] sm:$0xf]  ;;  %v8306_v16 = vld [vmem:[%s9360_s18 + $0x7e4] sm:$0xf0]  ;;  %v7332_v20 = vor.u32 %v8258_v8, %v7331_v7  ;;  %v7396_v21 = vor.u32 %v8274_v11, %v7395_v9  ;;  %v7323_v23 = vld [vmem:[%s9360_s18 + $0x650] sm:$0xf] }
 0x1ea   : > { %5869 = vmatpush.bf16.msra.mxu0 %v7076_v35  ;;  %v7163_v35 = vld [vmem:[%s9360_s18 + $0x510] sm:$0xf]  ;;  %v9603_v17 = vld [vmem:[#allocation1 + $0x12] sm:$0xff]  ;;  %v8288_v32 = vld [vmem:[%s9360_s18 + $0x754] sm:$0xf0] }
 0x1eb   : > { %5882 = vmatpush.bf16.msra.mxu1 %v7140_v37  ;;  %v8216_v37 = vld [vmem:[%s9360_s18 + $0x514] sm:$0xf0]  ;;  %v8286_v45 = vld [vmem:[%s9360_s18 + $0x744] sm:$0xf0]  ;;  %v7507_v46 = vld [vmem:[%s9360_s18 + $0x7c0] sm:$0xf] }
 0x1ec   : > { %5895 = vmatpush.bf16.msra.mxu2 %v7204_v38  ;;  %v7227_v38 = vld [vmem:[%s9360_s18 + $0x590] sm:$0xf]  ;;  %v7164_v44 = vor.u32 %v8216_v37, %v7163_v35  ;;  %v8304_v34 = vld [vmem:[%s9360_s18 + $0x7d4] sm:$0xf0]  ;;  %v8266_v7 = vld [vmem:[%s9360_s18 + $0x6a4] sm:$0xf0] }
 0x1ed   : > { %5908 = vmatpush.bf16.msra.mxu3 %v7268_v42  ;;  %v8182_v42 = vld [vmem:[%s9360_s18 + $0x404] sm:$0xf0]  ;;  %v8252_v52 = vld [vmem:[%s9360_s18 + $0x634] sm:$0xf0]  ;;  %v7371_v53 = vld [vmem:[%s9360_s18 + $0x6b0] sm:$0xf] }
 0x1ee   : > { %5870 = vmatpush.bf16.msra.mxu0 %v7068_v48  ;;  %v7228_v48 = vor.u32 %v8232_v39, %v7227_v38  ;;  %v7028_v55 = vor.u32 %v8182_v42, %v7027_v41  ;;  %v7452_v38 = vor.u32 %v8288_v32, %v7451_v28  ;;  %v7315_v39 = vld [vmem:[%s9360_s18 + $0x640] sm:$0xf]  ;;  %v8282_v9 = vld [vmem:[%s9360_s18 + $0x724] sm:$0xf0] }
 0x1ef   : > { %5883 = vmatpush.bf16.msra.mxu1 %v7132_v49  ;;  %v8214_v49 = vld [vmem:[%s9360_s18 + $0x504] sm:$0xf0]  ;;  %v7379_v41 = vld [vmem:[%s9360_s18 + $0x6c0] sm:$0xf] }
 0x1f0   : > { %5896 = vmatpush.bf16.msra.mxu2 %v7196_v50  ;;  %v7219_v50 = vld [vmem:[%s9360_s18 + $0x580] sm:$0xf]  ;;  %v8298_v11 = vld [vmem:[%s9360_s18 + $0x7a4] sm:$0xf0] }
 0x1f1   : > { %5909 = vmatpush.bf16.msra.mxu3 %v7260_v54  ;;  %v7403_v54 = vld [vmem:[%s9360_s18 + $0x6f0] sm:$0xf]  ;;  %v7220_v0 = vor.u32 %v8230_v51, %v7219_v50  ;;  %v7427_v8 = vld [vmem:[%s9360_s18 + $0x720] sm:$0xf]  ;;  %v8246_v32 = vld [vmem:[%s9360_s18 + $0x604] sm:$0xf0] }
 0x1f2   : > { %5871 = vmatpush.bf16.msra.mxu0 %v7060_v60  ;;  %v7156_v60 = vor.u32 %v8214_v49, %v7155_v47  ;;  %v7404_v5 = vor.u32 %v8276_v56, %v7403_v54  ;;  %v8302_v47 = vld [vmem:[%s9360_s18 + $0x7c4] sm:$0xf0]  ;;  %v7307_v51 = vld [vmem:[%s9360_s18 + $0x630] sm:$0xf]  ;;  %v7283_v28 = vld [vmem:[%s9360_s18 + $0x600] sm:$0xf] }
 0x1f3   : > { %5884 = vmatpush.bf16.msra.mxu1 %v7124_v61  ;;  %v7531_v61 = vld [vmem:[%s9360_s18 + $0x7f0] sm:$0xf]  ;;  %v7508_v54 = vor.u32 %v8302_v47, %v7507_v46  ;;  %v8340_v47 = vld [vmem:[%s9360_s18 + $0x8f4] sm:$0xf0] }
 0x1f4   : > { %5897 = vmatpush.bf16.msra.mxu2 %v7188_v63  ;;  %v8308_v63 = vld [vmem:[%s9360_s18 + $0x7f4] sm:$0xf0]  ;;  %v7435_v56 = vld [vmem:[%s9360_s18 + $0x730] sm:$0xf] }
 0x1f5   : > { %5910 = vmatpush.bf16.msra.mxu3 %v7252_v6  ;;  %v7468_v6 = vor.u32 %v8292_v58, %v7467_v57  ;;  %v7532_v10 = vor.u32 %v8308_v63, %v7531_v61  ;;  %v8284_v57 = vld [vmem:[%s9360_s18 + $0x734] sm:$0xf0]  ;;  %v7499_v58 = vld [vmem:[%s9360_s18 + $0x7b0] sm:$0xf] }
 0x1f6   : > { %5872 = vmatpush.bf16.msra.mxu0 %v7052_v12  ;;  %v7459_v12 = vld [vmem:[%s9360_s18 + $0x760] sm:$0xf]  ;;  %v7436_v63 = vor.u32 %v8284_v57, %v7435_v56  ;;  %v7659_v46 = vld [vmem:[%s9360_s18 + $0x8f0] sm:$0xf] }
 0x1f7   : > { %5885 = vmatpush.bf16.msra.mxu1 %v7116_v13  ;;  %v8290_v13 = vld [vmem:[%s9360_s18 + $0x764] sm:$0xf0] }
 0x1f8   : > { %5898 = vmatpush.bf16.msra.mxu2 %v7180_v14  ;;  %v9599_v14 = vld [vmem:[#allocation1] sm:$0xff]  ;;  %v7460_v22 = vor.u32 %v8290_v13, %v7459_v12  ;;  %v7291_v13 = vld [vmem:[%s9360_s18 + $0x610] sm:$0xf] }
 0x1f9   : > { %5911 = vmatpush.bf16.msra.mxu3 %v7244_v18  ;;  %v9605_v18 = vld [vmem:[#allocation1 + $0x9] sm:$0xff] }
 0x1fa   : > { %5873 = vmatpush.bf16.msra.mxu0 %v7044_v24  ;;  %v8256_v24 = vld [vmem:[%s9360_s18 + $0x654] sm:$0xf0] }
 0x1fb   : > { %5886 = vmatpush.bf16.msra.mxu1 %v7108_v25  ;;  %v7387_v25 = vld [vmem:[%s9360_s18 + $0x6d0] sm:$0xf]  ;;  %v7324_v35 = vor.u32 %v8256_v24, %v7323_v23 }
 0x1fc   : > { %5899 = vmatpush.bf16.msra.mxu2 %v7172_v26  ;;  %v7524_v26 = vor.u32 %v8306_v16, %v7523_v15  ;;  %v7388_v37 = vor.u32 %v8272_v27, %v7387_v25  ;;  %v7428_v16 = vor.u32 %v8282_v9, %v7427_v8  ;;  %v7419_v24 = vld [vmem:[%s9360_s18 + $0x710] sm:$0xf]  ;;  %v8280_v25 = vld [vmem:[%s9360_s18 + $0x714] sm:$0xf0]  ;;  %v8338_v8 = vld [vmem:[%s9360_s18 + $0x8e4] sm:$0xf0] }
 0x1fd   : > { %5912 = vmatpush.bf16.msra.mxu3 %v7236_v33  ;;  %v7515_v33 = vld [vmem:[%s9360_s18 + $0x7d0] sm:$0xf]  ;;  %v8296_v27 = vld [vmem:[%s9360_s18 + $0x794] sm:$0xf0]  ;;  %v7715_v9 = vld [vmem:[%s9360_s18 + $0x960] sm:$0xf] }
 0x1fe   : > { %5874 = vmatpush.bf16.msra.mxu0 %v7036_v40  ;;  %v8254_v40 = vld [vmem:[%s9360_s18 + $0x644] sm:$0xf0]  ;;  %v7516_v42 = vor.u32 %v8304_v34, %v7515_v33  ;;  %v7347_v34 = vld [vmem:[%s9360_s18 + $0x680] sm:$0xf] }
 0x1ff   : > { %5887 = vmatpush.bf16.msra.mxu1 %v7100_v43  ;;  %v8270_v43 = vld [vmem:[%s9360_s18 + $0x6c4] sm:$0xf0] }
 0x200   : > { %5900 = vmatpush.bf16.msra.mxu2 %v7164_v44  ;;  %v7443_v44 = vld [vmem:[%s9360_s18 + $0x740] sm:$0xf]  ;;  %v7380_v49 = vor.u32 %v8270_v43, %v7379_v41  ;;  %v7595_v43 = vld [vmem:[%s9360_s18 + $0x870] sm:$0xf] }
 0x201   : > { %5913 = vmatpush.bf16.msra.mxu3 %v7228_v48  ;;  %v7316_v48 = vor.u32 %v8254_v40, %v7315_v39  ;;  %v7444_v50 = vor.u32 %v8286_v45, %v7443_v44  ;;  %v7420_v40 = vor.u32 %v8280_v25, %v7419_v24  ;;  %v7475_v41 = vld [vmem:[%s9360_s18 + $0x780] sm:$0xf]  ;;  %v8324_v44 = vld [vmem:[%s9360_s18 + $0x874] sm:$0xf0]  ;;  %v7707_v25 = vld [vmem:[%s9360_s18 + $0x950] sm:$0xf] }
 0x202   : > { %5875 = vmatpush.bf16.msra.mxu0 %v7028_v55  ;;  %v8268_v55 = vld [vmem:[%s9360_s18 + $0x6b4] sm:$0xf0] }
 0x203   : > { %5888 = vmatpush.bf16.msra.mxu1 %v7092_v59  ;;  %v8300_v59 = vld [vmem:[%s9360_s18 + $0x7b4] sm:$0xf0]  ;;  %v7372_v61 = vor.u32 %v8268_v55, %v7371_v53  ;;  %v7284_v53 = vor.u32 %v8246_v32, %v7283_v28 }
 0x204   : > { %5901 = vmatpush.bf16.msra.mxu2 %v7156_v60  ;;  %v7308_v60 = vor.u32 %v8252_v52, %v7307_v51  ;;  %v9671_v51 = vld [vmem:[#allocation1 + $0x3f] sm:$0xff]  ;;  %v3399_v52 = vld [vmem:[%s10243_s0 + $0x10] sm:$0xff] }
 0x205   : > { %5914 = vmatpush.bf16.msra.mxu3 %v7220_v0  ;;  %5876 = vmatmul.bf16.vlgmr.msra.gmra.mxu0 %v9599_v14  ;;  %v7299_v0 = vld [vmem:[%s9360_s18 + $0x620] sm:$0xf]  ;;  %v8356_v55 = vld [vmem:[%s9360_s18 + $0x974] sm:$0xf0] }
 0x206   : > { %5920 = vmatpush.bf16.msrb.mxu0 %v7340_v1  ;;  %5889 = vmatmul.bf16.vlgmr.msra.gmra.mxu1 %v9605_v18  ;;  %v8250_v1 = vld [vmem:[%s9360_s18 + $0x624] sm:$0xf0]  ;;  %v8336_v24 = vld [vmem:[%s9360_s18 + $0x8d4] sm:$0xf0] }
 0x207   : > { %5933 = vmatpush.bf16.msrb.mxu1 %v7404_v5  ;;  %5902 = vmatmul.bf16.vlgmr.msra.gmra.mxu2 %v9603_v17  ;;  %v7363_v5 = vld [vmem:[%s9360_s18 + $0x6a0] sm:$0xf]  ;;  %v7300_v12 = vor.u32 %v8250_v1, %v7299_v0  ;;  %v8368_v28 = vld [vmem:[%s9360_s18 + $0x9d4] sm:$0xf0] }
 0x208   : > { %5946 = vmatpush.bf16.msrb.mxu2 %v7468_v6  ;;  %5915 = vmatmul.bf16.vlgmr.msra.gmra.mxu3 %v9607_v19  ;;  %v7500_v6 = vor.u32 %v8300_v59, %v7499_v58  ;;  %v7364_v15 = vor.u32 %v8266_v7, %v7363_v5  ;;  %v7787_v58 = vld [vmem:[%s9360_s18 + $0x9f0] sm:$0xf]  ;;  %v8372_v59 = vld [vmem:[%s9360_s18 + $0x9f4] sm:$0xf0]  ;;  %v7587_v1 = vld [vmem:[%s9360_s18 + $0x860] sm:$0xf] }
 0x209   : > { %5959 = vmatpush.bf16.msrb.mxu3 %v7532_v10  ;;  %v7491_v10 = vld [vmem:[%s9360_s18 + $0x7a0] sm:$0xf]  ;;  %v8322_v5 = vld [vmem:[%s9360_s18 + $0x864] sm:$0xf0]  ;;  %v7788_v7 = vor.u32 %v8372_v59, %v7787_v58  ;;  %v8348_v58 = vld [vmem:[%s9360_s18 + $0x934] sm:$0xf0] }
 0x20a   : > { %5921 = vmatpush.bf16.msrb.mxu0 %v7332_v20  ;;  %v8248_v20 = vld [vmem:[%s9360_s18 + $0x614] sm:$0xf0]  ;;  %v7492_v23 = vor.u32 %v8298_v11, %v7491_v10  ;;  %v8354_v10 = vld [vmem:[%s9360_s18 + $0x964] sm:$0xf0]  ;;  %v7779_v11 = vld [vmem:[%s9360_s18 + $0x9e0] sm:$0xf] }
 0x20b   : > { %5934 = vmatpush.bf16.msrb.mxu1 %v7396_v21  ;;  %v7355_v21 = vld [vmem:[%s9360_s18 + $0x690] sm:$0xf]  ;;  %v7292_v33 = vor.u32 %v8248_v20, %v7291_v13  ;;  %v7588_v13 = vor.u32 %v8322_v5, %v7587_v1  ;;  %v7555_v1 = vld [vmem:[%s9360_s18 + $0x820] sm:$0xf]  ;;  %v8314_v5 = vld [vmem:[%s9360_s18 + $0x824] sm:$0xf0] }
 0x20c   : > { %5947 = vmatpush.bf16.msrb.mxu2 %v7460_v22  ;;  %v8264_v22 = vld [vmem:[%s9360_s18 + $0x694] sm:$0xf0]  ;;  %v7579_v20 = vld [vmem:[%s9360_s18 + $0x850] sm:$0xf] }
 0x20d   : > { %5960 = vmatpush.bf16.msrb.mxu3 %v7524_v26  ;;  %v7483_v26 = vld [vmem:[%s9360_s18 + $0x790] sm:$0xf]  ;;  %v7356_v39 = vor.u32 %v8264_v22, %v7355_v21  ;;  %v8320_v21 = vld [vmem:[%s9360_s18 + $0x854] sm:$0xf0] }
 0x20e   : > { %5922 = vmatpush.bf16.msrb.mxu0 %v7324_v35  ;;  %v8262_v35 = vld [vmem:[%s9360_s18 + $0x684] sm:$0xf0]  ;;  %v7484_v45 = vor.u32 %v8296_v27, %v7483_v26  ;;  %v7643_v22 = vld [vmem:[%s9360_s18 + $0x8d0] sm:$0xf]  ;;  %v8352_v26 = vld [vmem:[%s9360_s18 + $0x954] sm:$0xf0]  ;;  %v7580_v32 = vor.u32 %v8320_v21, %v7579_v20 }
 0x20f   : > { %5935 = vmatpush.bf16.msrb.mxu1 %v7388_v37  ;;  %v7411_v37 = vld [vmem:[%s9360_s18 + $0x700] sm:$0xf]  ;;  %v7348_v56 = vor.u32 %v8262_v35, %v7347_v34  ;;  %v7771_v27 = vld [vmem:[%s9360_s18 + $0x9d0] sm:$0xf]  ;;  %v7708_v34 = vor.u32 %v8352_v26, %v7707_v25  ;;  %v8312_v21 = vld [vmem:[%s9360_s18 + $0x814] sm:$0xf0] }
 0x210   : > { %5948 = vmatpush.bf16.msrb.mxu2 %v7452_v38  ;;  %v8278_v38 = vld [vmem:[%s9360_s18 + $0x704] sm:$0xf0]  ;;  %v7571_v35 = vld [vmem:[%s9360_s18 + $0x840] sm:$0xf]  ;;  %v7755_v59 = vld [vmem:[%s9360_s18 + $0x9b0] sm:$0xf] }
 0x211   : > { %5961 = vmatpush.bf16.msrb.mxu3 %v7516_v42  ;;  %v8294_v42 = vld [vmem:[%s9360_s18 + $0x784] sm:$0xf0]  ;;  %v7412_v57 = vor.u32 %v8278_v38, %v7411_v37  ;;  %v7635_v38 = vld [vmem:[%s9360_s18 + $0x8c0] sm:$0xf]  ;;  %v7547_v20 = vld [vmem:[%s9360_s18 + $0x810] sm:$0xf] }
 0x212   : > { %5923 = vmatpush.bf16.msrb.mxu0 %v7316_v48  ;;  %v9665_v48 = vld [vmem:[#allocation1 + $0x24] sm:$0xff]  ;;  %v8318_v37 = vld [vmem:[%s9360_s18 + $0x844] sm:$0xf0]  ;;  %v7675_v25 = vld [vmem:[%s9360_s18 + $0x910] sm:$0xf] }
 0x213   : > { %5936 = vmatpush.bf16.msrb.mxu1 %v7380_v49  ;;  %v9667_v49 = vld [vmem:[#allocation1 + $0x36] sm:$0xff]  ;;  %v8344_v26 = vld [vmem:[%s9360_s18 + $0x914] sm:$0xf0] }
 0x214   : > { %5949 = vmatpush.bf16.msrb.mxu2 %v7444_v50  ;;  %v9669_v50 = vld [vmem:[#allocation1 + $0x2d] sm:$0xff] }
 0x215   : > { %5962 = vmatpush.bf16.msrb.mxu3 %v7508_v54  ;;  %v7723_v54 = vld [vmem:[%s9360_s18 + $0x970] sm:$0xf]  ;;  %3811 = vst [vmem:[#allocation1] ss:$9 sm:$0xff] %v3399_v52 }
 0x216   : > { %5924 = vmatpush.bf16.msrb.mxu0 %v7308_v60  ;;  %v7476_v60 = vor.u32 %v8294_v42, %v7475_v41  ;;  %v7724_v0 = vor.u32 %v8356_v55, %v7723_v54  ;;  %v7699_v41 = vld [vmem:[%s9360_s18 + $0x940] sm:$0xf]  ;;  %v8350_v42 = vld [vmem:[%s9360_s18 + $0x944] sm:$0xf0]  ;;  %v7563_v52 = vld [vmem:[%s9360_s18 + $0x830] sm:$0xf] }
 0x217   : > { %5937 = vmatpush.bf16.msrb.mxu1 %v7372_v61  ;;  %v7596_v61 = vor.u32 %v8324_v44, %v7595_v43  ;;  %v7763_v43 = vld [vmem:[%s9360_s18 + $0x9c0] sm:$0xf]  ;;  %v8366_v44 = vld [vmem:[%s9360_s18 + $0x9c4] sm:$0xf0]  ;;  %v7627_v54 = vld [vmem:[%s9360_s18 + $0x8b0] sm:$0xf] }
 0x218   : > { %5950 = vmatpush.bf16.msrb.mxu2 %v7436_v63  ;;  %v7660_v63 = vor.u32 %v8340_v47, %v7659_v46  ;;  %v7700_v47 = vor.u32 %v8350_v42, %v7699_v41  ;;  %v7764_v55 = vor.u32 %v8366_v44, %v7763_v43  ;;  %v8342_v42 = vld [vmem:[%s9360_s18 + $0x904] sm:$0xf0]  ;;  %v7731_v43 = vld [vmem:[%s9360_s18 + $0x980] sm:$0xf] }
 0x219   : > { %5963 = vmatpush.bf16.msrb.mxu3 %v7500_v6  ;;  %v7651_v6 = vld [vmem:[%s9360_s18 + $0x8e0] sm:$0xf]  ;;  %v8358_v44 = vld [vmem:[%s9360_s18 + $0x984] sm:$0xf0] }
 0x21a   : > { %5925 = vmatpush.bf16.msrb.mxu0 %v7300_v12  ;;  %v8370_v12 = vld [vmem:[%s9360_s18 + $0x9e4] sm:$0xf0] }
 0x21b   : > { %5938 = vmatpush.bf16.msrb.mxu1 %v7364_v15  ;;  %v7652_v15 = vor.u32 %v8338_v8, %v7651_v6  ;;  %v7619_v6 = vld [vmem:[%s9360_s18 + $0x8a0] sm:$0xf]  ;;  %v8330_v8 = vld [vmem:[%s9360_s18 + $0x8a4] sm:$0xf0] }
 0x21c   : > { %5951 = vmatpush.bf16.msrb.mxu2 %v7428_v16  ;;  %v7716_v16 = vor.u32 %v8354_v10, %v7715_v9  ;;  %v7683_v9 = vld [vmem:[%s9360_s18 + $0x920] sm:$0xf]  ;;  %v8346_v10 = vld [vmem:[%s9360_s18 + $0x924] sm:$0xf0] }
 0x21d   : > { %5964 = vmatpush.bf16.msrb.mxu3 %v7492_v23  ;;  %v7780_v23 = vor.u32 %v8370_v12, %v7779_v11  ;;  %v7747_v11 = vld [vmem:[%s9360_s18 + $0x9a0] sm:$0xf]  ;;  %v8362_v12 = vld [vmem:[%s9360_s18 + $0x9a4] sm:$0xf0] }
 0x21e   : > { %5926 = vmatpush.bf16.msrb.mxu0 %v7292_v33  ;;  %v7644_v33 = vor.u32 %v8336_v24, %v7643_v22  ;;  %v7611_v22 = vld [vmem:[%s9360_s18 + $0x890] sm:$0xf]  ;;  %v8328_v24 = vld [vmem:[%s9360_s18 + $0x894] sm:$0xf0] }
 0x21f   : > { %5939 = vmatpush.bf16.msrb.mxu1 %v7356_v39  ;;  %v7772_v39 = vor.u32 %v8368_v28, %v7771_v27  ;;  %v7739_v27 = vld [vmem:[%s9360_s18 + $0x990] sm:$0xf]  ;;  %v8360_v28 = vld [vmem:[%s9360_s18 + $0x994] sm:$0xf0] }
 0x220   : > { %5952 = vmatpush.bf16.msrb.mxu2 %v7420_v40  ;;  %v8334_v40 = vld [vmem:[%s9360_s18 + $0x8c4] sm:$0xf0]  ;;  %v7740_v41 = vor.u32 %v8360_v28, %v7739_v27  ;;  %v8400_v28 = vld [vmem:[%s9360_s18 + $0xad4] sm:$0xf0] }
 0x221   : > { %5965 = vmatpush.bf16.msrb.mxu3 %v7484_v45  ;;  %v7572_v45 = vor.u32 %v8318_v37, %v7571_v35  ;;  %v7636_v46 = vor.u32 %v8334_v40, %v7635_v38  ;;  %v7612_v35 = vor.u32 %v8328_v24, %v7611_v22  ;;  %v7676_v37 = vor.u32 %v8344_v26, %v7675_v25  ;;  %v7603_v38 = vld [vmem:[%s9360_s18 + $0x880] sm:$0xf]  ;;  %v7835_v24 = vld [vmem:[%s9360_s18 + $0xa50] sm:$0xf]  ;;  %v8384_v25 = vld [vmem:[%s9360_s18 + $0xa54] sm:$0xf0] }
 0x222   : > { %5927 = vmatpush.bf16.msrb.mxu0 %v7284_v53  ;;  %v8316_v53 = vld [vmem:[%s9360_s18 + $0x834] sm:$0xf0]  ;;  %v7667_v40 = vld [vmem:[%s9360_s18 + $0x900] sm:$0xf]  ;;  %v7899_v26 = vld [vmem:[%s9360_s18 + $0xad0] sm:$0xf] }
 0x223   : > { %5940 = vmatpush.bf16.msrb.mxu1 %v7348_v56  ;;  %v8332_v56 = vld [vmem:[%s9360_s18 + $0x8b4] sm:$0xf0] }
 0x224   : > { %5953 = vmatpush.bf16.msrb.mxu2 %v7412_v57  ;;  %v7691_v57 = vld [vmem:[%s9360_s18 + $0x930] sm:$0xf] }
 0x225   : > { %5966 = vmatpush.bf16.msrb.mxu3 %v7476_v60  ;;  %5928 = vmatmul.bf16.vlgmr.msrb.gmra.mxu0 %v9665_v48  ;;  %v8364_v60 = vld [vmem:[%s9360_s18 + $0x9b4] sm:$0xf0] }
 0x226   : > { %5972 = vmatpush.bf16.msra.mxu0 %v7596_v61  ;;  %5941 = vmatmul.bf16.vlgmr.msrb.gmra.mxu1 %v9669_v50  ;;  %v7564_v61 = vor.u32 %v8316_v53, %v7563_v52  ;;  %v8404_v53 = vld [vmem:[%s9360_s18 + $0xaf4] sm:$0xf0] }
 0x227   : > { %5985 = vmatpush.bf16.msra.mxu1 %v7660_v63  ;;  %5954 = vmatmul.bf16.vlgmr.msrb.gmra.mxu2 %v9667_v49  ;;  %v7628_v63 = vor.u32 %v8332_v56, %v7627_v54  ;;  %v7979_v54 = vld [vmem:[%s9360_s18 + $0xb70] sm:$0xf] }
 0x228   : > { %5998 = vmatpush.bf16.msra.mxu2 %v7724_v0  ;;  %5967 = vmatmul.bf16.vlgmr.msrb.gmra.mxu3 %v9671_v51  ;;  %v7692_v0 = vor.u32 %v8348_v58, %v7691_v57  ;;  %v7668_v57 = vor.u32 %v8342_v42, %v7667_v40  ;;  %v8043_v58 = vld [vmem:[%s9360_s18 + $0xbf0] sm:$0xf]  ;;  %v7827_v40 = vld [vmem:[%s9360_s18 + $0xa40] sm:$0xf] }
 0x229   : > { %6011 = vmatpush.bf16.msra.mxu3 %v7788_v7  ;;  %v7756_v7 = vor.u32 %v8364_v60, %v7755_v59  ;;  %v8436_v59 = vld [vmem:[%s9360_s18 + $0xbf4] sm:$0xf0]  ;;  %v7732_v60 = vor.u32 %v8358_v44, %v7731_v43  ;;  %v7891_v42 = vld [vmem:[%s9360_s18 + $0xac0] sm:$0xf]  ;;  %v8398_v44 = vld [vmem:[%s9360_s18 + $0xac4] sm:$0xf0] }
 0x22a   : > { %5973 = vmatpush.bf16.msra.mxu0 %v7588_v13  ;;  %v7556_v13 = vor.u32 %v8314_v5, %v7555_v1  ;;  %v7843_v1 = vld [vmem:[%s9360_s18 + $0xa60] sm:$0xf]  ;;  %v8386_v5 = vld [vmem:[%s9360_s18 + $0xa64] sm:$0xf0] }
 0x22b   : > { %5986 = vmatpush.bf16.msra.mxu1 %v7652_v15  ;;  %v7620_v15 = vor.u32 %v8330_v8, %v7619_v6  ;;  %v7907_v6 = vld [vmem:[%s9360_s18 + $0xae0] sm:$0xf]  ;;  %v8402_v8 = vld [vmem:[%s9360_s18 + $0xae4] sm:$0xf0] }
 0x22c   : > { %5999 = vmatpush.bf16.msra.mxu2 %v7716_v16  ;;  %v7684_v16 = vor.u32 %v8346_v10, %v7683_v9  ;;  %v7971_v9 = vld [vmem:[%s9360_s18 + $0xb60] sm:$0xf]  ;;  %v8418_v10 = vld [vmem:[%s9360_s18 + $0xb64] sm:$0xf0]  ;;  %v7908_v22 = vor.u32 %v8402_v8, %v7907_v6 }
 0x22d   : > { %6012 = vmatpush.bf16.msra.mxu3 %v7780_v23  ;;  %v7748_v23 = vor.u32 %v8362_v12, %v7747_v11  ;;  %v3812_v11 = vld [vmem:[#allocation1] sm:$0xff]  ;;  %v8035_v12 = vld [vmem:[%s9360_s18 + $0xbe0] sm:$0xf] }
 0x22e   : > { %5974 = vmatpush.bf16.msra.mxu0 %v7580_v32  ;;  %v7548_v32 = vor.u32 %v8312_v21, %v7547_v20  ;;  %v3815_v20 = vld [vmem:[#allocation1 + $0x1b] sm:$0xff]  ;;  %v7844_v21 = vor.u32 %v8386_v5, %v7843_v1  ;;  %v8428_v1 = vld [vmem:[%s9360_s18 + $0xbb4] sm:$0xf0]  ;;  %v7811_v6 = vld [vmem:[%s9360_s18 + $0xa20] sm:$0xf] }
 0x22f   : > { %5987 = vmatpush.bf16.msra.mxu1 %v7644_v33  ;;  %v7539_v33 = vld [vmem:[%s9360_s18 + $0x800] sm:$0xf] }
 0x230   : > { %6000 = vmatpush.bf16.msra.mxu2 %v7708_v34  ;;  %v8310_v34 = vld [vmem:[%s9360_s18 + $0x804] sm:$0xf0] }
 0x231   : > { %6013 = vmatpush.bf16.msra.mxu3 %v7772_v39  ;;  %v8326_v39 = vld [vmem:[%s9360_s18 + $0x884] sm:$0xf0]  ;;  %v7540_v52 = vor.u32 %v8310_v34, %v7539_v33  ;;  %v8416_v33 = vld [vmem:[%s9360_s18 + $0xb54] sm:$0xf0]  ;;  %v8027_v34 = vld [vmem:[%s9360_s18 + $0xbd0] sm:$0xf] }
 0x232   : > { %5975 = vmatpush.bf16.msra.mxu0 %v7572_v45  ;;  %v7851_v45 = vld [vmem:[%s9360_s18 + $0xa70] sm:$0xf]  ;;  %v7604_v56 = vor.u32 %v8326_v39, %v7603_v38  ;;  %v7900_v38 = vor.u32 %v8400_v28, %v7899_v26  ;;  %v8376_v26 = vld [vmem:[%s9360_s18 + $0xa14] sm:$0xf0] }
 0x233   : > { %5988 = vmatpush.bf16.msra.mxu1 %v7636_v46  ;;  %v8388_v46 = vld [vmem:[%s9360_s18 + $0xa74] sm:$0xf0] }
 0x234   : > { %6001 = vmatpush.bf16.msra.mxu2 %v7700_v47  ;;  %v7915_v47 = vld [vmem:[%s9360_s18 + $0xaf0] sm:$0xf] }
 0x235   : > { %6014 = vmatpush.bf16.msra.mxu3 %v7764_v55  ;;  %v8420_v55 = vld [vmem:[%s9360_s18 + $0xb74] sm:$0xf0] }
 0x236   : > { %5976 = vmatpush.bf16.msra.mxu0 %v7564_v61  ;;  %v7852_v61 = vor.u32 %v8388_v46, %v7851_v45  ;;  %v7955_v45 = vld [vmem:[%s9360_s18 + $0xb40] sm:$0xf]  ;;  %v8414_v46 = vld [vmem:[%s9360_s18 + $0xb44] sm:$0xf0] }
 0x237   : > { %5989 = vmatpush.bf16.msra.mxu1 %v7628_v63  ;;  %v7916_v63 = vor.u32 %v8404_v53, %v7915_v47  ;;  %v8019_v47 = vld [vmem:[%s9360_s18 + $0xbc0] sm:$0xf] }
 0x238   : > { %6002 = vmatpush.bf16.msra.mxu2 %v7692_v0  ;;  %v7980_v0 = vor.u32 %v8420_v55, %v7979_v54  ;;  %v7892_v54 = vor.u32 %v8398_v44, %v7891_v42  ;;  %v7956_v55 = vor.u32 %v8414_v46, %v7955_v45  ;;  %v7859_v45 = vld [vmem:[%s9360_s18 + $0xa80] sm:$0xf]  ;;  %v8390_v46 = vld [vmem:[%s9360_s18 + $0xa84] sm:$0xf0] }
 0x239   : > { %6015 = vmatpush.bf16.msra.mxu3 %v7756_v7  ;;  %v8044_v7 = vor.u32 %v8436_v59, %v8043_v58  ;;  %v7883_v58 = vld [vmem:[%s9360_s18 + $0xab0] sm:$0xf] }
 0x23a   : > { %5977 = vmatpush.bf16.msra.mxu0 %v7556_v13  ;;  %v8434_v13 = vld [vmem:[%s9360_s18 + $0xbe4] sm:$0xf0] }
 0x23b   : > { %5990 = vmatpush.bf16.msra.mxu1 %v7620_v15  ;;  %v3814_v15 = vld [vmem:[#allocation1 + $0x12] sm:$0xff]  ;;  %v8036_v27 = vor.u32 %v8434_v13, %v8035_v12  ;;  %v7939_v13 = vld [vmem:[%s9360_s18 + $0xb20] sm:$0xf] }
 0x23c   : > { %6003 = vmatpush.bf16.msra.mxu2 %v7684_v16  ;;  %v3813_v16 = vld [vmem:[#allocation1 + $0x9] sm:$0xff] }
 0x23d   : > { %6016 = vmatpush.bf16.msra.mxu3 %v7748_v23  ;;  %v7972_v23 = vor.u32 %v8418_v10, %v7971_v9  ;;  %v8378_v9 = vld [vmem:[%s9360_s18 + $0xa24] sm:$0xf0]  ;;  %v7875_v10 = vld [vmem:[%s9360_s18 + $0xaa0] sm:$0xf] }
 0x23e   : > { %5978 = vmatpush.bf16.msra.mxu0 %v7548_v32  ;;  %v7963_v32 = vld [vmem:[%s9360_s18 + $0xb50] sm:$0xf] }
 0x23f   : > { %5991 = vmatpush.bf16.msra.mxu1 %v7612_v35  ;;  %v8432_v35 = vld [vmem:[%s9360_s18 + $0xbd4] sm:$0xf0]  ;;  %v7964_v39 = vor.u32 %v8416_v33, %v7963_v32 }
 0x240   : > { %6004 = vmatpush.bf16.msra.mxu2 %v7676_v37  ;;  %v7836_v37 = vor.u32 %v8384_v25, %v7835_v24  ;;  %v8028_v43 = vor.u32 %v8432_v35, %v8027_v34  ;;  %v8392_v33 = vld [vmem:[%s9360_s18 + $0xa94] sm:$0xf0]  ;;  %v7931_v34 = vld [vmem:[%s9360_s18 + $0xb10] sm:$0xf] }
 0x241   : > { %6017 = vmatpush.bf16.msra.mxu3 %v7740_v41  ;;  %v8382_v41 = vld [vmem:[%s9360_s18 + $0xa44] sm:$0xf0]  ;;  %v8408_v35 = vld [vmem:[%s9360_s18 + $0xb14] sm:$0xf0] }
 0x242   : > { %5979 = vmatpush.bf16.msra.mxu0 %v7540_v52  ;;  %v8430_v52 = vld [vmem:[%s9360_s18 + $0xbc4] sm:$0xf0]  ;;  %v7828_v53 = vor.u32 %v8382_v41, %v7827_v40  ;;  %v7795_v40 = vld [vmem:[%s9360_s18 + $0xa00] sm:$0xf]  ;;  %v7932_v44 = vor.u32 %v8408_v35, %v7931_v34  ;;  %v8113_v34 = vld [vmem:[%s9360_s18 + $0x1e4] sm:$0xf] }
 0x243   : > { %5992 = vmatpush.bf16.msra.mxu1 %v7604_v56  ;;  %v7819_v56 = vld [vmem:[%s9360_s18 + $0xa30] sm:$0xf]  ;;  %v8020_v59 = vor.u32 %v8430_v52, %v8019_v47  ;;  %v8374_v41 = vld [vmem:[%s9360_s18 + $0xa04] sm:$0xf0]  ;;  %v7923_v47 = vld [vmem:[%s9360_s18 + $0xb00] sm:$0xf] }
 0x244   : > { %6005 = vmatpush.bf16.msra.mxu2 %v7668_v57  ;;  %v8380_v57 = vld [vmem:[%s9360_s18 + $0xa34] sm:$0xf0]  ;;  %v6757_v35 = vld [vmem:[%s9360_s18 + $0x1e8] sm:$0xf0] }
 0x245   : > { %6018 = vmatpush.bf16.msra.mxu3 %v7732_v60  ;;  %5980 = vmatmul.bf16.vlgmr.msra.gmra.mxu0 %v3812_v11  ;;  %v8396_v60 = vld [vmem:[%s9360_s18 + $0xab4] sm:$0xf0]  ;;  %v7820_v5 = vor.u32 %v8380_v57, %v7819_v56  ;;  %v8394_v11 = vld [vmem:[%s9360_s18 + $0xaa4] sm:$0xf0]  ;;  %v7987_v56 = vld [vmem:[%s9360_s18 + $0xb80] sm:$0xf] }
 0x246   : > { %6024 = vmatpush.bf16.msrb.mxu0 %v7852_v61  ;;  %5993 = vmatmul.bf16.vlgmr.msra.gmra.mxu1 %v3813_v16  ;;  %v7947_v61 = vld [vmem:[%s9360_s18 + $0xb30] sm:$0xf]  ;;  %v3784_v16 = vld [vmem:[%s9354_s14] sm:$0x3]  ;;  %v7876_v24 = vor.u32 %v8394_v11, %v7875_v10  ;;  %v8422_v57 = vld [vmem:[%s9360_s18 + $0xb84] sm:$0xf0] }
 0x247   : > { %6037 = vmatpush.bf16.msrb.mxu1 %v7916_v63  ;;  %6006 = vmatmul.bf16.vlgmr.msra.gmra.mxu2 %v3814_v15  ;;  %v8412_v63 = vld [vmem:[%s9360_s18 + $0xb34] sm:$0xf0]  ;;  %v8410_v15 = vld [vmem:[%s9360_s18 + $0xb24] sm:$0xf0]  ;;  %v3786_v28 = vperm.slane %v3784_v16, 0  ;;  %v7988_v11 = vor.u32 %v8422_v57, %v7987_v56 }
 0x248   : > { %6050 = vmatpush.bf16.msrb.mxu2 %v7980_v0  ;;  %6019 = vmatmul.bf16.vlgmr.msra.gmra.mxu3 %v3815_v20  ;;  %v8011_v0 = vld [vmem:[%s9360_s18 + $0xbb0] sm:$0xf]  ;;  %v7948_v8 = vor.u32 %v8412_v63, %v7947_v61  ;;  %v8003_v20 = vld [vmem:[%s9360_s18 + $0xba0] sm:$0xf]  ;;  %v7940_v25 = vor.u32 %v8410_v15, %v7939_v13  ;;  %v5773_v42 = vpop.f32.mrf.mxu0  ;;  %v7796_v63 = vor.u32 %v8374_v41, %v7795_v40  ;;  %v3819_v40 = vld [vmem:[#allocation1 + $0x3f] sm:$0xff] }
 0x249   : > { %6063 = vmatpush.bf16.msrb.mxu3 %v8044_v7  ;;  %v7884_v7 = vor.u32 %v8396_v60, %v7883_v58  ;;  %v8012_v12 = vor.u32 %v8428_v1, %v8011_v0  ;;  %v5774_v52 = vadd.f32 %v5773_v42, %v3786_v28  ;;  %v8067_v58 = vld [vmem:[%s9360_s18 + $0x74] sm:$0xf]  ;;  %v6637_v0 = vld [vmem:[%s9360_s18 + $0xf8] sm:$0xf0] }
 0x24a   : > { %6025 = vmatpush.bf16.msrb.mxu0 %v7844_v21  ;;  %v8426_v21 = vld [vmem:[%s9360_s18 + $0xba4] sm:$0xf0]  ;;  %v8083_v60 = vld [vmem:[%s9360_s18 + $0xf4] sm:$0xf]  ;;  %v6749_v56 = vld [vmem:[%s9360_s18 + $0x1d8] sm:$0xf0] }
 0x24b   : > { %6038 = vmatpush.bf16.msrb.mxu1 %v7908_v22  ;;  %v7812_v22 = vor.u32 %v8378_v9, %v7811_v6  ;;  %v8004_v32 = vor.u32 %v8426_v21, %v8003_v20  ;;  %v8099_v1 = vld [vmem:[%s9360_s18 + $0x174] sm:$0xf]  ;;  %v7860_v6 = vor.u32 %v8390_v46, %v7859_v45  ;;  %v6765_v9 = vld [vmem:[%s9360_s18 + $0x1f8] sm:$0xf0]  ;;  %v6640_v16 = vor.u32 %v8083_v60, %v6637_v0  ;;  %v8065_v21 = vld [vmem:[%s9360_s18 + $0x64] sm:$0xf] }
 0x24c   : > { %6051 = vmatpush.bf16.msrb.mxu2 %v7972_v23  ;;  %v7803_v23 = vld [vmem:[%s9360_s18 + $0xa10] sm:$0xf]  ;;  %v6557_v45 = vld [vmem:[%s9360_s18 + $0x58] sm:$0xf0]  ;;  %v8079_v46 = vld [vmem:[%s9360_s18 + $0xd4] sm:$0xf] }
 0x24d   : > { %6064 = vmatpush.bf16.msrb.mxu3 %v8036_v27  ;;  %v7867_v27 = vld [vmem:[%s9360_s18 + $0xa90] sm:$0xf]  ;;  %v5799_v10 = vpop.f32.mrf.mxu2  ;;  %v6549_v0 = vld [vmem:[%s9360_s18 + $0x48] sm:$0xf0] }
 0x24e   : > { %6026 = vmatpush.bf16.msrb.mxu0 %v7836_v37  ;;  %v7995_v37 = vld [vmem:[%s9360_s18 + $0xb90] sm:$0xf] }
 0x24f   : > { %6039 = vmatpush.bf16.msrb.mxu1 %v7900_v38  ;;  %v8424_v38 = vld [vmem:[%s9360_s18 + $0xb94] sm:$0xf0]  ;;  %v5812_v15 = vpop.f32.mrf.mxu3 }
 0x250   : > { %6052 = vmatpush.bf16.msrb.mxu2 %v7964_v39  ;;  %v7804_v39 = vor.u32 %v8376_v26, %v7803_v23  ;;  %v8081_v23 = vld [vmem:[%s9360_s18 + $0xe4] sm:$0xf] }
 0x251   : > { %6065 = vmatpush.bf16.msrb.mxu3 %v8028_v43  ;;  %v7868_v43 = vor.u32 %v8392_v33, %v7867_v27  ;;  %v8097_v26 = vld [vmem:[%s9360_s18 + $0x164] sm:$0xf]  ;;  %v6693_v27 = vld [vmem:[%s9360_s18 + $0x168] sm:$0xf0]  ;;  %v3816_v33 = vld [vmem:[#allocation1 + $0x24] sm:$0xff] }
 0x252   : > { %6027 = vmatpush.bf16.msrb.mxu0 %v7828_v53  ;;  %v5786_v53 = vpop.f32.mrf.mxu1 }
 0x253   : > { %6040 = vmatpush.bf16.msrb.mxu1 %v7892_v54  ;;  %v7996_v54 = vor.u32 %v8424_v38, %v7995_v37  ;;  %v5787_v61 = vadd.f32 %v5786_v53, %v5774_v52  ;;  %v3818_v38 = vld [vmem:[#allocation1 + $0x36] sm:$0xff]  ;;  %v6621_v52 = vld [vmem:[%s9360_s18 + $0xd8] sm:$0xf0]  ;;  %v8095_v53 = vld [vmem:[%s9360_s18 + $0x154] sm:$0xf] }
 0x254   : > { %6053 = vmatpush.bf16.msrb.mxu2 %v7956_v55  ;;  %v8406_v55 = vld [vmem:[%s9360_s18 + $0xb04] sm:$0xf0]  ;;  %v6624_v60 = vor.u32 %v8079_v46, %v6621_v52  ;;  %v8105_v52 = vld [vmem:[%s9360_s18 + $0x1a4] sm:$0xf] }
 0x255   : > { %6066 = vmatpush.bf16.msrb.mxu3 %v8020_v59  ;;  %v6573_v59 = vld [vmem:[%s9360_s18 + $0x78] sm:$0xf0]  ;;  %v5800_v13 = vadd.f32 %v5799_v10, %v5787_v61  ;;  %v5801_v57 = vpop.f32.mrf.mxu2  ;;  %v6741_v10 = vld [vmem:[%s9360_s18 + $0x1c8] sm:$0xf0] }
 0x256   : > { %6028 = vmatpush.bf16.msrb.mxu0 %v7820_v5  ;;  %v6701_v5 = vld [vmem:[%s9360_s18 + $0x178] sm:$0xf0] }
 0x257   : > { %6041 = vmatpush.bf16.msrb.mxu1 %v7884_v7  ;;  %v7924_v7 = vor.u32 %v8406_v55, %v7923_v47  ;;  %v6704_v20 = vor.u32 %v8099_v1, %v6701_v5  ;;  %v5813_v28 = vadd.f32 %v5812_v15, %v5800_v13  ;;  %v6760_v47 = vor.u32 %v8113_v34, %v6757_v35  ;;  %v8111_v55 = vld [vmem:[%s9360_s18 + $0x1d4] sm:$0xf]  ;;  %v8077_v1 = vld [vmem:[%s9360_s18 + $0xc4] sm:$0xf] }
 0x258   : > { %6054 = vmatpush.bf16.msrb.mxu2 %v7948_v8  ;;  %v8115_v8 = vld [vmem:[%s9360_s18 + $0x1f4] sm:$0xf]  ;;  %v6752_v5 = vor.u32 %v8111_v55, %v6749_v56 }
 0x259   : > { %6067 = vmatpush.bf16.msrb.mxu3 %v8012_v12  ;;  %v6576_v12 = vor.u32 %v8067_v58, %v6573_v59  ;;  %v5814_v59 = vpop.f32.mrf.mxu3 }
 0x25a   : > { %6029 = vmatpush.bf16.msrb.mxu0 %v7812_v22  ;;  %v6565_v22 = vld [vmem:[%s9360_s18 + $0x68] sm:$0xf0]  ;;  %v5788_v37 = vpop.f32.mrf.mxu1  ;;  %v8055_v59 = vld [vmem:[%s9360_s18 + $0x14] sm:$0xf] }
 0x25b   : > { %6042 = vmatpush.bf16.msrb.mxu1 %v7876_v24  ;;  %v6768_v24 = vor.u32 %v8115_v8, %v6765_v9  ;;  %v6568_v41 = vor.u32 %v8065_v21, %v6565_v22  ;;  %v6677_v8 = vld [vmem:[%s9360_s18 + $0x148] sm:$0xf0]  ;;  %v8109_v9 = vld [vmem:[%s9360_s18 + $0x1c4] sm:$0xf]  ;;  %v8075_v21 = vld [vmem:[%s9360_s18 + $0xb4] sm:$0xf] }
 0x25c   : > { %6055 = vmatpush.bf16.msrb.mxu2 %v7940_v25  ;;  %v6629_v25 = vld [vmem:[%s9360_s18 + $0xe8] sm:$0xf0] }
 0x25d   : > { %6068 = vmatpush.bf16.msrb.mxu3 %v8004_v32  ;;  %v5775_v32 = vpop.f32.mrf.mxu0  ;;  %v6632_v42 = vor.u32 %v8081_v23, %v6629_v25  ;;  %v6605_v25 = vld [vmem:[%s9360_s18 + $0xb8] sm:$0xf0] }
 0x25e   : > { %6030 = vmatpush.bf16.msrb.mxu0 %v7804_v39  ;;  %v3817_v39 = vld [vmem:[#allocation1 + $0x2d] sm:$0xff]  ;;  %v8107_v32 = vld [vmem:[%s9360_s18 + $0x1b4] sm:$0xf] }
 0x25f   : > { %6043 = vmatpush.bf16.msrb.mxu1 %v7868_v43  ;;  %v6696_v43 = vor.u32 %v8097_v26, %v6693_v27  ;;  %v8091_v26 = vld [vmem:[%s9360_s18 + $0x134] sm:$0xf]  ;;  %v6669_v27 = vld [vmem:[%s9360_s18 + $0x138] sm:$0xf0] }
 0x260   : > { %6056 = vmatpush.bf16.msrb.mxu2 %v7932_v44  ;;  %v8063_v44 = vld [vmem:[%s9360_s18 + $0x54] sm:$0xf]  ;;  %v6672_v37 = vor.u32 %v8091_v26, %v6669_v27 }
 0x261   : > { %6069 = vmatpush.bf16.msrb.mxu3 %v7996_v54  ;;  %v6685_v54 = vld [vmem:[%s9360_s18 + $0x158] sm:$0xf0]  ;;  %v6560_v58 = vor.u32 %v8063_v44, %v6557_v45  ;;  %v8089_v44 = vld [vmem:[%s9360_s18 + $0x124] sm:$0xf]  ;;  %v6661_v45 = vld [vmem:[%s9360_s18 + $0x128] sm:$0xf0] }
 0x262   : > { %6031 = vmatpush.bf16.msrb.mxu0 %v7796_v63  ;;  %v6688_v61 = vor.u32 %v8095_v53, %v6685_v54  ;;  %v8061_v63 = vld [vmem:[%s9360_s18 + $0x44] sm:$0xf]  ;;  %v6725_v53 = vld [vmem:[%s9360_s18 + $0x1a8] sm:$0xf0]  ;;  %v8131_v27 = vld [vmem:[%s9360_s18 + $0x274] sm:$0xf] }
 0x263   : > { %6044 = vmatpush.bf16.msrb.mxu1 %v7860_v6  ;;  %v6613_v6 = vld [vmem:[%s9360_s18 + $0xc8] sm:$0xf0]  ;;  %v5838_v23 = vpop.f32.mrf.mxu1 }
 0x264   : > { %6057 = vmatpush.bf16.msrb.mxu2 %v7924_v7  ;;  %v8093_v7 = vld [vmem:[%s9360_s18 + $0x144] sm:$0xf]  ;;  %v6616_v13 = vor.u32 %v8077_v1, %v6613_v6  ;;  %v6589_v1 = vld [vmem:[%s9360_s18 + $0x98] sm:$0xf0] }
 0x265   : > { %6070 = vmatpush.bf16.msrb.mxu3 %v7988_v11  ;;  %6032 = vmatmul.bf16.vlgmr.msrb.gmra.mxu0 %v3816_v33  ;;  %v6552_v11 = vor.u32 %v8061_v63, %v6549_v0  ;;  %v6680_v15 = vor.u32 %v8093_v7, %v6677_v8  ;;  %v6733_v33 = vld [vmem:[%s9360_s18 + $0x1b8] sm:$0xf0]  ;;  %v6728_v0 = vor.u32 %v8105_v52, %v6725_v53  ;;  %v8103_v7 = vld [vmem:[%s9360_s18 + $0x194] sm:$0xf]  ;;  %v8145_v52 = vld [vmem:[%s9360_s18 + $0x2e4] sm:$0xf] }
 0x266   : > { %6076 = vmatpush.bf16.msra.mxu0 %v6576_v12  ;;  %6045 = vmatmul.bf16.vlgmr.msrb.gmra.mxu1 %v3817_v39  ;;  %v5825_v12 = vpop.f32.mrf.mxu0  ;;  %v6533_v39 = vld [vmem:[%s9360_s18 + $0x28] sm:$0xf0]  ;;  %v6653_v6 = vld [vmem:[%s9360_s18 + $0x118] sm:$0xf0] }
 0x267   : > { %6089 = vmatpush.bf16.msra.mxu1 %v6640_v16  ;;  %6058 = vmatmul.bf16.vlgmr.msrb.gmra.mxu2 %v3818_v38  ;;  %v8059_v16 = vld [vmem:[%s9360_s18 + $0x34] sm:$0xf]  ;;  %v5826_v22 = vadd.f32 %v5825_v12, %v5813_v28  ;;  %v6608_v28 = vor.u32 %v8075_v21, %v6605_v25  ;;  %v8057_v38 = vld [vmem:[%s9360_s18 + $0x24] sm:$0xf]  ;;  %v6717_v8 = vld [vmem:[%s9360_s18 + $0x198] sm:$0xf0] }
 0x268   : > { %6102 = vmatpush.bf16.msra.mxu2 %v6704_v20  ;;  %6071 = vmatmul.bf16.vlgmr.msrb.gmra.mxu3 %v3819_v40  ;;  %v6541_v20 = vld [vmem:[%s9360_s18 + $0x38] sm:$0xf0]  ;;  %v8073_v40 = vld [vmem:[%s9360_s18 + $0xa4] sm:$0xf]  ;;  %v6536_v54 = vor.u32 %v8057_v38, %v6533_v39  ;;  %v6709_v25 = vld [vmem:[%s9360_s18 + $0x188] sm:$0xf0] }
 0x269   : > { %6115 = vmatpush.bf16.msra.mxu3 %v6768_v24  ;;  %v6744_v24 = vor.u32 %v8109_v9, %v6741_v10  ;;  %v5839_v34 = vadd.f32 %v5838_v23, %v5826_v22  ;;  %v6544_v35 = vor.u32 %v8059_v16, %v6541_v20  ;;  %v8053_v10 = vld [vmem:[%s9360_s18 + $0x4] sm:$0xf]  ;;  %v6581_v16 = vld [vmem:[%s9360_s18 + $0x88] sm:$0xf0]  ;;  %v6720_v22 = vor.u32 %v8103_v7, %v6717_v8  ;;  %v6877_v7 = vld [vmem:[%s9360_s18 + $0x2d8] sm:$0xf0] }
 0x26a   : > { %6077 = vmatpush.bf16.msra.mxu0 %v6568_v41  ;;  %v5851_v41 = vpop.f32.mrf.mxu2  ;;  %v8085_v20 = vld [vmem:[%s9360_s18 + $0x104] sm:$0xf]  ;;  %v6645_v23 = vld [vmem:[%s9360_s18 + $0x108] sm:$0xf0]  ;;  %v8159_v8 = vld [vmem:[%s9360_s18 + $0x354] sm:$0xf] }
 0x26b   : > { %6090 = vmatpush.bf16.msra.mxu1 %v6632_v42  ;;  %v6736_v42 = vor.u32 %v8107_v32, %v6733_v33  ;;  %v5852_v46 = vadd.f32 %v5851_v41, %v5839_v34  ;;  %v5840_v63 = vpop.f32.mrf.mxu1  ;;  %v6829_v32 = vld [vmem:[%s9360_s18 + $0x278] sm:$0xf0]  ;;  %v8147_v33 = vld [vmem:[%s9360_s18 + $0x2f4] sm:$0xf]  ;;  %v6648_v39 = vor.u32 %v8085_v20, %v6645_v23  ;;  %v8141_v20 = vld [vmem:[%s9360_s18 + $0x2c4] sm:$0xf] }
 0x26c   : > { %6103 = vmatpush.bf16.msra.mxu2 %v6696_v43  ;;  %v6597_v43 = vld [vmem:[%s9360_s18 + $0xa8] sm:$0xf0]  ;;  %v7021_v41 = vld [vmem:[%s9360_s18 + $0x3f8] sm:$0xf0] }
 0x26d   : > { %6116 = vmatpush.bf16.msra.mxu3 %v6760_v47  ;;  %v5864_v47 = vpop.f32.mrf.mxu3  ;;  %v6600_v57 = vor.u32 %v8073_v40, %v6597_v43  ;;  %v8179_v40 = vld [vmem:[%s9360_s18 + $0x3f4] sm:$0xf]  ;;  %v6832_v43 = vor.u32 %v8131_v27, %v6829_v32 }
 0x26e   : > { %6078 = vmatpush.bf16.msra.mxu0 %v6560_v58  ;;  %v9853_v55 = vadd.f32 %v5864_v47, %v5852_v46  ;;  %v5827_v56 = vpop.f32.mrf.mxu0  ;;  %v6664_v58 = vor.u32 %v8089_v44, %v6661_v45  ;;  %v8129_v46 = vld [vmem:[%s9360_s18 + $0x264] sm:$0xf]  ;;  %v6821_v47 = vld [vmem:[%s9360_s18 + $0x268] sm:$0xf0]  ;;  %v7024_v53 = vor.u32 %v8179_v40, %v7021_v41  ;;  %v8155_v40 = vld [vmem:[%s9360_s18 + $0x334] sm:$0xf] }
 0x26f   : > { %6091 = vmatpush.bf16.msra.mxu1 %v6624_v60  ;;  %v6525_v60 = vld [vmem:[%s9360_s18 + $0x18] sm:$0xf0]  ;;  %v8161_v56 = vld [vmem:[%s9360_s18 + $0x364] sm:$0xf]  ;;  %v8171_v41 = vld [vmem:[%s9360_s18 + $0x3b4] sm:$0xf] }
 0x270   : > { %6104 = vmatpush.bf16.msra.mxu2 %v6688_v61  ;;  %v8071_v61 = vld [vmem:[%s9360_s18 + $0x94] sm:$0xf]  ;;  %v6528_v9 = vor.u32 %v8055_v59, %v6525_v60  ;;  %v7013_v59 = vld [vmem:[%s9360_s18 + $0x3e8] sm:$0xf0]  ;;  %v6824_v60 = vor.u32 %v8129_v46, %v6821_v47  ;;  %v8121_v46 = vld [vmem:[%s9360_s18 + $0x224] sm:$0xf] }
 0x271   : > { %6117 = vmatpush.bf16.msra.mxu3 %v6752_v5  ;;  %v8087_v5 = vld [vmem:[%s9360_s18 + $0x114] sm:$0xf]  ;;  %v6592_v12 = vor.u32 %v8071_v61, %v6589_v1  ;;  %v6813_v1 = vld [vmem:[%s9360_s18 + $0x258] sm:$0xf0]  ;;  %v6789_v47 = vld [vmem:[%s9360_s18 + $0x228] sm:$0xf0] }
 0x272   : > { %6079 = vmatpush.bf16.msra.mxu0 %v6552_v11  ;;  %v6517_v11 = vld [vmem:[%s9360_s18 + $0x8] sm:$0xf0]  ;;  %v5853_v21 = vpop.f32.mrf.mxu2 }
 0x273   : > { %6092 = vmatpush.bf16.msra.mxu1 %v6616_v13  ;;  %v6656_v13 = vor.u32 %v8087_v5, %v6653_v6  ;;  %v6520_v34 = vor.u32 %v8053_v10, %v6517_v11  ;;  %v8143_v5 = vld [vmem:[%s9360_s18 + $0x2d4] sm:$0xf]  ;;  %v7005_v11 = vld [vmem:[%s9360_s18 + $0x3d8] sm:$0xf0] }
 0x274   : > { %6105 = vmatpush.bf16.msra.mxu2 %v6680_v15  ;;  %v8069_v15 = vld [vmem:[%s9360_s18 + $0x84] sm:$0xf]  ;;  %v8175_v10 = vld [vmem:[%s9360_s18 + $0x3d4] sm:$0xf] }
 0x275   : > { %6118 = vmatpush.bf16.msra.mxu3 %v6744_v24  ;;  %v8101_v24 = vld [vmem:[%s9360_s18 + $0x184] sm:$0xf]  ;;  %v5866_v26 = vpop.f32.mrf.mxu3  ;;  %v6584_v38 = vor.u32 %v8069_v15, %v6581_v16  ;;  %v6805_v16 = vld [vmem:[%s9360_s18 + $0x248] sm:$0xf0]  ;;  %v7008_v21 = vor.u32 %v8175_v10, %v7005_v11  ;;  %v6781_v10 = vld [vmem:[%s9360_s18 + $0x218] sm:$0xf0] }
 0x276   : > { %6080 = vmatpush.bf16.msra.mxu0 %v6544_v35  ;;  %v6893_v35 = vld [vmem:[%s9360_s18 + $0x2f8] sm:$0xf0]  ;;  %v8135_v11 = vld [vmem:[%s9360_s18 + $0x294] sm:$0xf] }
 0x277   : > { %6093 = vmatpush.bf16.msra.mxu1 %v6608_v28  ;;  %v8163_v28 = vld [vmem:[%s9360_s18 + $0x374] sm:$0xf]  ;;  %v6896_v44 = vor.u32 %v8147_v33, %v6893_v35  ;;  %v6797_v35 = vld [vmem:[%s9360_s18 + $0x238] sm:$0xf0] }
 0x278   : > { %6106 = vmatpush.bf16.msra.mxu2 %v6672_v37  ;;  %v6957_v37 = vld [vmem:[%s9360_s18 + $0x378] sm:$0xf0] }
 0x279   : > { %6119 = vmatpush.bf16.msra.mxu3 %v6736_v42  ;;  %v6712_v42 = vor.u32 %v8101_v24, %v6709_v25  ;;  %v6960_v45 = vor.u32 %v8163_v28, %v6957_v37  ;;  %v8173_v24 = vld [vmem:[%s9360_s18 + $0x3c4] sm:$0xf]  ;;  %v6997_v25 = vld [vmem:[%s9360_s18 + $0x3c8] sm:$0xf0]  ;;  %v8139_v28 = vld [vmem:[%s9360_s18 + $0x2b4] sm:$0xf] }
 0x27a   : > { %6081 = vmatpush.bf16.msra.mxu0 %v6536_v54  ;;  %v6885_v54 = vld [vmem:[%s9360_s18 + $0x2e8] sm:$0xf0]  ;;  %v7000_v37 = vor.u32 %v8173_v24, %v6997_v25  ;;  %v8133_v24 = vld [vmem:[%s9360_s18 + $0x284] sm:$0xf] }
 0x27b   : > { %6094 = vmatpush.bf16.msra.mxu1 %v6600_v57  ;;  %v6949_v57 = vld [vmem:[%s9360_s18 + $0x368] sm:$0xf0]  ;;  %v6888_v61 = vor.u32 %v8145_v52, %v6885_v54  ;;  %v8137_v52 = vld [vmem:[%s9360_s18 + $0x2a4] sm:$0xf] }
 0x27c   : > { %6107 = vmatpush.bf16.msra.mxu2 %v6664_v58  ;;  %v8177_v58 = vld [vmem:[%s9360_s18 + $0x3e4] sm:$0xf]  ;;  %v6952_v63 = vor.u32 %v8161_v56, %v6949_v57  ;;  %v6853_v56 = vld [vmem:[%s9360_s18 + $0x2a8] sm:$0xf0] }
 0x27d   : > { %6120 = vmatpush.bf16.msra.mxu3 %v6728_v0  ;;  %v8127_v0 = vld [vmem:[%s9360_s18 + $0x254] sm:$0xf]  ;;  %v7016_v6 = vor.u32 %v8177_v58, %v7013_v59  ;;  %v8153_v57 = vld [vmem:[%s9360_s18 + $0x324] sm:$0xf]  ;;  %v6917_v58 = vld [vmem:[%s9360_s18 + $0x328] sm:$0xf0] }
 0x27e   : > { %6082 = vmatpush.bf16.msra.mxu0 %v6528_v9  ;;  %v6941_v9 = vld [vmem:[%s9360_s18 + $0x358] sm:$0xf0]  ;;  %v6837_v25 = vld [vmem:[%s9360_s18 + $0x288] sm:$0xf0] }
 0x27f   : > { %6095 = vmatpush.bf16.msra.mxu1 %v6592_v12  ;;  %v6816_v12 = vor.u32 %v8127_v0, %v6813_v1  ;;  %v6944_v15 = vor.u32 %v8159_v8, %v6941_v9  ;;  %v6792_v1 = vor.u32 %v8121_v46, %v6789_v47  ;;  %v6920_v8 = vor.u32 %v8153_v57, %v6917_v58  ;;  %v8119_v9 = vld [vmem:[%s9360_s18 + $0x214] sm:$0xf]  ;;  %v8209_v57 = vld [vmem:[%s9360_s18 + $0x4e4] sm:$0xf] }
 0x280   : > { %6108 = vmatpush.bf16.msra.mxu2 %v6656_v13  ;;  %v6880_v13 = vor.u32 %v8143_v5, %v6877_v7  ;;  %v6856_v7 = vor.u32 %v8137_v52, %v6853_v56  ;;  %v7077_v56 = vld [vmem:[%s9360_s18 + $0x468] sm:$0xf0] }
 0x281   : > { %6121 = vmatpush.bf16.msra.mxu3 %v6720_v22  ;;  %v6933_v22 = vld [vmem:[%s9360_s18 + $0x348] sm:$0xf0] }
 0x282   : > { %6083 = vmatpush.bf16.msra.mxu0 %v6520_v34  ;;  %v5877_v23 = vpop.f32.mrf.mxu0  ;;  %v8123_v34 = vld [vmem:[%s9360_s18 + $0x234] sm:$0xf] }
 0x283   : > { %6096 = vmatpush.bf16.msra.mxu1 %v6584_v38  ;;  %v5890_v27 = vpop.f32.mrf.mxu1 }
 0x284   : > { %6109 = vmatpush.bf16.msra.mxu2 %v6648_v39  ;;  %v6861_v39 = vld [vmem:[%s9360_s18 + $0x2b8] sm:$0xf0] }
 0x285   : > { %6122 = vmatpush.bf16.msra.mxu3 %v6712_v42  ;;  %6084 = vmatmul.bf16.vlgmr.msra.gmra.mxu0 %v9473_v30  ;;  %v6869_v30 = vld [vmem:[%s9360_s18 + $0x2c8] sm:$0xf0]  ;;  %v6989_v42 = vld [vmem:[%s9360_s18 + $0x3b8] sm:$0xf0] }
 0x286   : > { %6128 = vmatpush.bf16.msrb.mxu0 %v6832_v43  ;;  %6097 = vmatmul.bf16.vlgmr.msra.gmra.mxu1 %v9479_v36  ;;  %v5878_v36 = vadd.f32 %v5877_v23, %v9853_v55  ;;  %v6872_v32 = vor.u32 %v8141_v20, %v6869_v30  ;;  %v6925_v55 = vld [vmem:[%s9360_s18 + $0x338] sm:$0xf0]  ;;  %v6800_v43 = vor.u32 %v8123_v34, %v6797_v35  ;;  %v8117_v30 = vld [vmem:[%s9360_s18 + $0x204] sm:$0xf]  ;;  %v8195_v35 = vld [vmem:[%s9360_s18 + $0x474] sm:$0xf] }
 0x287   : > { %6141 = vmatpush.bf16.msrb.mxu1 %v6896_v44  ;;  %6110 = vmatmul.bf16.vlgmr.msra.gmra.mxu2 %v9471_v29  ;;  %v8125_v29 = vld [vmem:[%s9360_s18 + $0x244] sm:$0xf]  ;;  %v6864_v44 = vor.u32 %v8139_v28, %v6861_v39  ;;  %v6973_v20 = vld [vmem:[%s9360_s18 + $0x398] sm:$0xf0] }
 0x288   : > { %6154 = vmatpush.bf16.msrb.mxu2 %v6960_v45  ;;  %6123 = vmatmul.bf16.vlgmr.msra.gmra.mxu3 %v9475_v31  ;;  %v8157_v31 = vld [vmem:[%s9360_s18 + $0x344] sm:$0xf]  ;;  %v6808_v26 = vor.u32 %v8125_v29, %v6805_v16  ;;  %v5891_v38 = vadd.f32 %v5890_v27, %v5878_v36  ;;  %v6928_v45 = vor.u32 %v8155_v40, %v6925_v55  ;;  %v6909_v29 = vld [vmem:[%s9360_s18 + $0x318] sm:$0xf0]  ;;  %v8167_v16 = vld [vmem:[%s9360_s18 + $0x394] sm:$0xf] }
 0x289   : > { %6167 = vmatpush.bf16.msrb.mxu3 %v7024_v53  ;;  %v6936_v33 = vor.u32 %v8157_v31, %v6933_v22  ;;  %v6992_v53 = vor.u32 %v8171_v41, %v6989_v42  ;;  %v6773_v31 = vld [vmem:[%s9360_s18 + $0x208] sm:$0xf0]  ;;  %v8149_v36 = vld [vmem:[%s9360_s18 + $0x304] sm:$0xf]  ;;  %v7085_v28 = vld [vmem:[%s9360_s18 + $0x478] sm:$0xf0]  ;;  %v6840_v42 = vor.u32 %v8133_v24, %v6837_v25 }
 0x28a   : > { %6129 = vmatpush.bf16.msrb.mxu0 %v6824_v60  ;;  %v5903_v54 = vpop.f32.mrf.mxu2  ;;  %v5879_v0 = vpop.f32.mrf.mxu0  ;;  %v6901_v27 = vld [vmem:[%s9360_s18 + $0x308] sm:$0xf0]  ;;  %v6776_v39 = vor.u32 %v8117_v30, %v6773_v31  ;;  %v7149_v40 = vld [vmem:[%s9360_s18 + $0x4f8] sm:$0xf0]  ;;  %v8227_v55 = vld [vmem:[%s9360_s18 + $0x574] sm:$0xf]  ;;  %v7088_v47 = vor.u32 %v8195_v35, %v7085_v28 }
 0x28b   : > { %6142 = vmatpush.bf16.msrb.mxu1 %v6888_v61  ;;  %v5904_v59 = vadd.f32 %v5903_v54, %v5891_v38  ;;  %v5916_v60 = vpop.f32.mrf.mxu3  ;;  %v8169_v61 = vld [vmem:[%s9360_s18 + $0x3a4] sm:$0xf]  ;;  %v5892_v5 = vpop.f32.mrf.mxu1  ;;  %v7213_v41 = vld [vmem:[%s9360_s18 + $0x578] sm:$0xf0]  ;;  %v7269_v0 = vld [vmem:[%s9360_s18 + $0x5e8] sm:$0xf0] }
 0x28c   : > { %6155 = vmatpush.bf16.msrb.mxu2 %v6952_v63  ;;  %v6981_v63 = vld [vmem:[%s9360_s18 + $0x3a8] sm:$0xf0]  ;;  %v8193_v54 = vld [vmem:[%s9360_s18 + $0x464] sm:$0xf]  ;;  %v8187_v35 = vld [vmem:[%s9360_s18 + $0x434] sm:$0xf] }
 0x28d   : > { %6168 = vmatpush.bf16.msrb.mxu3 %v7016_v6  ;;  %v9924_v6 = vadd.f32 %v5916_v60, %v5904_v59  ;;  %v7141_v59 = vld [vmem:[%s9360_s18 + $0x4e8] sm:$0xf0]  ;;  %v8225_v60 = vld [vmem:[%s9360_s18 + $0x564] sm:$0xf]  ;;  %v7053_v28 = vld [vmem:[%s9360_s18 + $0x438] sm:$0xf0] }
 0x28e   : > { %6130 = vmatpush.bf16.msrb.mxu0 %v6816_v12  ;;  %v6984_v12 = vor.u32 %v8169_v61, %v6981_v63  ;;  %v7205_v61 = vld [vmem:[%s9360_s18 + $0x568] sm:$0xf0]  ;;  %v8241_v63 = vld [vmem:[%s9360_s18 + $0x5e4] sm:$0xf]  ;;  %v7144_v5 = vor.u32 %v8209_v57, %v7141_v59 }
 0x28f   : > { %6143 = vmatpush.bf16.msrb.mxu1 %v6880_v13  ;;  %v6845_v13 = vld [vmem:[%s9360_s18 + $0x298] sm:$0xf0]  ;;  %v8189_v30 = vld [vmem:[%s9360_s18 + $0x444] sm:$0xf]  ;;  %v7061_v31 = vld [vmem:[%s9360_s18 + $0x448] sm:$0xf0] }
 0x290   : > { %6156 = vmatpush.bf16.msrb.mxu2 %v6944_v15  ;;  %v8151_v15 = vld [vmem:[%s9360_s18 + $0x314] sm:$0xf]  ;;  %v6848_v22 = vor.u32 %v8135_v11, %v6845_v13  ;;  %v7272_v11 = vor.u32 %v8241_v63, %v7269_v0  ;;  %v7189_v24 = vld [vmem:[%s9360_s18 + $0x548] sm:$0xf0]  ;;  %v8217_v57 = vld [vmem:[%s9360_s18 + $0x524] sm:$0xf] }
 0x291   : > { %6169 = vmatpush.bf16.msrb.mxu3 %v7008_v21  ;;  %v6784_v21 = vor.u32 %v8119_v9, %v6781_v10  ;;  %v6912_v23 = vor.u32 %v8151_v15, %v6909_v29  ;;  %v7069_v9 = vld [vmem:[%s9360_s18 + $0x458] sm:$0xf0]  ;;  %v8207_v10 = vld [vmem:[%s9360_s18 + $0x4d4] sm:$0xf]  ;;  %v7237_v63 = vld [vmem:[%s9360_s18 + $0x5a8] sm:$0xf0] }
 0x292   : > { %6131 = vmatpush.bf16.msrb.mxu0 %v6808_v26  ;;  %v6976_v26 = vor.u32 %v8167_v16, %v6973_v20  ;;  %v5905_v34 = vpop.f32.mrf.mxu2  ;;  %v8223_v13 = vld [vmem:[%s9360_s18 + $0x554] sm:$0xf]  ;;  %v7197_v15 = vld [vmem:[%s9360_s18 + $0x558] sm:$0xf0] }
 0x293   : > { %6144 = vmatpush.bf16.msrb.mxu1 %v6872_v32  ;;  %v8165_v32 = vld [vmem:[%s9360_s18 + $0x384] sm:$0xf]  ;;  %v5918_v38 = vpop.f32.mrf.mxu3  ;;  %v8239_v29 = vld [vmem:[%s9360_s18 + $0x5d4] sm:$0xf]  ;;  %v7261_v16 = vld [vmem:[%s9360_s18 + $0x5d8] sm:$0xf0] }
 0x294   : > { %6157 = vmatpush.bf16.msrb.mxu2 %v6936_v33  ;;  %v6965_v33 = vld [vmem:[%s9360_s18 + $0x388] sm:$0xf0] }
 0x295   : > { %6170 = vmatpush.bf16.msrb.mxu3 %v7000_v37  ;;  %v8211_v37 = vld [vmem:[%s9360_s18 + $0x4f4] sm:$0xf]  ;;  %v6968_v46 = vor.u32 %v8165_v32, %v6965_v33 }
 0x296   : > { %6132 = vmatpush.bf16.msrb.mxu0 %v6800_v43  ;;  %v6904_v43 = vor.u32 %v8149_v36, %v6901_v27  ;;  %v7152_v52 = vor.u32 %v8211_v37, %v7149_v40  ;;  %v8237_v36 = vld [vmem:[%s9360_s18 + $0x5c4] sm:$0xf]  ;;  %v7064_v27 = vor.u32 %v8189_v30, %v7061_v31  ;;  %v8203_v37 = vld [vmem:[%s9360_s18 + $0x4b4] sm:$0xf]  ;;  %v7117_v40 = vld [vmem:[%s9360_s18 + $0x4b8] sm:$0xf0] }
 0x297   : > { %6145 = vmatpush.bf16.msrb.mxu1 %v6864_v44  ;;  %v8243_v44 = vld [vmem:[%s9360_s18 + $0x5f4] sm:$0xf]  ;;  %v8181_v30 = vld [vmem:[%s9360_s18 + $0x404] sm:$0xf]  ;;  %v7029_v31 = vld [vmem:[%s9360_s18 + $0x408] sm:$0xf0] }
 0x298   : > { %6158 = vmatpush.bf16.msrb.mxu2 %v6928_v45  ;;  %v7277_v45 = vld [vmem:[%s9360_s18 + $0x5f8] sm:$0xf0] }
 0x299   : > { %6171 = vmatpush.bf16.msrb.mxu3 %v6992_v53  ;;  %v7216_v53 = vor.u32 %v8227_v55, %v7213_v41  ;;  %v7280_v58 = vor.u32 %v8243_v44, %v7277_v45  ;;  %v8219_v55 = vld [vmem:[%s9360_s18 + $0x534] sm:$0xf]  ;;  %v7120_v44 = vor.u32 %v8203_v37, %v7117_v40  ;;  %v7405_v37 = vld [vmem:[%s9360_s18 + $0x6f8] sm:$0xf0] }
 0x29a   : > { %6133 = vmatpush.bf16.msrb.mxu0 %v6792_v1  ;;  %v7080_v1 = vor.u32 %v8193_v54, %v7077_v56  ;;  %v8235_v41 = vld [vmem:[%s9360_s18 + $0x5b4] sm:$0xf]  ;;  %v7109_v56 = vld [vmem:[%s9360_s18 + $0x4a8] sm:$0xf0] }
 0x29b   : > { %6146 = vmatpush.bf16.msrb.mxu1 %v6856_v7  ;;  %v7208_v7 = vor.u32 %v8225_v60, %v7205_v61  ;;  %v8233_v61 = vld [vmem:[%s9360_s18 + $0x5a4] sm:$0xf] }
 0x29c   : > { %6159 = vmatpush.bf16.msrb.mxu2 %v6920_v8  ;;  %v8191_v8 = vld [vmem:[%s9360_s18 + $0x454] sm:$0xf] }
 0x29d   : > { %6172 = vmatpush.bf16.msrb.mxu3 %v6984_v12  ;;  %v7133_v12 = vld [vmem:[%s9360_s18 + $0x4d8] sm:$0xf0]  ;;  %v7072_v20 = vor.u32 %v8191_v8, %v7069_v9 }
 0x29e   : > { %6134 = vmatpush.bf16.msrb.mxu0 %v6784_v21  ;;  %v7200_v21 = vor.u32 %v8223_v13, %v7197_v15  ;;  %v7240_v13 = vor.u32 %v8233_v61, %v7237_v63  ;;  %v7101_v15 = vld [vmem:[%s9360_s18 + $0x498] sm:$0xf0] }
 0x29f   : > { %6147 = vmatpush.bf16.msrb.mxu1 %v6848_v22  ;;  %v8205_v22 = vld [vmem:[%s9360_s18 + $0x4c4] sm:$0xf] }
 0x2a0   : > { %6160 = vmatpush.bf16.msrb.mxu2 %v6912_v23  ;;  %v7264_v23 = vor.u32 %v8239_v29, %v7261_v16  ;;  %v8215_v29 = vld [vmem:[%s9360_s18 + $0x514] sm:$0xf]  ;;  %v7165_v16 = vld [vmem:[%s9360_s18 + $0x518] sm:$0xf0] }
 0x2a1   : > { %6173 = vmatpush.bf16.msrb.mxu3 %v6976_v26  ;;  %v7253_v26 = vld [vmem:[%s9360_s18 + $0x5c8] sm:$0xf0] }
 0x2a2   : > { %6135 = vmatpush.bf16.msrb.mxu0 %v6776_v39  ;;  %v5929_v25 = vpop.f32.mrf.mxu0  ;;  %v7256_v38 = vor.u32 %v8237_v36, %v7253_v26  ;;  %v7157_v36 = vld [vmem:[%s9360_s18 + $0x508] sm:$0xf0]  ;;  %v8229_v26 = vld [vmem:[%s9360_s18 + $0x584] sm:$0xf] }
 0x2a3   : > { %6148 = vmatpush.bf16.msrb.mxu1 %v6840_v42  ;;  %v5942_v32 = vpop.f32.mrf.mxu1  ;;  %v7245_v42 = vld [vmem:[%s9360_s18 + $0x5b8] sm:$0xf0] }
 0x2a4   : > { %6161 = vmatpush.bf16.msrb.mxu2 %v6904_v43  ;;  %v7056_v43 = vor.u32 %v8187_v35, %v7053_v28  ;;  %v7032_v28 = vor.u32 %v8181_v30, %v7029_v31  ;;  %v7445_v30 = vld [vmem:[%s9360_s18 + $0x748] sm:$0xf0]  ;;  %v8301_v31 = vld [vmem:[%s9360_s18 + $0x7c4] sm:$0xf] }
 0x2a5   : > { %6174 = vmatpush.bf16.msrb.mxu3 %v6968_v46  ;;  %6136 = vmatmul.bf16.vlgmr.msrb.gmra.mxu0 %v9509_v2  ;;  %v7125_v2 = vld [vmem:[%s9360_s18 + $0x4c8] sm:$0xf0]  ;;  %v8185_v46 = vld [vmem:[%s9360_s18 + $0x424] sm:$0xf] }
 0x2a6   : > { %6180 = vmatpush.bf16.msra.mxu0 %v7088_v47  ;;  %6149 = vmatmul.bf16.vlgmr.msrb.gmra.mxu1 %v9513_v4  ;;  %v5930_v4 = vadd.f32 %v5929_v25, %v9924_v6  ;;  %v7128_v33 = vor.u32 %v8205_v22, %v7125_v2  ;;  %v7181_v6 = vld [vmem:[%s9360_s18 + $0x538] sm:$0xf0]  ;;  %v7045_v47 = vld [vmem:[%s9360_s18 + $0x428] sm:$0xf0]  ;;  %v8197_v2 = vld [vmem:[%s9360_s18 + $0x484] sm:$0xf] }
 0x2a7   : > { %6193 = vmatpush.bf16.msra.mxu1 %v7152_v52  ;;  %6162 = vmatmul.bf16.vlgmr.msrb.gmra.mxu2 %v9504_v62  ;;  %v7136_v62 = vor.u32 %v8207_v10, %v7133_v12  ;;  %v7184_v45 = vor.u32 %v8219_v55, %v7181_v6  ;;  %v8201_v52 = vld [vmem:[%s9360_s18 + $0x4a4] sm:$0xf]  ;;  %v8183_v10 = vld [vmem:[%s9360_s18 + $0x414] sm:$0xf] }
 0x2a8   : > { %6206 = vmatpush.bf16.msra.mxu2 %v7216_v53  ;;  %6175 = vmatmul.bf16.vlgmr.msrb.gmra.mxu3 %v9511_v3  ;;  %v8221_v3 = vld [vmem:[%s9360_s18 + $0x544] sm:$0xf]  ;;  %v5943_v39 = vadd.f32 %v5942_v32, %v5930_v4  ;;  %v7248_v53 = vor.u32 %v8235_v41, %v7245_v42  ;;  %v7112_v8 = vor.u32 %v8201_v52, %v7109_v56  ;;  %v8199_v12 = vld [vmem:[%s9360_s18 + $0x494] sm:$0xf]  ;;  %v7221_v4 = vld [vmem:[%s9360_s18 + $0x588] sm:$0xf0] }
 0x2a9   : > { %6219 = vmatpush.bf16.msra.mxu3 %v7280_v58  ;;  %v7192_v34 = vor.u32 %v8221_v3, %v7189_v24  ;;  %v7173_v58 = vld [vmem:[%s9360_s18 + $0x528] sm:$0xf0]  ;;  %v7104_v22 = vor.u32 %v8199_v12, %v7101_v15  ;;  %v8213_v24 = vld [vmem:[%s9360_s18 + $0x504] sm:$0xf]  ;;  %v8259_v32 = vld [vmem:[%s9360_s18 + $0x674] sm:$0xf]  ;;  %v7224_v42 = vor.u32 %v8229_v26, %v7221_v4 }
 0x2aa   : > { %6181 = vmatpush.bf16.msra.mxu0 %v7080_v1  ;;  %v5955_v54 = vpop.f32.mrf.mxu2  ;;  %v5931_v0 = vpop.f32.mrf.mxu0  ;;  %v7048_v1 = vor.u32 %v8185_v46, %v7045_v47  ;;  %v7176_v9 = vor.u32 %v8217_v57, %v7173_v58  ;;  %v7093_v3 = vld [vmem:[%s9360_s18 + $0x488] sm:$0xf0]  ;;  %v7160_v55 = vor.u32 %v8213_v24, %v7157_v36  ;;  %v8307_v6 = vld [vmem:[%s9360_s18 + $0x7f4] sm:$0xf]  ;;  %v7533_v41 = vld [vmem:[%s9360_s18 + $0x7f8] sm:$0xf0] }
 0x2ab   : > { %6194 = vmatpush.bf16.msra.mxu1 %v7144_v5  ;;  %v5956_v59 = vadd.f32 %v5955_v54, %v5943_v39  ;;  %v5968_v60 = vpop.f32.mrf.mxu3  ;;  %v5944_v5 = vpop.f32.mrf.mxu1  ;;  %v7469_v39 = vld [vmem:[%s9360_s18 + $0x778] sm:$0xf0]  ;;  %v7096_v40 = vor.u32 %v8197_v2, %v7093_v3  ;;  %v8257_v46 = vld [vmem:[%s9360_s18 + $0x664] sm:$0xf]  ;;  %v7333_v47 = vld [vmem:[%s9360_s18 + $0x668] sm:$0xf0] }
 0x2ac   : > { %6207 = vmatpush.bf16.msra.mxu2 %v7208_v7  ;;  %v8273_v52 = vld [vmem:[%s9360_s18 + $0x6e4] sm:$0xf]  ;;  %v7397_v54 = vld [vmem:[%s9360_s18 + $0x6e8] sm:$0xf0]  ;;  %v8255_v0 = vld [vmem:[%s9360_s18 + $0x654] sm:$0xf] }
 0x2ad   : > { %6220 = vmatpush.bf16.msra.mxu3 %v7272_v11  ;;  %v9995_v7 = vadd.f32 %v5968_v60, %v5956_v59  ;;  %v7037_v11 = vld [vmem:[%s9360_s18 + $0x418] sm:$0xf0]  ;;  %v8289_v56 = vld [vmem:[%s9360_s18 + $0x764] sm:$0xf]  ;;  %v7461_v57 = vld [vmem:[%s9360_s18 + $0x768] sm:$0xf0]  ;;  %v7336_v60 = vor.u32 %v8257_v46, %v7333_v47  ;;  %v7400_v61 = vor.u32 %v8273_v52, %v7397_v54 }
 0x2ae   : > { %6182 = vmatpush.bf16.msra.mxu0 %v7072_v20  ;;  %v8231_v20 = vld [vmem:[%s9360_s18 + $0x594] sm:$0xf]  ;;  %v8305_v58 = vld [vmem:[%s9360_s18 + $0x7e4] sm:$0xf]  ;;  %v7525_v59 = vld [vmem:[%s9360_s18 + $0x7e8] sm:$0xf0]  ;;  %v7464_v63 = vor.u32 %v8289_v56, %v7461_v57 }
 0x2af   : > { %6195 = vmatpush.bf16.msra.mxu1 %v7136_v62  ;;  %v7229_v62 = vld [vmem:[%s9360_s18 + $0x598] sm:$0xf0]  ;;  %v8271_v5 = vld [vmem:[%s9360_s18 + $0x6d4] sm:$0xf]  ;;  %v8297_v52 = vld [vmem:[%s9360_s18 + $0x7a4] sm:$0xf] }
 0x2b0   : > { %6208 = vmatpush.bf16.msra.mxu2 %v7200_v21  ;;  %v7040_v21 = vor.u32 %v8183_v10, %v7037_v11  ;;  %v7232_v25 = vor.u32 %v8231_v20, %v7229_v62  ;;  %v8287_v10 = vld [vmem:[%s9360_s18 + $0x754] sm:$0xf]  ;;  %v7453_v11 = vld [vmem:[%s9360_s18 + $0x758] sm:$0xf0]  ;;  %v7317_v20 = vld [vmem:[%s9360_s18 + $0x648] sm:$0xf0] }
 0x2b1   : > { %6221 = vmatpush.bf16.msra.mxu3 %v7264_v23  ;;  %v7168_v23 = vor.u32 %v8215_v29, %v7165_v16  ;;  %v8303_v12 = vld [vmem:[%s9360_s18 + $0x7d4] sm:$0xf]  ;;  %v7456_v29 = vor.u32 %v8287_v10, %v7453_v11  ;;  %v8253_v16 = vld [vmem:[%s9360_s18 + $0x644] sm:$0xf]  ;;  %v7381_v62 = vld [vmem:[%s9360_s18 + $0x6c8] sm:$0xf0] }
 0x2b2   : > { %6183 = vmatpush.bf16.msra.mxu0 %v7064_v27  ;;  %v5957_v27 = vpop.f32.mrf.mxu2  ;;  %v7320_v2 = vor.u32 %v8253_v16, %v7317_v20  ;;  %v8251_v36 = vld [vmem:[%s9360_s18 + $0x634] sm:$0xf]  ;;  %v7309_v26 = vld [vmem:[%s9360_s18 + $0x638] sm:$0xf0]  ;;  %v8261_v16 = vld [vmem:[%s9360_s18 + $0x684] sm:$0xf] }
 0x2b3   : > { %6196 = vmatpush.bf16.msra.mxu1 %v7128_v33  ;;  %v7341_v33 = vld [vmem:[%s9360_s18 + $0x678] sm:$0xf0]  ;;  %v5970_v35 = vpop.f32.mrf.mxu3  ;;  %v8267_v4 = vld [vmem:[%s9360_s18 + $0x6b4] sm:$0xf]  ;;  %v7349_v20 = vld [vmem:[%s9360_s18 + $0x688] sm:$0xf0] }
 0x2b4   : > { %6209 = vmatpush.bf16.msra.mxu2 %v7192_v34  ;;  %v8275_v34 = vld [vmem:[%s9360_s18 + $0x6f4] sm:$0xf]  ;;  %v7485_v11 = vld [vmem:[%s9360_s18 + $0x798] sm:$0xf0] }
 0x2b5   : > { %6222 = vmatpush.bf16.msra.mxu3 %v7256_v38  ;;  %v8291_v38 = vld [vmem:[%s9360_s18 + $0x774] sm:$0xf] }
 0x2b6   : > { %6184 = vmatpush.bf16.msra.mxu0 %v7056_v43  ;;  %v7344_v43 = vor.u32 %v8259_v32, %v7341_v33  ;;  %v7373_v33 = vld [vmem:[%s9360_s18 + $0x6b8] sm:$0xf0]  ;;  %v8299_v35 = vld [vmem:[%s9360_s18 + $0x7b4] sm:$0xf] }
 0x2b7   : > { %6197 = vmatpush.bf16.msra.mxu1 %v7120_v44  ;;  %v7408_v44 = vor.u32 %v8275_v34, %v7405_v37  ;;  %v8283_v34 = vld [vmem:[%s9360_s18 + $0x734] sm:$0xf]  ;;  %v7312_v37 = vor.u32 %v8251_v36, %v7309_v26  ;;  %v7725_v36 = vld [vmem:[%s9360_s18 + $0x978] sm:$0xf0]  ;;  %v7352_v26 = vor.u32 %v8261_v16, %v7349_v20 }
 0x2b8   : > { %6210 = vmatpush.bf16.msra.mxu2 %v7184_v45  ;;  %v7472_v45 = vor.u32 %v8291_v38, %v7469_v39  ;;  %v7376_v38 = vor.u32 %v8267_v4, %v7373_v33  ;;  %v8295_v10 = vld [vmem:[%s9360_s18 + $0x794] sm:$0xf]  ;;  %v7565_v20 = vld [vmem:[%s9360_s18 + $0x838] sm:$0xf0] }
 0x2b9   : > { %6223 = vmatpush.bf16.msra.mxu3 %v7248_v53  ;;  %v7536_v53 = vor.u32 %v8307_v6, %v7533_v41  ;;  %v8265_v6 = vld [vmem:[%s9360_s18 + $0x6a4] sm:$0xf]  ;;  %v8315_v16 = vld [vmem:[%s9360_s18 + $0x834] sm:$0xf] }
 0x2ba   : > { %6185 = vmatpush.bf16.msra.mxu0 %v7048_v1  ;;  %v7325_v1 = vld [vmem:[%s9360_s18 + $0x658] sm:$0xf0] }
 0x2bb   : > { %6198 = vmatpush.bf16.msra.mxu1 %v7112_v8  ;;  %v7528_v8 = vor.u32 %v8305_v58, %v7525_v59 }
 0x2bc   : > { %6211 = vmatpush.bf16.msra.mxu2 %v7176_v9  ;;  %v7389_v9 = vld [vmem:[%s9360_s18 + $0x6d8] sm:$0xf0] }
 0x2bd   : > { %6224 = vmatpush.bf16.msra.mxu3 %v7240_v13  ;;  %v7517_v13 = vld [vmem:[%s9360_s18 + $0x7d8] sm:$0xf0]  ;;  %v7392_v15 = vor.u32 %v8271_v5, %v7389_v9 }
 0x2be   : > { %6186 = vmatpush.bf16.msra.mxu0 %v7040_v21  ;;  %v8285_v21 = vld [vmem:[%s9360_s18 + $0x744] sm:$0xf]  ;;  %v7357_v5 = vld [vmem:[%s9360_s18 + $0x698] sm:$0xf0] }
 0x2bf   : > { %6199 = vmatpush.bf16.msra.mxu1 %v7104_v22  ;;  %v7509_v22 = vld [vmem:[%s9360_s18 + $0x7c8] sm:$0xf0]  ;;  %v7421_v9 = vld [vmem:[%s9360_s18 + $0x718] sm:$0xf0] }
 0x2c0   : > { %6212 = vmatpush.bf16.msra.mxu2 %v7168_v23  ;;  %v7512_v27 = vor.u32 %v8301_v31, %v7509_v22  ;;  %v8323_v31 = vld [vmem:[%s9360_s18 + $0x874] sm:$0xf]  ;;  %v7597_v22 = vld [vmem:[%s9360_s18 + $0x878] sm:$0xf0] }
 0x2c1   : > { %6225 = vmatpush.bf16.msra.mxu3 %v7232_v25  ;;  %v7448_v25 = vor.u32 %v8285_v21, %v7445_v30  ;;  %v8293_v21 = vld [vmem:[%s9360_s18 + $0x784] sm:$0xf]  ;;  %v7477_v30 = vld [vmem:[%s9360_s18 + $0x788] sm:$0xf0] }
 0x2c2   : > { %6187 = vmatpush.bf16.msra.mxu0 %v7032_v28  ;;  %v7501_v28 = vld [vmem:[%s9360_s18 + $0x7b8] sm:$0xf0]  ;;  %v7480_v33 = vor.u32 %v8293_v21, %v7477_v30  ;;  %v8347_v30 = vld [vmem:[%s9360_s18 + $0x934] sm:$0xf] }
 0x2c3   : > { %6200 = vmatpush.bf16.msra.mxu1 %v7096_v40  ;;  %v5994_v3 = vpop.f32.mrf.mxu1  ;;  %v8249_v40 = vld [vmem:[%s9360_s18 + $0x624] sm:$0xf]  ;;  %v7504_v41 = vor.u32 %v8299_v35, %v7501_v28  ;;  %v7629_v21 = vld [vmem:[%s9360_s18 + $0x8b8] sm:$0xf0] }
 0x2c4   : > { %6213 = vmatpush.bf16.msra.mxu2 %v7160_v55  ;;  %v7301_v55 = vld [vmem:[%s9360_s18 + $0x628] sm:$0xf0]  ;;  %v8321_v28 = vld [vmem:[%s9360_s18 + $0x864] sm:$0xf] }
 0x2c5   : > { %6226 = vmatpush.bf16.msra.mxu3 %v7224_v42  ;;  %6188 = vmatmul.bf16.vlgmr.msra.gmra.mxu0 %v9599_v14  ;;  %v7328_v14 = vor.u32 %v8255_v0, %v7325_v1  ;;  %v7304_v56 = vor.u32 %v8249_v40, %v7301_v55  ;;  %v8263_v0 = vld [vmem:[%s9360_s18 + $0x694] sm:$0xf]  ;;  %v7653_v40 = vld [vmem:[%s9360_s18 + $0x8e8] sm:$0xf0]  ;;  %v8353_v55 = vld [vmem:[%s9360_s18 + $0x964] sm:$0xf] }
 0x2c6   : > { %6232 = vmatpush.bf16.msrb.mxu0 %v7344_v43  ;;  %6201 = vmatmul.bf16.vlgmr.msra.gmra.mxu1 %v9605_v18  ;;  %v7520_v18 = vor.u32 %v8303_v12, %v7517_v13  ;;  %v7365_v43 = vld [vmem:[%s9360_s18 + $0x6a8] sm:$0xf0]  ;;  %v8245_v13 = vld [vmem:[%s9360_s18 + $0x604] sm:$0xf] }
 0x2c7   : > { %6245 = vmatpush.bf16.msrb.mxu1 %v7408_v44  ;;  %6214 = vmatmul.bf16.vlgmr.msra.gmra.mxu2 %v9603_v17  ;;  %v8269_v17 = vld [vmem:[%s9360_s18 + $0x6c4] sm:$0xf]  ;;  %v7368_v59 = vor.u32 %v8265_v6, %v7365_v43  ;;  %v7717_v6 = vld [vmem:[%s9360_s18 + $0x968] sm:$0xf0] }
 0x2c8   : > { %6258 = vmatpush.bf16.msrb.mxu2 %v7472_v45  ;;  %6227 = vmatmul.bf16.vlgmr.msra.gmra.mxu3 %v9607_v19  ;;  %v5981_v19 = vpop.f32.mrf.mxu0  ;;  %v7384_v24 = vor.u32 %v8269_v17, %v7381_v62  ;;  %v8281_v44 = vld [vmem:[%s9360_s18 + $0x724] sm:$0xf]  ;;  %v7429_v45 = vld [vmem:[%s9360_s18 + $0x728] sm:$0xf0] }
 0x2c9   : > { %6271 = vmatpush.bf16.msrb.mxu3 %v7536_v53  ;;  %v5982_v23 = vadd.f32 %v5981_v19, %v9995_v7  ;;  %v7437_v7 = vld [vmem:[%s9360_s18 + $0x738] sm:$0xf0]  ;;  %v7493_v53 = vld [vmem:[%s9360_s18 + $0x7a8] sm:$0xf0]  ;;  %v8277_v17 = vld [vmem:[%s9360_s18 + $0x704] sm:$0xf] }
 0x2ca   : > { %6233 = vmatpush.bf16.msrb.mxu0 %v7336_v60  ;;  %v7440_v39 = vor.u32 %v8283_v34, %v7437_v7  ;;  %v6007_v42 = vpop.f32.mrf.mxu2  ;;  %v7432_v60 = vor.u32 %v8281_v44, %v7429_v45  ;;  %v7496_v1 = vor.u32 %v8297_v52, %v7493_v53  ;;  %v7413_v62 = vld [vmem:[%s9360_s18 + $0x708] sm:$0xf0]  ;;  %v7600_v34 = vor.u32 %v8323_v31, %v7597_v22  ;;  %v8335_v52 = vld [vmem:[%s9360_s18 + $0x8d4] sm:$0xf]  ;;  %v7757_v31 = vld [vmem:[%s9360_s18 + $0x9b8] sm:$0xf0] }
 0x2cb   : > { %6246 = vmatpush.bf16.msrb.mxu1 %v7400_v61  ;;  %v5995_v32 = vadd.f32 %v5994_v3, %v5982_v23  ;;  %v6020_v47 = vpop.f32.mrf.mxu3  ;;  %v5996_v57 = vpop.f32.mrf.mxu1  ;;  %v8247_v61 = vld [vmem:[%s9360_s18 + $0x614] sm:$0xf]  ;;  %v7416_v4 = vor.u32 %v8277_v17, %v7413_v62  ;;  %v7720_v45 = vor.u32 %v8353_v55, %v7717_v6  ;;  %v7568_v22 = vor.u32 %v8315_v16, %v7565_v20  ;;  %v8045_v16 = vld [vmem:[%s9360_s18 + $0xbf8] sm:$0xf0] }
 0x2cc   : > { %6259 = vmatpush.bf16.msrb.mxu2 %v7464_v63  ;;  %v7293_v63 = vld [vmem:[%s9360_s18 + $0x618] sm:$0xf0]  ;;  %v8339_v23 = vld [vmem:[%s9360_s18 + $0x8f4] sm:$0xf] }
 0x2cd   : > { %6272 = vmatpush.bf16.msrb.mxu3 %v7528_v8  ;;  %v6008_v46 = vadd.f32 %v6007_v42, %v5995_v32  ;;  %v8279_v8 = vld [vmem:[%s9360_s18 + $0x714] sm:$0xf]  ;;  %v7296_v12 = vor.u32 %v8247_v61, %v7293_v63  ;;  %v7789_v32 = vld [vmem:[%s9360_s18 + $0x9f8] sm:$0xf0]  ;;  %v7781_v42 = vld [vmem:[%s9360_s18 + $0x9e8] sm:$0xf0] }
 0x2ce   : > { %6234 = vmatpush.bf16.msrb.mxu0 %v7328_v14  ;;  %v7285_v14 = vld [vmem:[%s9360_s18 + $0x608] sm:$0xf0]  ;;  %v7709_v57 = vld [vmem:[%s9360_s18 + $0x958] sm:$0xf0]  ;;  %v8331_v17 = vld [vmem:[%s9360_s18 + $0x8b4] sm:$0xf] }
 0x2cf   : > { %6247 = vmatpush.bf16.msrb.mxu1 %v7392_v15  ;;  %v10066_v58 = vadd.f32 %v6020_v47, %v6008_v46  ;;  %v7360_v15 = vor.u32 %v8263_v0, %v7357_v5  ;;  %v7288_v3 = vor.u32 %v8245_v13, %v7285_v14  ;;  %v8319_v46 = vld [vmem:[%s9360_s18 + $0x854] sm:$0xf]  ;;  %v7581_v47 = vld [vmem:[%s9360_s18 + $0x858] sm:$0xf0]  ;;  %v8317_v0 = vld [vmem:[%s9360_s18 + $0x844] sm:$0xf] }
 0x2d0   : > { %6260 = vmatpush.bf16.msrb.mxu2 %v7456_v29  ;;  %v5983_v54 = vpop.f32.mrf.mxu0  ;;  %v7424_v29 = vor.u32 %v8279_v8, %v7421_v9  ;;  %v7637_v5 = vld [vmem:[%s9360_s18 + $0x8c8] sm:$0xf0]  ;;  %v8349_v8 = vld [vmem:[%s9360_s18 + $0x944] sm:$0xf]  ;;  %v8311_v6 = vld [vmem:[%s9360_s18 + $0x814] sm:$0xf] }
 0x2d1   : > { %6273 = vmatpush.bf16.msrb.mxu3 %v7520_v18  ;;  %v7488_v18 = vor.u32 %v8295_v10, %v7485_v11  ;;  %v7645_v54 = vld [vmem:[%s9360_s18 + $0x8d8] sm:$0xf0]  ;;  %v7701_v9 = vld [vmem:[%s9360_s18 + $0x948] sm:$0xf0]  ;;  %v8365_v10 = vld [vmem:[%s9360_s18 + $0x9c4] sm:$0xf] }
 0x2d2   : > { %6235 = vmatpush.bf16.msrb.mxu0 %v7320_v2  ;;  %v6009_v19 = vpop.f32.mrf.mxu2  ;;  %v7648_v61 = vor.u32 %v8335_v52, %v7645_v54  ;;  %v7765_v11 = vld [vmem:[%s9360_s18 + $0x9c8] sm:$0xf0]  ;;  %v7741_v52 = vld [vmem:[%s9360_s18 + $0x998] sm:$0xf0]  ;;  %v8309_v54 = vld [vmem:[%s9360_s18 + $0x804] sm:$0xf] }
 0x2d3   : > { %6248 = vmatpush.bf16.msrb.mxu1 %v7384_v24  ;;  %v6022_v2 = vpop.f32.mrf.mxu3  ;;  %v7661_v24 = vld [vmem:[%s9360_s18 + $0x8f8] sm:$0xf0]  ;;  %v8363_v19 = vld [vmem:[%s9360_s18 + $0x9b4] sm:$0xf] }
 0x2d4   : > { %6261 = vmatpush.bf16.msrb.mxu2 %v7448_v25  ;;  %v8355_v25 = vld [vmem:[%s9360_s18 + $0x974] sm:$0xf]  ;;  %v7664_v7 = vor.u32 %v8339_v23, %v7661_v24  ;;  %v7632_v23 = vor.u32 %v8331_v17, %v7629_v21  ;;  %v7557_v24 = vld [vmem:[%s9360_s18 + $0x828] sm:$0xf0]  ;;  %v8385_v21 = vld [vmem:[%s9360_s18 + $0xa64] sm:$0xf] }
 0x2d5   : > { %6274 = vmatpush.bf16.msrb.mxu3 %v7512_v27  ;;  %v8371_v27 = vld [vmem:[%s9360_s18 + $0x9f4] sm:$0xf]  ;;  %v7728_v35 = vor.u32 %v8355_v25, %v7725_v36  ;;  %v8329_v25 = vld [vmem:[%s9360_s18 + $0x8a4] sm:$0xf]  ;;  %v7760_v36 = vor.u32 %v8363_v19, %v7757_v31  ;;  %v7909_v31 = vld [vmem:[%s9360_s18 + $0xae8] sm:$0xf0] }
 0x2d6   : > { %6236 = vmatpush.bf16.msrb.mxu0 %v7312_v37  ;;  %v7589_v37 = vld [vmem:[%s9360_s18 + $0x868] sm:$0xf0] }
 0x2d7   : > { %6249 = vmatpush.bf16.msrb.mxu1 %v7376_v38  ;;  %v8337_v38 = vld [vmem:[%s9360_s18 + $0x8e4] sm:$0xf]  ;;  %v7592_v43 = vor.u32 %v8321_v28, %v7589_v37 }
 0x2d8   : > { %6262 = vmatpush.bf16.msrb.mxu2 %v7440_v39  ;;  %v7792_v39 = vor.u32 %v8371_v27, %v7789_v32  ;;  %v7656_v44 = vor.u32 %v8337_v38, %v7653_v40  ;;  %v8345_v27 = vld [vmem:[%s9360_s18 + $0x924] sm:$0xf]  ;;  %v7685_v32 = vld [vmem:[%s9360_s18 + $0x928] sm:$0xf0] }
 0x2d9   : > { %6275 = vmatpush.bf16.msrb.mxu3 %v7504_v41  ;;  %v8369_v41 = vld [vmem:[%s9360_s18 + $0x9e4] sm:$0xf]  ;;  %v7688_v55 = vor.u32 %v8345_v27, %v7685_v32  ;;  %v8399_v27 = vld [vmem:[%s9360_s18 + $0xad4] sm:$0xf] }
 0x2da   : > { %6237 = vmatpush.bf16.msrb.mxu0 %v7304_v56  ;;  %v7784_v53 = vor.u32 %v8369_v41, %v7781_v42  ;;  %v8351_v56 = vld [vmem:[%s9360_s18 + $0x954] sm:$0xf]  ;;  %v7549_v41 = vld [vmem:[%s9360_s18 + $0x818] sm:$0xf0] }
 0x2db   : > { %6250 = vmatpush.bf16.msrb.mxu1 %v7368_v59  ;;  %v8367_v59 = vld [vmem:[%s9360_s18 + $0x9d4] sm:$0xf]  ;;  %v7712_v63 = vor.u32 %v8351_v56, %v7709_v57  ;;  %v7541_v56 = vld [vmem:[%s9360_s18 + $0x808] sm:$0xf0] }
 0x2dc   : > { %6263 = vmatpush.bf16.msrb.mxu2 %v7432_v60  ;;  %v7773_v60 = vld [vmem:[%s9360_s18 + $0x9d8] sm:$0xf0]  ;;  %v8327_v42 = vld [vmem:[%s9360_s18 + $0x894] sm:$0xf] }
 0x2dd   : > { %6276 = vmatpush.bf16.msrb.mxu3 %v7496_v1  ;;  %v7573_v1 = vld [vmem:[%s9360_s18 + $0x848] sm:$0xf0]  ;;  %v8464_v32 = vld [vmem:[#allocation1] sm:$0xff] }
 0x2de   : > { %6238 = vmatpush.bf16.msrb.mxu0 %v7296_v12  ;;  %v7576_v13 = vor.u32 %v8317_v0, %v7573_v1  ;;  %v7669_v0 = vld [vmem:[%s9360_s18 + $0x908] sm:$0xf0]  ;;  %v8357_v1 = vld [vmem:[%s9360_s18 + $0x984] sm:$0xf] }
 0x2df   : > { %6251 = vmatpush.bf16.msrb.mxu1 %v7360_v15 }
 0x2e0   : > { %6264 = vmatpush.bf16.msrb.mxu2 %v7424_v29  ;;  %v7704_v29 = vor.u32 %v8349_v8, %v7701_v9  ;;  %v7853_v8 = vld [vmem:[%s9360_s18 + $0xa78] sm:$0xf0]  ;;  %v8403_v9 = vld [vmem:[%s9360_s18 + $0xaf4] sm:$0xf] }
 0x2e1   : > { %6277 = vmatpush.bf16.msrb.mxu3 %v7488_v18  ;;  %v7768_v18 = vor.u32 %v8365_v10, %v7765_v11  ;;  %v7544_v10 = vor.u32 %v8309_v54, %v7541_v56  ;;  %v7917_v11 = vld [vmem:[%s9360_s18 + $0xaf8] sm:$0xf0]  ;;  %v8413_v54 = vld [vmem:[%s9360_s18 + $0xb44] sm:$0xf]  ;;  %v7957_v56 = vld [vmem:[%s9360_s18 + $0xb48] sm:$0xf0] }
 0x2e2   : > { %6239 = vmatpush.bf16.msrb.mxu0 %v7288_v3  ;;  %v8313_v3 = vld [vmem:[%s9360_s18 + $0x824] sm:$0xf] }
 0x2e3   : > { %6252 = vmatpush.bf16.msrb.mxu1 %v7352_v26  ;;  %v6046_v14 = vpop.f32.mrf.mxu1  ;;  %v7560_v37 = vor.u32 %v8313_v3, %v7557_v24  ;;  %v8037_v3 = vld [vmem:[%s9360_s18 + $0xbe8] sm:$0xf0] }
 0x2e4   : > { %6265 = vmatpush.bf16.msrb.mxu2 %v7416_v4  ;;  %v7621_v4 = vld [vmem:[%s9360_s18 + $0x8a8] sm:$0xf0] }
 0x2e5   : > { %6278 = vmatpush.bf16.msrb.mxu3 %v7480_v33  ;;  %6240 = vmatmul.bf16.vlgmr.msrb.gmra.mxu0 %v9665_v48  ;;  %v7584_v48 = vor.u32 %v8319_v46, %v7581_v47  ;;  %v7624_v40 = vor.u32 %v8329_v25, %v7621_v4  ;;  %v7677_v46 = vld [vmem:[%s9360_s18 + $0x918] sm:$0xf0]  ;;  %v8359_v47 = vld [vmem:[%s9360_s18 + $0x994] sm:$0xf] }
 0x2e6   : > { %6284 = vmatpush.bf16.msra.mxu0 %v7600_v34  ;;  %6253 = vmatmul.bf16.vlgmr.msrb.gmra.mxu1 %v9669_v50  ;;  %v7776_v50 = vor.u32 %v8367_v59, %v7773_v60  ;;  %v8325_v60 = vld [vmem:[%s9360_s18 + $0x884] sm:$0xf]  ;;  %v7837_v4 = vld [vmem:[%s9360_s18 + $0xa58] sm:$0xf0] }
 0x2e7   : > { %6297 = vmatpush.bf16.msra.mxu1 %v7664_v7  ;;  %6266 = vmatmul.bf16.vlgmr.msrb.gmra.mxu2 %v9667_v49  ;;  %v8333_v49 = vld [vmem:[%s9360_s18 + $0x8c4] sm:$0xf] }
 0x2e8   : > { %6310 = vmatpush.bf16.msra.mxu2 %v7728_v35  ;;  %6279 = vmatmul.bf16.vlgmr.msrb.gmra.mxu3 %v9671_v51  ;;  %v6033_v51 = vpop.f32.mrf.mxu0  ;;  %v7640_v15 = vor.u32 %v8333_v49, %v7637_v5  ;;  %v8361_v7 = vld [vmem:[%s9360_s18 + $0x9a4] sm:$0xf]  ;;  %v7749_v35 = vld [vmem:[%s9360_s18 + $0x9a8] sm:$0xf0]  ;;  %v8387_v5 = vld [vmem:[%s9360_s18 + $0xa74] sm:$0xf] }
 0x2e9   : > { %6323 = vmatpush.bf16.msra.mxu3 %v7792_v39  ;;  %v6034_v12 = vadd.f32 %v6033_v51, %v10066_v58  ;;  %v7693_v58 = vld [vmem:[%s9360_s18 + $0x938] sm:$0xf0]  ;;  %v7733_v49 = vld [vmem:[%s9360_s18 + $0x988] sm:$0xf0]  ;;  %v7856_v17 = vor.u32 %v8387_v5, %v7853_v8 }
 0x2ea   : > { %6285 = vmatpush.bf16.msra.mxu0 %v7592_v43  ;;  %v7696_v2 = vor.u32 %v8347_v30, %v7693_v58  ;;  %v6059_v26 = vpop.f32.mrf.mxu2  ;;  %v7752_v43 = vor.u32 %v8361_v7, %v7749_v35  ;;  %v7736_v20 = vor.u32 %v8357_v1, %v7733_v49  ;;  %v7845_v30 = vld [vmem:[%s9360_s18 + $0xa68] sm:$0xf0]  ;;  %v8401_v58 = vld [vmem:[%s9360_s18 + $0xae4] sm:$0xf]  ;;  %v8415_v7 = vld [vmem:[%s9360_s18 + $0xb54] sm:$0xf] }
 0x2eb   : > { %6298 = vmatpush.bf16.msra.mxu1 %v7656_v44  ;;  %v6047_v62 = vadd.f32 %v6046_v14, %v6034_v12  ;;  %v6072_v34 = vpop.f32.mrf.mxu3  ;;  %v6048_v38 = vpop.f32.mrf.mxu1  ;;  %v7613_v44 = vld [vmem:[%s9360_s18 + $0x898] sm:$0xf0]  ;;  %v8419_v12 = vld [vmem:[%s9360_s18 + $0xb74] sm:$0xf]  ;;  %v7848_v24 = vor.u32 %v8385_v21, %v7845_v30  ;;  %v7912_v25 = vor.u32 %v8401_v58, %v7909_v31  ;;  %v7877_v21 = vld [vmem:[%s9360_s18 + $0xaa8] sm:$0xf0] }
 0x2ec   : > { %6311 = vmatpush.bf16.msra.mxu2 %v7720_v45  ;;  %v8343_v45 = vld [vmem:[%s9360_s18 + $0x914] sm:$0xf]  ;;  %v7616_v57 = vor.u32 %v8327_v42, %v7613_v44  ;;  %v7965_v35 = vld [vmem:[%s9360_s18 + $0xb58] sm:$0xf0]  ;;  %v7829_v44 = vld [vmem:[%s9360_s18 + $0xa48] sm:$0xf0] }
 0x2ed   : > { %6324 = vmatpush.bf16.msra.mxu3 %v7784_v53  ;;  %v6060_v33 = vadd.f32 %v6059_v26, %v6047_v62  ;;  %v7552_v53 = vor.u32 %v8311_v6, %v7549_v41  ;;  %v7680_v59 = vor.u32 %v8343_v45, %v7677_v46  ;;  %v8383_v26 = vld [vmem:[%s9360_s18 + $0xa54] sm:$0xf]  ;;  %v8381_v41 = vld [vmem:[%s9360_s18 + $0xa44] sm:$0xf]  ;;  %v7821_v1 = vld [vmem:[%s9360_s18 + $0xa38] sm:$0xf0] }
 0x2ee   : > { %6286 = vmatpush.bf16.msra.mxu0 %v7584_v48  ;;  %v7605_v48 = vld [vmem:[%s9360_s18 + $0x888] sm:$0xf0]  ;;  %v8431_v38 = vld [vmem:[%s9360_s18 + $0xbd4] sm:$0xf]  ;;  %v7840_v6 = vor.u32 %v8383_v26, %v7837_v4  ;;  %v8397_v45 = vld [vmem:[%s9360_s18 + $0xac4] sm:$0xf] }
 0x2ef   : > { %6299 = vmatpush.bf16.msra.mxu1 %v7648_v61  ;;  %v10137_v39 = vadd.f32 %v6072_v34, %v6060_v33  ;;  %v8341_v61 = vld [vmem:[%s9360_s18 + $0x904] sm:$0xf]  ;;  %v7608_v14 = vor.u32 %v8325_v60, %v7605_v48  ;;  %v7901_v34 = vld [vmem:[%s9360_s18 + $0xad8] sm:$0xf0]  ;;  %v8468_v46 = vld [vmem:[%s9354_s14] sm:$0x3]  ;;  %v7832_v60 = vor.u32 %v8381_v41, %v7829_v44 }
 0x2f0   : > { %6312 = vmatpush.bf16.msra.mxu2 %v7712_v63  ;;  %v6035_v28 = vpop.f32.mrf.mxu0  ;;  %v7744_v63 = vor.u32 %v8359_v47, %v7741_v52  ;;  %v7904_v42 = vor.u32 %v8399_v27, %v7901_v34  ;;  %v3787_v47 = vperm.slane %v8468_v46, 1  ;;  %v8395_v49 = vld [vmem:[%s9360_s18 + $0xab4] sm:$0xf]  ;;  %v8409_v30 = vld [vmem:[%s9360_s18 + $0xb24] sm:$0xf] }
 0x2f1   : > { %6325 = vmatpush.bf16.msra.mxu3 %v7776_v50  ;;  %v8465_v28 = vld [vmem:[#allocation1 + $0x12] sm:$0xff]  ;;  %v8375_v26 = vld [vmem:[%s9360_s18 + $0xa14] sm:$0xf]  ;;  %v7805_v4 = vld [vmem:[%s9360_s18 + $0xa18] sm:$0xf0] }
 0x2f2   : > { %6287 = vmatpush.bf16.msra.mxu0 %v7576_v13  ;;  %v6061_v50 = vpop.f32.mrf.mxu2  ;;  %v7981_v13 = vld [vmem:[%s9360_s18 + $0xb78] sm:$0xf0]  ;;  %v7941_v58 = vld [vmem:[%s9360_s18 + $0xb28] sm:$0xf0]  ;;  %v8391_v27 = vld [vmem:[%s9360_s18 + $0xa94] sm:$0xf] }
 0x2f3   : > { %6300 = vmatpush.bf16.msra.mxu1 %v7640_v15  ;;  %v6074_v51 = vpop.f32.mrf.mxu3  ;;  %v7672_v15 = vor.u32 %v8341_v61, %v7669_v0  ;;  %v7984_v62 = vor.u32 %v8419_v12, %v7981_v13  ;;  %v8379_v0 = vld [vmem:[%s9360_s18 + $0xa34] sm:$0xf]  ;;  %v8013_v12 = vld [vmem:[%s9360_s18 + $0xbb8] sm:$0xf0]  ;;  %v7797_v41 = vld [vmem:[%s9360_s18 + $0xa08] sm:$0xf0] }
 0x2f4   : > { %6313 = vmatpush.bf16.msra.mxu2 %v7704_v29  ;;  %v8435_v29 = vld [vmem:[%s9360_s18 + $0xbf4] sm:$0xf]  ;;  %v7869_v34 = vld [vmem:[%s9360_s18 + $0xa98] sm:$0xf0]  ;;  %v8405_v46 = vld [vmem:[%s9360_s18 + $0xb04] sm:$0xf] }
 0x2f5   : > { %6326 = vmatpush.bf16.msra.mxu3 %v7768_v18  ;;  %v7920_v18 = vor.u32 %v8403_v9, %v7917_v11  ;;  %v8048_v19 = vor.u32 %v8435_v29, %v8045_v16  ;;  %v7885_v9 = vld [vmem:[%s9360_s18 + $0xab8] sm:$0xf0]  ;;  %v8411_v51 = vld [vmem:[%s9360_s18 + $0xb34] sm:$0xf]  ;;  %v8377_v16 = vld [vmem:[%s9360_s18 + $0xa24] sm:$0xf] }
 0x2f6   : > { %6288 = vmatpush.bf16.msra.mxu0 %v7568_v22  ;;  %v8417_v22 = vld [vmem:[%s9360_s18 + $0xb64] sm:$0xf]  ;;  %v8427_v11 = vld [vmem:[%s9360_s18 + $0xbb4] sm:$0xf] }
 0x2f7   : > { %6301 = vmatpush.bf16.msra.mxu1 %v7632_v23  ;;  %v7973_v23 = vld [vmem:[%s9360_s18 + $0xb68] sm:$0xf0] }
 0x2f8   : > { %6314 = vmatpush.bf16.msra.mxu2 %v7696_v2  ;;  %v8433_v2 = vld [vmem:[%s9360_s18 + $0xbe4] sm:$0xf] }
 0x2f9   : > { %6327 = vmatpush.bf16.msra.mxu3 %v7760_v36  ;;  %v7976_v36 = vor.u32 %v8417_v22, %v7973_v23  ;;  %v8040_v33 = vor.u32 %v8433_v2, %v8037_v3  ;;  %v8425_v22 = vld [vmem:[%s9360_s18 + $0xba4] sm:$0xf]  ;;  %v8005_v23 = vld [vmem:[%s9360_s18 + $0xba8] sm:$0xf0] }
 0x2fa   : > { %6289 = vmatpush.bf16.msra.mxu0 %v7560_v37  ;;  %v8466_v37 = vld [vmem:[#allocation1 + $0x9] sm:$0xff] }
 0x2fb   : > { %6302 = vmatpush.bf16.msra.mxu1 %v7624_v40  ;;  %v8029_v40 = vld [vmem:[%s9360_s18 + $0xbd8] sm:$0xf0] }
 0x2fc   : > { %6315 = vmatpush.bf16.msra.mxu2 %v7688_v55  ;;  %v8467_v55 = vld [vmem:[#allocation1 + $0x1b] sm:$0xff]  ;;  %v8032_v52 = vor.u32 %v8431_v38, %v8029_v40  ;;  %v7808_v38 = vor.u32 %v8375_v26, %v7805_v4  ;;  %v7872_v40 = vor.u32 %v8391_v27, %v7869_v34 }
 0x2fd   : > { %6328 = vmatpush.bf16.msra.mxu3 %v7752_v43  ;;  %v7968_v43 = vor.u32 %v8415_v7, %v7965_v35  ;;  %v8407_v7 = vld [vmem:[%s9360_s18 + $0xb14] sm:$0xf]  ;;  %v7933_v35 = vld [vmem:[%s9360_s18 + $0xb18] sm:$0xf0] }
 0x2fe   : > { %6290 = vmatpush.bf16.msra.mxu0 %v7552_v53  ;;  %v7893_v53 = vld [vmem:[%s9360_s18 + $0xac8] sm:$0xf0] }
 0x2ff   : > { %6303 = vmatpush.bf16.msra.mxu1 %v7616_v57  ;;  %v8429_v57 = vld [vmem:[%s9360_s18 + $0xbc4] sm:$0xf]  ;;  %v7896_v61 = vor.u32 %v8397_v45, %v7893_v53  ;;  %v7861_v45 = vld [vmem:[%s9360_s18 + $0xa88] sm:$0xf0] }
 0x300   : > { %6316 = vmatpush.bf16.msra.mxu2 %v7680_v59  ;;  %v8021_v59 = vld [vmem:[%s9360_s18 + $0xbc8] sm:$0xf0]  ;;  %v8421_v53 = vld [vmem:[%s9360_s18 + $0xb84] sm:$0xf] }
 0x301   : > { %6329 = vmatpush.bf16.msra.mxu3 %v7744_v63  ;;  %v7960_v63 = vor.u32 %v8413_v54, %v7957_v56  ;;  %v8024_v8 = vor.u32 %v8429_v57, %v8021_v59  ;;  %v7989_v54 = vld [vmem:[%s9360_s18 + $0xb88] sm:$0xf0] }
 0x302   : > { %6291 = vmatpush.bf16.msra.mxu0 %v7544_v10  ;;  %v6085_v48 = vpop.f32.mrf.mxu0  ;;  %v7949_v10 = vld [vmem:[%s9360_s18 + $0xb38] sm:$0xf0] }
 0x303   : > { %6304 = vmatpush.bf16.msra.mxu1 %v7608_v14  ;;  %v6086_v50 = vadd.f32 %v6085_v48, %v3787_v47  ;;  %v6098_v5 = vpop.f32.mrf.mxu1  ;;  %v7824_v14 = vor.u32 %v8379_v0, %v7821_v1  ;;  %v7952_v29 = vor.u32 %v8411_v51, %v7949_v10  ;;  %v7925_v47 = vld [vmem:[%s9360_s18 + $0xb08] sm:$0xf0]  ;;  %v8469_v48 = vld [vmem:[#allocation1 + $0x24] sm:$0xff] }
 0x304   : > { %6317 = vmatpush.bf16.msra.mxu2 %v7672_v15  ;;  %v7888_v15 = vor.u32 %v8395_v49, %v7885_v9  ;;  %v7928_v59 = vor.u32 %v8405_v46, %v7925_v47  ;;  %v8472_v0 = vld [vmem:[#allocation1 + $0x3f] sm:$0xff] }
 0x305   : > { %6330 = vmatpush.bf16.msra.mxu3 %v7736_v20  ;;  %6292 = vmatmul.bf16.vlgmr.msra.gmra.mxu0 %v8464_v32  ;;  %v6099_v13 = vadd.f32 %v6098_v5, %v6086_v50  ;;  %v7813_v20 = vld [vmem:[%s9360_s18 + $0xa28] sm:$0xf0] }
 0x306   : > { %6336 = vmatpush.bf16.msrb.mxu0 %v7856_v17  ;;  %6305 = vmatmul.bf16.vlgmr.msra.gmra.mxu1 %v8466_v37  ;;  %v8393_v17 = vld [vmem:[%s9360_s18 + $0xaa4] sm:$0xf]  ;;  %v7816_v2 = vor.u32 %v8377_v16, %v7813_v20  ;;  %v7997_v37 = vld [vmem:[%s9360_s18 + $0xb98] sm:$0xf0] }
 0x307   : > { %6349 = vmatpush.bf16.msrb.mxu1 %v7920_v18  ;;  %6318 = vmatmul.bf16.vlgmr.msra.gmra.mxu2 %v8465_v28  ;;  %v8423_v28 = vld [vmem:[%s9360_s18 + $0xb94] sm:$0xf] }
 0x308   : > { %6362 = vmatpush.bf16.msrb.mxu2 %v7984_v62  ;;  %6331 = vmatmul.bf16.vlgmr.msra.gmra.mxu3 %v8467_v55  ;;  %v8016_v62 = vor.u32 %v8427_v11, %v8013_v12  ;;  %v7936_v55 = vor.u32 %v8407_v7, %v7933_v35  ;;  %v8000_v44 = vor.u32 %v8423_v28, %v7997_v37 }
 0x309   : > { %6375 = vmatpush.bf16.msrb.mxu3 %v8048_v19 }
 0x30a   : > { %6337 = vmatpush.bf16.msrb.mxu0 %v7848_v24  ;;  %v6111_v18 = vpop.f32.mrf.mxu2  ;;  %v6087_v24 = vpop.f32.mrf.mxu0 }
 0x30b   : > { %6350 = vmatpush.bf16.msrb.mxu1 %v7912_v25  ;;  %v6112_v19 = vadd.f32 %v6111_v18, %v6099_v13  ;;  %v6124_v31 = vpop.f32.mrf.mxu3  ;;  %v7880_v25 = vor.u32 %v8393_v17, %v7877_v21  ;;  %v6100_v32 = vpop.f32.mrf.mxu1 }
 0x30c   : > { %6363 = vmatpush.bf16.msrb.mxu2 %v7976_v36  ;;  %v7944_v36 = vor.u32 %v8409_v30, %v7941_v58 }
 0x30d   : > { %6376 = vmatpush.bf16.msrb.mxu3 %v8040_v33  ;;  %v6125_v3 = vadd.f32 %v6124_v31, %v6112_v19  ;;  %v8008_v33 = vor.u32 %v8425_v22, %v8005_v23 }
 0x30e   : > { %6338 = vmatpush.bf16.msrb.mxu0 %v7840_v6  ;;  %v8373_v6 = vld [vmem:[%s9360_s18 + $0xa04] sm:$0xf] }
 0x30f   : > { %6351 = vmatpush.bf16.msrb.mxu1 %v7904_v42  ;;  %v8389_v42 = vld [vmem:[%s9360_s18 + $0xa84] sm:$0xf]  ;;  %v7800_v56 = vor.u32 %v8373_v6, %v7797_v41 }
 0x310   : > { %6364 = vmatpush.bf16.msrb.mxu2 %v7968_v43  ;;  %v7864_v57 = vor.u32 %v8389_v42, %v7861_v45 }
 0x311   : > { %6377 = vmatpush.bf16.msrb.mxu3 %v8032_v52 }
 0x312   : > { %6339 = vmatpush.bf16.msrb.mxu0 %v7832_v60  ;;  %v6113_v43 = vpop.f32.mrf.mxu2  ;;  %v7992_v60 = vor.u32 %v8421_v53, %v7989_v54  ;;  %v6388_v53 = vmul.f32 0.2, %v10137_v39 }
 0x313   : > { %6352 = vmatpush.bf16.msrb.mxu1 %v7896_v61  ;;  %v6126_v52 = vpop.f32.mrf.mxu3  ;;  %v8470_v61 = vld [vmem:[#allocation1 + $0x2d] sm:$0xff]  ;;  %v6393_v43 = vld [vmem:[%s3389_s17] sm:$0x3] }
 0x314   : > { %6365 = vmatpush.bf16.msrb.mxu2 %v7960_v63  ;;  %v8471_v63 = vld [vmem:[#allocation1 + $0x36] sm:$0xff]  ;;  %v6394_v52 = vunpack.c.l.bf16 %v6393_v43 }
 0x315   : > { %6378 = vmatpush.bf16.msrb.mxu3 %v8024_v8 }
 0x316   : > { %6340 = vmatpush.bf16.msrb.mxu0 %v7824_v14 }
 0x317   : > { %6353 = vmatpush.bf16.msrb.mxu1 %v7888_v15 }
 0x318   : > { %6366 = vmatpush.bf16.msrb.mxu2 %v7952_v29 }
 0x319   : > { %6379 = vmatpush.bf16.msrb.mxu3 %v8016_v62 }
 0x31a   : > { %6341 = vmatpush.bf16.msrb.mxu0 %v7816_v2 }
 0x31b   : > { %6354 = vmatpush.bf16.msrb.mxu1 %v7880_v25 }
 0x31c   : > { %6367 = vmatpush.bf16.msrb.mxu2 %v7944_v36 }
 0x31d   : > { %6380 = vmatpush.bf16.msrb.mxu3 %v8008_v33 }
 0x31e   : > { %6342 = vmatpush.bf16.msrb.mxu0 %v7808_v38 }
 0x31f   : > { %6355 = vmatpush.bf16.msrb.mxu1 %v7872_v40 }
 0x320   : > { %6368 = vmatpush.bf16.msrb.mxu2 %v7936_v55 }
 0x321   : > { %6381 = vmatpush.bf16.msrb.mxu3 %v8000_v44 }
 0x322   : > { %6343 = vmatpush.bf16.msrb.mxu0 %v7800_v56  ;;  %v6137_v1 = vpop.f32.mrf.mxu0  ;;  %v6396_v56 = vperm.slane %v6394_v52, 0 }
 0x323   : > { %6356 = vmatpush.bf16.msrb.mxu1 %v7864_v57  ;;  %v6138_v49 = vadd.f32 %v6137_v1, %v6125_v3  ;;  %v6150_v50 = vpop.f32.mrf.mxu1 }
 0x324   : > { %6369 = vmatpush.bf16.msrb.mxu2 %v7928_v59 }
 0x325   : > { %6382 = vmatpush.bf16.msrb.mxu3 %v7992_v60  ;;  %6344 = vmatmul.bf16.vlgmr.msrb.gmra.mxu0 %v8469_v48  ;;  %v6151_v5 = vadd.f32 %v6150_v50, %v6138_v49  ;;  %v6400_v49 = vperm.slane %v6396_v56, 0 }
 0x326   : > { %6357 = vmatmul.bf16.vlgmr.msrb.gmra.mxu1 %v8470_v61  ;;  %v6397_v61 = vperm.slane %v6394_v52, 2 }
 0x327   : > { %6370 = vmatmul.bf16.vlgmr.msrb.gmra.mxu2 %v8471_v63 }
 0x328   : > { %6383 = vmatmul.bf16.vlgmr.msrb.gmra.mxu3 %v8472_v0  ;;  %v6390_v0 = vmax.f32 %v10137_v39, %v6388_v53 }
 0x32a   : > { %v6163_v8 = vpop.f32.mrf.mxu2  ;;  %v6139_v11 = vpop.f32.mrf.mxu0 }
 0x32b   : > { %v6164_v9 = vadd.f32 %v6163_v8, %v6151_v5  ;;  %v6176_v51 = vpop.f32.mrf.mxu3  ;;  %v6152_v12 = vpop.f32.mrf.mxu1  ;;  %v6401_v5 = vperm.slane %v6397_v61, 0 }
 0x32d   : > { %v6177_v10 = vadd.f32 %v6176_v51, %v6164_v9  ;;  %v6402_v9 = vmul.f32 %v6400_v49, %v6390_v0 }
 0x32f   : > { %v6405_v12 = vsel %vm6404_vm1, %v6402_v9, 0.0 }
 0x332   : > { %v6165_v13 = vpop.f32.mrf.mxu2 }
 0x333   : > { %v6178_v14 = vpop.f32.mrf.mxu3 }
 0x342   : > { %v6189_v15 = vpop.f32.mrf.mxu0 }
 0x343   : > { %v6190_v29 = vadd.f32 %v6189_v15, %v6177_v10  ;;  %v6202_v16 = vpop.f32.mrf.mxu1  ;;  %v6392_v15 = vld [vmem:[#allocation2] sm:$0x3] }
 0x345   : > { %v6203_v20 = vadd.f32 %v6202_v16, %v6190_v29 }
 0x34a   : > { %v6215_v17 = vpop.f32.mrf.mxu2  ;;  %v6191_v21 = vpop.f32.mrf.mxu0 }
 0x34b   : > { %v6216_v18 = vadd.f32 %v6215_v17, %v6203_v20  ;;  %v6228_v62 = vpop.f32.mrf.mxu3  ;;  %v6204_v30 = vpop.f32.mrf.mxu1 }
 0x34d   : > { %v6229_v58 = vadd.f32 %v6228_v62, %v6216_v18 }
 0x352   : > { %v6217_v19 = vpop.f32.mrf.mxu2 }
 0x353   : > { %v6230_v31 = vpop.f32.mrf.mxu3 }
 0x362   : > { %v6241_v22 = vpop.f32.mrf.mxu0 }
 0x363   : > { %v6254_v23 = vpop.f32.mrf.mxu1  ;;  %v6242_v32 = vadd.f32 %v6241_v22, %v6229_v58 }
 0x365   : > { %v6255_v28 = vadd.f32 %v6254_v23, %v6242_v32 }
 0x36a   : > { %v6267_v2 = vpop.f32.mrf.mxu2  ;;  %v6243_v24 = vpop.f32.mrf.mxu0 }
 0x36b   : > { %v6280_v3 = vpop.f32.mrf.mxu3  ;;  %v6256_v25 = vpop.f32.mrf.mxu1  ;;  %v6268_v37 = vadd.f32 %v6267_v2, %v6255_v28 }
 0x36d   : > { %v6281_v55 = vadd.f32 %v6280_v3, %v6268_v37 }
 0x372   : > { %v6269_v36 = vpop.f32.mrf.mxu2 }
 0x373   : > { %v6282_v26 = vpop.f32.mrf.mxu3 }
 0x382   : > { %v6293_v4 = vpop.f32.mrf.mxu0 }
 0x383   : > { %v6306_v27 = vpop.f32.mrf.mxu1  ;;  %v6294_v6 = vadd.f32 %v6293_v4, %v6281_v55 }
 0x385   : > { %v6307_v41 = vadd.f32 %v6306_v27, %v6294_v6 }
 0x38a   : > { %v6319_v33 = vpop.f32.mrf.mxu2  ;;  %v6295_v7 = vpop.f32.mrf.mxu0 }
 0x38b   : > { %v6332_v34 = vpop.f32.mrf.mxu3  ;;  %v6308_v35 = vpop.f32.mrf.mxu1  ;;  %v6320_v42 = vadd.f32 %v6319_v33, %v6307_v41 }
 0x38d   : > { %v6333_v44 = vadd.f32 %v6332_v34, %v6320_v42 }
 0x392   : > { %v6321_v38 = vpop.f32.mrf.mxu2 }
 0x393   : > { %v6334_v40 = vpop.f32.mrf.mxu3 }
 0x3a2   : > { %v6345_v45 = vpop.f32.mrf.mxu0 }
 0x3a3   : > { %v6358_v46 = vpop.f32.mrf.mxu1  ;;  %v6346_v47 = vadd.f32 %v6345_v45, %v6333_v44 }
 0x3a5   : > { %v6359_v54 = vadd.f32 %v6358_v46, %v6346_v47 }
 0x3aa   : > { %v6371_v57 = vpop.f32.mrf.mxu2  ;;  %v6347_v48 = vpop.f32.mrf.mxu0 }
 0x3ab   : > { %v6372_v59 = vadd.f32 %v6371_v57, %v6359_v54  ;;  %v6384_v60 = vpop.f32.mrf.mxu3  ;;  %v6360_v63 = vpop.f32.mrf.mxu1 }
 0x3ad   : > { %v6385_v1 = vadd.f32 %v6384_v60, %v6372_v59 }
 0x3af   : > { %v6389_v50 = vmul.f32 0.2, %v6385_v1 }
 0x3b1   : > { %v6391_v8 = vmax.f32 %v6385_v1, %v6389_v50 }
 0x3b2   : > { %v6373_v51 = vpop.f32.mrf.mxu2 }
 0x3b3   : > { %v6386_v10 = vpop.f32.mrf.mxu3  ;;  %v6403_v11 = vmul.f32 %v6401_v5, %v6391_v8 }
 0x3b5   : > { %v6406_v13 = vsel %vm6404_vm1, %v6403_v11, 0.0 }
 0x3b6   : > { %v6407_v14 = vadd.f32 %v6406_v13, %v6405_v12 }
 0x3b8   : > { %6408 = vadd.xlane.f32.xlu0 %v6407_v14 }
 0x42a   : > { %6416 = sbr.rel (%p8049_p10) target bundleno = 1111 (0x457), region = 100 }
 0x42b   : > { %v6409_v29 = vpop.xlane.xlu0 %6408 }
 0x42c   : > { %v6410_v16 = vadd.f32 %v6409_v29, %v6392_v15 }
 0x42e   : > { %6412 = vst.msk [vmem:[#allocation2] sm:$0x3] %vm6411_vm2, %v6410_v16 }
 0x42f   : > { %v8473_v20 = vld [vmem:[#allocation3] ss:$0 sm:$0xff] }
 0x435   : > { %v6417_v39 = vld [vmem:[#allocation2] sm:$0x3] }
 0x436   : > { %v6422_v17 = vadd.f32 %v8473_v20, %v6417_v39 }
 0x438   : > { %v6423_v18 = vsub.f32 0.0, %v6422_v17 }
 0x43a   : > { %v6424_v62 = vmul.f32 1.442695, %v6423_v18 }
 0x43c   : > { %8474 = vpow2.f32 %v6424_v62 }
 0x442   : > { %v8475_v21 = vpop.eup %8474 }
 0x443   : > { %v6426_v30 = vadd.f32 1.0, %v8475_v21 }
 0x445   : > { %8476 = vrcp.f32 %v6426_v30  ;;  %v6438_v31 = vand.u32 2147483648, %v6426_v30  ;;  %vm6432_vm3 = vweird.f32 %v6426_v30  ;;  %v6436_v23 = vand.u32 2147483647, %v6426_v30 }
 0x447   : > { %v6439_v3 = vor.u32 1.1754944e-38, %v6438_v31  ;;  %vm6437_vm6 = vcmp.eq.f32.partialorder %v6436_v23, 8.507059e+37 }
 0x44b   : > { %v8477_v58 = vpop.eup %8476 }
 0x44c   : > { %v6428_v19 = vmul.f32 %v8477_v58, %v6426_v30  ;;  %vm6433_vm4 = vweird.f32 %v8477_v58 }
 0x44d   : > { %vm6434_vm5 = vmor %vm6432_vm3, %vm6433_vm4 }
 0x44e   : > { %v6429_v22 = vsub.f32 1.0, %v6428_v19 }
 0x450   : > { %v6430_v2 = vmul.f32 %v8477_v58, %v6429_v22 }
 0x452   : > { %v6431_v24 = vadd.f32 %v8477_v58, %v6430_v2 }
 0x454   : > { %v6435_v25 = vsel %vm6434_vm5, %v8477_v58, %v6431_v24 }
 0x455   : > { %v6440_v36 = vsel %vm6437_vm6, %v6439_v3, %v6435_v25 }
 0x456   : > { %6442 = vst.msk [vmem:[%s10248_s5] sm:$0x3] %vm6411_vm2, %v6440_v36 }
 0x457 PF: > { %p14_p11 = scmp.ge.s32.totalorder %s8555_s23, 6   ;;  %s10249_s20 = smov %s8496_s21 }
 0x458   : > { %s10250_s21 = smov %s8564_s26  ;;  %s10251_s22 = smov %s8555_s23 }
 0x459   :  { %16 = sbr.rel (!%p14_p11) target bundleno = 5 (0x5), region = 143 }

</bundles_post_ra>
